<compile_context>
chip_gen: v6e
topology: v6e:2x2x1
jax: 0.10.0
libtpu: 0.0.40
codegen_flags: <defaults>
</compile_context>

<pallas_src>
import functools

import jax
import jax.numpy as jnp
from jax.experimental import pallas as pl
from jax.experimental.pallas import tpu as pltpu


# ---------------------------------------------------------------------------
# Pallas kernel
# ---------------------------------------------------------------------------
def detector_kernel(tok_ref, wp_ref, bp_ref, wup_ref, bup_ref,
                    proj_ref, up_top_ref, up_bot_ref, down_ref,
                    *, rh, n_w, c_up):
    # tok_ref    : (1, rh*n_w, C_in)     tokens (bf16 preferred)
    # wp_ref     : (C_in, C_mid)  bf16   bp_ref : (1, C_mid)   f32
    # wup_ref    : (C_mid, 4*C_up) bf16  bup_ref: (1, 4*C_up)  f32
    # proj_ref   : (1, rh*n_w, C_mid)            bf16 out
    # up_top_ref : (1, rh*n_w, 2*C_up)           bf16 out, (di=0, dj in {0,1})
    # up_bot_ref : (1, rh*n_w, 2*C_up)           bf16 out, (di=1, dj in {0,1})
    # down_ref   : (1, (rh//2)*(n_w//2), C_mid)  bf16 out
    t = tok_ref[0].astype(jnp.bfloat16)                          # (P, C_in)

    # --- proj: 1x1 Conv2d(768 -> 1024) == token-wise matmul (bf16 MXU, f32 acc)
    y = jnp.dot(t, wp_ref[...], preferred_element_type=jnp.float32) + bp_ref[...]
    proj_ref[0] = y.astype(proj_ref.dtype)
    y_bf = y.astype(jnp.bfloat16)

    # --- upsample2x: ConvTranspose2d(1024 -> 512, k=2, s=2) ------------------
    # One matmul per output-row offset di; each half is lane-dense (2*C_up wide)
    # and stored immediately, so the peak f32 temp is (P, 2*C_up), not 4*C_up.
    u_top = jnp.dot(y_bf, wup_ref[:, :2 * c_up],
                    preferred_element_type=jnp.float32) + bup_ref[:, :2 * c_up]
    up_top_ref[0] = u_top.astype(up_top_ref.dtype)
    u_bot = jnp.dot(y_bf, wup_ref[:, 2 * c_up:],
                    preferred_element_type=jnp.float32) + bup_ref[:, 2 * c_up:]
    up_bot_ref[0] = u_bot.astype(up_bot_ref.dtype)

    # --- downsample2x: MaxPool2d(k=2, s=2) on the f32 proj activations -------
    c_mid = y.shape[-1]
    # vertical (di) max: pairwise max of adjacent image rows (major-dim split,
    # inner (n_w, C_mid) tile untouched -> no relayout of the full y tile)
    yv = jnp.max(y.reshape(rh // 2, 2, n_w, c_mid), axis=1)      # (rh//2, n_w, C_mid)
    # horizontal (dj) max on the halved tensor
    pooled = jnp.max(yv.reshape(rh // 2, n_w // 2, 2, c_mid), axis=2)
    down_ref[0] = pooled.reshape((rh // 2) * (n_w // 2), c_mid).astype(down_ref.dtype)


# ---------------------------------------------------------------------------
# Device / tiling plan helpers
# ---------------------------------------------------------------------------
def _vmem_capacity_bytes():
    # Narrow capability query; fall back to the smallest per-core VMEM (v7x).
    try:
        return int(pltpu.get_tpu_info().vmem_capacity_bytes)
    except Exception:
        return 64 * 1024 * 1024


def _device_plan():
    vmem = _vmem_capacity_bytes()
    if vmem >= 100 * 1024 * 1024:             # v5e / v6e: 128 MiB VMEM
        return 2048, 96 * 1024 * 1024
    return 512, 48 * 1024 * 1024              # v7x: 64 MiB per TensorCore


def _pick_row_tile(n_h, n_w, batch, target_tokens):
    """Largest even divisor rh of n_h whose token tile rh*n_w (and pooled tile)
    is sublane-aligned and <= target_tokens; prefers >= 2 total grid steps so
    both TensorCores (v7x megacore) get work. Full grid is the legal fallback."""
    def ok(rh):
        return (n_h % rh == 0 and rh % 2 == 0
                and (rh * n_w) % 8 == 0
                and ((rh // 2) * (n_w // 2)) % 8 == 0)

    rh = n_h                                  # full-extent block: always legal
    if n_h * n_w > target_tokens:
        for cand in range(2, n_h, 2):
            if ok(cand) and cand * n_w <= target_tokens:
                rh = cand
    if batch * (n_h // rh) < 2:               # keep both TensorCores busy
        for cand in range(n_h - 2, 1, -2):
            if ok(cand):
                rh = cand
                break
    return rh


def _single_buffer_kwargs():
    """Kwargs that single-buffer constant (grid-invariant) operands, if this
    JAX supports BlockSpec(pipeline_mode=...). Narrow construction-time probe;
    real kernel compile errors are never swallowed."""
    if not hasattr(pl, "Buffered"):
        return {}
    try:
        pl.BlockSpec((8, 128), lambda i, j: (0, 0), pipeline_mode=pl.Buffered(1))
    except (TypeError, ValueError):
        return {}
    return {"pipeline_mode": pl.Buffered(1)}


# ---------------------------------------------------------------------------
# Wrapper: pallas_call + NCHW layout plumbing (glue).
# ---------------------------------------------------------------------------
def vit_detector_forward(tokens, wp_mat, bp, wup, bup, *, out_dtype=jnp.bfloat16):
    """tokens: [B, 1+N, C_in] ViT output (CLS first). Returns (x_up, x, x_down) NCHW.

    wp_mat : (C_in, C_mid)        nn.Conv2d(768, 1024, 1) weight as a matmul
    bp     : (C_mid,)
    wup    : (C_mid, C_up, 2, 2)  nn.ConvTranspose2d(1024, 512, 2, 2) weight
    bup    : (C_up,)
    """
    B, T, C_in = tokens.shape
    N = T - 1
    n_h = n_w = int(round(N ** 0.5))
    assert n_h * n_w == N and n_h % 2 == 0 and n_w % 2 == 0, \
        "patch grid must be a perfect square with even side"
    C_mid = wp_mat.shape[1]
    C_up = wup.shape[1]

    tok = tokens[:, 1:, :]                    # drop CLS token (glue)

    # bf16 weights (half DMA/VMEM, MXU-native); biases stay f32.
    wp_bf = wp_mat.astype(jnp.bfloat16)
    # ConvTranspose2d weight (C_mid, C_up, 2, 2) -> (C_mid, (di*2+dj)*C_up + co)
    wup_flat = jnp.transpose(wup, (0, 2, 3, 1)).reshape(C_mid, 4 * C_up).astype(jnp.bfloat16)
    bp_2d = bp.reshape(1, C_mid).astype(jnp.float32)
    bup_2d = jnp.tile(bup, 4).reshape(1, 4 * C_up).astype(jnp.float32)

    # Per-generation tile / VMEM plan; tile the token dim in multiples of 2
    # image rows so the 2x2 pool stays in-tile.
    target_tokens, vmem_limit = _device_plan()
    rh = _pick_row_tile(n_h, n_w, B, target_tokens)
    n_t = n_h // rh
    P = rh * n_w                              # tokens per tile
    Pd = (rh // 2) * (n_w // 2)               # pooled tokens per tile

    kernel = functools.partial(detector_kernel, rh=rh, n_w=n_w, c_up=C_up)
    w_kw = _single_buffer_kwargs()

    in_specs = [
        pl.BlockSpec((1, P, C_in), lambda b, t: (b, t, 0)),
        pl.BlockSpec((C_in, C_mid), lambda b, t: (0, 0), **w_kw),
        pl.BlockSpec((1, C_mid), lambda b, t: (0, 0), **w_kw),
        pl.BlockSpec((C_mid, 4 * C_up), lambda b, t: (0, 0), **w_kw),
        pl.BlockSpec((1, 4 * C_up), lambda b, t: (0, 0), **w_kw),
    ]
    out_specs = [
        pl.BlockSpec((1, P, C_mid), lambda b, t: (b, t, 0)),
        pl.BlockSpec((1, P, 2 * C_up), lambda b, t: (b, t, 0)),
        pl.BlockSpec((1, P, 2 * C_up), lambda b, t: (b, t, 0)),
        pl.BlockSpec((1, Pd, C_mid), lambda b, t: (b, t, 0)),
    ]
    out_shape = (
        jax.ShapeDtypeStruct((B, N, C_mid), out_dtype),
        jax.ShapeDtypeStruct((B, N, 2 * C_up), out_dtype),
        jax.ShapeDtypeStruct((B, N, 2 * C_up), out_dtype),
        jax.ShapeDtypeStruct((B, N // 4, C_mid), out_dtype),
    )

    flops = 2 * B * N * (C_in * C_mid + C_mid * 4 * C_up)
    in_item = jnp.dtype(tokens.dtype).itemsize
    out_item = jnp.dtype(out_dtype).itemsize
    bytes_accessed = (B * N * C_in * in_item
                      + (C_in * C_mid + C_mid * 4 * C_up) * 2        # bf16 weights
                      + (C_mid + 4 * C_up) * 4                       # f32 biases
                      + B * N * (C_mid + 4 * C_up) * out_item        # proj + up planes
                      + (B * N // 4) * C_mid * out_item)             # pooled

    proj_flat, up_top, up_bot, down_flat = pl.pallas_call(
        kernel,
        out_shape=out_shape,
        grid_spec=pltpu.PrefetchScalarGridSpec(
            num_scalar_prefetch=0,
            grid=(B, n_t),
            in_specs=in_specs,
            out_specs=out_specs,
        ),
        compiler_params=pltpu.CompilerParams(
            dimension_semantics=("parallel", "parallel"),
            vmem_limit_bytes=vmem_limit,
        ),
        cost_estimate=pl.CostEstimate(
            flops=flops, transcendentals=0, bytes_accessed=bytes_accessed),
    )(tok, wp_bf, bp_2d, wup_flat, bup_2d)

    # --- layout plumbing back to PyTorch NCHW --------------------------------
    # x (proj): [B, N, C_mid] -> [B, C_mid, n_h, n_w]
    x = jnp.transpose(proj_flat.reshape(B, n_h, n_w, C_mid), (0, 3, 1, 2))

    # x_up: interleave the two (di) half-planes while C_up is still the
    # lane-dense minor dim, then a single NHWC -> NCHW transpose.
    top = up_top.reshape(B, n_h, n_w, 2, C_up)        # [b, i, j, dj, c], di = 0
    bot = up_bot.reshape(B, n_h, n_w, 2, C_up)        # [b, i, j, dj, c], di = 1
    up = jnp.stack([top, bot], axis=2)                # [b, i, di, j, dj, c]
    up = up.reshape(B, 2 * n_h, 2 * n_w, C_up)        # NHWC, lane-dense
    x_up = jnp.transpose(up, (0, 3, 1, 2))            # NCHW

    # x_down: [B, N//4, C_mid] -> [B, C_mid, n_h//2, n_w//2]
    x_down = jnp.transpose(down_flat.reshape(B, n_h // 2, n_w // 2, C_mid), (0, 3, 1, 2))
    return x_up, x, x_down


# ---------------------------------------------------------------------------
# Pure-JAX reference (mirrors the kernel's bf16-operand / f32-accumulate math).
# ---------------------------------------------------------------------------
def reference_forward(tokens, wp_mat, bp, wup, bup):
    B, T, C_in = tokens.shape
    N = T - 1
    n_h = n_w = int(round(N ** 0.5))
    C_mid = wp_mat.shape[1]
    C_up = wup.shape[1]
    tok = tokens[:, 1:, :]

    def q(a):  # bf16 operand quantization, f32 compute (matches MXU bf16/f32-acc)
        return a.astype(jnp.bfloat16).astype(jnp.float32)

    y = jnp.einsum('bnc,cd->bnd', q(tok), q(wp_mat)) + bp                 # (B,N,C_mid) f32
    x = jnp.transpose(y.reshape(B, n_h, n_w, C_mid), (0, 3, 1, 2))
    # ConvTranspose2d(k=2,s=2): out[b,co,2i+di,2j+dj] = bup[co] + sum_ci y*W[ci,co,di,dj]
    u = jnp.einsum('bnc,cofg->bnfgo', q(y), q(wup)) + bup                 # (B,N,2,2,C_up)
    x_up = jnp.transpose(u.reshape(B, n_h, n_w, 2, 2, C_up),
                         (0, 5, 1, 3, 2, 4)).reshape(B, C_up, 2 * n_h, 2 * n_w)
    # MaxPool2d(k=2,s=2) on the f32 proj activations
    yd = y.reshape(B, n_h // 2, 2, n_w // 2, 2, C_mid).max(axis=(2, 4))
    x_down = jnp.transpose(yd, (0, 3, 1, 2))
    return x_up, x, x_down


if __name__ == "__main__":
    # Small-but-faithful shapes: B=2, 4x4 patch grid (+1 CLS token), real
    # channel widths from the module (768 -> 1024 -> 512).
    B, n_h, n_w = 2, 4, 4
    N = n_h * n_w
    C_in, C_mid, C_up = 768, 1024, 512

    key = jax.random.PRNGKey(0)
    k_tok, k_wp, k_bp, k_wu, k_bu = jax.random.split(key, 5)

    # ViT backbone output [B, 1+N, 768]; emitted in bf16 by the backbone so the
    # kernel reads half the input bytes (no extra wrapper-side cast pass).
    tokens = jax.random.normal(k_tok, (B, N + 1, C_in), dtype=jnp.float32).astype(jnp.bfloat16)

    # nn.Conv2d(768, 1024, 1): weight (1024, 768, 1, 1) used in its (C_in, C_mid) matmul form.
    wp_mat = jax.random.normal(k_wp, (C_in, C_mid), dtype=jnp.float32) * 0.02
    bp = jax.random.normal(k_bp, (C_mid,), dtype=jnp.float32) * 0.02
    # nn.ConvTranspose2d(1024, 512, kernel_size=2, stride=2): weight (1024, 512, 2, 2).
    wup = jax.random.normal(k_wu, (C_mid, C_up, 2, 2), dtype=jnp.float32) * 0.02
    bup = jax.random.normal(k_bu, (C_up,), dtype=jnp.float32) * 0.02

    x_up, x, x_down = jax.block_until_ready(
        vit_detector_forward(tokens, wp_mat, bp, wup, bup))

    assert x_up.shape == (B, C_up, 2 * n_h, 2 * n_w)
    assert x.shape == (B, C_mid, n_h, n_w)
    assert x_down.shape == (B, C_mid, n_h // 2, n_w // 2)

    r_up, r_x, r_down = reference_forward(tokens, wp_mat, bp, wup, bup)

    def _close(a, b):
        return jnp.allclose(a.astype(jnp.float32), b.astype(jnp.float32),
                            atol=2e-2, rtol=2e-2)

    assert _close(x, r_x), "proj mismatch"
    assert _close(x_up, r_up), "upsample mismatch"
    assert _close(x_down, r_down), "maxpool mismatch"

    print("KERNEL_OK")
</pallas_src>

<mosaic_0001>
module attributes {stable_mosaic.version = 11 : i64} {
  func.func @detector_kernel(%arg0: i32, %arg1: i32, %arg2: memref<1x16x768xbf16, #tpu.memory_space<vmem>>, %arg3: memref<768x1024xbf16, #tpu.memory_space<vmem>>, %arg4: memref<1x1024xf32, #tpu.memory_space<vmem>>, %arg5: memref<1024x2048xbf16, #tpu.memory_space<vmem>>, %arg6: memref<1x2048xf32, #tpu.memory_space<vmem>>, %arg7: memref<1x16x1024xbf16, #tpu.memory_space<vmem>>, %arg8: memref<1x16x1024xbf16, #tpu.memory_space<vmem>>, %arg9: memref<1x16x1024xbf16, #tpu.memory_space<vmem>>, %arg10: memref<1x4x1024xbf16, #tpu.memory_space<vmem>>) attributes {dimension_semantics = [#tpu.dimension_semantics<parallel>, #tpu.dimension_semantics<parallel>], iteration_bounds = array<i64: 2, 1>, scalar_prefetch = 0 : i64, scratch_operands = 0 : i64, tpu.core_type = #tpu.core_type<tc>, window_params = [{transform_indices = @transform_0, window_bounds = array<i64: 1, 16, 768>}, {pipeline_mode = #tpu.pipeline_mode<synchronous>, transform_indices = @transform_1, window_bounds = array<i64: 768, 1024>}, {pipeline_mode = #tpu.pipeline_mode<synchronous>, transform_indices = @transform_2, window_bounds = array<i64: 1, 1024>}, {pipeline_mode = #tpu.pipeline_mode<synchronous>, transform_indices = @transform_3, window_bounds = array<i64: 1024, 2048>}, {pipeline_mode = #tpu.pipeline_mode<synchronous>, transform_indices = @transform_4, window_bounds = array<i64: 1, 2048>}, {transform_indices = @transform_5, window_bounds = array<i64: 1, 16, 1024>}, {transform_indices = @transform_6, window_bounds = array<i64: 1, 16, 1024>}, {transform_indices = @transform_7, window_bounds = array<i64: 1, 16, 1024>}, {transform_indices = @transform_8, window_bounds = array<i64: 1, 4, 1024>}]} {
    %c0 = arith.constant 0 : index
    %c0_0 = arith.constant 0 : index
    %c0_1 = arith.constant 0 : index
    %0 = vector.load %arg2[%c0, %c0_0, %c0_1] : memref<1x16x768xbf16, #tpu.memory_space<vmem>>, vector<1x16x768xbf16>
    %1 = vector.shape_cast %0 : vector<1x16x768xbf16> to vector<16x768xbf16>
    %c0_2 = arith.constant 0 : index
    %c0_3 = arith.constant 0 : index
    %2 = vector.load %arg3[%c0_2, %c0_3] : memref<768x1024xbf16, #tpu.memory_space<vmem>>, vector<768x1024xbf16>
    %cst = arith.constant dense<0.000000e+00> : vector<16x1024xf32>
    %3 = tpu.matmul %1, %2, %cst {dimension_numbers = #tpu.dot_dimension_numbers<[1], [0], [0], [1], [0, 0, 1, 1], [], []>} : vector<16x768xbf16>, vector<768x1024xbf16>, vector<16x1024xf32> -> vector<16x1024xf32>
    %c0_4 = arith.constant 0 : index
    %c0_5 = arith.constant 0 : index
    %4 = vector.load %arg4[%c0_4, %c0_5] : memref<1x1024xf32, #tpu.memory_space<vmem>>, vector<1x1024xf32>
    %5 = vector.broadcast %4 : vector<1x1024xf32> to vector<16x1024xf32>
    %6 = arith.addf %3, %5 : vector<16x1024xf32>
    %7 = arith.truncf %6 : vector<16x1024xf32> to vector<16x1024xbf16>
    %c0_6 = arith.constant 0 : index
    %c0_7 = arith.constant 0 : index
    %c0_8 = arith.constant 0 : index
    %8 = vector.load %arg7[%c0_6, %c0_7, %c0_8] : memref<1x16x1024xbf16, #tpu.memory_space<vmem>>, vector<1x16x1024xbf16>
    %9 = vector.shape_cast %8 : vector<1x16x1024xbf16> to vector<16x1024xbf16>
    %10 = vector.shape_cast %7 : vector<16x1024xbf16> to vector<1x16x1024xbf16>
    tpu.vector_store %arg7[%c0_6, %c0_7, %c0_8], %10 {strides = array<i32>} : memref<1x16x1024xbf16, #tpu.memory_space<vmem>>, vector<1x16x1024xbf16>,
    %11 = arith.truncf %6 : vector<16x1024xf32> to vector<16x1024xbf16>
    %c0_9 = arith.constant 0 : index
    %c0_10 = arith.constant 0 : index
    %12 = vector.load %arg5[%c0_9, %c0_10] : memref<1024x2048xbf16, #tpu.memory_space<vmem>>, vector<1024x1024xbf16>
    %cst_11 = arith.constant dense<0.000000e+00> : vector<16x1024xf32>
    %13 = tpu.matmul %11, %12, %cst_11 {dimension_numbers = #tpu.dot_dimension_numbers<[1], [0], [0], [1], [0, 0, 1, 1], [], []>} : vector<16x1024xbf16>, vector<1024x1024xbf16>, vector<16x1024xf32> -> vector<16x1024xf32>
    %c0_12 = arith.constant 0 : index
    %c0_13 = arith.constant 0 : index
    %14 = vector.load %arg6[%c0_12, %c0_13] : memref<1x2048xf32, #tpu.memory_space<vmem>>, vector<1x1024xf32>
    %15 = vector.broadcast %14 : vector<1x1024xf32> to vector<16x1024xf32>
    %16 = arith.addf %13, %15 : vector<16x1024xf32>
    %17 = arith.truncf %16 : vector<16x1024xf32> to vector<16x1024xbf16>
    %c0_14 = arith.constant 0 : index
    %c0_15 = arith.constant 0 : index
    %c0_16 = arith.constant 0 : index
    %18 = vector.load %arg8[%c0_14, %c0_15, %c0_16] : memref<1x16x1024xbf16, #tpu.memory_space<vmem>>, vector<1x16x1024xbf16>
    %19 = vector.shape_cast %18 : vector<1x16x1024xbf16> to vector<16x1024xbf16>
    %20 = vector.shape_cast %17 : vector<16x1024xbf16> to vector<1x16x1024xbf16>
    tpu.vector_store %arg8[%c0_14, %c0_15, %c0_16], %20 {strides = array<i32>} : memref<1x16x1024xbf16, #tpu.memory_space<vmem>>, vector<1x16x1024xbf16>,
    %c0_17 = arith.constant 0 : index
    %c1024 = arith.constant 1024 : index
    %21 = vector.load %arg5[%c0_17, %c1024] : memref<1024x2048xbf16, #tpu.memory_space<vmem>>, vector<1024x1024xbf16>
    %cst_18 = arith.constant dense<0.000000e+00> : vector<16x1024xf32>
    %22 = tpu.matmul %11, %21, %cst_18 {dimension_numbers = #tpu.dot_dimension_numbers<[1], [0], [0], [1], [0, 0, 1, 1], [], []>} : vector<16x1024xbf16>, vector<1024x1024xbf16>, vector<16x1024xf32> -> vector<16x1024xf32>
    %c0_19 = arith.constant 0 : index
    %c1024_20 = arith.constant 1024 : index
    %23 = vector.load %arg6[%c0_19, %c1024_20] : memref<1x2048xf32, #tpu.memory_space<vmem>>, vector<1x1024xf32>
    %24 = vector.broadcast %23 : vector<1x1024xf32> to vector<16x1024xf32>
    %25 = arith.addf %22, %24 : vector<16x1024xf32>
    %26 = arith.truncf %25 : vector<16x1024xf32> to vector<16x1024xbf16>
    %c0_21 = arith.constant 0 : index
    %c0_22 = arith.constant 0 : index
    %c0_23 = arith.constant 0 : index
    %27 = vector.load %arg9[%c0_21, %c0_22, %c0_23] : memref<1x16x1024xbf16, #tpu.memory_space<vmem>>, vector<1x16x1024xbf16>
    %28 = vector.shape_cast %27 : vector<1x16x1024xbf16> to vector<16x1024xbf16>
    %29 = vector.shape_cast %26 : vector<16x1024xbf16> to vector<1x16x1024xbf16>
    tpu.vector_store %arg9[%c0_21, %c0_22, %c0_23], %29 {strides = array<i32>} : memref<1x16x1024xbf16, #tpu.memory_space<vmem>>, vector<1x16x1024xbf16>,
    %30 = vector.shape_cast %6 : vector<16x1024xf32> to vector<2x2x4x1024xf32>
    %cst_24 = arith.constant dense<0xFF800000> : vector<2x4x1024xf32>
    %31 = vector.multi_reduction <maximumf>, %30, %cst_24 [1] : vector<2x2x4x1024xf32> to vector<2x4x1024xf32>
    %32 = vector.shape_cast %31 : vector<2x4x1024xf32> to vector<2x2x2x1024xf32>
    %cst_25 = arith.constant dense<0xFF800000> : vector<2x2x1024xf32>
    %33 = vector.multi_reduction <maximumf>, %32, %cst_25 [2] : vector<2x2x2x1024xf32> to vector<2x2x1024xf32>
    %34 = vector.shape_cast %33 : vector<2x2x1024xf32> to vector<4x1024xf32>
    %35 = arith.truncf %34 : vector<4x1024xf32> to vector<4x1024xbf16>
    %c0_26 = arith.constant 0 : index
    %c0_27 = arith.constant 0 : index
    %c0_28 = arith.constant 0 : index
    %36 = vector.load %arg10[%c0_26, %c0_27, %c0_28] : memref<1x4x1024xbf16, #tpu.memory_space<vmem>>, vector<1x4x1024xbf16>
    %37 = vector.shape_cast %36 : vector<1x4x1024xbf16> to vector<4x1024xbf16>
    %38 = vector.shape_cast %35 : vector<4x1024xbf16> to vector<1x4x1024xbf16>
    tpu.vector_store %arg10[%c0_26, %c0_27, %c0_28], %38 {strides = array<i32>} : memref<1x4x1024xbf16, #tpu.memory_space<vmem>>, vector<1x4x1024xbf16>,
    return
  }
  func.func @transform_0(%arg0: i32, %arg1: i32) -> (i32, i32, i32) {
    %c0_i32 = arith.constant 0 : i32
    %c0_i32_0 = arith.constant 0 : i32
    return %arg0, %arg1, %c0_i32 : i32, i32, i32
  }
  func.func @transform_1(%arg0: i32, %arg1: i32) -> (i32, i32) {
    %c0_i32 = arith.constant 0 : i32
    %c0_i32_0 = arith.constant 0 : i32
    %c0_i32_1 = arith.constant 0 : i32
    return %c0_i32, %c0_i32_0 : i32, i32
  }
  func.func @transform_2(%arg0: i32, %arg1: i32) -> (i32, i32) {
    %c0_i32 = arith.constant 0 : i32
    %c0_i32_0 = arith.constant 0 : i32
    %c0_i32_1 = arith.constant 0 : i32
    return %c0_i32, %c0_i32_0 : i32, i32
  }
  func.func @transform_3(%arg0: i32, %arg1: i32) -> (i32, i32) {
    %c0_i32 = arith.constant 0 : i32
    %c0_i32_0 = arith.constant 0 : i32
    %c0_i32_1 = arith.constant 0 : i32
    return %c0_i32, %c0_i32_0 : i32, i32
  }
  func.func @transform_4(%arg0: i32, %arg1: i32) -> (i32, i32) {
    %c0_i32 = arith.constant 0 : i32
    %c0_i32_0 = arith.constant 0 : i32
    %c0_i32_1 = arith.constant 0 : i32
    return %c0_i32, %c0_i32_0 : i32, i32
  }
  func.func @transform_5(%arg0: i32, %arg1: i32) -> (i32, i32, i32) {
    %c0_i32 = arith.constant 0 : i32
    %c0_i32_0 = arith.constant 0 : i32
    return %arg0, %arg1, %c0_i32 : i32, i32, i32
  }
  func.func @transform_6(%arg0: i32, %arg1: i32) -> (i32, i32, i32) {
    %c0_i32 = arith.constant 0 : i32
    %c0_i32_0 = arith.constant 0 : i32
    return %arg0, %arg1, %c0_i32 : i32, i32, i32
  }
  func.func @transform_7(%arg0: i32, %arg1: i32) -> (i32, i32, i32) {
    %c0_i32 = arith.constant 0 : i32
    %c0_i32_0 = arith.constant 0 : i32
    return %arg0, %arg1, %c0_i32 : i32, i32, i32
  }
  func.func @transform_8(%arg0: i32, %arg1: i32) -> (i32, i32, i32) {
    %c0_i32 = arith.constant 0 : i32
    %c0_i32_0 = arith.constant 0 : i32
    return %arg0, %arg1, %c0_i32 : i32, i32, i32
  }
}

</mosaic_0001>

<bundles_post_ra>
// kernel: tpu_custom_call.1
= control target key start
LH: loop header
LB: loop body
LE: loop exit
PB: predicated region body
PF: predicated region fallthrough
CT: control target
= control target key end

     0   :  { %s16110_s0 = inlined_call_operand.hbm [shape: bf16[2,16,768], index: 0, kind: input, shape index: {}]   ;;  %s16111_s1 = inlined_call_operand.hbm [shape: bf16[768,1024], index: 1, kind: input, shape index: {}]   ;;  %s16112_s2 = inlined_call_operand.hbm [shape: f32[1,1024], index: 2, kind: input, shape index: {}]   ;;  %s16113_s3 = inlined_call_operand.hbm [shape: bf16[1024,2048], index: 3, kind: input, shape index: {}]   ;;  %s16114_s4 = inlined_call_operand.hbm [shape: f32[1,2048], index: 4, kind: input, shape index: {}]   ;;  %s16115_s5 = inlined_call_operand.hbm [shape: bf16[2,16,1024], index: 5, kind: output, shape index: {0}]   ;;  %s16116_s6 = inlined_call_operand.hbm [shape: bf16[2,16,1024], index: 6, kind: output, shape index: {1}]   ;;  %s16117_s7 = inlined_call_operand.hbm [shape: bf16[2,16,1024], index: 7, kind: output, shape index: {2}]   ;;  %s16118_s8 = inlined_call_operand.hbm [shape: bf16[2,4,1024], index: 8, kind: output, shape index: {3}]  }
   0x1   :  { %16186 = sst [smem:[#allocation44_spill]] %s16110_s0 }
   0x2   :  { %16187 = sst [smem:[#allocation45_spill]] %s16111_s1 }
   0x3   :  { %16188 = sst [smem:[#allocation46_spill]] %s16112_s2 }
   0x4   :  { %16189 = sst [smem:[#allocation47_spill]] %s16113_s3 }
   0x5   :  { %16190 = sst [smem:[#allocation48_spill]] %s16114_s4 }
   0x6   :  { %16191 = sst [smem:[#allocation49_spill]] %s16115_s5 }
   0x7   :  { %16192 = sst [smem:[#allocation50_spill]] %s16116_s6 }
   0x8   :  { %14 = vsyncpa [#allocation3], 0 }
   0x9   :  { %16 = vsyncpa [#allocation3 + $0x1], 0 }
   0xa   :  { %17 = vsyncpa [#allocation6], 0 }
   0xb   :  { %18 = vsyncpa [#allocation9], 0 }
   0xc   :  { %19 = vsyncpa [#allocation4], 0 }
   0xd   :  { %21 = vsyncpa [#allocation4 + $0x1], 0 }
   0xe   :  { %22 = vsyncpa [#allocation13], 0 }
   0xf   :  { %24 = vsyncpa [#allocation13 + $0x1], 0 }
  0x10   :  { %25 = vsyncpa [#allocation16], 0 }
  0x11   :  { %27 = vsyncpa [#allocation16 + $0x1], 0  ;;  %s14429_s27 = smov 0   ;;  %s14431_s28 = smov 0  }
  0x12   :  { %s14433_s29 = smov 0   ;;  %s14435_s30 = smov 0  }
  0x13   :  { %s14437_s9 = smov 0   ;;  %s14439_s10 = smov 0  }
  0x14 LB: > { %s14460_s11 = sadd.s32 4294967295, %s14364_s10   ;;  %s16120_s12 = sadd.s32 4294967294, %s14364_s10   ;;  %s14364_s10 = sphi %s14439_s10, %s33_s10   ;;  %s14360_s9 = sphi %s14437_s9, %s16381_s9   ;;  %s14356_s30 = sphi %s14435_s30, %s16380_s30   ;;  %s14352_s29 = sphi %s14433_s29, %s16379_s29   ;;  %s14348_s28 = sphi %s14431_s28, %s16378_s28   ;;  %s14344_s27 = sphi %s14429_s27, %s16377_s27  }
  0x15   : > { %p67_p0 = scmp.ne.s32.totalorder %s14348_s28, %s14344_s27  ;;  %p16119_p1 = scmp.eq.s32.totalorder %s14460_s11, 0 }
  0x16   : > { %p183_p3 = scmp.eq.s32.totalorder %s16120_s12, 1  ;;  %p12382_p5 = scmp.ge.s32.totalorder %s14364_s10, 1 }
  0x17   : > { %p14471_p4 = por %p16119_p1, %p67_p0  ;;  %p274_p7 = scmp.lt.s32.totalorder %s14364_s10, 3 }
  0x18   : > { %p14476_p6 = por %p183_p3, %p67_p0  ;;  %s14366_s16 = smov [#allocation5]  }
  0x19   : > { %s16193_s13 = scalar_select %p14471_p4, 1, 0 }
  0x1a   : > { %s16194_s14 = scalar_select %p14476_p6, 1, 0 }
  0x1b   : > { %p14481_p8 = pnand %p12382_p5, %p274_p7  ;;  %s286_s17 = sshll.u32 %s14366_s16, 4  ;;  %s287_s17 = int_to_ptr.vmem [resolvable:$true] %s286_s17 }
  0x1c   : > { %s14367_s19 = smov [#allocation8]   ;;  %s14069_s21 = scalar_lea.vmem %s287_s17, 49152 }
  0x1d   : > { %s16195_s15 = scalar_select %p14481_p8, 1, 0 }
  0x1e   : > { %p13939_p9 = pneg %p14481_p8  ;;  %s310_s20 = sshll.u32 %s14367_s19, 4  ;;  %s311_s20 = int_to_ptr.vmem [resolvable:$true] %s310_s20 }
  0x1f   : > { %p14070_p13 = scmp.ne.s32.totalorder %s287_s17, %s14069_s21  ;;  %p14077_p5 = scmp.lt.s32.totalorder %s287_s17, %s287_s17 }
  0x20   : > { %p14490_p11 = pnand %p13939_p9, %p16119_p1  ;;  %p14078_p7 = scmp.lt.s32.totalorder %s14069_s21, %s14069_s21 }
  0x22   : > { %p14060_p12 = pneg %p14490_p11  ;;  %p14079_p10 = por %p14078_p7, %p14077_p5 }
  0x24   : > { %p14072_p0 = pnand %p14070_p13, %p14060_p12 }
  0x26   : > { %p14073_p3 = pneg %p14072_p0 }
  0x28   : > { %p14080_p9 = pnand %p14079_p10, %p14073_p3 }
  0x2a   : > { %14083 = shalt.err (!%p14080_p9)
}
  0x2b   : > { %s14368_s22 = smov 512   ;;  %s14369_s23 = smov 32  }
  0x2c   : > { %s16197_s1 = sld [smem:[#allocation45_spill]]  ;;  %s14095_s26 = scalar_lea.vmem %s311_s20, 131072 }
  0x2d   : > { %p14096_p1 = scmp.ne.s32.totalorder %s311_s20, %s14095_s26  ;;  %p14103_p2 = scmp.lt.s32.totalorder %s311_s20, %s311_s20 }
  0x2e   : > { %p14104_p6 = scmp.lt.s32.totalorder %s14095_s26, %s14095_s26 }
  0x2f   : > { %p14098_p13 = pnand %p14096_p1, %p14060_p12 }
  0x30   : > { %p14105_p5 = por %p14104_p6, %p14103_p2 }
  0x31   : > { %p14099_p0 = pneg %p14098_p13 }
  0x32   : > { %13942 = dma.hbm_to_vmem [thread:$0]  (!%p14490_p11), %s16197_s1, 49152, %s287_s17, [#allocation6], %s14368_s22, %s14368_s22, %s14369_s23  }
  0x33   : > { %p14106_p10 = pnand %p14105_p5, %p14099_p0 }
  0x35   : > { %14109 = shalt.err (!%p14106_p10)
}
  0x36   : > { %s14370_s16 = smov 1024   ;;  %s14371_s19 = smov 64  }
  0x37   : > { %s16198_s3 = sld [smem:[#allocation47_spill]]  ;;  %s14372_s17 = smov [#allocation7]  }
  0x38   : > { %s300_s22 = sshll.u32 %s14372_s17, 4  ;;  %s14373_s23 = smov [#allocation10]   ;;  %s301_s22 = int_to_ptr.vmem [resolvable:$true] %s300_s22 }
  0x39   : > { %s324_s24 = sshll.u32 %s14373_s23, 4  ;;  %s14121_s25 = scalar_lea.vmem %s301_s22, 128  ;;  %s325_s24 = int_to_ptr.vmem [resolvable:$true] %s324_s24 }
  0x3a   : > { %p14122_p1 = scmp.ne.s32.totalorder %s301_s22, %s14121_s25  ;;  %p14129_p3 = scmp.lt.s32.totalorder %s301_s22, %s301_s22 }
  0x3b   : > { %p14130_p7 = scmp.lt.s32.totalorder %s14121_s25, %s14121_s25 }
  0x3c   : > { %p14124_p2 = pnand %p14122_p1, %p14060_p12 }
  0x3d   : > { %13948 = dma.hbm_to_vmem [thread:$0]  (!%p14490_p11), %s16198_s3, 131072, %s311_s20, [#allocation9], %s14370_s16, %s14370_s16, %s14371_s19  }
  0x3e   : > { %p14125_p6 = pneg %p14124_p2  ;;  %p14131_p9 = por %p14130_p7, %p14129_p3 }
  0x40   : > { %p14132_p13 = pnand %p14131_p9, %p14125_p6 }
  0x42   : > { %14135 = shalt.err (!%p14132_p13)
}
  0x43   : > { %s16199_s2 = sld [smem:[#allocation46_spill]]  ;;  %s14147_s26 = scalar_lea.vmem %s325_s24, 256 }
  0x44   : > { %p14148_p0 = scmp.ne.s32.totalorder %s325_s24, %s14147_s26  ;;  %p14155_p1 = scmp.lt.s32.totalorder %s325_s24, %s325_s24 }
  0x45   : > { %p14156_p2 = scmp.lt.s32.totalorder %s14147_s26, %s14147_s26 }
  0x46   : > { %p14150_p5 = pnand %p14148_p0, %p14060_p12 }
  0x47   : > { %p14157_p4 = por %p14156_p2, %p14155_p1 }
  0x48   : > { %p14151_p10 = pneg %p14150_p5 }
  0x49   : > { %13945 = dma.hbm_to_vmem [thread:$0]  (!%p14490_p11), %s16199_s2, 128, %s301_s22, [#allocation6]  }
  0x4a   : > { %p14158_p8 = pnand %p14157_p4, %p14151_p10 }
  0x4c   : > { %14161 = shalt.err (!%p14158_p8)
}
  0x4d   : > { %s16200_s4 = sld [smem:[#allocation48_spill]]  ;;  %s45_s21 = sadd.s32 1, %s14360_s9 }
  0x4e   : > { %s54_s17 = sadd.s32 1, %s14352_s29  ;;  %p47_p4 = scmp.ge.s32.totalorder %s45_s21, 2 }
  0x4f   : > { %p61_p8 = scmp.ne.s32.totalorder %s14352_s29, %s14348_s28  ;;  %p62_p12 = scmp.eq.s32.totalorder %s14364_s10, 0 }
  0x50   : > { %p13973_p6 = scmp.lt.s32.totalorder %s14364_s10, 2  ;;  %s16383_s21 = smov (%p47_p4, %s45_s21), 0 }
  0x51   : > { %16201 = sst [smem:[#allocation23_spill]] %s16383_s21  ;;  %p63_p3 = por %p62_p12, %p61_p8 }
  0x52   : > { %p16202_p7 = scmp.eq.s32.totalorder %s14460_s11, 1  ;;  %s49_s22 = ssub.s32 %s14360_s9, %s16383_s21 }
  0x53   : > { %13951 = dma.hbm_to_vmem [thread:$0]  (!%p14490_p11), %s16200_s4, 256, %s325_s24, [#allocation9]  }
  0x54   : > { %p14538_p9 = por %p16202_p7, %p61_p8  ;;  %s335_s23 = sand.u32 1, %s14352_s29  }
  0x55   : > { %p52_p13 = scmp.eq.s32.totalorder %s49_s22, 0  ;;  %s13910_s24 = smul.u32 48, %s335_s23 }
  0x56   : > { %p14545_p11 = pnand %p13973_p6, %p63_p3  ;;  %s13911_s20 = smul.u32 768, %s14360_s9 }
  0x57   : > { %s14550_s12 = scalar_select %p52_p13, %s14352_s29, %s54_s17  }
  0x58   : > { %s339_s26 = scalar_lea.vmem [#allocation2], %s13910_s24  ;;  %s16205_s0 = sld [smem:[#allocation44_spill]] }
  0x59   : > { %s349_s16 = sshll.u32 %s339_s26, 4  ;;  %s336_s3 = scalar_lea.sflag [#allocation3], %s335_s23  ;;  %s350_s16 = int_to_ptr.vmem [resolvable:$true] %s349_s16 }
  0x5a   : > { %p14164_p0 = pneg %p14545_p11  ;;  %s14175_s22 = scalar_lea.vmem %s350_s16, 768 }
  0x5b   : > { %p14176_p5 = scmp.ne.s32.totalorder %s350_s16, %s14175_s22  ;;  %s14374_s4 = smov [#allocation2]  }
  0x5c   : > { %s14180_s21 = sshll.u32 %s14374_s4, 4  ;;  %s14181_s21 = int_to_ptr.vmem [resolvable:$false] %s14180_s21 }
  0x5d   : > { %p14178_p10 = pnand %p14176_p5, %p14164_p0  ;;  %s14182_s17 = scalar_lea.vmem %s14181_s21, 1536 }
  0x5e   : > { %s348_s2 = scalar_lea.hbm %s16205_s0, %s13911_s20  ;;  %p14183_p2 = scmp.lt.s32.totalorder %s350_s16, %s14181_s21 }
  0x5f   : > { %p14179_p1 = pneg %p14178_p10  ;;  %p14184_p4 = scmp.lt.s32.totalorder %s14182_s17, %s14175_s22 }
  0x61   : > { %p14185_p8 = por %p14184_p4, %p14183_p2 }
  0x63   : > { %p14186_p12 = pnand %p14185_p8, %p14179_p1 }
  0x65   : > { %14189 = shalt.err (!%p14186_p12)
}
  0x66   : > { %s14375_s24 = smov 384   ;;  %s14376_s1 = smov 24  }
  0x67   : > { %13955 = dma.hbm_to_vmem [thread:$0]  (!%p14545_p11), %s348_s2, 768, %s350_s16, %s336_s3, %s14375_s24, %s14375_s24, %s14376_s1  }
  0x68   : > { %p16206_p6 = scmp.ne.s32.totalorder %s16195_s15, 0 }
  0x6a   : > { %361 = sbr.rel (%p16206_p6) target bundleno = 1844 (0x734), region = 40 }
  0x6f   : > { %s14563_s23 = sand.u32 1, %s14348_s28   ;;  %p16207_p3 = scmp.ne.s32.totalorder %s16193_s13, 0 }
  0x70   : > { %s13912_s4 = smul.u32 48, %s14563_s23  ;;  %s364_s21 = scalar_lea.sflag [#allocation3], %s14563_s23 }
  0x72   : > { %s14567_s20 = scalar_lea.vmem [#allocation2], %s13912_s4 }
  0x73   : > { %14319 = dma.done.wait (%p16207_p3), %s364_s21, 768  }
  0x74   : > { %14321 = vsyncadd (%p16207_p3), %s364_s21, 4294966528  ;;  %p16208_p7 = scmp.eq.s32.totalorder %s14460_s11, 0 }
  0x76   : > { %14323 = dma.done.wait (%p16208_p7), [#allocation6], 49280   ;;  %p16209_p13 = pmov %p16208_p7 }
  0x77   : > { %p16210_p11 = pmov %p16208_p7 }
  0x78   : > { %14325 = vsyncadd (%p16209_p13), [#allocation6], 4294918016 }
  0x79   : > { %14327 = dma.done.wait (%p16210_p11), [#allocation9], 131328   ;;  %p16211_p0 = pmov %p16208_p7 }
  0x7a   : > { %v497_v0 = vld [vmem:[#allocation5 + $0x1c0] sm:$0xff]  ;;  %s14652_s2 = sshll.u32 %s14563_s23, 6  ;;  %vm11401_vm0 = vcmask 1041408   ;;  %vm11979_vm1 = vcmask 1041409   ;;  %vm11982_vm2 = vcmask 1042434   ;;  %vm11985_vm3 = vcmask 1043459  }
  0x7b   : > { %14329 = vsyncadd (%p16211_p0), [#allocation9], 4294835968  ;;  %v501_v1 = vld [vmem:[#allocation5 + $0x1e0] sm:$0xff]  ;;  %s14662_s3 = scalar_lea.vmem [#allocation11], %s14652_s2  ;;  %s12397_s13 = sshll.u32 %s14563_s23, 4 }
  0x7c   : > { %v625_v2 = vld [vmem:[#allocation5 + $0x5c0] sm:$0xff]  ;;  %v12461_v3 = vcombine.high %v497_v0, %v501_v1  ;;  %v12460_v5 = vcombine.low %v497_v0, %v501_v1  ;;  %s15294_s15 = scalar_lea.vmem [#allocation15], %s12397_s13  ;;  %s15867_s25 = scalar_lea.vmem [#allocation12], %s14652_s2 }
  0x7d   : > { %v629_v4 = vld [vmem:[#allocation5 + $0x5e0] sm:$0xff]  ;;  %s15930_s26 = scalar_lea.vmem [#allocation14], %s14652_s2  ;;  %s12118_s16 = sshll.u32 %s15867_s25, 4  ;;  %s15956_s16 = int_to_ptr.vmem [resolvable:$true] %s12118_s16 }
  0x7e   : > { %v489_v6 = vld [vmem:[#allocation5 + $0x180] sm:$0xff]  ;;  %v12589_v8 = vcombine.high %v625_v2, %v629_v4  ;;  %v12588_v9 = vcombine.low %v625_v2, %v629_v4  ;;  %2817 = vmatprep.subr.bf16.mxu0 %v12461_v3  ;;  %s12072_s19 = sand.u32 1, %s14460_s11   ;;  %s15961_s22 = sshll.u32 %s14356_s30, 10 }
  0x7f   : > { %v493_v7 = vld [vmem:[#allocation5 + $0x1a0] sm:$0xff]  ;;  %2818 = vmatpush1.bf16.msra.mxu0 %v12460_v5  ;;  %s16370_s6 = sld [smem:[#allocation50_spill]]  ;;  %s15969_s4 = scalar_lea.sflag [#allocation13], %s12072_s19 }
  0x80   : > { %v12453_v10 = vcombine.high %v489_v6, %v493_v7  ;;  %v617_v11 = vld [vmem:[#allocation5 + $0x580] sm:$0xff]  ;;  %2860 = vmatprep.subr.bf16.mxu1 %v12589_v8  ;;  %v12452_v18 = vcombine.low %v489_v6, %v493_v7  ;;  %s14190_s21 = scalar_lea.vmem %s15956_s16, 1024 }
  0x81   : > { %v621_v12 = vld [vmem:[#allocation5 + $0x5a0] sm:$0xff]  ;;  %2861 = vmatpush1.bf16.msra.mxu1 %v12588_v9  ;;  %p14191_p5 = scmp.ne.s32.totalorder %s15956_s16, %s14190_s21 }
  0x82   : > { %v481_v13 = vld [vmem:[#allocation5 + $0x140] sm:$0xff]  ;;  %v12581_v14 = vcombine.high %v617_v11, %v621_v12  ;;  %2819 = vmatprep.subr.bf16.mxu0 %v12453_v10  ;;  %v12580_v19 = vcombine.low %v617_v11, %v621_v12 }
  0x83   : > { %v485_v15 = vld [vmem:[#allocation5 + $0x160] sm:$0xff]  ;;  %2820 = vmatpush1.bf16.msra.mxu0 %v12452_v18  ;;  %p14192_p10 = pnand %p14191_p5, %p14538_p9 }
  0x84   : > { %v609_v16 = vld [vmem:[#allocation5 + $0x540] sm:$0xff]  ;;  %v12445_v20 = vcombine.high %v481_v13, %v485_v15  ;;  %2862 = vmatprep.subr.bf16.mxu1 %v12581_v14  ;;  %v12444_v26 = vcombine.low %v481_v13, %v485_v15 }
  0x85   : > { %v613_v17 = vld [vmem:[#allocation5 + $0x560] sm:$0xff]  ;;  %2863 = vmatpush1.bf16.msra.mxu1 %v12580_v19  ;;  %s15967_s1 = scalar_lea.hbm %s16370_s6, %s15961_s22  ;;  %p14193_p1 = pneg %p14192_p10 }
  0x86   : > { %v12573_v21 = vcombine.high %v609_v16, %v613_v17  ;;  %v473_v22 = vld [vmem:[#allocation5 + $0x100] sm:$0xff]  ;;  %2821 = vmatprep.subr.bf16.mxu0 %v12445_v20  ;;  %v12572_v27 = vcombine.low %v609_v16, %v613_v17 }
  0x87   : > { %v477_v23 = vld [vmem:[#allocation5 + $0x120] sm:$0xff]  ;;  %2822 = vmatpush1.bf16.msra.mxu0 %v12444_v26 }
  0x88   : > { %v601_v24 = vld [vmem:[#allocation5 + $0x500] sm:$0xff]  ;;  %v12437_v28 = vcombine.high %v473_v22, %v477_v23  ;;  %2864 = vmatprep.subr.bf16.mxu1 %v12573_v21  ;;  %v12436_v34 = vcombine.low %v473_v22, %v477_v23 }
  0x89   : > { %v605_v25 = vld [vmem:[#allocation5 + $0x520] sm:$0xff]  ;;  %2865 = vmatpush1.bf16.msra.mxu1 %v12572_v27 }
  0x8a   : > { %v12565_v29 = vcombine.high %v601_v24, %v605_v25  ;;  %v465_v30 = vld [vmem:[#allocation5 + $0xc0] sm:$0xff]  ;;  %2823 = vmatprep.subr.bf16.mxu0 %v12437_v28  ;;  %v12564_v35 = vcombine.low %v601_v24, %v605_v25 }
  0x8b   : > { %v469_v31 = vld [vmem:[#allocation5 + $0xe0] sm:$0xff]  ;;  %2824 = vmatpush1.bf16.msra.mxu0 %v12436_v34 }
  0x8c   : > { %v593_v32 = vld [vmem:[#allocation5 + $0x4c0] sm:$0xff]  ;;  %v12429_v36 = vcombine.high %v465_v30, %v469_v31  ;;  %2866 = vmatprep.subr.bf16.mxu1 %v12565_v29  ;;  %v12428_v42 = vcombine.low %v465_v30, %v469_v31 }
  0x8d   : > { %v597_v33 = vld [vmem:[#allocation5 + $0x4e0] sm:$0xff]  ;;  %2867 = vmatpush1.bf16.msra.mxu1 %v12564_v35 }
  0x8e   : > { %v12557_v37 = vcombine.high %v593_v32, %v597_v33  ;;  %v457_v38 = vld [vmem:[#allocation5 + $0x80] sm:$0xff]  ;;  %2825 = vmatprep.subr.bf16.mxu0 %v12429_v36  ;;  %v12556_v43 = vcombine.low %v593_v32, %v597_v33 }
  0x8f   : > { %v461_v39 = vld [vmem:[#allocation5 + $0xa0] sm:$0xff]  ;;  %2826 = vmatpush1.bf16.msra.mxu0 %v12428_v42 }
  0x90   : > { %v585_v40 = vld [vmem:[#allocation5 + $0x480] sm:$0xff]  ;;  %v12421_v44 = vcombine.high %v457_v38, %v461_v39  ;;  %2868 = vmatprep.subr.bf16.mxu1 %v12557_v37  ;;  %v12420_v50 = vcombine.low %v457_v38, %v461_v39 }
  0x91   : > { %v589_v41 = vld [vmem:[#allocation5 + $0x4a0] sm:$0xff]  ;;  %2869 = vmatpush1.bf16.msra.mxu1 %v12556_v43 }
  0x92   : > { %v12549_v45 = vcombine.high %v585_v40, %v589_v41  ;;  %v449_v46 = vld [vmem:[#allocation5 + $0x40] sm:$0xff]  ;;  %2827 = vmatprep.subr.bf16.mxu0 %v12421_v44  ;;  %v12548_v52 = vcombine.low %v585_v40, %v589_v41 }
  0x93   : > { %v453_v47 = vld [vmem:[#allocation5 + $0x60] sm:$0xff]  ;;  %2828 = vmatpush1.bf16.msra.mxu0 %v12420_v50 }
  0x94   : > { %v577_v48 = vld [vmem:[#allocation5 + $0x440] sm:$0xff]  ;;  %v12413_v53 = vcombine.high %v449_v46, %v453_v47  ;;  %2870 = vmatprep.subr.bf16.mxu1 %v12549_v45  ;;  %v12412_v60 = vcombine.low %v449_v46, %v453_v47 }
  0x95   : > { %v581_v49 = vld [vmem:[#allocation5 + $0x460] sm:$0xff]  ;;  %2871 = vmatpush1.bf16.msra.mxu1 %v12548_v52 }
  0x96   : > { %v441_v51 = vld [vmem:[#allocation5] sm:$0xff]  ;;  %v12541_v55 = vcombine.high %v577_v48, %v581_v49  ;;  %2829 = vmatprep.subr.bf16.mxu0 %v12413_v53  ;;  %v12540_v61 = vcombine.low %v577_v48, %v581_v49 }
  0x97   : > { %v445_v54 = vld [vmem:[#allocation5 + $0x20] sm:$0xff]  ;;  %2830 = vmatpush1.bf16.msra.mxu0 %v12412_v60 }
  0x98   : > { %v14582_v56 = vld [vmem:[%s14567_s20 + $0x4] ss:$24 sps:$4 sm:$0xff]   ;;  %v12405_v62 = vcombine.high %v441_v51, %v445_v54  ;;  %2872 = vmatprep.subr.bf16.mxu1 %v12541_v55  ;;  %v12404_v4 = vcombine.low %v441_v51, %v445_v54 }
  0x99   : > { %v569_v57 = vld [vmem:[#allocation5 + $0x400] sm:$0xff]  ;;  %2849 = vmatprep.mubr.bf16.mxu0 %v14582_v56  ;;  %2873 = vmatpush1.bf16.msra.mxu1 %v12540_v61 }
  0x9a   : > { %v573_v58 = vld [vmem:[#allocation5 + $0x420] sm:$0xff]  ;;  %2831 = vmatprep.subr.bf16.mxu0 %v12405_v62 }
  0x9b   : > { %v14585_v59 = vld [vmem:[%s14567_s20 + $0xc] ss:$24 sps:$4 sm:$0xff]   ;;  %v12533_v63 = vcombine.high %v569_v57, %v573_v58  ;;  %v12532_v5 = vcombine.low %v569_v57, %v573_v58  ;;  %2832 = vmatpush1.bf16.msra.mxu0 %v12404_v4 }
  0x9c   : > { %v561_v0 = vld [vmem:[#allocation5 + $0x3c0] sm:$0xff]  ;;  %2892 = vmatprep.mubr.bf16.mxu1 %v14585_v59  ;;  %v498_v4 = vld [vmem:[#allocation5 + $0x1c8] sm:$0xff] }
  0x9d   : > { %v565_v1 = vld [vmem:[#allocation5 + $0x3e0] sm:$0xff]  ;;  %2874 = vmatprep.subr.bf16.mxu1 %v12533_v63 }
  0x9e   : > { %v689_v2 = vld [vmem:[#allocation5 + $0x7c0] sm:$0xff]  ;;  %v12525_v6 = vcombine.high %v561_v0, %v565_v1  ;;  %v12524_v12 = vcombine.low %v561_v0, %v565_v1  ;;  %2875 = vmatpush1.bf16.msra.mxu1 %v12532_v5  ;;  %v502_v5 = vld [vmem:[#allocation5 + $0x1e8] sm:$0xff] }
  0x9f   : > { %v693_v3 = vld [vmem:[#allocation5 + $0x7e0] sm:$0xff] }
  0xa0   : > { %v12653_v7 = vcombine.high %v689_v2, %v693_v3  ;;  %v553_v8 = vld [vmem:[#allocation5 + $0x380] sm:$0xff]  ;;  %2833 = vmatprep.subr.bf16.mxu0 %v12525_v6  ;;  %v12652_v13 = vcombine.low %v689_v2, %v693_v3 }
  0xa1   : > { %v557_v9 = vld [vmem:[#allocation5 + $0x3a0] sm:$0xff]  ;;  %2834 = vmatpush2.bf16.msra.mxu0 %v12524_v12 }
  0xa2   : > { %v681_v10 = vld [vmem:[#allocation5 + $0x780] sm:$0xff]  ;;  %v12517_v14 = vcombine.high %v553_v8, %v557_v9  ;;  %2876 = vmatprep.subr.bf16.mxu1 %v12653_v7  ;;  %v12516_v20 = vcombine.low %v553_v8, %v557_v9  ;;  %v12463_v9 = vcombine.high %v498_v4, %v502_v5 }
  0xa3   : > { %v685_v11 = vld [vmem:[#allocation5 + $0x7a0] sm:$0xff]  ;;  %2877 = vmatpush2.bf16.msra.mxu1 %v12652_v13  ;;  %v490_v13 = vld [vmem:[#allocation5 + $0x188] sm:$0xff] }
  0xa4   : > { %v12645_v15 = vcombine.high %v681_v10, %v685_v11  ;;  %v545_v16 = vld [vmem:[#allocation5 + $0x340] sm:$0xff]  ;;  %2835 = vmatprep.subr.bf16.mxu0 %v12517_v14  ;;  %v12644_v21 = vcombine.low %v681_v10, %v685_v11  ;;  %v494_v14 = vld [vmem:[#allocation5 + $0x1a8] sm:$0xff] }
  0xa5   : > { %v549_v17 = vld [vmem:[#allocation5 + $0x360] sm:$0xff]  ;;  %2836 = vmatpush2.bf16.msra.mxu0 %v12516_v20 }
  0xa6   : > { %v673_v18 = vld [vmem:[#allocation5 + $0x740] sm:$0xff]  ;;  %v12509_v22 = vcombine.high %v545_v16, %v549_v17  ;;  %2878 = vmatprep.subr.bf16.mxu1 %v12645_v15  ;;  %v12508_v28 = vcombine.low %v545_v16, %v549_v17  ;;  %v12462_v17 = vcombine.low %v498_v4, %v502_v5 }
  0xa7   : > { %v677_v19 = vld [vmem:[#allocation5 + $0x760] sm:$0xff]  ;;  %2879 = vmatpush2.bf16.msra.mxu1 %v12644_v21 }
  0xa8   : > { %v12637_v23 = vcombine.high %v673_v18, %v677_v19  ;;  %v537_v24 = vld [vmem:[#allocation5 + $0x300] sm:$0xff]  ;;  %2837 = vmatprep.subr.bf16.mxu0 %v12509_v22  ;;  %v12636_v29 = vcombine.low %v673_v18, %v677_v19  ;;  %v12455_v19 = vcombine.high %v490_v13, %v494_v14 }
  0xa9   : > { %v541_v25 = vld [vmem:[#allocation5 + $0x320] sm:$0xff]  ;;  %2838 = vmatpush2.bf16.msra.mxu0 %v12508_v28 }
  0xaa   : > { %v665_v26 = vld [vmem:[#allocation5 + $0x700] sm:$0xff]  ;;  %v12501_v30 = vcombine.high %v537_v24, %v541_v25  ;;  %2880 = vmatprep.subr.bf16.mxu1 %v12637_v23  ;;  %v12500_v36 = vcombine.low %v537_v24, %v541_v25  ;;  %v482_v23 = vld [vmem:[#allocation5 + $0x148] sm:$0xff] }
  0xab   : > { %v669_v27 = vld [vmem:[#allocation5 + $0x720] sm:$0xff]  ;;  %2881 = vmatpush2.bf16.msra.mxu1 %v12636_v29  ;;  %v486_v24 = vld [vmem:[#allocation5 + $0x168] sm:$0xff] }
  0xac   : > { %v12629_v31 = vcombine.high %v665_v26, %v669_v27  ;;  %v529_v32 = vld [vmem:[#allocation5 + $0x2c0] sm:$0xff]  ;;  %2839 = vmatprep.subr.bf16.mxu0 %v12501_v30  ;;  %v12628_v37 = vcombine.low %v665_v26, %v669_v27  ;;  %v12454_v26 = vcombine.low %v490_v13, %v494_v14  ;;  %v12447_v28 = vcombine.high %v482_v23, %v486_v24 }
  0xad   : > { %v533_v33 = vld [vmem:[#allocation5 + $0x2e0] sm:$0xff]  ;;  %2840 = vmatpush2.bf16.msra.mxu0 %v12500_v36 }
  0xae   : > { %v657_v34 = vld [vmem:[#allocation5 + $0x6c0] sm:$0xff]  ;;  %v12493_v38 = vcombine.high %v529_v32, %v533_v33  ;;  %2882 = vmatprep.subr.bf16.mxu1 %v12629_v31  ;;  %v12492_v44 = vcombine.low %v529_v32, %v533_v33  ;;  %v474_v31 = vld [vmem:[#allocation5 + $0x108] sm:$0xff] }
  0xaf   : > { %v661_v35 = vld [vmem:[#allocation5 + $0x6e0] sm:$0xff]  ;;  %2883 = vmatpush2.bf16.msra.mxu1 %v12628_v37  ;;  %v478_v32 = vld [vmem:[#allocation5 + $0x128] sm:$0xff] }
  0xb0   : > { %v12621_v39 = vcombine.high %v657_v34, %v661_v35  ;;  %v521_v40 = vld [vmem:[#allocation5 + $0x280] sm:$0xff]  ;;  %2841 = vmatprep.subr.bf16.mxu0 %v12493_v38  ;;  %v12620_v45 = vcombine.low %v657_v34, %v661_v35  ;;  %v12446_v34 = vcombine.low %v482_v23, %v486_v24  ;;  %v12439_v36 = vcombine.high %v474_v31, %v478_v32 }
  0xb1   : > { %v525_v41 = vld [vmem:[#allocation5 + $0x2a0] sm:$0xff]  ;;  %2842 = vmatpush2.bf16.msra.mxu0 %v12492_v44 }
  0xb2   : > { %v649_v42 = vld [vmem:[#allocation5 + $0x680] sm:$0xff]  ;;  %v12485_v46 = vcombine.high %v521_v40, %v525_v41  ;;  %2884 = vmatprep.subr.bf16.mxu1 %v12621_v39  ;;  %v12484_v52 = vcombine.low %v521_v40, %v525_v41  ;;  %v466_v39 = vld [vmem:[#allocation5 + $0xc8] sm:$0xff] }
  0xb3   : > { %v653_v43 = vld [vmem:[#allocation5 + $0x6a0] sm:$0xff]  ;;  %2885 = vmatpush2.bf16.msra.mxu1 %v12620_v45  ;;  %v470_v40 = vld [vmem:[#allocation5 + $0xe8] sm:$0xff] }
  0xb4   : > { %v12613_v47 = vcombine.high %v649_v42, %v653_v43  ;;  %v513_v48 = vld [vmem:[#allocation5 + $0x240] sm:$0xff]  ;;  %2843 = vmatprep.subr.bf16.mxu0 %v12485_v46  ;;  %v12612_v53 = vcombine.low %v649_v42, %v653_v43  ;;  %v12438_v42 = vcombine.low %v474_v31, %v478_v32  ;;  %v458_v46 = vld [vmem:[#allocation5 + $0x88] sm:$0xff] }
  0xb5   : > { %v517_v49 = vld [vmem:[#allocation5 + $0x260] sm:$0xff]  ;;  %2844 = vmatpush2.bf16.msra.mxu0 %v12484_v52 }
  0xb6   : > { %v641_v50 = vld [vmem:[#allocation5 + $0x640] sm:$0xff]  ;;  %v12477_v54 = vcombine.high %v513_v48, %v517_v49  ;;  %2886 = vmatprep.subr.bf16.mxu1 %v12613_v47  ;;  %v12476_v62 = vcombine.low %v513_v48, %v517_v49  ;;  %v462_v47 = vld [vmem:[#allocation5 + $0xa8] sm:$0xff]  ;;  %v12430_v49 = vcombine.low %v466_v39, %v470_v40 }
  0xb7   : > { %v645_v51 = vld [vmem:[#allocation5 + $0x660] sm:$0xff]  ;;  %2887 = vmatpush2.bf16.msra.mxu1 %v12612_v53 }
  0xb8   : > { %v12605_v55 = vcombine.high %v641_v50, %v645_v51  ;;  %v505_v57 = vld [vmem:[#allocation5 + $0x200] sm:$0xff]  ;;  %2845 = vmatprep.subr.bf16.mxu0 %v12477_v54  ;;  %v12604_v63 = vcombine.low %v641_v50, %v645_v51  ;;  %v12423_v51 = vcombine.high %v458_v46, %v462_v47  ;;  %v450_v54 = vld [vmem:[#allocation5 + $0x48] sm:$0xff] }
  0xb9   : > { %v509_v58 = vld [vmem:[#allocation5 + $0x220] sm:$0xff]  ;;  %2846 = vmatpush2.bf16.msra.mxu0 %v12476_v62 }
  0xba   : > { %v633_v60 = vld [vmem:[#allocation5 + $0x600] sm:$0xff]  ;;  %v12469_v0 = vcombine.high %v505_v57, %v509_v58  ;;  %2888 = vmatprep.subr.bf16.mxu1 %v12605_v55  ;;  %v12468_v6 = vcombine.low %v505_v57, %v509_v58  ;;  %v454_v55 = vld [vmem:[#allocation5 + $0x68] sm:$0xff]  ;;  %v12422_v58 = vcombine.low %v458_v46, %v462_v47 }
  0xbb   : > { %v637_v61 = vld [vmem:[#allocation5 + $0x620] sm:$0xff]  ;;  %2889 = vmatpush2.bf16.msra.mxu1 %v12604_v63 }
  0xbc   : > { %v12597_v1 = vcombine.high %v633_v60, %v637_v61  ;;  %v753_v2 = vld [vmem:[#allocation5 + $0x9c0] sm:$0xff]  ;;  %2847 = vmatprep.subr.bf16.mxu0 %v12469_v0  ;;  %v12596_v7 = vcombine.low %v633_v60, %v637_v61  ;;  %v12415_v61 = vcombine.high %v450_v54, %v454_v55  ;;  %v442_v0 = vld [vmem:[#allocation5 + $0x8] sm:$0xff] }
  0xbd   : > { %v757_v3 = vld [vmem:[#allocation5 + $0x9e0] sm:$0xff]  ;;  %2848 = vmatpush2.bf16.msra.mxu0 %v12468_v6 }
  0xbe   : > { %v12717_v8 = vcombine.high %v753_v2, %v757_v3  ;;  %2890 = vmatprep.subr.bf16.mxu1 %v12597_v1  ;;  %v745_v10 = vld [vmem:[#allocation5 + $0x980] sm:$0xff]  ;;  %v12716_v16 = vcombine.low %v753_v2, %v757_v3  ;;  %v446_v1 = vld [vmem:[#allocation5 + $0x28] sm:$0xff]  ;;  %v12414_v3 = vcombine.low %v450_v54, %v454_v55 }
  0xbf   : > { %v749_v11 = vld [vmem:[#allocation5 + $0x9a0] sm:$0xff]  ;;  %2891 = vmatpush2.bf16.msra.mxu1 %v12596_v7  ;;  %v12407_v5 = vcombine.high %v442_v0, %v446_v1 }
  0xc0   : > { %v14590_v12 = vld [vmem:[%s14567_s20] ss:$24 sps:$4 sm:$0xff]   ;;  %2903 = vmatprep.subr.bf16.mxu0 %v12717_v8  ;;  %v12709_v18 = vcombine.high %v745_v10, %v749_v11  ;;  %2946 = vmatprep.subr.bf16.mxu1 %v12463_v9  ;;  %v14596_v22 = vld [vmem:[%s14567_s20 + $0x14] ss:$24 sps:$4 sm:$0xff]   ;;  %v12708_v25 = vcombine.low %v745_v10, %v749_v11  ;;  %v12406_v11 = vcombine.low %v442_v0, %v446_v1 }
  0xc1   : > { %v14593_v15 = vld [vmem:[%s14567_s20 + $0x8] ss:$24 sps:$4 sm:$0xff]   ;;  %2850 = vmatmul.mubr.bf16.vlgmr.msra.gmra.mxu0 %v14590_v12 }
  0xc2   : > { %v737_v20 = vld [vmem:[#allocation5 + $0x940] sm:$0xff]  ;;  %2893 = vmatmul.mubr.bf16.vlgmr.msra.gmra.mxu1 %v14593_v15  ;;  %2904 = vmatpush1.bf16.msra.mxu0 %v12716_v16  ;;  %v562_v8 = vld [vmem:[#allocation5 + $0x3c8] sm:$0xff] }
  0xc3   : > { %v741_v21 = vld [vmem:[#allocation5 + $0x960] sm:$0xff]  ;;  %2947 = vmatpush1.bf16.msra.mxu1 %v12462_v17  ;;  %2905 = vmatprep.subr.bf16.mxu0 %v12709_v18  ;;  %v566_v9 = vld [vmem:[#allocation5 + $0x3e8] sm:$0xff] }
  0xc4   : > { %v12701_v27 = vcombine.high %v737_v20, %v741_v21  ;;  %2948 = vmatprep.subr.bf16.mxu1 %v12455_v19  ;;  %v729_v29 = vld [vmem:[#allocation5 + $0x900] sm:$0xff]  ;;  %2935 = vmatprep.mubr.bf16.mxu0 %v14596_v22  ;;  %v12700_v33 = vcombine.low %v737_v20, %v741_v21  ;;  %v12527_v14 = vcombine.high %v562_v8, %v566_v9  ;;  %v554_v18 = vld [vmem:[#allocation5 + $0x388] sm:$0xff] }
  0xc5   : > { %v733_v30 = vld [vmem:[#allocation5 + $0x920] sm:$0xff]  ;;  %2978 = vmatprep.mubr.bf16.mxu1 %v14582_v56  ;;  %v12431_v56 = vcombine.high %v466_v39, %v470_v40  ;;  %v558_v19 = vld [vmem:[#allocation5 + $0x3a8] sm:$0xff]  ;;  %v12526_v21 = vcombine.low %v562_v8, %v566_v9 }
  0xc6   : > { %2906 = vmatpush1.bf16.msra.mxu0 %v12708_v25  ;;  %v12693_v35 = vcombine.high %v729_v29, %v733_v30  ;;  %v721_v37 = vld [vmem:[#allocation5 + $0x8c0] sm:$0xff]  ;;  %v12692_v41 = vcombine.low %v729_v29, %v733_v30  ;;  %v12519_v24 = vcombine.high %v554_v18, %v558_v19  ;;  %v12518_v30 = vcombine.low %v554_v18, %v558_v19 }
  0xc7   : > { %2949 = vmatpush1.bf16.msra.mxu1 %v12454_v26  ;;  %2907 = vmatprep.subr.bf16.mxu0 %v12701_v27  ;;  %v725_v38 = vld [vmem:[#allocation5 + $0x8e0] sm:$0xff]  ;;  %v546_v27 = vld [vmem:[#allocation5 + $0x348] sm:$0xff] }
  0xc8   : > { %2950 = vmatprep.subr.bf16.mxu1 %v12447_v28  ;;  %v12685_v43 = vcombine.high %v721_v37, %v725_v38  ;;  %v713_v44 = vld [vmem:[#allocation5 + $0x880] sm:$0xff]  ;;  %v12684_v48 = vcombine.low %v721_v37, %v725_v38  ;;  %v550_v28 = vld [vmem:[#allocation5 + $0x368] sm:$0xff] }
  0xc9   : > { %v717_v45 = vld [vmem:[#allocation5 + $0x8a0] sm:$0xff]  ;;  %v12511_v32 = vcombine.high %v546_v27, %v550_v28  ;;  %v12510_v38 = vcombine.low %v546_v27, %v550_v28 }
  0xca   : > { %2908 = vmatpush1.bf16.msra.mxu0 %v12700_v33  ;;  %v12677_v50 = vcombine.high %v713_v44, %v717_v45  ;;  %v705_v52 = vld [vmem:[#allocation5 + $0x840] sm:$0xff]  ;;  %v12676_v57 = vcombine.low %v713_v44, %v717_v45 }
  0xcb   : > { %2951 = vmatpush1.bf16.msra.mxu1 %v12446_v34  ;;  %2909 = vmatprep.subr.bf16.mxu0 %v12693_v35  ;;  %v709_v53 = vld [vmem:[#allocation5 + $0x860] sm:$0xff]  ;;  %v538_v35 = vld [vmem:[#allocation5 + $0x308] sm:$0xff] }
  0xcc   : > { %2952 = vmatprep.subr.bf16.mxu1 %v12439_v36  ;;  %v12669_v60 = vcombine.high %v705_v52, %v709_v53  ;;  %v697_v62 = vld [vmem:[#allocation5 + $0x800] sm:$0xff]  ;;  %v12668_v2 = vcombine.low %v705_v52, %v709_v53  ;;  %v542_v36 = vld [vmem:[#allocation5 + $0x328] sm:$0xff] }
  0xcd   : > { %v701_v63 = vld [vmem:[#allocation5 + $0x820] sm:$0xff]  ;;  %v12503_v40 = vcombine.high %v538_v35, %v542_v36  ;;  %v12502_v45 = vcombine.low %v538_v35, %v542_v36 }
  0xce   : > { %2910 = vmatpush1.bf16.msra.mxu0 %v12692_v41  ;;  %v12661_v4 = vcombine.high %v697_v62, %v701_v63  ;;  %v817_v6 = vld [vmem:[#allocation5 + $0xbc0] sm:$0xff]  ;;  %v12660_v10 = vcombine.low %v697_v62, %v701_v63 }
  0xcf   : > { %2953 = vmatpush1.bf16.msra.mxu1 %v12438_v42  ;;  %2911 = vmatprep.subr.bf16.mxu0 %v12685_v43  ;;  %v821_v7 = vld [vmem:[#allocation5 + $0xbe0] sm:$0xff]  ;;  %v530_v43 = vld [vmem:[#allocation5 + $0x2c8] sm:$0xff] }
  0xd0   : > { %2954 = vmatprep.subr.bf16.mxu1 %v12431_v56  ;;  %v12781_v13 = vcombine.high %v817_v6, %v821_v7  ;;  %v809_v16 = vld [vmem:[#allocation5 + $0xb80] sm:$0xff]  ;;  %v12780_v20 = vcombine.low %v817_v6, %v821_v7  ;;  %v534_v56 = vld [vmem:[#allocation5 + $0x2e8] sm:$0xff] }
  0xd1   : > { %v813_v17 = vld [vmem:[#allocation5 + $0xba0] sm:$0xff]  ;;  %v12495_v47 = vcombine.high %v530_v43, %v534_v56  ;;  %v12494_v53 = vcombine.low %v530_v43, %v534_v56 }
  0xd2   : > { %2912 = vmatpush1.bf16.msra.mxu0 %v12684_v48  ;;  %v12773_v23 = vcombine.high %v809_v16, %v813_v17  ;;  %v801_v25 = vld [vmem:[#allocation5 + $0xb40] sm:$0xff]  ;;  %v12772_v29 = vcombine.low %v809_v16, %v813_v17 }
  0xd3   : > { %2955 = vmatpush1.bf16.msra.mxu1 %v12430_v49  ;;  %2913 = vmatprep.subr.bf16.mxu0 %v12677_v50  ;;  %v805_v26 = vld [vmem:[#allocation5 + $0xb60] sm:$0xff]  ;;  %v522_v50 = vld [vmem:[#allocation5 + $0x288] sm:$0xff] }
  0xd4   : > { %2956 = vmatprep.subr.bf16.mxu1 %v12423_v51  ;;  %v12765_v31 = vcombine.high %v801_v25, %v805_v26  ;;  %v793_v33 = vld [vmem:[#allocation5 + $0xb00] sm:$0xff]  ;;  %v12764_v37 = vcombine.low %v801_v25, %v805_v26  ;;  %v526_v51 = vld [vmem:[#allocation5 + $0x2a8] sm:$0xff] }
  0xd5   : > { %v797_v34 = vld [vmem:[#allocation5 + $0xb20] sm:$0xff]  ;;  %v12487_v55 = vcombine.high %v522_v50, %v526_v51  ;;  %v12486_v63 = vcombine.low %v522_v50, %v526_v51  ;;  %v750_v25 = vld [vmem:[#allocation5 + $0x9a8] sm:$0xff] }
  0xd6   : > { %2914 = vmatpush1.bf16.msra.mxu0 %v12676_v57  ;;  %v12757_v39 = vcombine.high %v793_v33, %v797_v34  ;;  %v785_v41 = vld [vmem:[#allocation5 + $0xac0] sm:$0xff]  ;;  %v12756_v44 = vcombine.low %v793_v33, %v797_v34  ;;  %v742_v33 = vld [vmem:[#allocation5 + $0x968] sm:$0xff] }
  0xd7   : > { %2957 = vmatpush1.bf16.msra.mxu1 %v12422_v58  ;;  %2915 = vmatprep.subr.bf16.mxu0 %v12669_v60  ;;  %v789_v42 = vld [vmem:[#allocation5 + $0xae0] sm:$0xff]  ;;  %v514_v60 = vld [vmem:[#allocation5 + $0x248] sm:$0xff] }
  0xd8   : > { %2958 = vmatprep.subr.bf16.mxu1 %v12415_v61  ;;  %v12749_v46 = vcombine.high %v785_v41, %v789_v42  ;;  %v777_v48 = vld [vmem:[#allocation5 + $0xa80] sm:$0xff]  ;;  %v12748_v52 = vcombine.low %v785_v41, %v789_v42  ;;  %v518_v61 = vld [vmem:[#allocation5 + $0x268] sm:$0xff] }
  0xd9   : > { %v781_v49 = vld [vmem:[#allocation5 + $0xaa0] sm:$0xff]  ;;  %v12479_v1 = vcombine.high %v514_v60, %v518_v61  ;;  %v12478_v7 = vcombine.low %v514_v60, %v518_v61  ;;  %v734_v41 = vld [vmem:[#allocation5 + $0x928] sm:$0xff] }
  0xda   : > { %2916 = vmatpush1.bf16.msra.mxu0 %v12668_v2  ;;  %v12741_v54 = vcombine.high %v777_v48, %v781_v49  ;;  %v769_v57 = vld [vmem:[#allocation5 + $0xa40] sm:$0xff]  ;;  %v12740_v62 = vcombine.low %v777_v48, %v781_v49  ;;  %v586_v50 = vld [vmem:[#allocation5 + $0x488] sm:$0xff] }
  0xdb   : > { %2959 = vmatpush1.bf16.msra.mxu1 %v12414_v3  ;;  %2917 = vmatprep.subr.bf16.mxu0 %v12661_v4  ;;  %v773_v58 = vld [vmem:[#allocation5 + $0xa60] sm:$0xff]  ;;  %v506_v4 = vld [vmem:[#allocation5 + $0x208] sm:$0xff] }
  0xdc   : > { %2960 = vmatprep.subr.bf16.mxu1 %v12407_v5  ;;  %v12733_v0 = vcombine.high %v769_v57, %v773_v58  ;;  %v761_v2 = vld [vmem:[#allocation5 + $0xa00] sm:$0xff]  ;;  %v510_v5 = vld [vmem:[#allocation5 + $0x228] sm:$0xff]  ;;  %v12732_v6 = vcombine.low %v769_v57, %v773_v58 }
  0xdd   : > { %v765_v3 = vld [vmem:[#allocation5 + $0xa20] sm:$0xff]  ;;  %v12471_v9 = vcombine.high %v506_v4, %v510_v5  ;;  %v12470_v17 = vcombine.low %v506_v4, %v510_v5  ;;  %v590_v51 = vld [vmem:[#allocation5 + $0x4a8] sm:$0xff] }
  0xde   : > { %2918 = vmatpush1.bf16.msra.mxu0 %v12660_v10  ;;  %v12725_v8 = vcombine.high %v761_v2, %v765_v3  ;;  %v626_v10 = vld [vmem:[#allocation5 + $0x5c8] sm:$0xff]  ;;  %v12724_v16 = vcombine.low %v761_v2, %v765_v3  ;;  %v12551_v57 = vcombine.high %v586_v50, %v590_v51 }
  0xdf   : > { %2961 = vmatpush1.bf16.msra.mxu1 %v12406_v11  ;;  %2919 = vmatprep.subr.bf16.mxu0 %v12781_v13  ;;  %v630_v11 = vld [vmem:[#allocation5 + $0x5e8] sm:$0xff] }
  0xe0   : > { %2962 = vmatprep.subr.bf16.mxu1 %v12527_v14  ;;  %v754_v13 = vld [vmem:[#allocation5 + $0x9c8] sm:$0xff]  ;;  %v12591_v18 = vcombine.high %v626_v10, %v630_v11  ;;  %v12590_v26 = vcombine.low %v626_v10, %v630_v11 }
  0xe1   : > { %v758_v14 = vld [vmem:[#allocation5 + $0x9e8] sm:$0xff] }
  0xe2   : > { %2920 = vmatpush2.bf16.msra.mxu0 %v12780_v20  ;;  %v12719_v19 = vcombine.high %v754_v13, %v758_v14  ;;  %v618_v20 = vld [vmem:[#allocation5 + $0x588] sm:$0xff]  ;;  %v12718_v27 = vcombine.low %v754_v13, %v758_v14 }
  0xe3   : > { %2963 = vmatpush2.bf16.msra.mxu1 %v12526_v21  ;;  %2921 = vmatprep.subr.bf16.mxu0 %v12773_v23  ;;  %v622_v21 = vld [vmem:[#allocation5 + $0x5a8] sm:$0xff] }
  0xe4   : > { %2964 = vmatprep.subr.bf16.mxu1 %v12519_v24  ;;  %v14603_v23 = vld [vmem:[%s14567_s20 + $0x10] ss:$24 sps:$4 sm:$0xff]   ;;  %v12583_v28 = vcombine.high %v618_v20, %v622_v21  ;;  %v12582_v34 = vcombine.low %v618_v20, %v622_v21 }
  0xe5   : > { %v746_v24 = vld [vmem:[#allocation5 + $0x988] sm:$0xff] }
  0xe6   : > { %2922 = vmatpush2.bf16.msra.mxu0 %v12772_v29  ;;  %v12711_v29 = vcombine.high %v746_v24, %v750_v25  ;;  %v12710_v35 = vcombine.low %v746_v24, %v750_v25  ;;  %v578_v60 = vld [vmem:[#allocation5 + $0x448] sm:$0xff] }
  0xe7   : > { %2965 = vmatpush2.bf16.msra.mxu1 %v12518_v30  ;;  %2923 = vmatprep.subr.bf16.mxu0 %v12765_v31  ;;  %v610_v30 = vld [vmem:[#allocation5 + $0x548] sm:$0xff] }
  0xe8   : > { %2966 = vmatprep.subr.bf16.mxu1 %v12511_v32  ;;  %v614_v31 = vld [vmem:[#allocation5 + $0x568] sm:$0xff] }
  0xe9   : > { %v738_v32 = vld [vmem:[#allocation5 + $0x948] sm:$0xff]  ;;  %v12575_v36 = vcombine.high %v610_v30, %v614_v31  ;;  %v12574_v42 = vcombine.low %v610_v30, %v614_v31 }
  0xea   : > { %2924 = vmatpush2.bf16.msra.mxu0 %v12764_v37  ;;  %v12703_v37 = vcombine.high %v738_v32, %v742_v33  ;;  %v582_v61 = vld [vmem:[#allocation5 + $0x468] sm:$0xff] }
  0xeb   : > { %2967 = vmatpush2.bf16.msra.mxu1 %v12510_v38  ;;  %2925 = vmatprep.subr.bf16.mxu0 %v12757_v39  ;;  %v602_v38 = vld [vmem:[#allocation5 + $0x508] sm:$0xff]  ;;  %v12543_v2 = vcombine.high %v578_v60, %v582_v61 }
  0xec   : > { %2968 = vmatprep.subr.bf16.mxu1 %v12503_v40  ;;  %v606_v39 = vld [vmem:[#allocation5 + $0x528] sm:$0xff] }
  0xed   : > { %v730_v40 = vld [vmem:[#allocation5 + $0x908] sm:$0xff]  ;;  %v12567_v43 = vcombine.high %v602_v38, %v606_v39  ;;  %v12566_v48 = vcombine.low %v602_v38, %v606_v39 }
  0xee   : > { %2926 = vmatpush2.bf16.msra.mxu0 %v12756_v44  ;;  %v12695_v56 = vcombine.high %v730_v40, %v734_v41  ;;  %v594_v44 = vld [vmem:[#allocation5 + $0x4c8] sm:$0xff] }
  0xef   : > { %2969 = vmatpush2.bf16.msra.mxu1 %v12502_v45  ;;  %2927 = vmatprep.subr.bf16.mxu0 %v12749_v46  ;;  %v598_v45 = vld [vmem:[#allocation5 + $0x4e8] sm:$0xff] }
  0xf0   : > { %2970 = vmatprep.subr.bf16.mxu1 %v12495_v47  ;;  %v722_v46 = vld [vmem:[#allocation5 + $0x8c8] sm:$0xff]  ;;  %v12559_v49 = vcombine.high %v594_v44, %v598_v45 }
  0xf1   : > { %v726_v47 = vld [vmem:[#allocation5 + $0x8e8] sm:$0xff] }
  0xf2   : > { %2928 = vmatpush2.bf16.msra.mxu0 %v12748_v52  ;;  %v714_v52 = vld [vmem:[#allocation5 + $0x888] sm:$0xff] }
  0xf3   : > { %2971 = vmatpush2.bf16.msra.mxu1 %v12494_v53  ;;  %2929 = vmatprep.subr.bf16.mxu0 %v12741_v54  ;;  %v718_v53 = vld [vmem:[#allocation5 + $0x8a8] sm:$0xff]  ;;  %v12558_v54 = vcombine.low %v594_v44, %v598_v45 }
  0xf4   : > { %2972 = vmatprep.subr.bf16.mxu1 %v12487_v55  ;;  %v12686_v55 = vcombine.low %v722_v46, %v726_v47  ;;  %v12679_v58 = vcombine.high %v714_v52, %v718_v53  ;;  %v570_v4 = vld [vmem:[#allocation5 + $0x408] sm:$0xff] }
  0xf5   : > { %v574_v5 = vld [vmem:[#allocation5 + $0x428] sm:$0xff] }
  0xf6   : > { %2930 = vmatpush2.bf16.msra.mxu0 %v12740_v62  ;;  %v706_v62 = vld [vmem:[#allocation5 + $0x848] sm:$0xff]  ;;  %v12535_v10 = vcombine.high %v570_v4, %v574_v5 }
  0xf7   : > { %2973 = vmatpush2.bf16.msra.mxu1 %v12486_v63  ;;  %2931 = vmatprep.subr.bf16.mxu0 %v12733_v0  ;;  %v710_v63 = vld [vmem:[#allocation5 + $0x868] sm:$0xff]  ;;  %v12550_v0 = vcombine.low %v586_v50, %v590_v51 }
  0xf8   : > { %2974 = vmatprep.subr.bf16.mxu1 %v12479_v1  ;;  %v12678_v1 = vcombine.low %v714_v52, %v718_v53  ;;  %v12671_v3 = vcombine.high %v706_v62, %v710_v63  ;;  %v690_v13 = vld [vmem:[#allocation5 + $0x7c8] sm:$0xff] }
  0xf9   : > { %v694_v14 = vld [vmem:[#allocation5 + $0x7e8] sm:$0xff] }
  0xfa   : > { %2932 = vmatpush2.bf16.msra.mxu0 %v12732_v6  ;;  %v698_v6 = vld [vmem:[#allocation5 + $0x808] sm:$0xff]  ;;  %v12655_v20 = vcombine.high %v690_v13, %v694_v14 }
  0xfb   : > { %2975 = vmatpush2.bf16.msra.mxu1 %v12478_v7  ;;  %2933 = vmatprep.subr.bf16.mxu0 %v12725_v8  ;;  %v702_v7 = vld [vmem:[#allocation5 + $0x828] sm:$0xff]  ;;  %v12542_v8 = vcombine.low %v578_v60, %v582_v61 }
  0xfc   : > { %2976 = vmatprep.subr.bf16.mxu1 %v12471_v9  ;;  %v12670_v9 = vcombine.low %v706_v62, %v710_v63  ;;  %v12663_v11 = vcombine.high %v698_v6, %v702_v7  ;;  %v682_v24 = vld [vmem:[#allocation5 + $0x788] sm:$0xff] }
  0xfd   : > { %v686_v25 = vld [vmem:[#allocation5 + $0x7a8] sm:$0xff] }
  0xfe   : > { %2934 = vmatpush2.bf16.msra.mxu0 %v12724_v16  ;;  %v818_v16 = vld [vmem:[#allocation5 + $0xbc8] sm:$0xff]  ;;  %v12647_v30 = vcombine.high %v682_v24, %v686_v25 }
  0xff   : > { %2977 = vmatpush2.bf16.msra.mxu1 %v12470_v17  ;;  %2989 = vmatprep.subr.bf16.mxu0 %v12591_v18  ;;  %v822_v17 = vld [vmem:[#allocation5 + $0xbe8] sm:$0xff]  ;;  %v12534_v18 = vcombine.low %v570_v4, %v574_v5 }
 0x100   : > { %3032 = vmatprep.subr.bf16.mxu1 %v12719_v19  ;;  %v12662_v19 = vcombine.low %v698_v6, %v702_v7  ;;  %v12783_v21 = vcombine.high %v818_v16, %v822_v17  ;;  %v650_v52 = vld [vmem:[#allocation5 + $0x688] sm:$0xff] }
 0x101   : > { %2936 = vmatmul.mubr.bf16.vlgmr.msra.gmra.mxu0 %v14603_v23  ;;  %v654_v53 = vld [vmem:[#allocation5 + $0x6a8] sm:$0xff] }
 0x102   : > { %2979 = vmatmul.mubr.bf16.vlgmr.msra.gmra.mxu1 %v14590_v12  ;;  %2990 = vmatpush1.bf16.msra.mxu0 %v12590_v26  ;;  %v12702_v12 = vcombine.low %v738_v32, %v742_v33  ;;  %v810_v26 = vld [vmem:[#allocation5 + $0xb88] sm:$0xff]  ;;  %v12615_v60 = vcombine.high %v650_v52, %v654_v53 }
 0x103   : > { %3033 = vmatpush1.bf16.msra.mxu1 %v12718_v27  ;;  %2991 = vmatprep.subr.bf16.mxu0 %v12583_v28  ;;  %v814_v27 = vld [vmem:[#allocation5 + $0xba8] sm:$0xff]  ;;  %v12654_v28 = vcombine.low %v690_v13, %v694_v14 }
 0x104   : > { %3034 = vmatprep.subr.bf16.mxu1 %v12711_v29  ;;  %3021 = vmatprep.mubr.bf16.mxu0 %v14585_v59  ;;  %v12694_v59 = vcombine.low %v730_v40, %v734_v41  ;;  %v12782_v29 = vcombine.low %v818_v16, %v822_v17  ;;  %v12775_v31 = vcombine.high %v810_v26, %v814_v27  ;;  %v674_v32 = vld [vmem:[#allocation5 + $0x748] sm:$0xff]  ;;  %v499_v16 = vld [vmem:[#allocation5 + $0x1d0] sm:$0xff] }
 0x105   : > { %3064 = vmatprep.mubr.bf16.mxu1 %v14596_v22  ;;  %v12687_v22 = vcombine.high %v722_v46, %v726_v47  ;;  %v678_v33 = vld [vmem:[#allocation5 + $0x768] sm:$0xff]  ;;  %v503_v17 = vld [vmem:[#allocation5 + $0x1f0] sm:$0xff] }
 0x106   : > { %2992 = vmatpush1.bf16.msra.mxu0 %v12582_v34  ;;  %v802_v34 = vld [vmem:[#allocation5 + $0xb48] sm:$0xff]  ;;  %v12639_v38 = vcombine.high %v674_v32, %v678_v33 }
 0x107   : > { %3035 = vmatpush1.bf16.msra.mxu1 %v12710_v35  ;;  %2993 = vmatprep.subr.bf16.mxu0 %v12575_v36  ;;  %v806_v35 = vld [vmem:[#allocation5 + $0xb68] sm:$0xff]  ;;  %v12646_v36 = vcombine.low %v682_v24, %v686_v25  ;;  %v12465_v24 = vcombine.high %v499_v16, %v503_v17 }
 0x108   : > { %3036 = vmatprep.subr.bf16.mxu1 %v12703_v37  ;;  %v12774_v37 = vcombine.low %v810_v26, %v814_v27  ;;  %v12767_v39 = vcombine.high %v802_v34, %v806_v35  ;;  %v666_v40 = vld [vmem:[#allocation5 + $0x708] sm:$0xff]  ;;  %v491_v26 = vld [vmem:[#allocation5 + $0x190] sm:$0xff] }
 0x109   : > { %v670_v41 = vld [vmem:[#allocation5 + $0x728] sm:$0xff]  ;;  %v495_v27 = vld [vmem:[#allocation5 + $0x1b0] sm:$0xff] }
 0x10a   : > { %2994 = vmatpush1.bf16.msra.mxu0 %v12574_v42  ;;  %v794_v42 = vld [vmem:[#allocation5 + $0xb08] sm:$0xff]  ;;  %v12631_v44 = vcombine.high %v666_v40, %v670_v41 }
 0x10b   : > { %3037 = vmatpush1.bf16.msra.mxu1 %v12702_v12  ;;  %2995 = vmatprep.subr.bf16.mxu0 %v12567_v43  ;;  %v798_v12 = vld [vmem:[#allocation5 + $0xb28] sm:$0xff]  ;;  %v12638_v43 = vcombine.low %v674_v32, %v678_v33  ;;  %v12457_v32 = vcombine.high %v491_v26, %v495_v27 }
 0x10c   : > { %3038 = vmatprep.subr.bf16.mxu1 %v12695_v56  ;;  %v12766_v56 = vcombine.low %v802_v34, %v806_v35  ;;  %v12759_v45 = vcombine.high %v794_v42, %v798_v12  ;;  %v658_v46 = vld [vmem:[#allocation5 + $0x6c8] sm:$0xff]  ;;  %v483_v34 = vld [vmem:[#allocation5 + $0x150] sm:$0xff] }
 0x10d   : > { %v662_v47 = vld [vmem:[#allocation5 + $0x6e8] sm:$0xff]  ;;  %v487_v35 = vld [vmem:[#allocation5 + $0x170] sm:$0xff] }
 0x10e   : > { %2996 = vmatpush1.bf16.msra.mxu0 %v12566_v48  ;;  %v786_v48 = vld [vmem:[#allocation5 + $0xac8] sm:$0xff]  ;;  %v12623_v50 = vcombine.high %v658_v46, %v662_v47 }
 0x10f   : > { %3039 = vmatpush1.bf16.msra.mxu1 %v12694_v59  ;;  %2997 = vmatprep.subr.bf16.mxu0 %v12559_v49  ;;  %v790_v59 = vld [vmem:[#allocation5 + $0xae8] sm:$0xff]  ;;  %v12630_v49 = vcombine.low %v666_v40, %v670_v41  ;;  %v12449_v40 = vcombine.high %v483_v34, %v487_v35 }
 0x110   : > { %3040 = vmatprep.subr.bf16.mxu1 %v12687_v22  ;;  %v12758_v22 = vcombine.low %v794_v42, %v798_v12  ;;  %v12751_v51 = vcombine.high %v786_v48, %v790_v59  ;;  %v642_v62 = vld [vmem:[#allocation5 + $0x648] sm:$0xff]  ;;  %v475_v42 = vld [vmem:[#allocation5 + $0x110] sm:$0xff] }
 0x111   : > { %v646_v63 = vld [vmem:[#allocation5 + $0x668] sm:$0xff]  ;;  %v479_v12 = vld [vmem:[#allocation5 + $0x130] sm:$0xff] }
 0x112   : > { %2998 = vmatpush1.bf16.msra.mxu0 %v12558_v54  ;;  %v778_v54 = vld [vmem:[#allocation5 + $0xa88] sm:$0xff]  ;;  %v12607_v4 = vcombine.high %v642_v62, %v646_v63 }
 0x113   : > { %3041 = vmatpush1.bf16.msra.mxu1 %v12686_v55  ;;  %2999 = vmatprep.subr.bf16.mxu0 %v12551_v57  ;;  %v782_v55 = vld [vmem:[#allocation5 + $0xaa8] sm:$0xff]  ;;  %v12622_v57 = vcombine.low %v658_v46, %v662_v47  ;;  %v12441_v46 = vcombine.high %v475_v42, %v479_v12 }
 0x114   : > { %3042 = vmatprep.subr.bf16.mxu1 %v12679_v58  ;;  %v12750_v58 = vcombine.low %v786_v48, %v790_v59  ;;  %v12743_v61 = vcombine.high %v778_v54, %v782_v55  ;;  %v634_v6 = vld [vmem:[#allocation5 + $0x608] sm:$0xff]  ;;  %v467_v48 = vld [vmem:[#allocation5 + $0xd0] sm:$0xff] }
 0x115   : > { %v638_v7 = vld [vmem:[#allocation5 + $0x628] sm:$0xff]  ;;  %v471_v59 = vld [vmem:[#allocation5 + $0xf0] sm:$0xff] }
 0x116   : > { %3000 = vmatpush1.bf16.msra.mxu0 %v12550_v0  ;;  %v770_v0 = vld [vmem:[#allocation5 + $0xa48] sm:$0xff]  ;;  %v12599_v13 = vcombine.high %v634_v6, %v638_v7 }
 0x117   : > { %3043 = vmatpush1.bf16.msra.mxu1 %v12678_v1  ;;  %3001 = vmatprep.subr.bf16.mxu0 %v12543_v2  ;;  %v774_v1 = vld [vmem:[#allocation5 + $0xa68] sm:$0xff]  ;;  %v12614_v2 = vcombine.low %v650_v52, %v654_v53  ;;  %v12433_v52 = vcombine.high %v467_v48, %v471_v59 }
 0x118   : > { %3044 = vmatprep.subr.bf16.mxu1 %v12671_v3  ;;  %v12742_v3 = vcombine.low %v778_v54, %v782_v55  ;;  %v12735_v5 = vcombine.high %v770_v0, %v774_v1  ;;  %v459_v54 = vld [vmem:[#allocation5 + $0x90] sm:$0xff] }
 0x119   : > { %v463_v55 = vld [vmem:[#allocation5 + $0xb0] sm:$0xff] }
 0x11a   : > { %3002 = vmatpush1.bf16.msra.mxu0 %v12542_v8  ;;  %v762_v8 = vld [vmem:[#allocation5 + $0xa08] sm:$0xff] }
 0x11b   : > { %3045 = vmatpush1.bf16.msra.mxu1 %v12670_v9  ;;  %3003 = vmatprep.subr.bf16.mxu0 %v12535_v10  ;;  %v766_v9 = vld [vmem:[#allocation5 + $0xa28] sm:$0xff]  ;;  %v12606_v10 = vcombine.low %v642_v62, %v646_v63  ;;  %v12425_v62 = vcombine.high %v459_v54, %v463_v55 }
 0x11c   : > { %3046 = vmatprep.subr.bf16.mxu1 %v12663_v11  ;;  %v12734_v11 = vcombine.low %v770_v0, %v774_v1  ;;  %v12727_v14 = vcombine.high %v762_v8, %v766_v9  ;;  %v451_v0 = vld [vmem:[#allocation5 + $0x50] sm:$0xff] }
 0x11d   : > { %v455_v1 = vld [vmem:[#allocation5 + $0x70] sm:$0xff] }
 0x11e   : > { %3004 = vmatpush1.bf16.msra.mxu0 %v12534_v18  ;;  %v627_v18 = vld [vmem:[#allocation5 + $0x5d0] sm:$0xff] }
 0x11f   : > { %3047 = vmatpush1.bf16.msra.mxu1 %v12662_v19  ;;  %3005 = vmatprep.subr.bf16.mxu0 %v12655_v20  ;;  %v631_v19 = vld [vmem:[#allocation5 + $0x5f0] sm:$0xff]  ;;  %v12598_v20 = vcombine.low %v634_v6, %v638_v7  ;;  %v12417_v6 = vcombine.high %v451_v0, %v455_v1 }
 0x120   : > { %3048 = vmatprep.subr.bf16.mxu1 %v12783_v21  ;;  %v12726_v21 = vcombine.low %v762_v8, %v766_v9  ;;  %v12593_v25 = vcombine.high %v627_v18, %v631_v19  ;;  %v443_v8 = vld [vmem:[#allocation5 + $0x10] sm:$0xff] }
 0x121   : > { %v447_v9 = vld [vmem:[#allocation5 + $0x30] sm:$0xff] }
 0x122   : > { %3006 = vmatpush2.bf16.msra.mxu0 %v12654_v28  ;;  %v619_v28 = vld [vmem:[#allocation5 + $0x590] sm:$0xff] }
 0x123   : > { %3049 = vmatpush2.bf16.msra.mxu1 %v12782_v29  ;;  %3007 = vmatprep.subr.bf16.mxu0 %v12647_v30  ;;  %v623_v29 = vld [vmem:[#allocation5 + $0x5b0] sm:$0xff]  ;;  %v12464_v30 = vcombine.low %v499_v16, %v503_v17  ;;  %v12409_v16 = vcombine.high %v443_v8, %v447_v9 }
 0x124   : > { %3050 = vmatprep.subr.bf16.mxu1 %v12775_v31  ;;  %v12592_v31 = vcombine.low %v627_v18, %v631_v19  ;;  %v12585_v33 = vcombine.high %v619_v28, %v623_v29  ;;  %v563_v18 = vld [vmem:[#allocation5 + $0x3d0] sm:$0xff] }
 0x125   : > { %v567_v19 = vld [vmem:[#allocation5 + $0x3f0] sm:$0xff] }
 0x126   : > { %3008 = vmatpush2.bf16.msra.mxu0 %v12646_v36  ;;  %v611_v36 = vld [vmem:[#allocation5 + $0x550] sm:$0xff] }
 0x127   : > { %3051 = vmatpush2.bf16.msra.mxu1 %v12774_v37  ;;  %3009 = vmatprep.subr.bf16.mxu0 %v12639_v38  ;;  %v615_v37 = vld [vmem:[#allocation5 + $0x570] sm:$0xff]  ;;  %v12456_v38 = vcombine.low %v491_v26, %v495_v27  ;;  %v12529_v26 = vcombine.high %v563_v18, %v567_v19 }
 0x128   : > { %3052 = vmatprep.subr.bf16.mxu1 %v12767_v39  ;;  %v12584_v39 = vcombine.low %v619_v28, %v623_v29  ;;  %v12577_v41 = vcombine.high %v611_v36, %v615_v37  ;;  %v555_v28 = vld [vmem:[#allocation5 + $0x390] sm:$0xff] }
 0x129   : > { %v559_v29 = vld [vmem:[#allocation5 + $0x3b0] sm:$0xff] }
 0x12a   : > { %3010 = vmatpush2.bf16.msra.mxu0 %v12638_v43  ;;  %v14612_v43 = vld [vmem:[%s14567_s20 + $0x4] ss:$24 sps:$4 sm:$0xff]  }
 0x12b   : > { %3053 = vmatpush2.bf16.msra.mxu1 %v12766_v56  ;;  %3011 = vmatprep.subr.bf16.mxu0 %v12631_v44  ;;  %v607_v56 = vld [vmem:[#allocation5 + $0x530] sm:$0xff] }
 0x12c   : > { %3054 = vmatprep.subr.bf16.mxu1 %v12759_v45  ;;  %v14616_v44 = vld [vmem:[%s14567_s20 + $0xc] ss:$24 sps:$4 sm:$0xff]   ;;  %v12576_v45 = vcombine.low %v611_v36, %v615_v37 }
 0x12d   : > { %v547_v36 = vld [vmem:[#allocation5 + $0x350] sm:$0xff] }
 0x12e   : > { %3012 = vmatpush2.bf16.msra.mxu0 %v12630_v49  ;;  %v595_v49 = vld [vmem:[#allocation5 + $0x4d0] sm:$0xff] }
 0x12f   : > { %3055 = vmatpush2.bf16.msra.mxu1 %v12758_v22  ;;  %3013 = vmatprep.subr.bf16.mxu0 %v12623_v50  ;;  %v599_v22 = vld [vmem:[#allocation5 + $0x4f0] sm:$0xff]  ;;  %v12440_v50 = vcombine.low %v475_v42, %v479_v12 }
 0x130   : > { %3056 = vmatprep.subr.bf16.mxu1 %v12751_v51  ;;  %v12561_v53 = vcombine.high %v595_v49, %v599_v22  ;;  %v551_v37 = vld [vmem:[#allocation5 + $0x370] sm:$0xff] }
 0x131   : > { %v12513_v42 = vcombine.high %v547_v36, %v551_v37 }
 0x132   : > { %3014 = vmatpush2.bf16.msra.mxu0 %v12622_v57  ;;  %v587_v57 = vld [vmem:[#allocation5 + $0x490] sm:$0xff] }
 0x133   : > { %3057 = vmatpush2.bf16.msra.mxu1 %v12750_v58  ;;  %3015 = vmatprep.subr.bf16.mxu0 %v12615_v60  ;;  %v591_v58 = vld [vmem:[#allocation5 + $0x4b0] sm:$0xff]  ;;  %v12432_v60 = vcombine.low %v467_v48, %v471_v59 }
 0x134   : > { %3058 = vmatprep.subr.bf16.mxu1 %v12743_v61  ;;  %v12560_v61 = vcombine.low %v595_v49, %v599_v22  ;;  %v12553_v63 = vcombine.high %v587_v57, %v591_v58  ;;  %v531_v49 = vld [vmem:[#allocation5 + $0x2d0] sm:$0xff] }
 0x135   : > { %v535_v22 = vld [vmem:[#allocation5 + $0x2f0] sm:$0xff] }
 0x136   : > { %3016 = vmatpush2.bf16.msra.mxu0 %v12614_v2  ;;  %v579_v2 = vld [vmem:[#allocation5 + $0x450] sm:$0xff] }
 0x137   : > { %3059 = vmatpush2.bf16.msra.mxu1 %v12742_v3  ;;  %3017 = vmatprep.subr.bf16.mxu0 %v12607_v4  ;;  %v583_v3 = vld [vmem:[#allocation5 + $0x470] sm:$0xff]  ;;  %v12424_v4 = vcombine.low %v459_v54, %v463_v55  ;;  %v12497_v54 = vcombine.high %v531_v49, %v535_v22 }
 0x138   : > { %3060 = vmatprep.subr.bf16.mxu1 %v12735_v5  ;;  %v12552_v5 = vcombine.low %v587_v57, %v591_v58  ;;  %v12545_v7 = vcombine.high %v579_v2, %v583_v3  ;;  %v523_v57 = vld [vmem:[#allocation5 + $0x290] sm:$0xff] }
 0x139   : > { %v527_v58 = vld [vmem:[#allocation5 + $0x2b0] sm:$0xff] }
 0x13a   : > { %3018 = vmatpush2.bf16.msra.mxu0 %v12606_v10  ;;  %v571_v10 = vld [vmem:[#allocation5 + $0x410] sm:$0xff] }
 0x13b   : > { %3061 = vmatpush2.bf16.msra.mxu1 %v12734_v11  ;;  %3019 = vmatprep.subr.bf16.mxu0 %v12599_v13  ;;  %v575_v11 = vld [vmem:[#allocation5 + $0x430] sm:$0xff]  ;;  %v12416_v13 = vcombine.low %v451_v0, %v455_v1  ;;  %v12489_v0 = vcombine.high %v523_v57, %v527_v58 }
 0x13c   : > { %3062 = vmatprep.subr.bf16.mxu1 %v12727_v14  ;;  %v12544_v14 = vcombine.low %v579_v2, %v583_v3  ;;  %v12537_v17 = vcombine.high %v571_v10, %v575_v11  ;;  %v515_v2 = vld [vmem:[#allocation5 + $0x250] sm:$0xff] }
 0x13d   : > { %v519_v3 = vld [vmem:[#allocation5 + $0x270] sm:$0xff] }
 0x13e   : > { %3020 = vmatpush2.bf16.msra.mxu0 %v12598_v20  ;;  %v691_v20 = vld [vmem:[#allocation5 + $0x7d0] sm:$0xff] }
 0x13f   : > { %3063 = vmatpush2.bf16.msra.mxu1 %v12726_v21  ;;  %3075 = vmatprep.subr.bf16.mxu0 %v12465_v24  ;;  %v695_v21 = vld [vmem:[#allocation5 + $0x7f0] sm:$0xff]  ;;  %v12408_v24 = vcombine.low %v443_v8, %v447_v9  ;;  %v12481_v8 = vcombine.high %v515_v2, %v519_v3 }
 0x140   : > { %3118 = vmatprep.subr.bf16.mxu1 %v12593_v25  ;;  %v12536_v25 = vcombine.low %v571_v10, %v575_v11  ;;  %v12657_v27 = vcombine.high %v691_v20, %v695_v21  ;;  %v507_v10 = vld [vmem:[#allocation5 + $0x210] sm:$0xff] }
 0x141   : > { %3022 = vmatmul.mubr.bf16.vlgmr.msra.gmra.mxu0 %v14593_v15  ;;  %v603_v15 = vld [vmem:[#allocation5 + $0x510] sm:$0xff] }
 0x142   : > { %3065 = vmatmul.mubr.bf16.vlgmr.msra.gmra.mxu1 %v14603_v23  ;;  %3076 = vmatpush1.bf16.msra.mxu0 %v12464_v30  ;;  %v12448_v23 = vcombine.low %v483_v34, %v487_v35  ;;  %v12569_v47 = vcombine.high %v603_v15, %v607_v56  ;;  %v12568_v51 = vcombine.low %v603_v15, %v607_v56  ;;  %v683_v30 = vld [vmem:[#allocation5 + $0x790] sm:$0xff] }
 0x143   : > { %3119 = vmatpush1.bf16.msra.mxu1 %v12592_v31  ;;  %3077 = vmatprep.subr.bf16.mxu0 %v12457_v32  ;;  %v687_v31 = vld [vmem:[#allocation5 + $0x7b0] sm:$0xff]  ;;  %v12528_v32 = vcombine.low %v563_v18, %v567_v19  ;;  %v12521_v34 = vcombine.high %v555_v28, %v559_v29 }
 0x144   : > { %3120 = vmatprep.subr.bf16.mxu1 %v12585_v33  ;;  %3107 = vmatprep.mubr.bf16.mxu0 %v14612_v43  ;;  %v12656_v33 = vcombine.low %v691_v20, %v695_v21  ;;  %v12649_v35 = vcombine.high %v683_v30, %v687_v31  ;;  %v539_v15 = vld [vmem:[#allocation5 + $0x310] sm:$0xff] }
 0x145   : > { %3150 = vmatprep.mubr.bf16.mxu1 %v14616_v44  ;;  %v543_v56 = vld [vmem:[#allocation5 + $0x330] sm:$0xff] }
 0x146   : > { %3078 = vmatpush1.bf16.msra.mxu0 %v12456_v38  ;;  %v675_v38 = vld [vmem:[#allocation5 + $0x750] sm:$0xff]  ;;  %v12505_v48 = vcombine.high %v539_v15, %v543_v56 }
 0x147   : > { %3121 = vmatpush1.bf16.msra.mxu1 %v12584_v39  ;;  %3079 = vmatprep.subr.bf16.mxu0 %v12449_v40  ;;  %v679_v39 = vld [vmem:[#allocation5 + $0x770] sm:$0xff]  ;;  %v12520_v40 = vcombine.low %v555_v28, %v559_v29 }
 0x148   : > { %3122 = vmatprep.subr.bf16.mxu1 %v12577_v41  ;;  %v12648_v41 = vcombine.low %v683_v30, %v687_v31  ;;  %v12641_v12 = vcombine.high %v675_v38, %v679_v39  ;;  %v511_v11 = vld [vmem:[#allocation5 + $0x230] sm:$0xff] }
 0x149   : > { %v12473_v18 = vcombine.high %v507_v10, %v511_v11  ;;  %v755_v20 = vld [vmem:[#allocation5 + $0x9d0] sm:$0xff] }
 0x14a   : > { %3080 = vmatpush1.bf16.msra.mxu0 %v12448_v23  ;;  %v667_v23 = vld [vmem:[#allocation5 + $0x710] sm:$0xff] }
 0x14b   : > { %3123 = vmatpush1.bf16.msra.mxu1 %v12576_v45  ;;  %3081 = vmatprep.subr.bf16.mxu0 %v12441_v46  ;;  %v671_v45 = vld [vmem:[#allocation5 + $0x730] sm:$0xff]  ;;  %v12512_v46 = vcombine.low %v547_v36, %v551_v37 }
 0x14c   : > { %3124 = vmatprep.subr.bf16.mxu1 %v12569_v47  ;;  %v12640_v47 = vcombine.low %v675_v38, %v679_v39  ;;  %v12633_v59 = vcombine.high %v667_v23, %v671_v45  ;;  %v759_v21 = vld [vmem:[#allocation5 + $0x9f0] sm:$0xff] }
 0x14d   : > { %v12721_v28 = vcombine.high %v755_v20, %v759_v21  ;;  %v747_v30 = vld [vmem:[#allocation5 + $0x990] sm:$0xff] }
 0x14e   : > { %3082 = vmatpush1.bf16.msra.mxu0 %v12440_v50  ;;  %v659_v50 = vld [vmem:[#allocation5 + $0x6d0] sm:$0xff] }
 0x14f   : > { %3125 = vmatpush1.bf16.msra.mxu1 %v12568_v51  ;;  %3083 = vmatprep.subr.bf16.mxu0 %v12433_v52  ;;  %v663_v51 = vld [vmem:[#allocation5 + $0x6f0] sm:$0xff]  ;;  %v12504_v52 = vcombine.low %v539_v15, %v543_v56 }
 0x150   : > { %3126 = vmatprep.subr.bf16.mxu1 %v12561_v53  ;;  %v12632_v53 = vcombine.low %v667_v23, %v671_v45  ;;  %v12625_v55 = vcombine.high %v659_v50, %v663_v51  ;;  %v751_v31 = vld [vmem:[#allocation5 + $0x9b0] sm:$0xff] }
 0x151   : > { %v12713_v36 = vcombine.high %v747_v30, %v751_v31  ;;  %v739_v38 = vld [vmem:[#allocation5 + $0x950] sm:$0xff]  ;;  %v12712_v15 = vcombine.low %v747_v30, %v751_v31 }
 0x152   : > { %3084 = vmatpush1.bf16.msra.mxu0 %v12432_v60  ;;  %v651_v60 = vld [vmem:[#allocation5 + $0x690] sm:$0xff] }
 0x153   : > { %3127 = vmatpush1.bf16.msra.mxu1 %v12560_v61  ;;  %3085 = vmatprep.subr.bf16.mxu0 %v12425_v62  ;;  %v655_v61 = vld [vmem:[#allocation5 + $0x6b0] sm:$0xff]  ;;  %v12496_v62 = vcombine.low %v531_v49, %v535_v22  ;;  %v480_v49 = vld [vmem:[#allocation5 + $0x138] sm:$0xff] }
 0x154   : > { %3128 = vmatprep.subr.bf16.mxu1 %v12553_v63  ;;  %v12624_v63 = vcombine.low %v659_v50, %v663_v51  ;;  %v12617_v1 = vcombine.high %v651_v60, %v655_v61  ;;  %v743_v39 = vld [vmem:[#allocation5 + $0x970] sm:$0xff] }
 0x155   : > { %v12705_v23 = vcombine.high %v739_v38, %v743_v39  ;;  %v12704_v22 = vcombine.low %v739_v38, %v743_v39 }
 0x156   : > { %3086 = vmatpush1.bf16.msra.mxu0 %v12424_v4  ;;  %v643_v4 = vld [vmem:[#allocation5 + $0x650] sm:$0xff] }
 0x157   : > { %3129 = vmatpush1.bf16.msra.mxu1 %v12552_v5  ;;  %3087 = vmatprep.subr.bf16.mxu0 %v12417_v6  ;;  %v647_v5 = vld [vmem:[#allocation5 + $0x670] sm:$0xff]  ;;  %v12488_v6 = vcombine.low %v523_v57, %v527_v58  ;;  %v472_v57 = vld [vmem:[#allocation5 + $0xf8] sm:$0xff] }
 0x158   : > { %3130 = vmatprep.subr.bf16.mxu1 %v12545_v7  ;;  %v12616_v7 = vcombine.low %v651_v60, %v655_v61  ;;  %v12609_v9 = vcombine.high %v643_v4, %v647_v5 }
 0x15a   : > { %3088 = vmatpush1.bf16.msra.mxu0 %v12416_v13  ;;  %v635_v13 = vld [vmem:[#allocation5 + $0x610] sm:$0xff] }
 0x15b   : > { %3131 = vmatpush1.bf16.msra.mxu1 %v12544_v14  ;;  %3089 = vmatprep.subr.bf16.mxu0 %v12409_v16  ;;  %v639_v14 = vld [vmem:[#allocation5 + $0x630] sm:$0xff]  ;;  %v12480_v16 = vcombine.low %v515_v2, %v519_v3 }
 0x15c   : > { %3132 = vmatprep.subr.bf16.mxu1 %v12537_v17  ;;  %v12608_v17 = vcombine.low %v643_v4, %v647_v5  ;;  %v12601_v19 = vcombine.high %v635_v13, %v639_v14 }
 0x15e   : > { %3090 = vmatpush1.bf16.msra.mxu0 %v12408_v24  ;;  %v500_v24 = vld [vmem:[#allocation5 + $0x1d8] sm:$0xff] }
 0x15f   : > { %3133 = vmatpush1.bf16.msra.mxu1 %v12536_v25  ;;  %3091 = vmatprep.subr.bf16.mxu0 %v12529_v26  ;;  %v504_v25 = vld [vmem:[#allocation5 + $0x1f8] sm:$0xff]  ;;  %v12472_v26 = vcombine.low %v507_v10, %v511_v11 }
 0x160   : > { %3134 = vmatprep.subr.bf16.mxu1 %v12657_v27  ;;  %v12600_v27 = vcombine.low %v635_v13, %v639_v14  ;;  %v12467_v29 = vcombine.high %v500_v24, %v504_v25 }
 0x162   : > { %3092 = vmatpush2.bf16.msra.mxu0 %v12528_v32  ;;  %v492_v32 = vld [vmem:[#allocation5 + $0x198] sm:$0xff] }
 0x163   : > { %3135 = vmatpush2.bf16.msra.mxu1 %v12656_v33  ;;  %3093 = vmatprep.subr.bf16.mxu0 %v12521_v34  ;;  %v496_v33 = vld [vmem:[#allocation5 + $0x1b8] sm:$0xff]  ;;  %v12720_v34 = vcombine.low %v755_v20, %v759_v21 }
 0x164   : > { %3136 = vmatprep.subr.bf16.mxu1 %v12649_v35  ;;  %v12466_v35 = vcombine.low %v500_v24, %v504_v25  ;;  %v12459_v37 = vcombine.high %v492_v32, %v496_v33  ;;  %v12458_v56 = vcombine.low %v492_v32, %v496_v33 }
 0x166   : > { %3094 = vmatpush2.bf16.msra.mxu0 %v12520_v40  ;;  %v14620_v40 = vld [vmem:[%s14567_s20] ss:$24 sps:$4 sm:$0xff]  }
 0x167   : > { %3137 = vmatpush2.bf16.msra.mxu1 %v12648_v41  ;;  %3095 = vmatprep.subr.bf16.mxu0 %v12513_v42  ;;  %v484_v41 = vld [vmem:[#allocation5 + $0x158] sm:$0xff] }
 0x168   : > { %3138 = vmatprep.subr.bf16.mxu1 %v12641_v12  ;;  %v488_v42 = vld [vmem:[#allocation5 + $0x178] sm:$0xff] }
 0x169   : > { %v14624_v12 = vld [vmem:[%s14567_s20 + $0x8] ss:$24 sps:$4 sm:$0xff]   ;;  %v12451_v45 = vcombine.high %v484_v41, %v488_v42  ;;  %v12450_v50 = vcombine.low %v484_v41, %v488_v42 }
 0x16a   : > { %3096 = vmatpush2.bf16.msra.mxu0 %v12512_v46  ;;  %v731_v46 = vld [vmem:[#allocation5 + $0x910] sm:$0xff] }
 0x16b   : > { %3139 = vmatpush2.bf16.msra.mxu1 %v12640_v47  ;;  %3097 = vmatprep.subr.bf16.mxu0 %v12505_v48  ;;  %v735_v47 = vld [vmem:[#allocation5 + $0x930] sm:$0xff] }
 0x16c   : > { %3140 = vmatprep.subr.bf16.mxu1 %v12633_v59  ;;  %v14628_v48 = vld [vmem:[%s14567_s20 + $0x14] ss:$24 sps:$4 sm:$0xff]   ;;  %v12697_v51 = vcombine.high %v731_v46, %v735_v47  ;;  %v12696_v58 = vcombine.low %v731_v46, %v735_v47 }
 0x16d   : > { %v476_v59 = vld [vmem:[#allocation5 + $0x118] sm:$0xff] }
 0x16e   : > { %3098 = vmatpush2.bf16.msra.mxu0 %v12504_v52  ;;  %v12443_v52 = vcombine.high %v476_v59, %v480_v49  ;;  %v12442_v60 = vcombine.low %v476_v59, %v480_v49 }
 0x16f   : > { %3141 = vmatpush2.bf16.msra.mxu1 %v12632_v53  ;;  %3099 = vmatprep.subr.bf16.mxu0 %v12497_v54  ;;  %v723_v53 = vld [vmem:[#allocation5 + $0x8d0] sm:$0xff] }
 0x170   : > { %3142 = vmatprep.subr.bf16.mxu1 %v12625_v55  ;;  %v727_v54 = vld [vmem:[#allocation5 + $0x8f0] sm:$0xff]  ;;  %v468_v55 = vld [vmem:[#allocation5 + $0xd8] sm:$0xff] }
 0x171   : > { %v12689_v61 = vcombine.high %v723_v53, %v727_v54  ;;  %v12688_v2 = vcombine.low %v723_v53, %v727_v54  ;;  %v12434_v3 = vcombine.low %v468_v55, %v472_v57 }
 0x172   : > { %3100 = vmatpush2.bf16.msra.mxu0 %v12496_v62  ;;  %v715_v62 = vld [vmem:[#allocation5 + $0x890] sm:$0xff] }
 0x173   : > { %3143 = vmatpush2.bf16.msra.mxu1 %v12624_v63  ;;  %3101 = vmatprep.subr.bf16.mxu0 %v12489_v0  ;;  %v719_v63 = vld [vmem:[#allocation5 + $0x8b0] sm:$0xff]  ;;  %v460_v0 = vld [vmem:[#allocation5 + $0x98] sm:$0xff] }
 0x174   : > { %3144 = vmatprep.subr.bf16.mxu1 %v12617_v1  ;;  %v464_v1 = vld [vmem:[#allocation5 + $0xb8] sm:$0xff]  ;;  %v12681_v4 = vcombine.high %v715_v62, %v719_v63  ;;  %v12680_v10 = vcombine.low %v715_v62, %v719_v63 }
 0x175   : > { %v12427_v5 = vcombine.high %v460_v0, %v464_v1  ;;  %v12426_v11 = vcombine.low %v460_v0, %v464_v1 }
 0x176   : > { %3102 = vmatpush2.bf16.msra.mxu0 %v12488_v6  ;;  %v707_v6 = vld [vmem:[#allocation5 + $0x850] sm:$0xff] }
 0x177   : > { %3145 = vmatpush2.bf16.msra.mxu1 %v12616_v7  ;;  %3103 = vmatprep.subr.bf16.mxu0 %v12481_v8  ;;  %v711_v7 = vld [vmem:[#allocation5 + $0x870] sm:$0xff]  ;;  %v452_v8 = vld [vmem:[#allocation5 + $0x58] sm:$0xff] }
 0x178   : > { %3146 = vmatprep.subr.bf16.mxu1 %v12609_v9  ;;  %v456_v9 = vld [vmem:[#allocation5 + $0x78] sm:$0xff]  ;;  %v12673_v13 = vcombine.high %v707_v6, %v711_v7  ;;  %v12672_v20 = vcombine.low %v707_v6, %v711_v7  ;;  %v827_v6 = vlaneseq }
 0x179   : > { %v12419_v14 = vcombine.high %v452_v8, %v456_v9  ;;  %v12418_v21 = vcombine.low %v452_v8, %v456_v9 }
 0x17a   : > { %3104 = vmatpush2.bf16.msra.mxu0 %v12480_v16  ;;  %v699_v16 = vld [vmem:[#allocation5 + $0x810] sm:$0xff] }
 0x17b   : > { %3147 = vmatpush2.bf16.msra.mxu1 %v12608_v17  ;;  %3105 = vmatprep.subr.bf16.mxu0 %v12473_v18  ;;  %v703_v17 = vld [vmem:[#allocation5 + $0x830] sm:$0xff]  ;;  %v444_v18 = vld [vmem:[#allocation5 + $0x18] sm:$0xff] }
 0x17c   : > { %3148 = vmatprep.subr.bf16.mxu1 %v12601_v19  ;;  %v448_v19 = vld [vmem:[#allocation5 + $0x38] sm:$0xff]  ;;  %v12665_v24 = vcombine.high %v699_v16, %v703_v17  ;;  %v12664_v30 = vcombine.low %v699_v16, %v703_v17  ;;  %v14632_v17 = vshrl.u32 %v827_v6, 7 }
 0x17d   : > { %v12411_v25 = vcombine.high %v444_v18, %v448_v19  ;;  %v12410_v31 = vcombine.low %v444_v18, %v448_v19  ;;  %v520_v16 = vld [vmem:[#allocation5 + $0x278] sm:$0xff] }
 0x17e   : > { %3106 = vmatpush2.bf16.msra.mxu0 %v12472_v26  ;;  %v819_v26 = vld [vmem:[#allocation5 + $0xbd0] sm:$0xff]  ;;  %16212 = vst [vmem:[#allocation24_spill] sm:$0xff] %v14632_v17 }
 0x17f   : > { %3149 = vmatpush2.bf16.msra.mxu1 %v12600_v27  ;;  %3161 = vmatprep.subr.bf16.mxu0 %v12721_v28  ;;  %v823_v27 = vld [vmem:[#allocation5 + $0xbf0] sm:$0xff]  ;;  %v564_v28 = vld [vmem:[#allocation5 + $0x3d8] sm:$0xff] }
 0x180   : > { %3204 = vmatprep.subr.bf16.mxu1 %v12467_v29  ;;  %v568_v29 = vld [vmem:[#allocation5 + $0x3f8] sm:$0xff]  ;;  %v12785_v32 = vcombine.high %v819_v26, %v823_v27  ;;  %v12784_v38 = vcombine.low %v819_v26, %v823_v27  ;;  %v767_v26 = vld [vmem:[#allocation5 + $0xa30] sm:$0xff] }
 0x181   : > { %3108 = vmatmul.mubr.bf16.vlgmr.msra.gmra.mxu0 %v14620_v40  ;;  %v12531_v33 = vcombine.high %v564_v28, %v568_v29  ;;  %v12530_v39 = vcombine.low %v564_v28, %v568_v29  ;;  %v2851_v18 = vpop.f32.mrf.mxu0  ;;  %v508_v27 = vld [vmem:[#allocation5 + $0x218] sm:$0xff]  ;;  %v14635_v29 = vsub.s32 0, %v14632_v17 }
 0x182   : > { %3151 = vmatmul.mubr.bf16.vlgmr.msra.gmra.mxu1 %v14624_v12  ;;  %3162 = vmatpush1.bf16.msra.mxu0 %v12720_v34  ;;  %v811_v34 = vld [vmem:[#allocation5 + $0xb90] sm:$0xff]  ;;  %v512_v28 = vld [vmem:[#allocation5 + $0x238] sm:$0xff] }
 0x183   : > { %3205 = vmatpush1.bf16.msra.mxu1 %v12466_v35  ;;  %3163 = vmatprep.subr.bf16.mxu0 %v12713_v36  ;;  %v815_v35 = vld [vmem:[#allocation5 + $0xbb0] sm:$0xff]  ;;  %v556_v36 = vld [vmem:[#allocation5 + $0x398] sm:$0xff]  ;;  %16213 = vst [vmem:[#allocation25_spill] sm:$0xff] %v14635_v29 }
 0x184   : > { %3206 = vmatprep.subr.bf16.mxu1 %v12459_v37  ;;  %3193 = vmatprep.mubr.bf16.mxu0 %v14628_v48  ;;  %v560_v37 = vld [vmem:[#allocation5 + $0x3b8] sm:$0xff]  ;;  %v12777_v41 = vcombine.high %v811_v34, %v815_v35  ;;  %v12776_v46 = vcombine.low %v811_v34, %v815_v35 }
 0x185   : > { %3236 = vmatprep.mubr.bf16.mxu1 %v14612_v43  ;;  %v12435_v43 = vcombine.high %v468_v55, %v472_v57  ;;  %v12523_v42 = vcombine.high %v556_v36, %v560_v37  ;;  %v12522_v47 = vcombine.low %v556_v36, %v560_v37  ;;  %v2894_v36 = vpop.f32.mrf.mxu1  ;;  %v12475_v37 = vcombine.high %v508_v27, %v512_v28 }
 0x186   : > { %3164 = vmatpush1.bf16.msra.mxu0 %v12712_v15  ;;  %v803_v15 = vld [vmem:[#allocation5 + $0xb50] sm:$0xff] }
 0x187   : > { %3207 = vmatpush1.bf16.msra.mxu1 %v12458_v56  ;;  %3165 = vmatprep.subr.bf16.mxu0 %v12705_v23  ;;  %v807_v56 = vld [vmem:[#allocation5 + $0xb70] sm:$0xff]  ;;  %v548_v23 = vld [vmem:[#allocation5 + $0x358] sm:$0xff] }
 0x188   : > { %3208 = vmatprep.subr.bf16.mxu1 %v12451_v45  ;;  %v552_v45 = vld [vmem:[#allocation5 + $0x378] sm:$0xff]  ;;  %v12769_v59 = vcombine.high %v803_v15, %v807_v56  ;;  %v12768_v53 = vcombine.low %v803_v15, %v807_v56 }
 0x189   : > { %v12515_v49 = vcombine.high %v548_v23, %v552_v45  ;;  %v12514_v54 = vcombine.low %v548_v23, %v552_v45 }
 0x18a   : > { %3166 = vmatpush1.bf16.msra.mxu0 %v12704_v22  ;;  %v795_v22 = vld [vmem:[#allocation5 + $0xb10] sm:$0xff] }
 0x18b   : > { %3209 = vmatpush1.bf16.msra.mxu1 %v12450_v50  ;;  %3167 = vmatprep.subr.bf16.mxu0 %v12697_v51  ;;  %v799_v50 = vld [vmem:[#allocation5 + $0xb30] sm:$0xff]  ;;  %v540_v51 = vld [vmem:[#allocation5 + $0x318] sm:$0xff] }
 0x18c   : > { %3210 = vmatprep.subr.bf16.mxu1 %v12443_v52  ;;  %v544_v52 = vld [vmem:[#allocation5 + $0x338] sm:$0xff]  ;;  %v12761_v55 = vcombine.high %v795_v22, %v799_v50  ;;  %v12760_v62 = vcombine.low %v795_v22, %v799_v50 }
 0x18d   : > { %v12507_v57 = vcombine.high %v540_v51, %v544_v52  ;;  %v12506_v63 = vcombine.low %v540_v51, %v544_v52  ;;  %v620_v22 = vld [vmem:[#allocation5 + $0x598] sm:$0xff] }
 0x18e   : > { %3168 = vmatpush1.bf16.msra.mxu0 %v12696_v58  ;;  %v787_v58 = vld [vmem:[#allocation5 + $0xad0] sm:$0xff]  ;;  %v624_v50 = vld [vmem:[#allocation5 + $0x5b8] sm:$0xff] }
 0x18f   : > { %3211 = vmatpush1.bf16.msra.mxu1 %v12442_v60  ;;  %3169 = vmatprep.subr.bf16.mxu0 %v12689_v61  ;;  %v791_v60 = vld [vmem:[#allocation5 + $0xaf0] sm:$0xff]  ;;  %v532_v61 = vld [vmem:[#allocation5 + $0x2d8] sm:$0xff] }
 0x190   : > { %3212 = vmatprep.subr.bf16.mxu1 %v12435_v43  ;;  %v536_v43 = vld [vmem:[#allocation5 + $0x2f8] sm:$0xff]  ;;  %v12753_v0 = vcombine.high %v787_v58, %v791_v60  ;;  %v12752_v7 = vcombine.low %v787_v58, %v791_v60  ;;  %v12587_v60 = vcombine.high %v620_v22, %v624_v50 }
 0x191   : > { %v12499_v1 = vcombine.high %v532_v61, %v536_v43  ;;  %v12498_v8 = vcombine.low %v532_v61, %v536_v43  ;;  %v748_v51 = vld [vmem:[#allocation5 + $0x998] sm:$0xff] }
 0x192   : > { %3170 = vmatpush1.bf16.msra.mxu0 %v12688_v2  ;;  %v779_v2 = vld [vmem:[#allocation5 + $0xa90] sm:$0xff]  ;;  %v752_v52 = vld [vmem:[#allocation5 + $0x9b8] sm:$0xff] }
 0x193   : > { %3213 = vmatpush1.bf16.msra.mxu1 %v12434_v3  ;;  %3171 = vmatprep.subr.bf16.mxu0 %v12681_v4  ;;  %v783_v3 = vld [vmem:[#allocation5 + $0xab0] sm:$0xff]  ;;  %v524_v4 = vld [vmem:[#allocation5 + $0x298] sm:$0xff] }
 0x194   : > { %3214 = vmatprep.subr.bf16.mxu1 %v12427_v5  ;;  %v528_v5 = vld [vmem:[#allocation5 + $0x2b8] sm:$0xff]  ;;  %v12745_v9 = vcombine.high %v779_v2, %v783_v3  ;;  %v12744_v19 = vcombine.low %v779_v2, %v783_v3 }
 0x195   : > { %v612_v61 = vld [vmem:[#allocation5 + $0x558] sm:$0xff] }
 0x196   : > { %3172 = vmatpush1.bf16.msra.mxu0 %v12680_v10  ;;  %v12491_v10 = vcombine.high %v524_v4, %v528_v5  ;;  %v744_v2 = vld [vmem:[#allocation5 + $0x978] sm:$0xff] }
 0x197   : > { %3215 = vmatpush1.bf16.msra.mxu1 %v12426_v11  ;;  %3173 = vmatprep.subr.bf16.mxu0 %v12673_v13  ;;  %v771_v11 = vld [vmem:[#allocation5 + $0xa50] sm:$0xff] }
 0x198   : > { %3216 = vmatprep.subr.bf16.mxu1 %v12419_v14  ;;  %v775_v13 = vld [vmem:[#allocation5 + $0xa70] sm:$0xff]  ;;  %v516_v14 = vld [vmem:[#allocation5 + $0x258] sm:$0xff] }
 0x199   : > { %v12482_v34 = vcombine.low %v516_v14, %v520_v16 }
 0x19a   : > { %3174 = vmatpush1.bf16.msra.mxu0 %v12672_v20  ;;  %v12490_v20 = vcombine.low %v524_v4, %v528_v5  ;;  %v14647_v5 = vld [vmem:[%s14567_s20 + $0x10] ss:$24 sps:$4 sm:$0xff]   ;;  %s14378_s20 = smov [#allocation12]  }
 0x19b   : > { %3217 = vmatpush1.bf16.msra.mxu1 %v12418_v21  ;;  %3175 = vmatprep.subr.bf16.mxu0 %v12665_v24  ;;  %v12737_v21 = vcombine.high %v771_v11, %v775_v13  ;;  %v12483_v24 = vcombine.high %v516_v14, %v520_v16  ;;  %s14194_s2 = sshll.u32 %s14378_s20, 4  ;;  %s14195_s2 = int_to_ptr.vmem [resolvable:$false] %s14194_s2 }
 0x19c   : > { %3218 = vmatprep.subr.bf16.mxu1 %v12411_v25  ;;  %v763_v25 = vld [vmem:[#allocation5 + $0xa10] sm:$0xff]  ;;  %s14196_s13 = scalar_lea.vmem %s14195_s2, 2048  ;;  %p14197_p2 = scmp.lt.s32.totalorder %s15956_s16, %s14195_s2 }
 0x19d   : > { %v12729_v35 = vcombine.high %v763_v25, %v767_v26  ;;  %v12728_v45 = vcombine.low %v763_v25, %v767_v26  ;;  %v732_v26 = vld [vmem:[#allocation5 + $0x918] sm:$0xff]  ;;  %p14198_p4 = scmp.lt.s32.totalorder %s14196_s13, %s14190_s21 }
 0x19e   : > { %3176 = vmatpush1.bf16.msra.mxu0 %v12664_v30  ;;  %v14638_v30 = vsub.s32 1, %v14632_v17 }
 0x19f   : > { %3219 = vmatpush1.bf16.msra.mxu1 %v12410_v31  ;;  %3177 = vmatprep.subr.bf16.mxu0 %v12785_v32  ;;  %v2853_v31 = vpop.f32.mrf.mxu0  ;;  %v12736_v32 = vcombine.low %v771_v11, %v775_v13  ;;  %p14199_p8 = por %p14198_p4, %p14197_p2 }
 0x1a0   : > { %3220 = vmatprep.subr.bf16.mxu1 %v12531_v33  ;;  %16214 = vst [vmem:[#allocation26_spill] sm:$0xff] %v14638_v30  ;;  %v14640_v33 = vld [vmem:[#allocation7] sm:$0xff] }
 0x1a1   : > { %v830_v15 = vrot.slane %v14640_v33, %v14635_v29  ;;  %v834_v56 = vrot.slane %v14640_v33, %v14638_v30  ;;  %v2855_v23 = vpop.f32.mrf.mxu0  ;;  %p14200_p12 = pnand %p14199_p8, %p14193_p1 }
 0x1a2   : > { %3178 = vmatpush2.bf16.msra.mxu0 %v12784_v38  ;;  %v628_v38 = vld [vmem:[#allocation5 + $0x5d8] sm:$0xff] }
 0x1a3   : > { %3221 = vmatpush2.bf16.msra.mxu1 %v12530_v39  ;;  %3179 = vmatprep.subr.bf16.mxu0 %v12777_v41  ;;  %v632_v39 = vld [vmem:[#allocation5 + $0x5f8] sm:$0xff]  ;;  %v2856_v43 = vadd.f32 %v2855_v23, %v830_v15 }
 0x1a4   : > { %3222 = vmatprep.subr.bf16.mxu1 %v12523_v42  ;;  %v756_v41 = vld [vmem:[#allocation5 + $0x9d8] sm:$0xff] }
 0x1a5   : > { %v760_v42 = vld [vmem:[#allocation5 + $0x9f8] sm:$0xff] }
 0x1a6   : > { %3180 = vmatpush2.bf16.msra.mxu0 %v12776_v46  ;;  %v12474_v46 = vcombine.low %v508_v27, %v512_v28  ;;  %v12722_v58 = vcombine.low %v756_v41, %v760_v42  ;;  %v736_v27 = vld [vmem:[#allocation5 + $0x938] sm:$0xff] }
 0x1a7   : > { %3223 = vmatpush2.bf16.msra.mxu1 %v12522_v47  ;;  %3181 = vmatprep.subr.bf16.mxu0 %v12769_v59  ;;  %v12595_v47 = vcombine.high %v628_v38, %v632_v39  ;;  %v2896_v59 = vpop.f32.mrf.mxu1 }
 0x1a8   : > { %3224 = vmatprep.subr.bf16.mxu1 %v12515_v49  ;;  %v12723_v49 = vcombine.high %v756_v41, %v760_v42  ;;  %v596_v41 = vld [vmem:[#allocation5 + $0x4d8] sm:$0xff] }
 0x1a9   : > { %v600_v42 = vld [vmem:[#allocation5 + $0x4f8] sm:$0xff] }
 0x1aa   : > { %3182 = vmatpush2.bf16.msra.mxu0 %v12768_v53  ;;  %v2852_v53 = vadd.f32 %v2851_v18, %v830_v15  ;;  %v724_v15 = vld [vmem:[#allocation5 + $0x8d8] sm:$0xff] }
 0x1ab   : > { %3225 = vmatpush2.bf16.msra.mxu1 %v12514_v54  ;;  %3183 = vmatprep.subr.bf16.mxu0 %v12761_v55  ;;  %v2854_v54 = vadd.f32 %v2853_v31, %v834_v56  ;;  %v2857_v55 = vpop.f32.mrf.mxu0 }
 0x1ac   : > { %3226 = vmatprep.subr.bf16.mxu1 %v12507_v57  ;;  %v12594_v57 = vcombine.low %v628_v38, %v632_v39  ;;  %v2858_v3 = vadd.f32 %v2857_v55, %v834_v56  ;;  %v2895_v6 = vadd.f32 %v2894_v36, %v2852_v53  ;;  %v12699_v39 = vcombine.high %v732_v26, %v736_v27  ;;  %v728_v56 = vld [vmem:[#allocation5 + $0x8f8] sm:$0xff] }
 0x1ad   : > { %v716_v53 = vld [vmem:[#allocation5 + $0x898] sm:$0xff]  ;;  %v12562_v55 = vcombine.low %v596_v41, %v600_v42 }
 0x1ae   : > { %3184 = vmatpush2.bf16.msra.mxu0 %v12760_v62  ;;  %v2898_v62 = vpop.f32.mrf.mxu1 }
 0x1af   : > { %3227 = vmatpush2.bf16.msra.mxu1 %v12506_v63  ;;  %3185 = vmatprep.subr.bf16.mxu0 %v12753_v0  ;;  %v12715_v63 = vcombine.high %v748_v51, %v752_v52  ;;  %v616_v0 = vld [vmem:[#allocation5 + $0x578] sm:$0xff]  ;;  %v2899_v14 = vadd.f32 %v2898_v62, %v2856_v43 }
 0x1b0   : > { %3228 = vmatprep.subr.bf16.mxu1 %v12499_v1  ;;  %v740_v1 = vld [vmem:[#allocation5 + $0x958] sm:$0xff]  ;;  %v12579_v11 = vcombine.high %v612_v61, %v616_v0  ;;  %v2900_v16 = vpop.f32.mrf.mxu1  ;;  %v12578_v25 = vcombine.low %v612_v61, %v616_v0 }
 0x1b1   : > { %v12707_v13 = vcombine.high %v740_v1, %v744_v2  ;;  %v580_v61 = vld [vmem:[#allocation5 + $0x458] sm:$0xff] }
 0x1b2   : > { %3186 = vmatpush2.bf16.msra.mxu0 %v12752_v7  ;;  %v2897_v7 = vadd.f32 %v2896_v59, %v2854_v54  ;;  %v12698_v59 = vcombine.low %v732_v26, %v736_v27  ;;  %v720_v54 = vld [vmem:[#allocation5 + $0x8b8] sm:$0xff] }
 0x1b3   : > { %3229 = vmatpush2.bf16.msra.mxu1 %v12498_v8  ;;  %3187 = vmatprep.subr.bf16.mxu0 %v12745_v9  ;;  %v12586_v8 = vcombine.low %v620_v22, %v624_v50  ;;  %v12691_v22 = vcombine.high %v724_v15, %v728_v56  ;;  %v588_v50 = vld [vmem:[#allocation5 + $0x498] sm:$0xff] }
 0x1b4   : > { %3230 = vmatprep.subr.bf16.mxu1 %v12491_v10  ;;  %v12714_v10 = vcombine.low %v748_v51, %v752_v52  ;;  %v592_v51 = vld [vmem:[#allocation5 + $0x4b8] sm:$0xff] }
 0x1b5   : > { %v584_v43 = vld [vmem:[#allocation5 + $0x478] sm:$0xff]  ;;  %v12554_v0 = vcombine.low %v588_v50, %v592_v51 }
 0x1b6   : > { %3188 = vmatpush2.bf16.msra.mxu0 %v12744_v19  ;;  %v708_v62 = vld [vmem:[#allocation5 + $0x858] sm:$0xff] }
 0x1b7   : > { %3231 = vmatpush2.bf16.msra.mxu1 %v12490_v20  ;;  %3189 = vmatprep.subr.bf16.mxu0 %v12737_v21  ;;  %v604_v20 = vld [vmem:[#allocation5 + $0x518] sm:$0xff] }
 0x1b8   : > { %3232 = vmatprep.subr.bf16.mxu1 %v12483_v24  ;;  %v608_v21 = vld [vmem:[#allocation5 + $0x538] sm:$0xff] }
 0x1b9   : > { %v12571_v36 = vcombine.high %v604_v20, %v608_v21  ;;  %v684_v26 = vld [vmem:[#allocation5 + $0x798] sm:$0xff] }
 0x1ba   : > { %3190 = vmatpush2.bf16.msra.mxu0 %v12736_v32  ;;  %v688_v27 = vld [vmem:[#allocation5 + $0x7b8] sm:$0xff] }
 0x1bb   : > { %3233 = vmatpush2.bf16.msra.mxu1 %v12482_v34  ;;  %3191 = vmatprep.subr.bf16.mxu0 %v12729_v35 }
 0x1bc   : > { %3234 = vmatprep.subr.bf16.mxu1 %v12475_v37 }
 0x1be   : > { %3192 = vmatpush2.bf16.msra.mxu0 %v12728_v45 }
 0x1bf   : > { %3235 = vmatpush2.bf16.msra.mxu1 %v12474_v46  ;;  %3247 = vmatprep.subr.bf16.mxu0 %v12595_v47  ;;  %v12570_v46 = vcombine.low %v604_v20, %v608_v21  ;;  %v824_v20 = vld [vmem:[#allocation5 + $0xbf8] sm:$0xff] }
 0x1c0   : > { %3290 = vmatprep.subr.bf16.mxu1 %v12723_v49  ;;  %v12563_v49 = vcombine.high %v596_v41, %v600_v42  ;;  %v804_v41 = vld [vmem:[#allocation5 + $0xb58] sm:$0xff] }
 0x1c1   : > { %v2937_v4 = vpop.f32.mrf.mxu0  ;;  %3194 = vmatmul.mubr.bf16.vlgmr.msra.gmra.mxu0 %v14647_v5  ;;  %v808_v42 = vld [vmem:[#allocation5 + $0xb78] sm:$0xff] }
 0x1c2   : > { %3237 = vmatmul.mubr.bf16.vlgmr.msra.gmra.mxu1 %v14620_v40  ;;  %3248 = vmatpush1.bf16.msra.mxu0 %v12594_v57  ;;  %v2938_v18 = vadd.f32 %v2937_v4, %v2895_v6  ;;  %v2901_v40 = vadd.f32 %v2900_v16, %v2858_v3  ;;  %v12690_v57 = vcombine.low %v724_v15, %v728_v56  ;;  %v572_v4 = vld [vmem:[#allocation5 + $0x418] sm:$0xff] }
 0x1c3   : > { %3291 = vmatpush1.bf16.msra.mxu1 %v12722_v58  ;;  %v2939_v9 = vpop.f32.mrf.mxu0  ;;  %3249 = vmatprep.subr.bf16.mxu0 %v12587_v60  ;;  %v12555_v58 = vcombine.high %v588_v50, %v592_v51  ;;  %v12683_v60 = vcombine.high %v716_v53, %v720_v54  ;;  %v576_v6 = vld [vmem:[#allocation5 + $0x438] sm:$0xff]  ;;  %v12650_v15 = vcombine.low %v684_v26, %v688_v27 }
 0x1c4   : > { %v14654_v19 = vadd.f32 %v2939_v9, %v2897_v7  ;;  %3292 = vmatprep.subr.bf16.mxu1 %v12715_v63  ;;  %3279 = vmatprep.mubr.bf16.mxu0 %v14616_v44  ;;  %v12706_v44 = vcombine.low %v740_v1, %v744_v2  ;;  %v712_v63 = vld [vmem:[#allocation5 + $0x878] sm:$0xff]  ;;  %v12682_v1 = vcombine.low %v716_v53, %v720_v54 }
 0x1c5   : > { %v2941_v24 = vpop.f32.mrf.mxu0  ;;  %3322 = vmatprep.mubr.bf16.mxu1 %v14628_v48  ;;  %v12547_v2 = vcombine.high %v580_v61, %v584_v43  ;;  %v12675_v3 = vcombine.high %v708_v62, %v712_v63  ;;  %v700_v7 = vld [vmem:[#allocation5 + $0x818] sm:$0xff]  ;;  %v12546_v9 = vcombine.low %v580_v61, %v584_v43  ;;  %v12538_v21 = vcombine.low %v572_v4, %v576_v6 }
 0x1c6   : > { %v13882_v28 = vpack.c.bf16 %v14654_v19, %v2938_v18  ;;  %v11121_v31 = vcombine.low %v2938_v18, %v14654_v19  ;;  %v11122_v32 = vcombine.high %v2938_v18, %v14654_v19  ;;  %v2942_v34 = vadd.f32 %v2941_v24, %v2899_v14  ;;  %3250 = vmatpush1.bf16.msra.mxu0 %v12586_v8  ;;  %v704_v8 = vld [vmem:[#allocation5 + $0x838] sm:$0xff] }
 0x1c7   : > { %3293 = vmatpush1.bf16.msra.mxu1 %v12714_v10  ;;  %v2943_v35 = vpop.f32.mrf.mxu0  ;;  %3251 = vmatprep.subr.bf16.mxu0 %v12579_v11  ;;  %v12674_v10 = vcombine.low %v708_v62, %v712_v63  ;;  %v12539_v11 = vcombine.high %v572_v4, %v576_v6  ;;  %v692_v14 = vld [vmem:[#allocation5 + $0x7d8] sm:$0xff]  ;;  %v12770_v50 = vcombine.low %v804_v41, %v808_v42 }
 0x1c8   : > { %3381 = vst [vmem:[%s14662_s3] sm:$0xff] %v13882_v28  ;;  %v14665_v37 = vmax.f32 %v11121_v31, %v11122_v32  ;;  %v14667_v48 = vpack.c.bf16 %v2942_v34, %v2938_v18  ;;  %v14669_v38 = vadd.f32 %v2943_v35, %v2901_v40  ;;  %3294 = vmatprep.subr.bf16.mxu1 %v12707_v13  ;;  %v696_v16 = vld [vmem:[#allocation5 + $0x7f8] sm:$0xff] }
 0x1c9   : > { %v12667_v13 = vcombine.high %v700_v7, %v704_v8  ;;  %v820_v18 = vld [vmem:[#allocation5 + $0xbd8] sm:$0xff]  ;;  %v12666_v40 = vcombine.low %v700_v7, %v704_v8  ;;  %v12659_v24 = vcombine.high %v692_v14, %v696_v16  ;;  %v12658_v32 = vcombine.low %v692_v14, %v696_v16 }
 0x1ca   : > { %16215 = vst [vmem:[#allocation27_spill] sm:$0xff] %v14667_v48  ;;  %v13886_v23 = vpack.c.bf16 %v14669_v38, %v2942_v34  ;;  %v11129_v45 = vcombine.low %v2942_v34, %v14669_v38  ;;  %3252 = vmatpush1.bf16.msra.mxu0 %v12578_v25  ;;  %v11130_v47 = vcombine.high %v2942_v34, %v14669_v38  ;;  %v812_v28 = vld [vmem:[#allocation5 + $0xb98] sm:$0xff] }
 0x1cb   : > { %3295 = vmatpush1.bf16.msra.mxu1 %v12706_v44  ;;  %3253 = vmatprep.subr.bf16.mxu0 %v12571_v36  ;;  %v12787_v25 = vcombine.high %v820_v18, %v824_v20  ;;  %v816_v31 = vld [vmem:[#allocation5 + $0xbb8] sm:$0xff]  ;;  %v12786_v34 = vcombine.low %v820_v18, %v824_v20  ;;  %v12651_v35 = vcombine.high %v684_v26, %v688_v27  ;;  %v2980_v18 = vpop.f32.mrf.mxu1 }
 0x1cc   : > { %3385 = vst [vmem:[%s14662_s3 + $0x20] sm:$0xff] %v13886_v23  ;;  %3296 = vmatprep.subr.bf16.mxu1 %v12699_v39  ;;  %v14675_v52 = vmax.f32 %v11129_v45, %v11130_v47  ;;  %v12779_v44 = vcombine.high %v812_v28, %v816_v31  ;;  %v676_v36 = vld [vmem:[#allocation5 + $0x758] sm:$0xff]  ;;  %v12778_v56 = vcombine.low %v812_v28, %v816_v31  ;;  %v14678_v31 = vsub.s32 2, %v14632_v17 }
 0x1cd   : > { %v680_v39 = vld [vmem:[#allocation5 + $0x778] sm:$0xff]  ;;  %v12771_v45 = vcombine.high %v804_v41, %v808_v42  ;;  %v14681_v41 = vsub.s32 3, %v14632_v17 }
 0x1ce   : > { %3254 = vmatpush1.bf16.msra.mxu0 %v12570_v46  ;;  %v12643_v23 = vcombine.high %v676_v36, %v680_v39  ;;  %v668_v46 = vld [vmem:[#allocation5 + $0x718] sm:$0xff]  ;;  %16216 = vst [vmem:[#allocation28_spill] sm:$0xff] %v14678_v31 }
 0x1cf   : > { %3297 = vmatpush1.bf16.msra.mxu1 %v12698_v59  ;;  %3255 = vmatprep.subr.bf16.mxu0 %v12563_v49  ;;  %v672_v47 = vld [vmem:[#allocation5 + $0x738] sm:$0xff]  ;;  %16217 = vst [vmem:[#allocation29_spill] sm:$0xff] %v14681_v41 }
 0x1d0   : > { %3298 = vmatprep.subr.bf16.mxu1 %v12691_v22  ;;  %v796_v59 = vld [vmem:[#allocation5 + $0xb18] sm:$0xff]  ;;  %v12642_v22 = vcombine.low %v676_v36, %v680_v39  ;;  %v12635_v51 = vcombine.high %v668_v46, %v672_v47  ;;  %v3573_v36 = vld [vmem:[#allocation8 + $0xb80] sm:$0xff] }
 0x1d1   : > { %v800_v49 = vld [vmem:[#allocation5 + $0xb38] sm:$0xff]  ;;  %v3577_v39 = vld [vmem:[#allocation8 + $0xbc0] sm:$0xff] }
 0x1d2   : > { %3256 = vmatpush1.bf16.msra.mxu0 %v12562_v55  ;;  %v12763_v53 = vcombine.high %v796_v59, %v800_v49  ;;  %v660_v54 = vld [vmem:[#allocation5 + $0x6d8] sm:$0xff]  ;;  %v12762_v61 = vcombine.low %v796_v59, %v800_v49  ;;  %v14377_v59 = vmov 1983009808  }
 0x1d3   : > { %3299 = vmatpush1.bf16.msra.mxu1 %v12690_v57  ;;  %3257 = vmatprep.subr.bf16.mxu0 %v12555_v58  ;;  %v664_v55 = vld [vmem:[#allocation5 + $0x6f8] sm:$0xff]  ;;  %v11170_v49 = vunpack.c.l.s4 %v14377_v59  ;;  %v14746_v59 = vld [vmem:[#allocation8 + $0x900] sm:$0xff] }
 0x1d4   : > { %3300 = vmatprep.subr.bf16.mxu1 %v12683_v60  ;;  %v788_v57 = vld [vmem:[#allocation5 + $0xad8] sm:$0xff]  ;;  %v12634_v60 = vcombine.low %v668_v46, %v672_v47  ;;  %v12627_v43 = vcombine.high %v660_v54, %v664_v55  ;;  %v12981_v46 = vcombine.high %v3573_v36, %v3577_v39  ;;  %v3437_v47 = vld [vmem:[#allocation8 + $0x300] sm:$0xff] }
 0x1d5   : > { %v792_v58 = vld [vmem:[#allocation5 + $0xaf8] sm:$0xff] }
 0x1d6   : > { %3258 = vmatpush1.bf16.msra.mxu0 %v12554_v0  ;;  %v12755_v62 = vcombine.high %v788_v57, %v792_v58  ;;  %v652_v63 = vld [vmem:[#allocation5 + $0x698] sm:$0xff]  ;;  %v12754_v4 = vcombine.low %v788_v57, %v792_v58 }
 0x1d7   : > { %3301 = vmatpush1.bf16.msra.mxu1 %v12682_v1  ;;  %3259 = vmatprep.subr.bf16.mxu0 %v12547_v2  ;;  %v656_v0 = vld [vmem:[#allocation5 + $0x6b8] sm:$0xff] }
 0x1d8   : > { %3302 = vmatprep.subr.bf16.mxu1 %v12675_v3  ;;  %v780_v1 = vld [vmem:[#allocation5 + $0xa98] sm:$0xff]  ;;  %v12626_v3 = vcombine.low %v660_v54, %v664_v55  ;;  %v12619_v6 = vcombine.high %v652_v63, %v656_v0  ;;  %v12980_v55 = vcombine.low %v3573_v36, %v3577_v39 }
 0x1d9   : > { %v784_v2 = vld [vmem:[#allocation5 + $0xab8] sm:$0xff] }
 0x1da   : > { %3260 = vmatpush1.bf16.msra.mxu0 %v12546_v9  ;;  %v12747_v7 = vcombine.high %v780_v1, %v784_v2  ;;  %v644_v8 = vld [vmem:[#allocation5 + $0x658] sm:$0xff]  ;;  %v12746_v14 = vcombine.low %v780_v1, %v784_v2  ;;  %v14696_v1 = vld [vmem:[#allocation8 + $0xa80] sm:$0xff] }
 0x1db   : > { %3303 = vmatpush1.bf16.msra.mxu1 %v12674_v10  ;;  %3261 = vmatprep.subr.bf16.mxu0 %v12539_v11  ;;  %v648_v9 = vld [vmem:[#allocation5 + $0x678] sm:$0xff]  ;;  %v14698_v2 = vld [vmem:[#allocation8 + $0xac0] sm:$0xff] }
 0x1dc   : > { %3304 = vmatprep.subr.bf16.mxu1 %v12667_v13  ;;  %v772_v10 = vld [vmem:[#allocation5 + $0xa58] sm:$0xff]  ;;  %v12618_v13 = vcombine.low %v652_v63, %v656_v0  ;;  %v12611_v16 = vcombine.high %v644_v8, %v648_v9  ;;  %v12610_v26 = vcombine.low %v644_v8, %v648_v9  ;;  %v11171_v63 = vunpack.c.0.s8 %v11170_v49  ;;  %v14706_v9 = vld [vmem:[#allocation8 + $0x240] sm:$0xff] }
 0x1dd   : > { %v776_v11 = vld [vmem:[#allocation5 + $0xa78] sm:$0xff]  ;;  %v14693_v0 = vpack.c.bf16 %v14669_v38, %v14654_v19  ;;  %v14748_v49 = vld [vmem:[#allocation8 + $0x940] sm:$0xff] }
 0x1de   : > { %3262 = vmatpush1.bf16.msra.mxu0 %v12538_v21  ;;  %v12739_v20 = vcombine.high %v772_v10, %v776_v11  ;;  %v636_v21 = vld [vmem:[#allocation5 + $0x618] sm:$0xff]  ;;  %v12738_v27 = vcombine.low %v772_v10, %v776_v11 }
 0x1df   : > { %3305 = vmatpush1.bf16.msra.mxu1 %v12666_v40  ;;  %3263 = vmatprep.subr.bf16.mxu0 %v12659_v24  ;;  %v640_v40 = vld [vmem:[#allocation5 + $0x638] sm:$0xff]  ;;  %16218 = vst [vmem:[#allocation30_spill] sm:$0xff] %v14693_v0 }
 0x1e0   : > { %3306 = vmatprep.subr.bf16.mxu1 %v12787_v25  ;;  %v764_v24 = vld [vmem:[#allocation5 + $0xa18] sm:$0xff]  ;;  %v12603_v28 = vcombine.high %v636_v21, %v640_v40  ;;  %v12602_v42 = vcombine.low %v636_v21, %v640_v40  ;;  %v14717_v21 = vld [vmem:[#allocation8 + $0xa40] sm:$0xff] }
 0x1e1   : > { %v768_v25 = vld [vmem:[#allocation5 + $0xa38] sm:$0xff]  ;;  %v14719_v40 = vld [vmem:[#allocation8 + $0x180] sm:$0xff] }
 0x1e2   : > { %3264 = vmatpush2.bf16.msra.mxu0 %v12658_v32  ;;  %v2982_v32 = vpop.f32.mrf.mxu1 }
 0x1e3   : > { %3307 = vmatpush2.bf16.msra.mxu1 %v12786_v34  ;;  %3265 = vmatprep.subr.bf16.mxu0 %v12651_v35  ;;  %v12731_v34 = vcombine.high %v764_v24, %v768_v25  ;;  %v3445_v35 = vld [vmem:[#allocation8 + $0x380] sm:$0xff] }
 0x1e4   : > { %3308 = vmatprep.subr.bf16.mxu1 %v12779_v44  ;;  %v3449_v44 = vld [vmem:[#allocation8 + $0x3c0] sm:$0xff] }
 0x1e5   : > { %v12852_v54 = vcombine.low %v3445_v35, %v3449_v44 }
 0x1e6   : > { %3266 = vmatpush2.bf16.msra.mxu0 %v12650_v15  ;;  %v12730_v15 = vcombine.low %v764_v24, %v768_v25  ;;  %v14721_v24 = vld [vmem:[#allocation8 + $0x1c0] sm:$0xff] }
 0x1e7   : > { %3309 = vmatpush2.bf16.msra.mxu1 %v12778_v56  ;;  %3267 = vmatprep.subr.bf16.mxu0 %v12643_v23  ;;  %v12853_v56 = vcombine.high %v3445_v35, %v3449_v44  ;;  %v838_v23 = vrot.slane %v14640_v33, %v14678_v31  ;;  %v14944_v31 = vld [vmem:[#allocation8 + $0xc00] sm:$0xff] }
 0x1e8   : > { %3310 = vmatprep.subr.bf16.mxu1 %v12771_v45  ;;  %v2984_v45 = vpop.f32.mrf.mxu1 }
 0x1e9   : > { %v2981_v57 = vadd.f32 %v2980_v18, %v838_v23 }
 0x1ea   : > { %3268 = vmatpush2.bf16.msra.mxu0 %v12642_v22  ;;  %v3441_v22 = vld [vmem:[#allocation8 + $0x340] sm:$0xff]  ;;  %v2986_v58 = vpop.f32.mrf.mxu1 }
 0x1eb   : > { %3311 = vmatpush2.bf16.msra.mxu1 %v12770_v50  ;;  %3269 = vmatprep.subr.bf16.mxu0 %v12635_v51  ;;  %v3565_v50 = vld [vmem:[#allocation8 + $0xb00] sm:$0xff] }
 0x1ec   : > { %3312 = vmatprep.subr.bf16.mxu1 %v12763_v53  ;;  %v3569_v51 = vld [vmem:[#allocation8 + $0xb40] sm:$0xff]  ;;  %v842_v53 = vrot.slane %v14640_v33, %v14681_v41 }
 0x1ed   : > { %v12972_v19 = vcombine.low %v3565_v50, %v3569_v51  ;;  %v14942_v41 = vld [vmem:[#allocation8 + $0x440] sm:$0xff] }
 0x1ee   : > { %3270 = vmatpush2.bf16.msra.mxu0 %v12634_v60  ;;  %v12845_v60 = vcombine.high %v3437_v47, %v3441_v22  ;;  %v2987_v35 = vadd.f32 %v2986_v58, %v842_v53  ;;  %v14760_v58 = vld [vmem:[#allocation8 + $0x8c0] sm:$0xff] }
 0x1ef   : > { %3313 = vmatpush2.bf16.msra.mxu1 %v12762_v61  ;;  %3271 = vmatprep.subr.bf16.mxu0 %v12627_v43  ;;  %v12973_v61 = vcombine.high %v3565_v50, %v3569_v51  ;;  %v14687_v43 = vld [vmem:[#allocation8 + $0x280] sm:$0xff] }
 0x1f0   : > { %3314 = vmatprep.subr.bf16.mxu1 %v12755_v62  ;;  %v14689_v62 = vld [vmem:[#allocation8 + $0x2c0] sm:$0xff] }
 0x1f1   : > { %v12837_v38 = vcombine.high %v14687_v43, %v14689_v62 }
 0x1f2   : > { %3272 = vmatpush2.bf16.msra.mxu0 %v12626_v3  ;;  %v2983_v3 = vadd.f32 %v2982_v32, %v842_v53 }
 0x1f3   : > { %3315 = vmatpush2.bf16.msra.mxu1 %v12754_v4  ;;  %3273 = vmatprep.subr.bf16.mxu0 %v12619_v6 }
 0x1f4   : > { %3316 = vmatprep.subr.bf16.mxu1 %v12747_v7  ;;  %v12844_v7 = vcombine.low %v3437_v47, %v3441_v22  ;;  %v12821_v47 = vcombine.high %v14719_v40, %v14721_v24  ;;  %v14750_v22 = vld [vmem:[#allocation8 + $0x80] sm:$0xff] }
 0x1f6   : > { %3274 = vmatpush2.bf16.msra.mxu0 %v12618_v13  ;;  %v14710_v13 = vld [vmem:[#allocation8 + $0xa00] sm:$0xff] }
 0x1f7   : > { %3317 = vmatpush2.bf16.msra.mxu1 %v12746_v14  ;;  %3275 = vmatprep.subr.bf16.mxu0 %v12611_v16  ;;  %v14713_v14 = vsub.s32 %v11171_v63, %v14632_v17  ;;  %v2985_v16 = vadd.f32 %v2984_v45, %v838_v23  ;;  %v12956_v45 = vcombine.low %v14710_v13, %v14717_v21 }
 0x1f8   : > { %3318 = vmatprep.subr.bf16.mxu1 %v12739_v20  ;;  %v12836_v20 = vcombine.low %v14687_v43, %v14689_v62 }
 0x1f9   : > { %16219 = vst [vmem:[#allocation31_spill] sm:$0xff] %v14713_v14 }
 0x1fa   : > { %3276 = vmatpush2.bf16.msra.mxu0 %v12610_v26 }
 0x1fb   : > { %3319 = vmatpush2.bf16.msra.mxu1 %v12738_v27  ;;  %3277 = vmatprep.subr.bf16.mxu0 %v12603_v28  ;;  %v12964_v28 = vcombine.low %v14696_v1, %v14698_v2 }
 0x1fc   : > { %3320 = vmatprep.subr.bf16.mxu1 %v12731_v34  ;;  %v14729_v34 = vld [vmem:[#allocation8 + $0x980] sm:$0xff] }
 0x1fe   : > { %3278 = vmatpush2.bf16.msra.mxu0 %v12602_v42  ;;  %v14733_v42 = vld [vmem:[#allocation8 + $0x9c0] sm:$0xff] }
 0x1ff   : > { %3321 = vmatpush2.bf16.msra.mxu1 %v12730_v15  ;;  %6503 = vmatprep.subr.bf16.mxu0 %v12853_v56  ;;  %v14735_v15 = vld [vmem:[#allocation8 + $0x100] sm:$0xff]  ;;  %v12949_v43 = vcombine.high %v14729_v34, %v14733_v42 }
 0x200   : > { %6546 = vmatprep.subr.bf16.mxu1 %v12981_v46  ;;  %v14737_v56 = vld [vmem:[#allocation8 + $0x140] sm:$0xff]  ;;  %v12957_v46 = vcombine.high %v14710_v13, %v14717_v21 }
 0x201   : > { %v3023_v33 = vpop.f32.mrf.mxu0  ;;  %3280 = vmatmul.mubr.bf16.vlgmr.msra.gmra.mxu0 %v14624_v12  ;;  %v14704_v12 = vld [vmem:[#allocation8 + $0x200] sm:$0xff]  ;;  %v12812_v62 = vcombine.low %v14735_v15, %v14737_v56  ;;  %v12813_v63 = vcombine.high %v14735_v15, %v14737_v56  ;;  %v16222_v15 = vcombine.low %v14746_v59, %v14748_v49 }
 0x202   : > { %v3024_v4 = vadd.f32 %v3023_v33, %v2981_v57  ;;  %v3066_v6 = vpop.f32.mrf.mxu1  ;;  %3323 = vmatmul.mubr.bf16.vlgmr.msra.gmra.mxu1 %v14647_v5  ;;  %6504 = vmatpush1.bf16.msra.mxu0 %v12852_v54  ;;  %v12965_v5 = vcombine.high %v14696_v1, %v14698_v2  ;;  %v12829_v32 = vcombine.high %v14704_v12, %v14706_v9  ;;  %v14758_v57 = vld [vmem:[#allocation8 + $0x880] sm:$0xff] }
 0x203   : > { %6535 = vmatprep.mubr.bf16.mxu0 %v14693_v0  ;;  %6547 = vmatpush1.bf16.msra.mxu1 %v12980_v55  ;;  %v3025_v8 = vpop.f32.mrf.mxu0  ;;  %v12828_v39 = vcombine.low %v14704_v12, %v14706_v9  ;;  %v12820_v54 = vcombine.low %v14719_v40, %v14721_v24  ;;  %v14756_v55 = vld [vmem:[#allocation8 + $0xc0] sm:$0xff]  ;;  %v11175_v40 = vrot.slane %v14665_v37, %v14713_v14 }
 0x204   : > { %v3026_v10 = vadd.f32 %v3025_v8, %v2983_v3  ;;  %v3068_v11 = vpop.f32.mrf.mxu1  ;;  %6505 = vmatprep.subr.bf16.mxu0 %v12845_v60  ;;  %6548 = vmatprep.subr.bf16.mxu1 %v12973_v61  ;;  %v14723_v25 = vadd.f32 %v3066_v6, %v3024_v4  ;;  %v12948_v61 = vcombine.low %v14729_v34, %v14733_v42  ;;  %v14771_v33 = vld [vmem:[#allocation8] sm:$0xff] }
 0x205   : > { %v3027_v18 = vpop.f32.mrf.mxu0  ;;  %v14773_v1 = vld [vmem:[#allocation8 + $0x40] sm:$0xff]  ;;  %v16223_v56 = vcombine.high %v14750_v22, %v14756_v55 }
 0x206   : > { %v3069_v26 = vadd.f32 %v3068_v11, %v3026_v10  ;;  %v3070_v27 = vpop.f32.mrf.mxu1  ;;  %6506 = vmatpush1.bf16.msra.mxu0 %v12844_v7  ;;  %v3028_v44 = vadd.f32 %v3027_v18, %v2985_v16  ;;  %v14775_v2 = vld [vmem:[#allocation8 + $0x800] sm:$0xff] }
 0x207   : > { %6549 = vmatpush1.bf16.msra.mxu1 %v12972_v19  ;;  %v3029_v36 = vpop.f32.mrf.mxu0  ;;  %6507 = vmatprep.subr.bf16.mxu0 %v12837_v38  ;;  %v14783_v7 = vld [vmem:[#allocation8 + $0x840] sm:$0xff]  ;;  %v12941_v38 = vcombine.high %v14746_v59, %v14748_v49  ;;  %v16224_v59 = vcombine.high %v14758_v57, %v14760_v58 }
 0x208   : > { %v13883_v23 = vpack.c.bf16 %v3069_v26, %v14723_v25  ;;  %6550 = vmatprep.subr.bf16.mxu1 %v12965_v5  ;;  %v11123_v50 = vcombine.low %v14723_v25, %v3069_v26  ;;  %v11124_v51 = vcombine.high %v14723_v25, %v3069_v26  ;;  %v3030_v53 = vadd.f32 %v3029_v36, %v2987_v35  ;;  %v3072_v60 = vpop.f32.mrf.mxu1  ;;  %v14785_v8 = vld [vmem:[#allocation8 + $0x780] sm:$0xff] }
 0x209   : > { %v14777_v3 = vadd.f32 %v3070_v27, %v3028_v44  ;;  %v14787_v19 = vld [vmem:[#allocation8 + $0x7c0] sm:$0xff] }
 0x20a   : > { %3382 = vst [vmem:[%s14662_s3 + $0x8] sm:$0xff] %v13883_v23  ;;  %6508 = vmatpush1.bf16.msra.mxu0 %v12836_v20  ;;  %v14779_v4 = vadd.f32 %v3072_v60, %v3030_v53  ;;  %v14797_v11 = vld [vmem:[#allocation8 + $0xf80] sm:$0xff]  ;;  %v11154_v16 = vmax.f32 %v11123_v50, %v11124_v51 }
 0x20b   : > { %16220 = vst [vmem:[#allocation32_spill] sm:$0xff] %v14777_v3  ;;  %6551 = vmatpush1.bf16.msra.mxu1 %v12964_v28  ;;  %6509 = vmatprep.subr.bf16.mxu0 %v12829_v32  ;;  %v14799_v5 = vld [vmem:[#allocation8 + $0xfc0] sm:$0xff] }
 0x20c   : > { %6552 = vmatprep.subr.bf16.mxu1 %v12957_v46  ;;  %v14801_v13 = vld [vmem:[#allocation8 + $0x700] sm:$0xff]  ;;  %v14804_v18 = vpack.c.bf16 %v14779_v4, %v3069_v26  ;;  %v13887_v20 = vpack.c.bf16 %v14779_v4, %v14777_v3  ;;  %v14857_v26 = vrot.slane %v11154_v16, %v14713_v14  ;;  %v11131_v37 = vcombine.low %v14777_v3, %v14779_v4 }
 0x20d   : > { %v14810_v27 = vld [vmem:[#allocation8 + $0x740] sm:$0xff]  ;;  %v11132_v34 = vcombine.high %v14777_v3, %v14779_v4 }
 0x20e   : > { %16221 = vst [vmem:[#allocation33_spill] sm:$0xff] %v14804_v18  ;;  %v14812_v28 = vld [vmem:[#allocation8 + $0xf00] sm:$0xff]  ;;  %6510 = vmatpush1.bf16.msra.mxu0 %v12828_v39  ;;  %3386 = vst [vmem:[%s14662_s3 + $0x28] sm:$0xff] %v13887_v20  ;;  %6578 = vmatprep.mubr.bf16.mxu1 %v14804_v18  ;;  %v13836_v16 = vcombine.low %v14857_v26, %v14857_v26  ;;  %v16229_v18 = vcombine.low %v14750_v22, %v14756_v55 }
 0x20f   : > { %v14814_v32 = vld [vmem:[#allocation8 + $0xf40] sm:$0xff]  ;;  %6553 = vmatpush1.bf16.msra.mxu1 %v12956_v45  ;;  %6511 = vmatprep.subr.bf16.mxu0 %v12821_v47  ;;  %v11158_v30 = vmax.f32 %v11131_v37, %v11132_v34 }
 0x210   : > { %v14824_v23 = vld [vmem:[#allocation8 + $0x680] sm:$0xff]  ;;  %6554 = vmatprep.subr.bf16.mxu1 %v12949_v43  ;;  %v11247_v37 = vrot.slane %v13836_v16, %v14713_v14 }
 0x211   : > { %v14826_v46 = vld [vmem:[#allocation8 + $0x6c0] sm:$0xff]  ;;  %v11214_v16 = vrot.slane %v11158_v30, %v14713_v14 }
 0x212   : > { %v14828_v50 = vld [vmem:[#allocation8 + $0xe80] sm:$0xff]  ;;  %6512 = vmatpush1.bf16.msra.mxu0 %v12820_v54  ;;  %v11183_v54 = vcombine.low %v11175_v40, %v14857_v26  ;;  %v11249_v30 = vcombine.high %v11247_v37, %v11247_v37 }
 0x213   : > { %v14838_v60 = vld [vmem:[#allocation8 + $0xec0] sm:$0xff]  ;;  %6555 = vmatpush1.bf16.msra.mxu1 %v12948_v61  ;;  %6513 = vmatprep.subr.bf16.mxu0 %v12813_v63  ;;  %v11184_v61 = vcombine.high %v11175_v40, %v14857_v26  ;;  %v13838_v40 = vcombine.high %v14857_v26, %v14857_v26 }
 0x214   : > { %v14840_v44 = vld [vmem:[#allocation8 + $0x600] sm:$0xff]  ;;  %6556 = vmatprep.subr.bf16.mxu1 %v12941_v38  ;;  %v11240_v29 = vrot.slane %v11183_v54, %v14713_v14 }
 0x215   : > { %v14842_v35 = vld [vmem:[#allocation8 + $0x640] sm:$0xff]  ;;  %v11281_v17 = vrot.slane %v13838_v40, %v14713_v14  ;;  %v16235_v40 = vcombine.high %v14771_v33, %v14773_v1 }
 0x216   : > { %v14852_v53 = vld [vmem:[#allocation8 + $0xe00] sm:$0xff]  ;;  %6514 = vmatpush1.bf16.msra.mxu0 %v12812_v62  ;;  %v11248_v22 = vcombine.high %v11240_v29, %v11240_v29 }
 0x217   : > { %v14854_v36 = vld [vmem:[#allocation8 + $0xe40] sm:$0xff]  ;;  %6557 = vmatpush1.bf16.msra.mxu1 %v16222_v15  ;;  %6515 = vmatprep.subr.bf16.mxu0 %v16223_v56  ;;  %v11274_v56 = vrot.slane %v11184_v61, %v14713_v14  ;;  %v16232_v61 = vcombine.low %v14758_v57, %v14760_v58  ;;  %v16236_v57 = vcombine.high %v14775_v2, %v14783_v7  ;;  %v11402_v58 = vsel %vm11401_vm0, %v11240_v29, -inf }
 0x218   : > { %v14865_v45 = vld [vmem:[#allocation8 + $0x580] sm:$0xff]  ;;  %6558 = vmatprep.subr.bf16.mxu1 %v16224_v59  ;;  %v13842_v29 = vcombine.high %v11214_v16, %v11214_v16 }
 0x219   : > { %v14867_v51 = vld [vmem:[#allocation8 + $0x5c0] sm:$0xff] }
 0x21a   : > { %v14880_v47 = vld [vmem:[#allocation8 + $0xd80] sm:$0xff]  ;;  %6516 = vmatpush1.bf16.msra.mxu0 %v16229_v18 }
 0x21b   : > { %v14882_v10 = vld [vmem:[#allocation8 + $0xdc0] sm:$0xff]  ;;  %6559 = vmatpush1.bf16.msra.mxu1 %v16232_v61  ;;  %6517 = vmatprep.subr.bf16.mxu0 %v16235_v40  ;;  %v16239_v61 = vcombine.low %v14771_v33, %v14773_v1  ;;  %v11416_v33 = vsel %vm11401_vm0, %v11247_v37, -inf  ;;  %v11458_v1 = vsel %vm11401_vm0, %v11274_v56, -inf  ;;  %v13840_v40 = vcombine.low %v11214_v16, %v11214_v16 }
 0x21c   : > { %v14884_v12 = vld [vmem:[#allocation8 + $0x500] sm:$0xff]  ;;  %6560 = vmatprep.subr.bf16.mxu1 %v16236_v57  ;;  %v11207_v57 = vrot.slane %v14675_v52, %v14713_v14  ;;  %v16242_v52 = vcombine.high %v14797_v11, %v14799_v5 }
 0x21d   : > { %v14898_v20 = vld [vmem:[#allocation8 + $0x540] sm:$0xff] }
 0x21e   : > { %v14900_v39 = vld [vmem:[#allocation8 + $0xd00] sm:$0xff]  ;;  %6518 = vmatpush1.bf16.msra.mxu0 %v16239_v61  ;;  %v11215_v61 = vcombine.low %v11207_v57, %v11214_v16 }
 0x21f   : > { %v14902_v43 = vld [vmem:[#allocation8 + $0xd40] sm:$0xff] }
 0x220   : > { %v14915_v63 = vld [vmem:[#allocation8 + $0x480] sm:$0xff] }
 0x221   : > { %v14917_v24 = vld [vmem:[#allocation8 + $0x4c0] sm:$0xff] }
 0x222   : > { %v14926_v21 = vld [vmem:[#allocation8 + $0xc80] sm:$0xff] }
 0x223   : > { %v14928_v42 = vld [vmem:[#allocation8 + $0xcc0] sm:$0xff] }
 0x224   : > { %v14940_v38 = vld [vmem:[#allocation8 + $0x400] sm:$0xff] }
 0x225   : > { %v14958_v9 = vld [vmem:[#allocation8 + $0xc40] sm:$0xff] }
 0x226   : > { %v14960_v6 = vld [vmem:[#allocation8 + $0x1380] sm:$0xff] }
 0x227   : > { %v14962_v26 = vld [vmem:[#allocation8 + $0x13c0] sm:$0xff] }
 0x228   : > { %v14973_v4 = vld [vmem:[#allocation8 + $0x1300] sm:$0xff] }
 0x229   : > { %16225 = vst [vmem:[#allocation34_spill] sm:$0xff] %v14973_v4  ;;  %v14975_v62 = vld [vmem:[#allocation8 + $0x1340] sm:$0xff]  ;;  %v11282_v4 = vcombine.high %v11274_v56, %v11274_v56  ;;  %v11308_v56 = vrot.slane %v11215_v61, %v14713_v14 }
 0x22a   : > { %16226 = vst [vmem:[#allocation35_spill] sm:$0xff] %v14975_v62  ;;  %v14983_v49 = vld [vmem:[#allocation8 + $0x1280] sm:$0xff]  ;;  %v16240_v62 = vcombine.low %v14775_v2, %v14783_v7  ;;  %v11403_v2 = vrot.slane %v11402_v58, 4  ;;  %v11409_v7 = vsel %vm11401_vm0, %v11248_v22, -inf  ;;  %v11472_v22 = vsel %vm11401_vm0, %v11281_v17, -inf }
 0x22b   : > { %16227 = vst [vmem:[#allocation36_spill] sm:$0xff] %v14983_v49  ;;  %v14985_v15 = vld [vmem:[#allocation8 + $0x12c0] sm:$0xff]  ;;  %v11283_v49 = vcombine.high %v11281_v17, %v11281_v17  ;;  %v11465_v37 = vsel %vm11401_vm0, %v11282_v4, -inf  ;;  %v16245_v4 = vcombine.high %v14801_v13, %v14810_v27  ;;  %v11316_v61 = vcombine.high %v11308_v56, %v11308_v56 }
 0x22c   : > { %16228 = vst [vmem:[#allocation37_spill] sm:$0xff] %v14985_v15  ;;  %v14997_v59 = vld [vmem:[#allocation8 + $0x1200] sm:$0xff]  ;;  %6561 = vmatpush1.bf16.msra.mxu1 %v16240_v62  ;;  %v11216_v15 = vcombine.high %v11207_v57, %v11214_v16  ;;  %v11423_v62 = vsel %vm11401_vm0, %v11249_v30, -inf  ;;  %v16246_v17 = vcombine.high %v14812_v28, %v14814_v32 }
 0x22d   : > { %16230 = vst [vmem:[#allocation38_spill] sm:$0xff] %v14997_v59  ;;  %v14999_v0 = vld [vmem:[#allocation8 + $0x1240] sm:$0xff]  ;;  %6562 = vmatprep.subr.bf16.mxu1 %v16242_v52  ;;  %v11479_v30 = vsel %vm11401_vm0, %v11283_v49, -inf  ;;  %v16244_v52 = vcombine.low %v14797_v11, %v14799_v5  ;;  %v11424_v16 = vrot.slane %v11423_v62, 4  ;;  %v11459_v49 = vrot.slane %v11458_v1, 4 }
 0x22e   : > { %16231 = vst [vmem:[#allocation39_spill] sm:$0xff] %v14999_v0  ;;  %v15011_v34 = vld [vmem:[#allocation8 + $0x1180] sm:$0xff]  ;;  %v16241_v0 = vcombine.high %v14785_v8, %v14787_v19  ;;  %v11342_v57 = vrot.slane %v11216_v15, %v14713_v14  ;;  %v11410_v15 = vrot.slane %v11409_v7, 4  ;;  %v11514_v5 = vsel %vm11401_vm0, %v11308_v56, -inf }
 0x22f   : > { %16233 = vst [vmem:[#allocation40_spill] sm:$0xff] %v15011_v34  ;;  %v15013_v54 = vld [vmem:[#allocation8 + $0x11c0] sm:$0xff] }
 0x230   : > { %16234 = vst [vmem:[#allocation41_spill] sm:$0xff] %v15013_v54  ;;  %v15026_v55 = vld [vmem:[#allocation8 + $0x1100] sm:$0xff]  ;;  %6519 = vmatprep.subr.bf16.mxu0 %v16241_v0  ;;  %v16243_v0 = vcombine.low %v14785_v8, %v14787_v19  ;;  %6563 = vmatpush2.bf16.msra.mxu1 %v16244_v52  ;;  %v11349_v8 = vrot.slane %v13842_v29, %v14713_v14  ;;  %v11480_v54 = vrot.slane %v11479_v30, 4  ;;  %v11521_v52 = vsel %vm11401_vm0, %v11316_v61, -inf }
 0x231   : > { %16237 = vst [vmem:[#allocation42_spill] sm:$0xff] %v15026_v55  ;;  %v15028_v18 = vld [vmem:[#allocation8 + $0x1140] sm:$0xff]  ;;  %v11315_v55 = vrot.slane %v13840_v40, %v14713_v14  ;;  %6564 = vmatprep.subr.bf16.mxu1 %v16246_v17  ;;  %v11404_v19 = vmax.f32 %v11402_v58, %v11403_v2  ;;  %v11466_v40 = vrot.slane %v11465_v37, 4  ;;  %v11350_v11 = vcombine.high %v11342_v57, %v11342_v57 }
 0x232   : > { %16238 = vst [vmem:[#allocation43_spill] sm:$0xff] %v15028_v18  ;;  %6520 = vmatpush2.bf16.msra.mxu0 %v16243_v0  ;;  %v11417_v18 = vrot.slane %v11416_v33, 4  ;;  %v11351_v34 = vcombine.high %v11349_v8, %v11349_v8  ;;  %v11522_v29 = vrot.slane %v11521_v52, 4  ;;  %v16248_v58 = vcombine.low %v14812_v28, %v14814_v32 }
 0x233   : > { %6521 = vmatprep.subr.bf16.mxu0 %v16245_v4  ;;  %v11317_v0 = vcombine.high %v11315_v55, %v11315_v55  ;;  %v16247_v4 = vcombine.low %v14801_v13, %v14810_v27  ;;  %v11528_v59 = vsel %vm11401_vm0, %v11315_v55, -inf  ;;  %v16249_v2 = vcombine.high %v14824_v23, %v14826_v46 }
 0x234   : > { %6565 = vmatpush2.bf16.msra.mxu1 %v16248_v58  ;;  %v11411_v56 = vmax.f32 %v11409_v7, %v11410_v15  ;;  %v11418_v61 = vmax.f32 %v11416_v33, %v11417_v18  ;;  %v11473_v14 = vrot.slane %v11472_v22, 4  ;;  %v16250_v13 = vcombine.high %v14828_v50, %v14838_v60 }
 0x235   : > { %v11535_v17 = vsel %vm11401_vm0, %v11317_v0, -inf  ;;  %v11425_v27 = vmax.f32 %v11423_v62, %v11424_v16  ;;  %v11460_v55 = vmax.f32 %v11458_v1, %v11459_v49  ;;  %v11515_v0 = vrot.slane %v11514_v5, 4 }
 0x236   : > { %6522 = vmatpush2.bf16.msra.mxu0 %v16247_v4  ;;  %v11536_v48 = vrot.slane %v11535_v17, 4  ;;  %6566 = vmatprep.subr.bf16.mxu1 %v16250_v13  ;;  %v11467_v4 = vmax.f32 %v11465_v37, %v11466_v40  ;;  %v11529_v3 = vrot.slane %v11528_v59, 4  ;;  %v11570_v28 = vsel %vm11401_vm0, %v11342_v57, -inf }
 0x237   : > { %6523 = vmatprep.subr.bf16.mxu0 %v16249_v2  ;;  %v11577_v32 = vsel %vm11401_vm0, %v11350_v11, -inf  ;;  %v11584_v58 = vsel %vm11401_vm0, %v11349_v8, -inf  ;;  %v16251_v18 = vcombine.low %v14824_v23, %v14826_v46  ;;  %v11405_v33 = vrot.slane %v11404_v19, 2 }
 0x238   : > { %v11481_v7 = vmax.f32 %v11479_v30, %v11480_v54  ;;  %v11523_v15 = vmax.f32 %v11521_v52, %v11522_v29  ;;  %v11591_v2 = vsel %vm11401_vm0, %v11351_v34, -inf  ;;  %v16252_v1 = vcombine.low %v14828_v50, %v14838_v60 }
 0x239   : > { %v16253_v62 = vcombine.high %v14840_v44, %v14842_v35  ;;  %v11412_v37 = vrot.slane %v11411_v56, 2  ;;  %v11419_v57 = vrot.slane %v11418_v61, 2  ;;  %v11474_v16 = vmax.f32 %v11472_v22, %v11473_v14 }
 0x23a   : > { %6524 = vmatpush2.bf16.msra.mxu0 %v16251_v18  ;;  %6567 = vmatpush2.bf16.msra.mxu1 %v16252_v1  ;;  %v11537_v8 = vmax.f32 %v11535_v17, %v11536_v48  ;;  %v16254_v23 = vcombine.high %v14852_v53, %v14854_v36  ;;  %v11516_v46 = vmax.f32 %v11514_v5, %v11515_v0  ;;  %v11571_v54 = vrot.slane %v11570_v28, 4 }
 0x23b   : > { %6525 = vmatprep.subr.bf16.mxu0 %v16253_v62  ;;  %v11578_v30 = vrot.slane %v11577_v32, 4  ;;  %v11585_v34 = vrot.slane %v11584_v58, 4  ;;  %v11426_v49 = vrot.slane %v11425_v27, 2  ;;  %v11468_v40 = vrot.slane %v11467_v4, 2 }
 0x23c   : > { %6568 = vmatprep.subr.bf16.mxu1 %v16254_v23  ;;  %v11530_v50 = vmax.f32 %v11528_v59, %v11529_v3  ;;  %v11592_v60 = vrot.slane %v11591_v2, 4  ;;  %v16255_v11 = vcombine.low %v14840_v44, %v14842_v35  ;;  %v11406_v52 = vmax.f32 %v11404_v19, %v11405_v33 }
 0x23d   : > { %v11461_v29 = vrot.slane %v11460_v55, 2  ;;  %v11482_v14 = vrot.slane %v11481_v7, 2  ;;  %v11524_v48 = vrot.slane %v11523_v15, 2  ;;  %v16256_v22 = vcombine.low %v14852_v53, %v14854_v36 }
 0x23e   : > { %6526 = vmatpush2.bf16.msra.mxu0 %v16255_v11  ;;  %v16257_v5 = vcombine.high %v14865_v45, %v14867_v51  ;;  %v11413_v17 = vmax.f32 %v11411_v56, %v11412_v37  ;;  %v11420_v13 = vmax.f32 %v11418_v61, %v11419_v57  ;;  %v11475_v3 = vrot.slane %v11474_v16, 2 }
 0x23f   : > { %6569 = vmatpush2.bf16.msra.mxu1 %v16256_v22  ;;  %v11538_v59 = vrot.slane %v11537_v8, 2  ;;  %v16258_v35 = vcombine.high %v14880_v47, %v14882_v10  ;;  %v11517_v44 = vrot.slane %v11516_v46, 2  ;;  %v11572_v19 = vmax.f32 %v11570_v28, %v11571_v54  ;;  %v3829_v22 = vld [vmem:[#allocation8 + $0x1b80] sm:$0xff] }
 0x240   : > { %6527 = vmatprep.subr.bf16.mxu0 %v16257_v5  ;;  %v11579_v0 = vmax.f32 %v11577_v32, %v11578_v30  ;;  %v11586_v18 = vmax.f32 %v11584_v58, %v11585_v34  ;;  %v11427_v33 = vmax.f32 %v11425_v27, %v11426_v49  ;;  %v11469_v1 = vmax.f32 %v11467_v4, %v11468_v40  ;;  %v3833_v5 = vld [vmem:[#allocation8 + $0x1bc0] sm:$0xff] }
 0x241   : > { %6570 = vmatprep.subr.bf16.mxu1 %v16258_v35  ;;  %v11531_v36 = vrot.slane %v11530_v50, 2  ;;  %v11593_v53 = vmax.f32 %v11591_v2, %v11592_v60  ;;  %v16259_v62 = vcombine.low %v14865_v45, %v14867_v51  ;;  %v11407_v56 = vrot.slane %v11406_v52, 1 }
 0x242   : > { %v11462_v61 = vmax.f32 %v11460_v55, %v11461_v29  ;;  %v11483_v37 = vmax.f32 %v11481_v7, %v11482_v14  ;;  %v11525_v57 = vmax.f32 %v11523_v15, %v11524_v48  ;;  %v16260_v23 = vcombine.low %v14880_v47, %v14882_v10 }
 0x243   : > { %6528 = vmatpush2.bf16.msra.mxu0 %v16259_v62  ;;  %v16261_v28 = vcombine.high %v14884_v12, %v14898_v20  ;;  %v11414_v27 = vrot.slane %v11413_v17, 1  ;;  %v11421_v4 = vrot.slane %v11420_v13, 1  ;;  %v11476_v32 = vmax.f32 %v11474_v16, %v11475_v3 }
 0x244   : > { %6571 = vmatpush2.bf16.msra.mxu1 %v16260_v23  ;;  %v11539_v58 = vmax.f32 %v11537_v8, %v11538_v59  ;;  %v16262_v51 = vcombine.high %v14900_v39, %v14902_v43  ;;  %v11518_v45 = vmax.f32 %v11516_v46, %v11517_v44  ;;  %v11573_v55 = vrot.slane %v11572_v19, 2 }
 0x245   : > { %6529 = vmatprep.subr.bf16.mxu0 %v16261_v28  ;;  %v11580_v7 = vrot.slane %v11579_v0, 2  ;;  %v11587_v15 = vrot.slane %v11586_v18, 2  ;;  %v11428_v2 = vrot.slane %v11427_v33, 1  ;;  %v11470_v54 = vrot.slane %v11469_v1, 1 }
 0x246   : > { %6572 = vmatprep.subr.bf16.mxu1 %v16262_v51  ;;  %v11532_v10 = vmax.f32 %v11530_v50, %v11531_v36  ;;  %v11594_v47 = vrot.slane %v11593_v53, 2  ;;  %v16263_v30 = vcombine.low %v14884_v12, %v14898_v20  ;;  %v15139_v34 = vmax.f32 %v11406_v52, %v11407_v56 }
 0x247   : > { %v11463_v16 = vrot.slane %v11462_v61, 1  ;;  %v11484_v8 = vrot.slane %v11483_v37, 1  ;;  %v11526_v49 = vrot.slane %v11525_v57, 1  ;;  %v16264_v40 = vcombine.low %v14900_v39, %v14902_v43 }
 0x248   : > { %6530 = vmatpush2.bf16.msra.mxu0 %v16263_v30  ;;  %v16265_v46 = vcombine.high %v14915_v63, %v14917_v24  ;;  %v11415_v60 = vmax.f32 %v11413_v17, %v11414_v27  ;;  %v11422_v50 = vmax.f32 %v11420_v13, %v11421_v4  ;;  %v11477_v11 = vrot.slane %v11476_v32, 1  ;;  %v3813_v30 = vld [vmem:[#allocation8 + $0x1a80] sm:$0xff] }
 0x249   : > { %6573 = vmatpush2.bf16.msra.mxu1 %v16264_v40  ;;  %v11540_v29 = vrot.slane %v11539_v58, 1  ;;  %v16266_v12 = vcombine.high %v14926_v21, %v14928_v42  ;;  %v11519_v20 = vrot.slane %v11518_v45, 1  ;;  %v11574_v52 = vmax.f32 %v11572_v19, %v11573_v55  ;;  %v16278_v40 = vld [vmem:[#allocation31_spill] sm:$0xff] }
 0x24a   : > { %6531 = vmatprep.subr.bf16.mxu0 %v16265_v46  ;;  %v11581_v14 = vmax.f32 %v11579_v0, %v11580_v7  ;;  %v11588_v48 = vmax.f32 %v11586_v18, %v11587_v15  ;;  %v11429_v39 = vmax.f32 %v11427_v33, %v11428_v2  ;;  %v11471_v43 = vmax.f32 %v11469_v1, %v11470_v54  ;;  %v16274_v7 = vld [vmem:[#allocation32_spill] sm:$0xff] }
 0x24b   : > { %6574 = vmatprep.subr.bf16.mxu1 %v16266_v12  ;;  %v11533_v3 = vrot.slane %v11532_v10, 1  ;;  %v11595_v59 = vmax.f32 %v11593_v53, %v11594_v47  ;;  %v16267_v17 = vcombine.low %v14915_v63, %v14917_v24  ;;  %v11464_v13 = vmax.f32 %v11462_v61, %v11463_v16  ;;  %v15163_v24 = vld [vmem:[#allocation8 + $0x1080] sm:$0xff] }
 0x24c   : > { %v11485_v35 = vmax.f32 %v11483_v37, %v11484_v8  ;;  %v11527_v44 = vmax.f32 %v11525_v57, %v11526_v49  ;;  %v16268_v36 = vcombine.low %v14926_v21, %v14928_v42  ;;  %v16269_v19 = vcombine.high %v14940_v38, %v14942_v41  ;;  %v15165_v42 = vld [vmem:[#allocation8 + $0x10c0] sm:$0xff] }
 0x24d   : > { %6532 = vmatpush2.bf16.msra.mxu0 %v16267_v17  ;;  %v11478_v0 = vmax.f32 %v11476_v32, %v11477_v11  ;;  %v13844_v18 = vpack.c.bf16 %v11415_v60, %v15139_v34  ;;  %v11541_v33 = vmax.f32 %v11539_v58, %v11540_v29  ;;  %v16270_v1 = vcombine.high %v14944_v31, %v14958_v9  ;;  %v3821_v61 = vld [vmem:[#allocation8 + $0x1b00] sm:$0xff]  ;;  %v16280_v11 = vld [vmem:[#allocation35_spill] sm:$0xff] }
 0x24e   : > { %6575 = vmatpush2.bf16.msra.mxu1 %v16268_v36  ;;  %6533 = vmatprep.subr.bf16.mxu0 %v16269_v19  ;;  %v13237_v63 = vcombine.high %v3829_v22, %v3833_v5  ;;  %v11520_v53 = vmax.f32 %v11518_v45, %v11519_v20  ;;  %v11575_v62 = vrot.slane %v11574_v52, 1  ;;  %v11582_v56 = vrot.slane %v11581_v14, 1  ;;  %v3825_v37 = vld [vmem:[#allocation8 + $0x1b40] sm:$0xff] }
 0x24f   : > { %6576 = vmatprep.subr.bf16.mxu1 %v16270_v1  ;;  %v11589_v21 = vrot.slane %v11588_v48, 1  ;;  %v13845_v57 = vpack.c.bf16 %v11429_v39, %v11422_v50  ;;  %v13848_v23 = vpack.c.bf16 %v11471_v43, %v11464_v13  ;;  %v11534_v28 = vmax.f32 %v11532_v10, %v11533_v3  ;;  %v3817_v34 = vld [vmem:[#allocation8 + $0x1ac0] sm:$0xff] }
 0x250   : > { %v11596_v27 = vrot.slane %v11595_v59, 1  ;;  %v16271_v4 = vcombine.low %v14940_v38, %v14942_v41  ;;  %v13849_v32 = vpack.c.bf16 %v11485_v35, %v11478_v0  ;;  %v13852_v58 = vpack.c.bf16 %v11527_v44, %v11520_v53  ;;  %v15187_v8 = vld [vmem:[#allocation8 + $0x1a00] sm:$0xff] }
 0x251   : > { %v16272_v51 = vcombine.low %v14944_v31, %v14958_v9  ;;  %v16273_v45 = vcombine.high %v14960_v6, %v14962_v26  ;;  %v13236_v55 = vcombine.low %v3829_v22, %v3833_v5  ;;  %v15178_v15 = vpack.c.bf16 %v16274_v7, %v14723_v25  ;;  %v16276_v31 = vld [vmem:[#allocation27_spill] sm:$0xff]  ;;  %v15189_v49 = vld [vmem:[#allocation8 + $0x1a40] sm:$0xff] }
 0x252   : > { %6534 = vmatpush2.bf16.msra.mxu0 %v16271_v4  ;;  %v13853_v2 = vpack.c.bf16 %v11541_v33, %v11534_v28  ;;  %v13061_v41 = vcombine.high %v15163_v24, %v15165_v42  ;;  %v13229_v38 = vcombine.high %v3821_v61, %v3825_v37  ;;  %v11576_v54 = vmax.f32 %v11574_v52, %v11575_v62  ;;  %v16279_v50 = vld [vmem:[#allocation34_spill] sm:$0xff]  ;;  %v16284_v33 = vld [vmem:[#allocation37_spill] sm:$0xff] }
 0x253   : > { %6577 = vmatpush2.bf16.msra.mxu1 %v16272_v51  ;;  %6589 = vmatprep.subr.bf16.mxu0 %v16273_v45  ;;  %16275 = vst [vmem:[#allocation32_spill] sm:$0xff] %v15178_v15  ;;  %v11583_v10 = vmax.f32 %v11581_v14, %v11582_v56  ;;  %v11590_v47 = vmax.f32 %v11588_v48, %v11589_v21  ;;  %v15196_v12 = vld [vmem:[#allocation8 + $0x1980] sm:$0xff] }
 0x254   : > { %6632 = vmatprep.subr.bf16.mxu1 %v13237_v63  ;;  %v13228_v9 = vcombine.low %v3821_v61, %v3825_v37  ;;  %v11597_v16 = vmax.f32 %v11595_v59, %v11596_v27  ;;  %v16277_v25 = vcombine.low %v14960_v6, %v14962_v26  ;;  %v11698_v46 = vrot.slane %v13844_v18, %v16278_v40  ;;  %v15198_v20 = vld [vmem:[#allocation8 + $0x19c0] sm:$0xff]  ;;  %v16283_v18 = vld [vmem:[#allocation36_spill] sm:$0xff] }
 0x255   : > { %6536 = vmatmul.mubr.bf16.vlgmr.msra.gmra.mxu0 %v16276_v31  ;;  %v11705_v60 = vrot.slane %v13845_v57, %v16278_v40  ;;  %v16281_v29 = vcombine.high %v16279_v50, %v16280_v11  ;;  %v11732_v6 = vrot.slane %v13848_v23, %v16278_v40  ;;  %v11739_v26 = vrot.slane %v13849_v32, %v16278_v40  ;;  %v15208_v3 = vld [vmem:[#allocation8 + $0x1900] sm:$0xff] }
 0x256   : > { %6579 = vmatmul.mubr.bf16.vlgmr.msra.gmra.mxu1 %v15178_v15  ;;  %6590 = vmatpush1.bf16.msra.mxu0 %v16277_v25  ;;  %v11766_v52 = vrot.slane %v13852_v58, %v16278_v40  ;;  %v13220_v14 = vcombine.low %v3813_v30, %v3817_v34  ;;  %v13221_v48 = vcombine.high %v3813_v30, %v3817_v34  ;;  %v15210_v59 = vld [vmem:[#allocation8 + $0x1940] sm:$0xff] }
 0x257   : > { %6591 = vmatprep.subr.bf16.mxu0 %v16281_v29  ;;  %6633 = vmatpush1.bf16.msra.mxu1 %v13236_v55  ;;  %v11706_v22 = vcombine.low %v11698_v46, %v11705_v60  ;;  %v11773_v5 = vrot.slane %v13853_v2, %v16278_v40  ;;  %v13212_v39 = vcombine.low %v15187_v8, %v15189_v49  ;;  %v15222_v63 = vld [vmem:[#allocation8 + $0x1880] sm:$0xff] }
 0x258   : > { %6634 = vmatprep.subr.bf16.mxu1 %v13229_v38  ;;  %v13213_v43 = vcombine.high %v15187_v8, %v15189_v49  ;;  %v11740_v17 = vcombine.low %v11732_v6, %v11739_v26  ;;  %v13856_v13 = vpack.c.bf16 %v11583_v10, %v11576_v54  ;;  %v16282_v35 = vcombine.low %v16279_v50, %v16280_v11  ;;  %v15224_v53 = vld [vmem:[#allocation8 + $0x18c0] sm:$0xff]  ;;  %v16288_v38 = vld [vmem:[#allocation39_spill] sm:$0xff] }
 0x259   : > { %v13204_v44 = vcombine.low %v15196_v12, %v15198_v20  ;;  %v13205_v36 = vcombine.high %v15196_v12, %v15198_v20  ;;  %v11774_v19 = vcombine.low %v11766_v52, %v11773_v5  ;;  %v13857_v0 = vpack.c.bf16 %v11597_v16, %v11590_v47  ;;  %v16287_v2 = vld [vmem:[#allocation38_spill] sm:$0xff] }
 0x25a   : > { %6592 = vmatpush1.bf16.msra.mxu0 %v16282_v35  ;;  %v16285_v1 = vcombine.high %v16283_v18, %v16284_v33  ;;  %v11800_v62 = vrot.slane %v13856_v13, %v16278_v40  ;;  %v13860_v56 = vcombine.low %v11705_v60, %v11705_v60  ;;  %v11833_v21 = vrot.slane %v11706_v22, %v16278_v40 }
 0x25b   : > { %6635 = vmatpush1.bf16.msra.mxu1 %v13228_v9  ;;  %v13196_v61 = vcombine.low %v15208_v3, %v15210_v59  ;;  %v13197_v37 = vcombine.high %v15208_v3, %v15210_v59  ;;  %v11807_v57 = vrot.slane %v13857_v0, %v16278_v40  ;;  %v13862_v23 = vcombine.low %v11739_v26, %v11739_v26 }
 0x25c   : > { %6593 = vmatprep.subr.bf16.mxu0 %v16285_v1  ;;  %6636 = vmatprep.subr.bf16.mxu1 %v13221_v48  ;;  %v11840_v28 = vrot.slane %v13860_v56, %v16278_v40  ;;  %v11863_v27 = vrot.slane %v11740_v17, %v16278_v40  ;;  %v13864_v4 = vcombine.low %v11773_v5, %v11773_v5  ;;  %v11946_v47 = vunpack.c.l.b16 %v11833_v21  ;;  %v16292_v48 = vld [vmem:[#allocation41_spill] sm:$0xff] }
 0x25d   : > { %v11893_v32 = vrot.slane %v11774_v19, %v16278_v40  ;;  %v16286_v58 = vcombine.low %v16283_v18, %v16284_v33  ;;  %v13189_v51 = vcombine.high %v15222_v63, %v15224_v53  ;;  %v11808_v45 = vcombine.low %v11800_v62, %v11807_v57 }
 0x25e   : > { %v11870_v55 = vrot.slane %v13862_v23, %v16278_v40  ;;  %v13866_v7 = vcombine.low %v11807_v57, %v11807_v57  ;;  %v16289_v54 = vcombine.high %v16287_v2, %v16288_v38  ;;  %v11900_v10 = vrot.slane %v13864_v4, %v16278_v40 }
 0x25f   : > { %6594 = vmatpush1.bf16.msra.mxu0 %v16286_v58  ;;  %6637 = vmatpush1.bf16.msra.mxu1 %v13220_v14  ;;  %v11947_v9 = vunpack.c.h.b16 %v11833_v21  ;;  %v11948_v30 = vunpack.c.l.b16 %v11840_v28  ;;  %v11923_v34 = vrot.slane %v11808_v45, %v16278_v40  ;;  %v11949_v25 = vunpack.c.h.b16 %v11840_v28  ;;  %v16291_v14 = vld [vmem:[#allocation40_spill] sm:$0xff]  ;;  %v3649_v58 = vld [vmem:[#allocation8 + $0x1040] sm:$0xff] }
 0x260   : > { %6595 = vmatprep.subr.bf16.mxu0 %v16289_v54  ;;  %6638 = vmatprep.subr.bf16.mxu1 %v13213_v43  ;;  %v11930_v16 = vrot.slane %v13866_v7, %v16278_v40  ;;  %v11954_v8 = vunpack.c.l.b16 %v11863_v27  ;;  %v11955_v49 = vunpack.c.h.b16 %v11863_v27  ;;  %v11956_v46 = vunpack.c.l.b16 %v11870_v55  ;;  %v16296_v27 = vld [vmem:[#allocation43_spill] sm:$0xff] }
 0x261   : > { %v11957_v60 = vunpack.c.h.b16 %v11870_v55  ;;  %v11962_v50 = vunpack.c.l.b16 %v11893_v32  ;;  %v16290_v11 = vcombine.low %v16287_v2, %v16288_v38  ;;  %v11963_v29 = vunpack.c.h.b16 %v11893_v32  ;;  %v3645_v32 = vld [vmem:[#allocation8 + $0x1000] sm:$0xff] }
 0x262   : > { %v11964_v6 = vunpack.c.l.b16 %v11900_v10  ;;  %v11965_v26 = vunpack.c.h.b16 %v11900_v10  ;;  %v11970_v52 = vunpack.c.l.b16 %v11923_v34  ;;  %v16293_v22 = vcombine.high %v16291_v14, %v16292_v48 }
 0x263   : > { %6596 = vmatpush1.bf16.msra.mxu0 %v16290_v11  ;;  %6639 = vmatpush1.bf16.msra.mxu1 %v13212_v39  ;;  %v11971_v5 = vunpack.c.h.b16 %v11923_v34  ;;  %v11972_v43 = vunpack.c.l.b16 %v11930_v16  ;;  %v11973_v17 = vunpack.c.h.b16 %v11930_v16  ;;  %v11978_v13 = vrot.slane %v11954_v8, 7  ;;  %v3777_v34 = vld [vmem:[#allocation8 + $0x1840] sm:$0xff] }
 0x264   : > { %6597 = vmatprep.subr.bf16.mxu0 %v16293_v22  ;;  %6640 = vmatprep.subr.bf16.mxu1 %v13205_v36  ;;  %v11981_v35 = vrot.slane %v11962_v50, 6  ;;  %v11984_v19 = vrot.slane %v11970_v52, 5  ;;  %v11987_v0 = vrot.slane %v11955_v49, 7  ;;  %v11989_v18 = vrot.slane %v11963_v29, 6  ;;  %v16295_v36 = vld [vmem:[#allocation42_spill] sm:$0xff] }
 0x265   : > { %v11980_v33 = vsel %vm11979_vm1, %v11978_v13, %v11946_v47  ;;  %v11991_v1 = vrot.slane %v11971_v5, 5  ;;  %v11993_v62 = vrot.slane %v11956_v46, 7  ;;  %v11995_v56 = vrot.slane %v11964_v6, 6  ;;  %v3769_v50 = vld [vmem:[#allocation8 + $0x17c0] sm:$0xff] }
 0x266   : > { %v16294_v21 = vcombine.low %v16291_v14, %v16292_v48  ;;  %v11983_v39 = vsel %vm11982_vm2, %v11981_v35, %v11980_v33  ;;  %v11988_v57 = vsel %vm11979_vm1, %v11987_v0, %v11947_v9  ;;  %v11997_v23 = vrot.slane %v11972_v43, 5  ;;  %v3773_v9 = vld [vmem:[#allocation8 + $0x1800] sm:$0xff] }
 0x267   : > { %v11999_v28 = vrot.slane %v11957_v60, 7  ;;  %v16297_v4 = vcombine.high %v16295_v36, %v16296_v27  ;;  %6641 = vmatpush1.bf16.msra.mxu1 %v13204_v44  ;;  %v11986_v45 = vsel %vm11985_vm3, %v11984_v19, %v11983_v39  ;;  %v11990_v55 = vsel %vm11982_vm2, %v11989_v18, %v11988_v57  ;;  %v3765_v60 = vld [vmem:[#allocation8 + $0x1780] sm:$0xff] }
 0x268   : > { %6598 = vmatpush1.bf16.msra.mxu0 %v16294_v21  ;;  %v11994_v7 = vsel %vm11979_vm1, %v11993_v62, %v11948_v30  ;;  %v12001_v2 = vrot.slane %v11965_v26, 6  ;;  %6642 = vmatprep.subr.bf16.mxu1 %v13197_v37  ;;  %v11992_v38 = vsel %vm11985_vm3, %v11991_v1, %v11990_v55  ;;  %v12003_v47 = vrot.slane %v11973_v17, 5  ;;  %v3757_v6 = vld [vmem:[#allocation8 + $0x1700] sm:$0xff] }
 0x269   : > { %6599 = vmatprep.subr.bf16.mxu0 %v16297_v4  ;;  %v11996_v54 = vsel %vm11982_vm2, %v11995_v56, %v11994_v7  ;;  %v12000_v10 = vsel %vm11979_vm1, %v11999_v28, %v11949_v25  ;;  %v12029_v44 = vpack.c.b16 %v11992_v38, %v11986_v45  ;;  %v16298_v30 = vcombine.low %v16295_v36, %v16296_v27  ;;  %v3761_v26 = vld [vmem:[#allocation8 + $0x1740] sm:$0xff] }
 0x26a   : > { %v11998_v12 = vsel %vm11985_vm3, %v11997_v23, %v11996_v54  ;;  %v12002_v20 = vsel %vm11982_vm2, %v12001_v2, %v12000_v10  ;;  %v13060_v37 = vcombine.low %v15163_v24, %v15165_v42  ;;  %v13053_v16 = vcombine.high %v3645_v32, %v3649_v58  ;;  %v3893_v24 = vld [vmem:[#allocation8 + $0x1f80] sm:$0xff] }
 0x26b   : > { %v12004_v8 = vsel %vm11985_vm3, %v12003_v47, %v12002_v20  ;;  %6643 = vmatpush1.bf16.msra.mxu1 %v13196_v61  ;;  %v13188_v25 = vcombine.low %v15222_v63, %v15224_v53  ;;  %v12039_v46 = vrot.slane %v12029_v44, %v16278_v40  ;;  %v13181_v11 = vcombine.high %v3773_v9, %v3777_v34  ;;  %v3897_v42 = vld [vmem:[#allocation8 + $0x1fc0] sm:$0xff]  ;;  %v15297_v53 = vld [vmem:[#allocation8 + $0xb88] sm:$0xff] }
 0x26c   : > { %6600 = vmatpush1.bf16.msra.mxu0 %v16298_v30  ;;  %v12030_v49 = vpack.c.b16 %v12004_v8, %v11998_v12  ;;  %6644 = vmatprep.subr.bf16.mxu1 %v13189_v51  ;;  %v13052_v3 = vcombine.low %v3645_v32, %v3649_v58  ;;  %v13173_v59 = vcombine.high %v3765_v60, %v3769_v50  ;;  %v3885_v14 = vld [vmem:[#allocation8 + $0x1f00] sm:$0xff]  ;;  %v15299_v51 = vld [vmem:[#allocation8 + $0xbc8] sm:$0xff] }
 0x26d   : > { %6601 = vmatprep.subr.bf16.mxu0 %v13061_v41  ;;  %v13180_v61 = vcombine.low %v3773_v9, %v3777_v34  ;;  %v13301_v52 = vcombine.high %v3893_v24, %v3897_v42  ;;  %v3889_v48 = vld [vmem:[#allocation8 + $0x1f40] sm:$0xff]  ;;  %v13172_v63 = vcombine.low %v3765_v60, %v3769_v50  ;;  %v13165_v22 = vcombine.high %v3757_v6, %v3761_v26 }
 0x26e   : > { %v12046_v41 = vrot.slane %v12030_v49, %v16278_v40  ;;  %v13300_v5 = vcombine.low %v3893_v24, %v3897_v42  ;;  %v3749_v43 = vld [vmem:[#allocation8 + $0x1680] sm:$0xff]  ;;  %v13293_v13 = vcombine.high %v3885_v14, %v3889_v48  ;;  %v12982_v35 = vcombine.low %v15297_v53, %v15299_v51  ;;  %v3109_v49 = vpop.f32.mrf.mxu0 }
 0x26f   : > { %6645 = vmatpush1.bf16.msra.mxu1 %v13188_v25  ;;  %v3753_v17 = vld [vmem:[#allocation8 + $0x16c0] sm:$0xff]  ;;  %v13164_v18 = vcombine.low %v3757_v6, %v3761_v26  ;;  %v13292_v1 = vcombine.low %v3885_v14, %v3889_v48  ;;  %v3446_v14 = vld [vmem:[#allocation8 + $0x388] sm:$0xff] }
 0x270   : > { %6602 = vmatpush1.bf16.msra.mxu0 %v13060_v37  ;;  %v12047_v29 = vcombine.low %v12039_v46, %v12046_v41  ;;  %6646 = vmatprep.subr.bf16.mxu1 %v13181_v11  ;;  %v3877_v19 = vld [vmem:[#allocation8 + $0x1e80] sm:$0xff]  ;;  %v13157_v33 = vcombine.high %v3749_v43, %v3753_v17  ;;  %v13156_v23 = vcombine.low %v3749_v43, %v3753_v17  ;;  %v3111_v6 = vpop.f32.mrf.mxu0  ;;  %v3450_v48 = vld [vmem:[#allocation8 + $0x3c8] sm:$0xff] }
 0x271   : > { %6603 = vmatprep.subr.bf16.mxu0 %v13053_v16  ;;  %v3881_v0 = vld [vmem:[#allocation8 + $0x1ec0] sm:$0xff] }
 0x272   : > { %12065 = vst [vmem:[%s15294_s15] sm:$0xff] %v12047_v29  ;;  %v3741_v62 = vld [vmem:[#allocation8 + $0x1600] sm:$0xff]  ;;  %v13285_v21 = vcombine.high %v3877_v19, %v3881_v0  ;;  %v13284_v36 = vcombine.low %v3877_v19, %v3881_v0  ;;  %v3113_v19 = vpop.f32.mrf.mxu0  ;;  %v12855_v0 = vcombine.high %v3446_v14, %v3450_v48 }
 0x273   : > { %6647 = vmatpush1.bf16.msra.mxu1 %v13180_v61  ;;  %v3745_v56 = vld [vmem:[#allocation8 + $0x1640] sm:$0xff] }
 0x274   : > { %6604 = vmatpush1.bf16.msra.mxu0 %v13052_v3  ;;  %6648 = vmatprep.subr.bf16.mxu1 %v13301_v52  ;;  %v3869_v39 = vld [vmem:[#allocation8 + $0x1e00] sm:$0xff]  ;;  %v13149_v28 = vcombine.high %v3741_v62, %v3745_v56  ;;  %v13148_v55 = vcombine.low %v3741_v62, %v3745_v56  ;;  %v16299_v3 = vld [vmem:[#allocation24_spill] sm:$0xff] }
 0x275   : > { %6605 = vmatprep.subr.bf16.mxu0 %v13173_v59  ;;  %v3873_v57 = vld [vmem:[#allocation8 + $0x1e40] sm:$0xff]  ;;  %v15304_v59 = vsub.s32 4, %v16299_v3  ;;  %v15307_v61 = vsub.s32 5, %v16299_v3 }
 0x276   : > { %v3733_v27 = vld [vmem:[#allocation8 + $0x1580] sm:$0xff]  ;;  %v13277_v32 = vcombine.high %v3869_v39, %v3873_v57  ;;  %v13276_v2 = vcombine.low %v3869_v39, %v3873_v57 }
 0x277   : > { %6649 = vmatpush2.bf16.msra.mxu1 %v13300_v5  ;;  %v3737_v4 = vld [vmem:[#allocation8 + $0x15c0] sm:$0xff]  ;;  %16300 = vst [vmem:[#allocation34_spill] sm:$0xff] %v15304_v59  ;;  %16301 = vst [vmem:[#allocation35_spill] sm:$0xff] %v15307_v61  ;;  %v15309_v5 = vld [vmem:[#allocation7] sm:$0xff] }
 0x278   : > { %6606 = vmatpush2.bf16.msra.mxu0 %v13172_v63  ;;  %6650 = vmatprep.subr.bf16.mxu1 %v13293_v13  ;;  %v3861_v58 = vld [vmem:[#allocation8 + $0x1d80] sm:$0xff]  ;;  %v13141_v7 = vcombine.high %v3733_v27, %v3737_v4  ;;  %v13140_v34 = vcombine.low %v3733_v27, %v3737_v4  ;;  %v846_v43 = vrot.slane %v15309_v5, %v15304_v59 }
 0x279   : > { %6607 = vmatprep.subr.bf16.mxu0 %v13165_v22  ;;  %v3865_v45 = vld [vmem:[#allocation8 + $0x1dc0] sm:$0xff]  ;;  %v3152_v22 = vpop.f32.mrf.mxu1  ;;  %v850_v17 = vrot.slane %v15309_v5, %v15307_v61  ;;  %v15595_v61 = vld [vmem:[#allocation8 + $0x1548] sm:$0xff] }
 0x27a   : > { %v3725_v38 = vld [vmem:[#allocation8 + $0x1500] sm:$0xff]  ;;  %v13269_v10 = vcombine.high %v3861_v58, %v3865_v45  ;;  %v13268_v20 = vcombine.low %v3861_v58, %v3865_v45  ;;  %v3110_v62 = vadd.f32 %v3109_v49, %v846_v43  ;;  %v3114_v39 = vadd.f32 %v3113_v19, %v846_v43  ;;  %v3406_v43 = vld [vmem:[#allocation8 + $0x108] sm:$0xff] }
 0x27b   : > { %6651 = vmatpush2.bf16.msra.mxu1 %v13292_v1  ;;  %v3729_v54 = vld [vmem:[#allocation8 + $0x1540] sm:$0xff]  ;;  %v3154_v1 = vpop.f32.mrf.mxu1  ;;  %v3112_v56 = vadd.f32 %v3111_v6, %v850_v17  ;;  %v3426_v6 = vld [vmem:[#allocation8 + $0x248] sm:$0xff] }
 0x27c   : > { %6608 = vmatpush2.bf16.msra.mxu0 %v13164_v18  ;;  %6652 = vmatprep.subr.bf16.mxu1 %v13285_v21  ;;  %v3853_v47 = vld [vmem:[#allocation8 + $0x1d00] sm:$0xff]  ;;  %v13133_v12 = vcombine.high %v3725_v38, %v3729_v54  ;;  %v13132_v25 = vcombine.low %v3725_v38, %v3729_v54  ;;  %v3115_v21 = vpop.f32.mrf.mxu0 }
 0x27d   : > { %6609 = vmatprep.subr.bf16.mxu0 %v13157_v33  ;;  %v3857_v9 = vld [vmem:[#allocation8 + $0x1d40] sm:$0xff]  ;;  %v12983_v33 = vcombine.high %v15297_v53, %v15299_v51  ;;  %v3156_v57 = vpop.f32.mrf.mxu1  ;;  %v3116_v27 = vadd.f32 %v3115_v21, %v850_v17  ;;  %v3410_v17 = vld [vmem:[#allocation8 + $0x148] sm:$0xff] }
 0x27e   : > { %v3717_v44 = vld [vmem:[#allocation8 + $0x1480] sm:$0xff]  ;;  %v13261_v37 = vcombine.high %v3853_v47, %v3857_v9  ;;  %v13260_v60 = vcombine.low %v3853_v47, %v3857_v9  ;;  %v3157_v45 = vadd.f32 %v3156_v57, %v3114_v39  ;;  %v12815_v19 = vcombine.high %v3406_v43, %v3410_v17  ;;  %v3510_v57 = vld [vmem:[#allocation8 + $0x788] sm:$0xff] }
 0x27f   : > { %6653 = vmatpush2.bf16.msra.mxu1 %v13284_v36  ;;  %v3721_v30 = vld [vmem:[#allocation8 + $0x14c0] sm:$0xff]  ;;  %v3155_v36 = vadd.f32 %v3154_v1, %v3112_v56  ;;  %v3394_v56 = vld [vmem:[#allocation8 + $0x48] sm:$0xff] }
 0x280   : > { %6610 = vmatpush2.bf16.msra.mxu0 %v13156_v23  ;;  %6654 = vmatprep.subr.bf16.mxu1 %v13277_v32  ;;  %v3845_v16 = vld [vmem:[#allocation8 + $0x1c80] sm:$0xff]  ;;  %v13125_v46 = vcombine.high %v3717_v44, %v3721_v30  ;;  %v13124_v29 = vcombine.low %v3717_v44, %v3721_v30  ;;  %v3442_v44 = vld [vmem:[#allocation8 + $0x348] sm:$0xff] }
 0x281   : > { %6611 = vmatprep.subr.bf16.mxu0 %v13149_v28  ;;  %v3849_v8 = vld [vmem:[#allocation8 + $0x1cc0] sm:$0xff]  ;;  %v3195_v23 = vpop.f32.mrf.mxu0  ;;  %v3153_v28 = vadd.f32 %v3152_v22, %v3110_v62  ;;  %v3390_v62 = vld [vmem:[#allocation8 + $0x8] sm:$0xff] }
 0x282   : > { %v3709_v50 = vld [vmem:[#allocation8 + $0x1400] sm:$0xff]  ;;  %v13253_v24 = vcombine.high %v3845_v16, %v3849_v8  ;;  %v13252_v52 = vcombine.low %v3845_v16, %v3849_v8  ;;  %v12854_v8 = vcombine.low %v3446_v14, %v3450_v48  ;;  %v3414_v14 = vld [vmem:[#allocation8 + $0x188] sm:$0xff]  ;;  %v12799_v39 = vcombine.high %v3390_v62, %v3394_v56 }
 0x283   : > { %6655 = vmatpush2.bf16.msra.mxu1 %v13276_v2  ;;  %v3713_v11 = vld [vmem:[#allocation8 + $0x1440] sm:$0xff]  ;;  %v3197_v4 = vpop.f32.mrf.mxu0  ;;  %v3196_v32 = vadd.f32 %v3195_v23, %v3153_v28  ;;  %v3418_v48 = vld [vmem:[#allocation8 + $0x1c8] sm:$0xff]  ;;  %v12798_v28 = vcombine.low %v3390_v62, %v3394_v56 }
 0x284   : > { %6612 = vmatpush2.bf16.msra.mxu0 %v13148_v55  ;;  %6656 = vmatprep.subr.bf16.mxu1 %v13269_v10  ;;  %v3837_v42 = vld [vmem:[#allocation8 + $0x1c00] sm:$0xff]  ;;  %v13117_v26 = vcombine.high %v3709_v50, %v3713_v11  ;;  %v13116_v13 = vcombine.low %v3709_v50, %v3713_v11  ;;  %v3198_v58 = vadd.f32 %v3197_v4, %v3155_v36  ;;  %v3158_v55 = vpop.f32.mrf.mxu1  ;;  %v3434_v50 = vld [vmem:[#allocation8 + $0x2c8] sm:$0xff] }
 0x285   : > { %6613 = vmatprep.subr.bf16.mxu0 %v13141_v7  ;;  %v3841_v41 = vld [vmem:[#allocation8 + $0x1c40] sm:$0xff]  ;;  %v3199_v7 = vpop.f32.mrf.mxu0  ;;  %v3159_v2 = vadd.f32 %v3158_v55, %v3116_v27  ;;  %v12823_v22 = vcombine.high %v3414_v14, %v3418_v48  ;;  %v3514_v23 = vld [vmem:[#allocation8 + $0x7c8] sm:$0xff] }
 0x286   : > { %v13245_v63 = vcombine.high %v3837_v42, %v3841_v41  ;;  %v13244_v18 = vcombine.low %v3837_v42, %v3841_v41  ;;  %v13884_v38 = vpack.c.bf16 %v3198_v58, %v3196_v32  ;;  %v11125_v54 = vcombine.low %v3196_v32, %v3198_v58  ;;  %v3502_v27 = vld [vmem:[#allocation8 + $0x708] sm:$0xff] }
 0x287   : > { %6657 = vmatpush2.bf16.msra.mxu1 %v13268_v20  ;;  %v11126_v10 = vcombine.high %v3196_v32, %v3198_v58  ;;  %v3200_v47 = vadd.f32 %v3199_v7, %v3157_v45  ;;  %v3201_v9 = vpop.f32.mrf.mxu0  ;;  %v3438_v20 = vld [vmem:[#allocation8 + $0x308] sm:$0xff]  ;;  %v12919_v36 = vcombine.high %v3510_v57, %v3514_v23 }
 0x288   : > { %6614 = vmatpush2.bf16.msra.mxu0 %v13140_v34  ;;  %6658 = vmatprep.subr.bf16.mxu1 %v13261_v37  ;;  %3383 = vst [vmem:[%s14662_s3 + $0x10] sm:$0xff] %v13884_v38  ;;  %v12846_v42 = vcombine.low %v3438_v20, %v3442_v44  ;;  %v3506_v4 = vld [vmem:[#allocation8 + $0x748] sm:$0xff] }
 0x289   : > { %6615 = vmatprep.subr.bf16.mxu0 %v13133_v12  ;;  %v15318_v34 = vmax.f32 %v11125_v54, %v11126_v10  ;;  %v3202_v12 = vadd.f32 %v3201_v9, %v3159_v2  ;;  %v3494_v45 = vld [vmem:[#allocation8 + $0x688] sm:$0xff]  ;;  %v12910_v7 = vcombine.low %v3502_v27, %v3506_v4  ;;  %v3238_v9 = vpop.f32.mrf.mxu1 }
 0x28a   : > { %v3498_v55 = vld [vmem:[#allocation8 + $0x6c8] sm:$0xff] }
 0x28b   : > { %6659 = vmatpush2.bf16.msra.mxu1 %v13260_v60  ;;  %v15320_v30 = vpack.c.bf16 %v3202_v12, %v3198_v58  ;;  %v13888_v37 = vpack.c.bf16 %v3202_v12, %v3200_v47  ;;  %v11133_v16 = vcombine.low %v3200_v47, %v3202_v12  ;;  %v11134_v49 = vcombine.high %v3200_v47, %v3202_v12  ;;  %v3430_v60 = vld [vmem:[#allocation8 + $0x288] sm:$0xff] }
 0x28c   : > { %6616 = vmatpush2.bf16.msra.mxu0 %v13132_v25  ;;  %6660 = vmatprep.subr.bf16.mxu1 %v13253_v24  ;;  %v15322_v25 = vpack.c.bf16 %v3200_v47, %v3196_v32  ;;  %v16304_v24 = vld [vmem:[#allocation30_spill] sm:$0xff]  ;;  %v12839_v41 = vcombine.high %v3430_v60, %v3434_v50  ;;  %v12918_v32 = vcombine.low %v3510_v57, %v3514_v23  ;;  %v3486_v38 = vld [vmem:[#allocation8 + $0x608] sm:$0xff] }
 0x28d   : > { %6617 = vmatprep.subr.bf16.mxu0 %v13125_v46  ;;  %16302 = vst [vmem:[#allocation36_spill] sm:$0xff] %v15320_v30  ;;  %v12847_v46 = vcombine.high %v3438_v20, %v3442_v44  ;;  %3387 = vst [vmem:[%s14662_s3 + $0x30] sm:$0xff] %v13888_v37  ;;  %6621 = vmatprep.mubr.bf16.mxu0 %v15320_v30  ;;  %v15326_v11 = vmax.f32 %v11133_v16, %v11134_v49  ;;  %v3490_v54 = vld [vmem:[#allocation8 + $0x648] sm:$0xff]  ;;  %v15331_v16 = vsub.s32 6, %v16299_v3 }
 0x28e   : > { %16303 = vst [vmem:[#allocation37_spill] sm:$0xff] %v15322_v25  ;;  %v12911_v58 = vcombine.high %v3502_v27, %v3506_v4  ;;  %v12903_v2 = vcombine.high %v3494_v45, %v3498_v55  ;;  %v12902_v10 = vcombine.low %v3494_v45, %v3498_v55  ;;  %v12895_v47 = vcombine.high %v3486_v38, %v3490_v54  ;;  %v3478_v12 = vld [vmem:[#allocation8 + $0x588] sm:$0xff] }
 0x28f   : > { %6661 = vmatpush2.bf16.msra.mxu1 %v13252_v52  ;;  %v3482_v20 = vld [vmem:[#allocation8 + $0x5c8] sm:$0xff]  ;;  %v12894_v44 = vcombine.low %v3486_v38, %v3490_v54  ;;  %16305 = vst [vmem:[#allocation38_spill] sm:$0xff] %v15331_v16 }
 0x290   : > { %6618 = vmatpush2.bf16.msra.mxu0 %v13124_v29  ;;  %6662 = vmatprep.subr.bf16.mxu1 %v13245_v63  ;;  %v3422_v29 = vld [vmem:[#allocation8 + $0x208] sm:$0xff]  ;;  %v12887_v37 = vcombine.high %v3478_v12, %v3482_v20 }
 0x291   : > { %6619 = vmatprep.subr.bf16.mxu0 %v13117_v26  ;;  %v12838_v26 = vcombine.low %v3430_v60, %v3434_v50  ;;  %v12831_v52 = vcombine.high %v3422_v29, %v3426_v6  ;;  %v12830_v63 = vcombine.low %v3422_v29, %v3426_v6  ;;  %v3470_v49 = vld [vmem:[#allocation8 + $0x508] sm:$0xff]  ;;  %v15334_v60 = vsub.s32 7, %v16299_v3 }
 0x292   : > { %v12886_v50 = vcombine.low %v3478_v12, %v3482_v20  ;;  %v3462_v6 = vld [vmem:[#allocation8 + $0x488] sm:$0xff] }
 0x293   : > { %6663 = vmatpush2.bf16.msra.mxu1 %v13244_v18  ;;  %v3402_v18 = vld [vmem:[#allocation8 + $0xc8] sm:$0xff]  ;;  %16306 = vst [vmem:[#allocation39_spill] sm:$0xff] %v15334_v60 }
 0x294   : > { %6620 = vmatpush2.bf16.msra.mxu0 %v13116_v13  ;;  %6718 = vmatprep.subr.bf16.mxu1 %v12983_v33  ;;  %v12822_v13 = vcombine.low %v3414_v14, %v3418_v48  ;;  %v12814_v33 = vcombine.low %v3406_v43, %v3410_v17  ;;  %v3458_v43 = vld [vmem:[#allocation8 + $0x448] sm:$0xff] }
 0x295   : > { %6675 = vmatprep.subr.bf16.mxu0 %v12855_v0  ;;  %v3398_v0 = vld [vmem:[#allocation8 + $0x88] sm:$0xff] }
 0x296   : > { %v12807_v1 = vcombine.high %v3398_v0, %v3402_v18  ;;  %v12806_v21 = vcombine.low %v3398_v0, %v3402_v18  ;;  %v15340_v38 = vld [vmem:[#allocation8 + $0x1308] sm:$0xff] }
 0x297   : > { %6622 = vmatmul.mubr.bf16.vlgmr.msra.gmra.mxu0 %v15322_v25  ;;  %v15342_v54 = vld [vmem:[#allocation8 + $0x1348] sm:$0xff] }
 0x298   : > { %6676 = vmatpush1.bf16.msra.mxu0 %v12854_v8  ;;  %6707 = vmatprep.mubr.bf16.mxu0 %v16304_v24  ;;  %v3240_v8 = vpop.f32.mrf.mxu1  ;;  %v15348_v12 = vld [vmem:[#allocation8 + $0x1288] sm:$0xff] }
 0x299   : > { %6677 = vmatprep.subr.bf16.mxu0 %v12847_v46  ;;  %v3474_v46 = vld [vmem:[#allocation8 + $0x548] sm:$0xff] }
 0x29a   : > { %v3242_v29 = vpop.f32.mrf.mxu1  ;;  %v12878_v14 = vcombine.low %v3470_v49, %v3474_v46  ;;  %v15350_v20 = vld [vmem:[#allocation8 + $0x12c8] sm:$0xff] }
 0x29c   : > { %6678 = vmatpush1.bf16.msra.mxu0 %v12846_v42  ;;  %v12879_v42 = vcombine.high %v3470_v49, %v3474_v46  ;;  %v3244_v3 = vpop.f32.mrf.mxu1  ;;  %v15355_v46 = vld [vmem:[#allocation8 + $0xa88] sm:$0xff] }
 0x29d   : > { %6679 = vmatprep.subr.bf16.mxu0 %v12839_v41  ;;  %v854_v41 = vrot.slane %v15309_v5, %v15331_v16 }
 0x29f   : > { %v3243_v62 = vadd.f32 %v3242_v29, %v854_v41  ;;  %v13103_v29 = vcombine.high %v15340_v38, %v15342_v54 }
 0x2a0   : > { %6680 = vmatpush1.bf16.msra.mxu0 %v12838_v26  ;;  %v3466_v26 = vld [vmem:[#allocation8 + $0x4c8] sm:$0xff] }
 0x2a1   : > { %6681 = vmatprep.subr.bf16.mxu0 %v12831_v52  ;;  %v858_v52 = vrot.slane %v15309_v5, %v15334_v60  ;;  %v12871_v48 = vcombine.high %v3462_v6, %v3466_v26  ;;  %v12870_v18 = vcombine.low %v3462_v6, %v3466_v26  ;;  %v15365_v6 = vld [vmem:[#allocation8 + $0x1208] sm:$0xff] }
 0x2a2   : > { %v15367_v26 = vld [vmem:[#allocation8 + $0x1248] sm:$0xff] }
 0x2a4   : > { %6682 = vmatpush1.bf16.msra.mxu0 %v12830_v63  ;;  %v3239_v63 = vadd.f32 %v3238_v9, %v854_v41  ;;  %v15346_v9 = vld [vmem:[#allocation8 + $0xb48] sm:$0xff]  ;;  %v13102_v41 = vcombine.low %v15340_v38, %v15342_v54 }
 0x2a5   : > { %6683 = vmatprep.subr.bf16.mxu0 %v12823_v22  ;;  %v3454_v22 = vld [vmem:[#allocation8 + $0x408] sm:$0xff] }
 0x2a6   : > { %v12862_v4 = vcombine.low %v3454_v22, %v3458_v43  ;;  %v15461_v38 = vld [vmem:[#allocation8 + $0x1048] sm:$0xff] }
 0x2a8   : > { %6684 = vmatpush1.bf16.msra.mxu0 %v12822_v13  ;;  %v3241_v13 = vadd.f32 %v3240_v8, %v858_v52 }
 0x2a9   : > { %6685 = vmatprep.subr.bf16.mxu0 %v12815_v19 }
 0x2ac   : > { %6686 = vmatpush1.bf16.msra.mxu0 %v12814_v33 }
 0x2ad   : > { %6687 = vmatprep.subr.bf16.mxu0 %v12807_v1  ;;  %v12863_v1 = vcombine.high %v3454_v22, %v3458_v43  ;;  %v15379_v22 = vld [vmem:[#allocation8 + $0xa48] sm:$0xff] }
 0x2ae   : > { %v15381_v43 = vld [vmem:[#allocation8 + $0x1188] sm:$0xff] }
 0x2b0   : > { %6688 = vmatpush1.bf16.msra.mxu0 %v12806_v21  ;;  %v3702_v21 = vld [vmem:[#allocation8 + $0x1388] sm:$0xff] }
 0x2b1   : > { %6689 = vmatprep.subr.bf16.mxu0 %v12799_v39  ;;  %v3706_v39 = vld [vmem:[#allocation8 + $0x13c8] sm:$0xff] }
 0x2b2   : > { %v13111_v45 = vcombine.high %v3702_v21, %v3706_v39  ;;  %v13110_v49 = vcombine.low %v3702_v21, %v3706_v39  ;;  %v13087_v39 = vcombine.high %v15365_v6, %v15367_v26  ;;  %v15506_v21 = vld [vmem:[#allocation8 + $0xf48] sm:$0xff] }
 0x2b4   : > { %6690 = vmatpush1.bf16.msra.mxu0 %v12798_v28 }
 0x2b5   : > { %6691 = vmatprep.subr.bf16.mxu0 %v12919_v36 }
 0x2b8   : > { %6692 = vmatpush2.bf16.msra.mxu0 %v12918_v32  ;;  %v3245_v32 = vadd.f32 %v3244_v3, %v858_v52  ;;  %v15369_v52 = vld [vmem:[#allocation8 + $0xa08] sm:$0xff]  ;;  %v13095_v3 = vcombine.high %v15348_v12, %v15350_v20 }
 0x2b9   : > { %6693 = vmatprep.subr.bf16.mxu0 %v12911_v58 }
 0x2bc   : > { %6694 = vmatpush2.bf16.msra.mxu0 %v12910_v7 }
 0x2bd   : > { %6695 = vmatprep.subr.bf16.mxu0 %v12903_v2 }
 0x2c0   : > { %6696 = vmatpush2.bf16.msra.mxu0 %v12902_v10  ;;  %v15344_v10 = vld [vmem:[#allocation8 + $0xb08] sm:$0xff] }
 0x2c1   : > { %6697 = vmatprep.subr.bf16.mxu0 %v12895_v47  ;;  %v3281_v17 = vpop.f32.mrf.mxu0 }
 0x2c2   : > { %v3282_v19 = vadd.f32 %v3281_v17, %v3239_v63  ;;  %v3324_v0 = vpop.f32.mrf.mxu1  ;;  %v13094_v63 = vcombine.low %v15348_v12, %v15350_v20  ;;  %v15383_v17 = vld [vmem:[#allocation8 + $0x11c8] sm:$0xff] }
 0x2c3   : > { %v3283_v33 = vpop.f32.mrf.mxu0  ;;  %v15562_v20 = vld [vmem:[#allocation8 + $0x1588] sm:$0xff] }
 0x2c4   : > { %6698 = vmatpush2.bf16.msra.mxu0 %v12894_v44  ;;  %v3284_v56 = vadd.f32 %v3283_v33, %v3241_v13  ;;  %v3326_v5 = vpop.f32.mrf.mxu1  ;;  %v3325_v23 = vadd.f32 %v3324_v0, %v3282_v19  ;;  %v15395_v33 = vld [vmem:[#allocation8 + $0x988] sm:$0xff] }
 0x2c5   : > { %6699 = vmatprep.subr.bf16.mxu0 %v12887_v37  ;;  %v3285_v57 = vpop.f32.mrf.mxu0  ;;  %v15573_v12 = vld [vmem:[#allocation8 + $0xdc8] sm:$0xff] }
 0x2c6   : > { %v3327_v28 = vadd.f32 %v3326_v5, %v3284_v56  ;;  %v3286_v36 = vadd.f32 %v3285_v57, %v3243_v62  ;;  %v3328_v27 = vpop.f32.mrf.mxu1  ;;  %v15399_v62 = vld [vmem:[#allocation8 + $0x1108] sm:$0xff] }
 0x2c7   : > { %v3287_v58 = vpop.f32.mrf.mxu0  ;;  %v15411_v57 = vld [vmem:[#allocation8 + $0x1148] sm:$0xff] }
 0x2c8   : > { %6700 = vmatpush2.bf16.msra.mxu0 %v12886_v50  ;;  %v13885_v55 = vpack.c.bf16 %v3327_v28, %v3325_v23  ;;  %v11127_v7 = vcombine.low %v3325_v23, %v3327_v28  ;;  %v11128_v2 = vcombine.high %v3325_v23, %v3327_v28  ;;  %v3288_v47 = vadd.f32 %v3287_v58, %v3245_v32  ;;  %v3330_v8 = vpop.f32.mrf.mxu1  ;;  %v15357_v50 = vld [vmem:[#allocation8 + $0xac8] sm:$0xff] }
 0x2c9   : > { %6701 = vmatprep.subr.bf16.mxu0 %v12879_v42  ;;  %v15353_v37 = vadd.f32 %v3328_v27, %v3286_v36  ;;  %v15415_v36 = vld [vmem:[#allocation8 + $0x948] sm:$0xff]  ;;  %v11191_v32 = vrot.slane %v15318_v34, %v16278_v40  ;;  %v16309_v34 = vld [vmem:[#allocation33_spill] sm:$0xff] }
 0x2ca   : > { %3384 = vst [vmem:[%s14662_s3 + $0x18] sm:$0xff] %v13885_v55  ;;  %v11156_v44 = vmax.f32 %v11127_v7, %v11128_v2  ;;  %v15359_v42 = vadd.f32 %v3330_v8, %v3288_v47  ;;  %v15435_v7 = vld [vmem:[#allocation8 + $0x1088] sm:$0xff] }
 0x2cb   : > { %v15405_v5 = vpack.c.bf16 %v15353_v37, %v3325_v23  ;;  %v15437_v2 = vld [vmem:[#allocation8 + $0x10c8] sm:$0xff] }
 0x2cc   : > { %6702 = vmatpush2.bf16.msra.mxu0 %v12878_v14  ;;  %v12974_v14 = vcombine.low %v15344_v10, %v15346_v9  ;;  %v15386_v13 = vpack.c.bf16 %v15359_v42, %v3327_v28  ;;  %v13889_v19 = vpack.c.bf16 %v15359_v42, %v15353_v37  ;;  %v15402_v56 = vrot.slane %v11156_v44, %v16278_v40  ;;  %v15413_v28 = vld [vmem:[#allocation8 + $0x908] sm:$0xff] }
 0x2cd   : > { %6703 = vmatprep.subr.bf16.mxu0 %v12871_v48  ;;  %v12975_v48 = vcombine.high %v15344_v10, %v15346_v9  ;;  %16308 = vst [vmem:[#allocation41_spill] sm:$0xff] %v15405_v5  ;;  %v15449_v44 = vld [vmem:[#allocation8 + $0x888] sm:$0xff]  ;;  %v11135_v23 = vcombine.low %v15353_v37, %v15359_v42 }
 0x2ce   : > { %16307 = vst [vmem:[#allocation40_spill] sm:$0xff] %v15386_v13  ;;  %3388 = vst [vmem:[%s14662_s3 + $0x38] sm:$0xff] %v13889_v19  ;;  %6664 = vmatprep.mubr.bf16.mxu1 %v15386_v13  ;;  %v15451_v8 = vld [vmem:[#allocation8 + $0x8c8] sm:$0xff]  ;;  %v11199_v53 = vcombine.low %v11191_v32, %v15402_v56  ;;  %v11200_v51 = vcombine.high %v11191_v32, %v15402_v56  ;;  %v13839_v54 = vcombine.high %v15402_v56, %v15402_v56 }
 0x2cf   : > { %6665 = vmatmul.mubr.bf16.vlgmr.msra.gmra.mxu1 %v15405_v5  ;;  %v15463_v47 = vld [vmem:[#allocation8 + $0x808] sm:$0xff]  ;;  %v16313_v5 = vcombine.high %v15381_v43, %v15383_v17 }
 0x2d0   : > { %6704 = vmatpush2.bf16.msra.mxu0 %v12870_v18  ;;  %v12967_v18 = vcombine.high %v15355_v46, %v15357_v50  ;;  %6719 = vmatpush1.bf16.msra.mxu1 %v12982_v35  ;;  %v13837_v35 = vcombine.low %v15402_v56, %v15402_v56  ;;  %v15473_v58 = vld [vmem:[#allocation8 + $0x1788] sm:$0xff]  ;;  %v11136_v56 = vcombine.high %v15353_v37, %v15359_v42 }
 0x2d1   : > { %6705 = vmatprep.subr.bf16.mxu0 %v12863_v1  ;;  %v15397_v1 = vld [vmem:[#allocation8 + $0x9c8] sm:$0xff]  ;;  %6750 = vmatprep.mubr.bf16.mxu1 %v16309_v34  ;;  %v11257_v10 = vrot.slane %v11199_v53, %v16278_v40  ;;  %v11298_v0 = vrot.slane %v13839_v54, %v16278_v40 }
 0x2d2   : > { %6720 = vmatprep.subr.bf16.mxu1 %v12975_v48  ;;  %v15475_v19 = vld [vmem:[#allocation8 + $0x17c8] sm:$0xff]  ;;  %v11264_v9 = vrot.slane %v13837_v35, %v16278_v40 }
 0x2d3   : > { %v15477_v55 = vld [vmem:[#allocation8 + $0xf88] sm:$0xff]  ;;  %v11265_v60 = vcombine.high %v11257_v10, %v11257_v10 }
 0x2d4   : > { %6706 = vmatpush2.bf16.msra.mxu0 %v12862_v4  ;;  %v15487_v32 = vld [vmem:[#allocation8 + $0xfc8] sm:$0xff]  ;;  %6721 = vmatpush1.bf16.msra.mxu1 %v12974_v14  ;;  %v11291_v14 = vrot.slane %v11200_v51, %v16278_v40  ;;  %v11266_v16 = vcombine.high %v11264_v9, %v11264_v9 }
 0x2d5   : > { %6761 = vmatprep.subr.bf16.mxu0 %v13111_v45  ;;  %v15465_v45 = vld [vmem:[#allocation8 + $0x848] sm:$0xff]  ;;  %6722 = vmatprep.subr.bf16.mxu1 %v12967_v18  ;;  %v11437_v59 = vsel %vm11401_vm0, %v11265_v60, -inf }
 0x2d6   : > { %v15491_v4 = vld [vmem:[#allocation8 + $0x1748] sm:$0xff] }
 0x2d7   : > { %6708 = vmatmul.mubr.bf16.vlgmr.msra.gmra.mxu0 %v16276_v31  ;;  %v15504_v48 = vld [vmem:[#allocation8 + $0xf08] sm:$0xff]  ;;  %v11438_v31 = vrot.slane %v11437_v59, 4 }
 0x2d8   : > { %6762 = vmatpush1.bf16.msra.mxu0 %v13110_v49  ;;  %6793 = vmatprep.mubr.bf16.mxu0 %v15320_v30  ;;  %v15453_v49 = vld [vmem:[#allocation8 + $0x1008] sm:$0xff] }
 0x2d9   : > { %6763 = vmatprep.subr.bf16.mxu0 %v13103_v29  ;;  %v15489_v29 = vld [vmem:[#allocation8 + $0x1708] sm:$0xff] }
 0x2da   : > { %v15508_v27 = vld [vmem:[#allocation8 + $0x1688] sm:$0xff] }
 0x2db   : > { %v15518_v37 = vld [vmem:[#allocation8 + $0x16c8] sm:$0xff] }
 0x2dc   : > { %6764 = vmatpush1.bf16.msra.mxu0 %v13102_v41  ;;  %v15520_v41 = vld [vmem:[#allocation8 + $0xe88] sm:$0xff] }
 0x2dd   : > { %6765 = vmatprep.subr.bf16.mxu0 %v13095_v3  ;;  %v15522_v42 = vld [vmem:[#allocation8 + $0xec8] sm:$0xff]  ;;  %v11160_v3 = vmax.f32 %v11135_v23, %v11136_v56  ;;  %v16310_v23 = vcombine.low %v15355_v46, %v15357_v50  ;;  %v11299_v46 = vcombine.high %v11291_v14, %v11291_v14  ;;  %v16311_v50 = vcombine.high %v15369_v52, %v15379_v22 }
 0x2de   : > { %v15534_v35 = vld [vmem:[#allocation8 + $0x1608] sm:$0xff] }
 0x2df   : > { %v15545_v54 = vld [vmem:[#allocation8 + $0x1648] sm:$0xff]  ;;  %6723 = vmatpush1.bf16.msra.mxu1 %v16310_v23  ;;  %v11430_v23 = vsel %vm11401_vm0, %v11257_v10, -inf  ;;  %v11230_v34 = vrot.slane %v11160_v3, %v16278_v40  ;;  %v16315_v10 = vcombine.low %v15369_v52, %v15379_v22  ;;  %v11493_v30 = vsel %vm11401_vm0, %v11299_v46, -inf }
 0x2e0   : > { %6766 = vmatpush1.bf16.msra.mxu0 %v13094_v63  ;;  %v15547_v18 = vld [vmem:[#allocation8 + $0xe08] sm:$0xff]  ;;  %6724 = vmatprep.subr.bf16.mxu1 %v16311_v50  ;;  %v16312_v63 = vcombine.low %v15365_v6, %v15367_v26  ;;  %v11444_v50 = vsel %vm11401_vm0, %v11264_v9, -inf  ;;  %v11223_v26 = vrot.slane %v15326_v11, %v16278_v40  ;;  %v11451_v9 = vsel %vm11401_vm0, %v11266_v16, -inf }
 0x2e1   : > { %6767 = vmatprep.subr.bf16.mxu0 %v13087_v39  ;;  %v15549_v51 = vld [vmem:[#allocation8 + $0xe48] sm:$0xff]  ;;  %v11300_v39 = vcombine.high %v11298_v0, %v11298_v0  ;;  %v16316_v52 = vcombine.high %v15395_v33, %v15397_v1  ;;  %v11431_v22 = vrot.slane %v11430_v23, 4  ;;  %v16317_v6 = vcombine.low %v15381_v43, %v15383_v17 }
 0x2e2   : > { %v15564_v53 = vld [vmem:[#allocation8 + $0x15c8] sm:$0xff]  ;;  %v11445_v60 = vrot.slane %v11444_v50, 4  ;;  %v11500_v16 = vsel %vm11401_vm0, %v11298_v0, -inf  ;;  %v11231_v46 = vcombine.low %v11223_v26, %v11230_v34  ;;  %v11232_v3 = vcombine.high %v11223_v26, %v11230_v34 }
 0x2e3   : > { %v15571_v56 = vld [vmem:[#allocation8 + $0xd88] sm:$0xff]  ;;  %6725 = vmatpush1.bf16.msra.mxu1 %v16315_v10  ;;  %v11486_v10 = vsel %vm11401_vm0, %v11291_v14, -inf  ;;  %v11452_v14 = vrot.slane %v11451_v9, 4  ;;  %v11494_v13 = vrot.slane %v11493_v30, 4  ;;  %v16319_v43 = vcombine.low %v15395_v33, %v15397_v1 }
 0x2e4   : > { %6768 = vmatpush1.bf16.msra.mxu0 %v16312_v63  ;;  %v15593_v63 = vld [vmem:[#allocation8 + $0x1508] sm:$0xff]  ;;  %6726 = vmatprep.subr.bf16.mxu1 %v16316_v52  ;;  %v16318_v52 = vcombine.high %v15399_v62, %v15411_v57  ;;  %v13843_v11 = vcombine.high %v11230_v34, %v11230_v34  ;;  %v11359_v0 = vrot.slane %v11232_v3, %v16278_v40  ;;  %v11501_v24 = vrot.slane %v11500_v16, 4 }
 0x2e5   : > { %6769 = vmatprep.subr.bf16.mxu0 %v16313_v5  ;;  %16314 = vst [vmem:[#allocation42_spill] sm:$0xff] %v15593_v63  ;;  %v11507_v5 = vsel %vm11401_vm0, %v11300_v39, -inf  ;;  %v13841_v39 = vcombine.low %v11230_v34, %v11230_v34  ;;  %v16320_v26 = vcombine.high %v15413_v28, %v15415_v36  ;;  %v15634_v15 = vmax.f32 %v11430_v23, %v11431_v22 }
 0x2e6   : > { %v11508_v17 = vrot.slane %v11507_v5, 4  ;;  %v16321_v33 = vcombine.low %v15399_v62, %v15411_v57  ;;  %v11367_v34 = vcombine.high %v11359_v0, %v11359_v0  ;;  %v11439_v23 = vmax.f32 %v11437_v59, %v11438_v31 }
 0x2e7   : > { %6727 = vmatpush1.bf16.msra.mxu1 %v16319_v43  ;;  %v11332_v25 = vrot.slane %v13841_v39, %v16278_v40  ;;  %v16322_v43 = vcombine.high %v15435_v7, %v15437_v2  ;;  %v11453_v22 = vmax.f32 %v11451_v9, %v11452_v14  ;;  %v16323_v39 = vcombine.low %v15413_v28, %v15415_v36 }
 0x2e8   : > { %6770 = vmatpush1.bf16.msra.mxu0 %v16317_v6  ;;  %v11325_v6 = vrot.slane %v11231_v46, %v16278_v40  ;;  %6728 = vmatprep.subr.bf16.mxu1 %v16320_v26  ;;  %v11366_v46 = vrot.slane %v13843_v11, %v16278_v40  ;;  %v11495_v62 = vmax.f32 %v11493_v30, %v11494_v13  ;;  %v11598_v30 = vsel %vm11401_vm0, %v11359_v0, -inf }
 0x2e9   : > { %6771 = vmatprep.subr.bf16.mxu0 %v16318_v52  ;;  %v11487_v52 = vrot.slane %v11486_v10, 4  ;;  %v11334_v26 = vcombine.high %v11332_v25, %v11332_v25  ;;  %v11556_v63 = vsel %vm11401_vm0, %v11332_v25, -inf  ;;  %v11509_v57 = vmax.f32 %v11507_v5, %v11508_v17 }
 0x2ea   : > { %v11333_v1 = vcombine.high %v11325_v6, %v11325_v6  ;;  %v11542_v3 = vsel %vm11401_vm0, %v11325_v6, -inf  ;;  %v16324_v6 = vcombine.high %v15449_v44, %v15451_v8  ;;  %v11557_v31 = vrot.slane %v11556_v63, 4 }
 0x2eb   : > { %6729 = vmatpush1.bf16.msra.mxu1 %v16323_v39  ;;  %v11543_v40 = vrot.slane %v11542_v3, 4  ;;  %v11563_v59 = vsel %vm11401_vm0, %v11334_v26, -inf  ;;  %v16325_v25 = vcombine.low %v15435_v7, %v15437_v2  ;;  %v11605_v13 = vsel %vm11401_vm0, %v11367_v34, -inf }
 0x2ec   : > { %6772 = vmatpush1.bf16.msra.mxu0 %v16321_v33  ;;  %v11368_v33 = vcombine.high %v11366_v46, %v11366_v46  ;;  %v11549_v11 = vsel %vm11401_vm0, %v11333_v1, -inf  ;;  %6730 = vmatprep.subr.bf16.mxu1 %v16324_v6  ;;  %v11564_v28 = vrot.slane %v11563_v59, 4  ;;  %v11612_v36 = vsel %vm11401_vm0, %v11366_v46, -inf }
 0x2ed   : > { %6773 = vmatprep.subr.bf16.mxu0 %v16322_v43  ;;  %v11550_v43 = vrot.slane %v11549_v11, 4  ;;  %v16326_v5 = vcombine.high %v15453_v49, %v15461_v38  ;;  %v11446_v9 = vmax.f32 %v11444_v50, %v11445_v60  ;;  %v11488_v14 = vmax.f32 %v11486_v10, %v11487_v52 }
 0x2ee   : > { %v11606_v1 = vrot.slane %v11605_v13, 4  ;;  %v16327_v26 = vcombine.low %v15449_v44, %v15451_v8  ;;  %v11440_v7 = vrot.slane %v11439_v23, 2  ;;  %v11502_v2 = vmax.f32 %v11500_v16, %v11501_v24 }
 0x2ef   : > { %v11551_v17 = vmax.f32 %v11549_v11, %v11550_v43  ;;  %v11565_v39 = vmax.f32 %v11563_v59, %v11564_v28  ;;  %v11619_v0 = vsel %vm11401_vm0, %v11368_v33, -inf  ;;  %v16328_v46 = vcombine.high %v15463_v47, %v15465_v45 }
 0x2f0   : > { %6774 = vmatpush1.bf16.msra.mxu0 %v16325_v25  ;;  %6731 = vmatpush1.bf16.msra.mxu1 %v16327_v26  ;;  %v11544_v34 = vmax.f32 %v11542_v3, %v11543_v40  ;;  %v11558_v6 = vmax.f32 %v11556_v63, %v11557_v31  ;;  %v11599_v25 = vrot.slane %v11598_v30, 4  ;;  %v11613_v50 = vrot.slane %v11612_v36, 4 }
 0x2f1   : > { %6775 = vmatprep.subr.bf16.mxu0 %v16326_v5  ;;  %6732 = vmatprep.subr.bf16.mxu1 %v16328_v46  ;;  %v16329_v10 = vcombine.low %v15453_v49, %v15461_v38  ;;  %v11454_v60 = vrot.slane %v11453_v22, 2  ;;  %v11496_v44 = vrot.slane %v11495_v62, 2  ;;  %v11510_v8 = vrot.slane %v11509_v57, 2 }
 0x2f2   : > { %v11620_v52 = vrot.slane %v11619_v0, 4  ;;  %v16330_v24 = vcombine.high %v15473_v58, %v15475_v19  ;;  %v11433_v16 = vrot.slane %v15634_v15, 2  ;;  %v11552_v33 = vrot.slane %v11551_v17, 2 }
 0x2f3   : > { %v11566_v11 = vrot.slane %v11565_v39, 2  ;;  %v11607_v40 = vmax.f32 %v11605_v13, %v11606_v1  ;;  %v16331_v63 = vcombine.low %v15463_v47, %v15465_v45  ;;  %v11447_v3 = vrot.slane %v11446_v9, 2 }
 0x2f4   : > { %6776 = vmatpush1.bf16.msra.mxu0 %v16329_v10  ;;  %v11489_v38 = vrot.slane %v11488_v14, 2  ;;  %v11503_v49 = vrot.slane %v11502_v2, 2  ;;  %v11621_v43 = vmax.f32 %v11619_v0, %v11620_v52  ;;  %v16332_v31 = vcombine.high %v15477_v55, %v15487_v32 }
 0x2f5   : > { %6777 = vmatprep.subr.bf16.mxu0 %v16330_v24  ;;  %6733 = vmatpush1.bf16.msra.mxu1 %v16331_v63  ;;  %v11545_v59 = vrot.slane %v11544_v34, 2  ;;  %v11559_v28 = vrot.slane %v11558_v6, 2  ;;  %v11600_v5 = vmax.f32 %v11598_v30, %v11599_v25  ;;  %v11614_v26 = vmax.f32 %v11612_v36, %v11613_v50 }
 0x2f6   : > { %6734 = vmatprep.subr.bf16.mxu1 %v16332_v31  ;;  %v16333_v46 = vcombine.low %v15473_v58, %v15475_v19  ;;  %v11441_v13 = vmax.f32 %v11439_v23, %v11440_v7  ;;  %v11455_v1 = vmax.f32 %v11453_v22, %v11454_v60  ;;  %v11497_v45 = vmax.f32 %v11495_v62, %v11496_v44 }
 0x2f7   : > { %v11511_v47 = vmax.f32 %v11509_v57, %v11510_v8  ;;  %v16334_v10 = vcombine.high %v15489_v29, %v15491_v4  ;;  %v11553_v0 = vmax.f32 %v11551_v17, %v11552_v33  ;;  %v11567_v52 = vmax.f32 %v11565_v39, %v11566_v11 }
 0x2f8   : > { %6778 = vmatpush2.bf16.msra.mxu0 %v16333_v46  ;;  %v11608_v24 = vrot.slane %v11607_v40, 2  ;;  %v11622_v63 = vrot.slane %v11621_v43, 2  ;;  %v16335_v30 = vcombine.low %v15477_v55, %v15487_v32  ;;  %v11434_v36 = vmax.f32 %v15634_v15, %v11433_v16 }
 0x2f9   : > { %6779 = vmatprep.subr.bf16.mxu0 %v16334_v10  ;;  %v11448_v58 = vmax.f32 %v11446_v9, %v11447_v3  ;;  %v11490_v19 = vmax.f32 %v11488_v14, %v11489_v38  ;;  %v11504_v23 = vmax.f32 %v11502_v2, %v11503_v49  ;;  %v16336_v22 = vcombine.high %v15504_v48, %v15506_v21 }
 0x2fa   : > { %6735 = vmatpush2.bf16.msra.mxu1 %v16335_v30  ;;  %v11546_v62 = vmax.f32 %v11544_v34, %v11545_v59  ;;  %v11560_v57 = vmax.f32 %v11558_v6, %v11559_v28  ;;  %v11601_v7 = vrot.slane %v11600_v5, 2  ;;  %v11615_v17 = vrot.slane %v11614_v26, 2 }
 0x2fb   : > { %6736 = vmatprep.subr.bf16.mxu1 %v16336_v22  ;;  %v16337_v39 = vcombine.low %v15489_v29, %v15491_v4  ;;  %v11442_v25 = vrot.slane %v11441_v13, 1  ;;  %v11456_v55 = vrot.slane %v11455_v1, 1  ;;  %v11498_v32 = vrot.slane %v11497_v45, 1 }
 0x2fc   : > { %v11512_v50 = vrot.slane %v11511_v47, 1  ;;  %v16338_v15 = vcombine.high %v15508_v27, %v15518_v37  ;;  %v11554_v9 = vrot.slane %v11553_v0, 1  ;;  %v11568_v14 = vrot.slane %v11567_v52, 1 }
 0x2fd   : > { %6780 = vmatpush2.bf16.msra.mxu0 %v16337_v39  ;;  %v11609_v2 = vmax.f32 %v11607_v40, %v11608_v24  ;;  %v11623_v60 = vmax.f32 %v11621_v43, %v11622_v63  ;;  %v16339_v34 = vcombine.low %v15504_v48, %v15506_v21  ;;  %v11435_v6 = vrot.slane %v11434_v36, 1  ;;  %v3602_v63 = vld [vmem:[#allocation8 + $0xd48] sm:$0xff] }
 0x2fe   : > { %6781 = vmatprep.subr.bf16.mxu0 %v16338_v15  ;;  %v11449_v44 = vrot.slane %v11448_v58, 1  ;;  %v11491_v4 = vrot.slane %v11490_v19, 1  ;;  %v11505_v29 = vrot.slane %v11504_v23, 1  ;;  %v16340_v8 = vcombine.high %v15520_v41, %v15522_v42 }
 0x2ff   : > { %6737 = vmatpush2.bf16.msra.mxu1 %v16339_v34  ;;  %v11547_v16 = vrot.slane %v11546_v62, 1  ;;  %v11561_v33 = vrot.slane %v11560_v57, 1  ;;  %v11602_v11 = vmax.f32 %v11600_v5, %v11601_v7  ;;  %v11616_v3 = vmax.f32 %v11614_v26, %v11615_v17  ;;  %v16349_v17 = vld [vmem:[#allocation42_spill] sm:$0xff] }
 0x300   : > { %6738 = vmatprep.subr.bf16.mxu1 %v16340_v8  ;;  %v16341_v40 = vcombine.low %v15508_v27, %v15518_v37  ;;  %v11443_v38 = vmax.f32 %v11441_v13, %v11442_v25  ;;  %v11457_v49 = vmax.f32 %v11455_v1, %v11456_v55  ;;  %v11499_v21 = vmax.f32 %v11497_v45, %v11498_v32 }
 0x301   : > { %v11513_v48 = vmax.f32 %v11511_v47, %v11512_v50  ;;  %v16342_v43 = vcombine.high %v15534_v35, %v15545_v54  ;;  %v11555_v31 = vmax.f32 %v11553_v0, %v11554_v9  ;;  %v11569_v59 = vmax.f32 %v11567_v52, %v11568_v14  ;;  %v3598_v52 = vld [vmem:[#allocation8 + $0xd08] sm:$0xff] }
 0x302   : > { %6782 = vmatpush2.bf16.msra.mxu0 %v16341_v40  ;;  %v11610_v28 = vrot.slane %v11609_v2, 1  ;;  %v11624_v46 = vrot.slane %v11623_v60, 1  ;;  %v16343_v5 = vcombine.low %v15520_v41, %v15522_v42  ;;  %v11436_v26 = vmax.f32 %v11434_v36, %v11435_v6  ;;  %v3590_v14 = vld [vmem:[#allocation8 + $0xc88] sm:$0xff] }
 0x303   : > { %6783 = vmatprep.subr.bf16.mxu0 %v16342_v43  ;;  %v11450_v10 = vmax.f32 %v11448_v58, %v11449_v44  ;;  %v11492_v27 = vmax.f32 %v11490_v19, %v11491_v4  ;;  %v11506_v37 = vmax.f32 %v11504_v23, %v11505_v29  ;;  %v16344_v13 = vcombine.high %v15547_v18, %v15549_v51  ;;  %v3718_v19 = vld [vmem:[#allocation8 + $0x1488] sm:$0xff] }
 0x304   : > { %6739 = vmatpush2.bf16.msra.mxu1 %v16343_v5  ;;  %v11548_v1 = vmax.f32 %v11546_v62, %v11547_v16  ;;  %v11562_v45 = vmax.f32 %v11560_v57, %v11561_v33  ;;  %v11603_v47 = vrot.slane %v11602_v11, 1  ;;  %v11617_v24 = vrot.slane %v11616_v3, 1  ;;  %v3722_v23 = vld [vmem:[#allocation8 + $0x14c8] sm:$0xff] }
 0x305   : > { %6740 = vmatprep.subr.bf16.mxu1 %v16344_v13  ;;  %v16345_v0 = vcombine.low %v15534_v35, %v15545_v54  ;;  %v13846_v41 = vpack.c.bf16 %v11443_v38, %v11436_v26  ;;  %v13847_v42 = vpack.c.bf16 %v11457_v49, %v11450_v10  ;;  %v13850_v30 = vpack.c.bf16 %v11499_v21, %v11492_v27  ;;  %v3714_v4 = vld [vmem:[#allocation8 + $0x1448] sm:$0xff]  ;;  %v15755_v21 = vld [vmem:[#allocation8 + $0x3d0] sm:$0xff] }
 0x306   : > { %v13851_v36 = vpack.c.bf16 %v11513_v48, %v11506_v37  ;;  %v16346_v58 = vcombine.high %v15562_v20, %v15564_v53  ;;  %v11611_v22 = vmax.f32 %v11609_v2, %v11610_v28  ;;  %v11625_v62 = vmax.f32 %v11623_v60, %v11624_v46  ;;  %v3594_v2 = vld [vmem:[#allocation8 + $0xcc8] sm:$0xff]  ;;  %v15762_v27 = vld [vmem:[#allocation8 + $0x310] sm:$0xff] }
 0x307   : > { %6784 = vmatpush2.bf16.msra.mxu0 %v16345_v0  ;;  %v13854_v57 = vpack.c.bf16 %v11555_v31, %v11548_v1  ;;  %v13855_v7 = vpack.c.bf16 %v11569_v59, %v11562_v45  ;;  %v16347_v35 = vcombine.low %v15547_v18, %v15549_v51  ;;  %v16348_v54 = vcombine.high %v15571_v56, %v15573_v12  ;;  %v16352_v51 = vld [vmem:[#allocation31_spill] sm:$0xff]  ;;  %v15764_v37 = vld [vmem:[#allocation8 + $0x350] sm:$0xff] }
 0x308   : > { %6785 = vmatprep.subr.bf16.mxu0 %v16346_v58  ;;  %v13134_v39 = vcombine.low %v16349_v17, %v15595_v61  ;;  %v13007_v25 = vcombine.high %v3598_v52, %v3602_v63  ;;  %v11604_v55 = vmax.f32 %v11602_v11, %v11603_v47  ;;  %v11618_v32 = vmax.f32 %v11616_v3, %v11617_v24  ;;  %v3582_v3 = vld [vmem:[#allocation8 + $0xc08] sm:$0xff]  ;;  %v15782_v58 = vld [vmem:[#allocation8 + $0x2d0] sm:$0xff] }
 0x309   : > { %6741 = vmatpush2.bf16.msra.mxu1 %v16347_v35  ;;  %v16350_v50 = vcombine.low %v15562_v20, %v15564_v53  ;;  %v13006_v15 = vcombine.low %v3598_v52, %v3602_v63  ;;  %v13127_v9 = vcombine.high %v3718_v19, %v3722_v23  ;;  %v16351_v18 = vcombine.high %v16349_v17, %v15595_v61  ;;  %v3710_v20 = vld [vmem:[#allocation8 + $0x1408] sm:$0xff] }
 0x30a   : > { %6742 = vmatprep.subr.bf16.mxu1 %v16348_v54  ;;  %v11715_v60 = vrot.slane %v13846_v41, %v16352_v51  ;;  %v15742_v34 = vrot.slane %v13847_v42, %v16352_v51  ;;  %v11749_v6 = vrot.slane %v13850_v30, %v16352_v51  ;;  %v11756_v44 = vrot.slane %v13851_v36, %v16352_v51  ;;  %v3586_v40 = vld [vmem:[#allocation8 + $0xc48] sm:$0xff]  ;;  %v15780_v36 = vld [vmem:[#allocation8 + $0x290] sm:$0xff] }
 0x30b   : > { %6786 = vmatpush2.bf16.msra.mxu0 %v16350_v50  ;;  %v16353_v53 = vcombine.low %v15571_v56, %v15573_v12  ;;  %v11783_v29 = vrot.slane %v13854_v57, %v16352_v51  ;;  %v11790_v61 = vrot.slane %v13855_v7, %v16352_v51  ;;  %v13858_v8 = vpack.c.bf16 %v11611_v22, %v11604_v55  ;;  %v15753_v56 = vld [vmem:[#allocation8 + $0x390] sm:$0xff]  ;;  %v15757_v59 = vld [vmem:[#allocation8 + $0x1b88] sm:$0xff] }
 0x30c   : > { %6787 = vmatprep.subr.bf16.mxu0 %v16351_v18  ;;  %v13859_v16 = vpack.c.bf16 %v11625_v62, %v11618_v32  ;;  %v12999_v33 = vcombine.high %v3590_v14, %v3594_v2  ;;  %v13126_v11 = vcombine.low %v3718_v19, %v3722_v23  ;;  %v13119_v12 = vcombine.high %v3710_v20, %v3714_v4  ;;  %v15759_v28 = vld [vmem:[#allocation8 + $0x1bc8] sm:$0xff] }
 0x30d   : > { %6743 = vmatpush2.bf16.msra.mxu1 %v16353_v53  ;;  %v11817_v38 = vrot.slane %v13858_v8, %v16352_v51  ;;  %v11757_v48 = vcombine.low %v11749_v6, %v11756_v44  ;;  %v12998_v43 = vcombine.low %v3590_v14, %v3594_v2  ;;  %v13118_v31 = vcombine.low %v3710_v20, %v3714_v4  ;;  %v15768_v47 = vld [vmem:[#allocation8 + $0x1b08] sm:$0xff]  ;;  %v16354_v53 = vld [vmem:[#allocation37_spill] sm:$0xff]  ;;  %v16355_v8 = vld [vmem:[#allocation30_spill] sm:$0xff] }
 0x30e   : > { %6744 = vmatprep.subr.bf16.mxu1 %v13007_v25  ;;  %v11824_v49 = vrot.slane %v13859_v16, %v16352_v51  ;;  %v11723_v46 = vcombine.low %v11715_v60, %v15742_v34  ;;  %v11791_v5 = vcombine.low %v11783_v29, %v11790_v61  ;;  %v12990_v26 = vcombine.low %v3582_v3, %v3586_v40  ;;  %v15770_v24 = vld [vmem:[#allocation8 + $0x1b48] sm:$0xff] }
 0x30f   : > { %6788 = vmatpush2.bf16.msra.mxu0 %v13134_v39  ;;  %v12991_v10 = vcombine.high %v3582_v3, %v3586_v40  ;;  %v13863_v1 = vcombine.low %v11756_v44, %v11756_v44  ;;  %v12856_v45 = vcombine.low %v15753_v56, %v15755_v21  ;;  %v13861_v0 = vcombine.low %v15742_v34, %v15742_v34  ;;  %v15789_v62 = vld [vmem:[#allocation8 + $0x1a88] sm:$0xff]  ;;  %v16356_v40 = vld [vmem:[#allocation32_spill] sm:$0xff] }
 0x310   : > { %6789 = vmatprep.subr.bf16.mxu0 %v13127_v9  ;;  %v11825_v13 = vcombine.low %v11817_v38, %v11824_v49  ;;  %v13865_v52 = vcombine.low %v11790_v61, %v11790_v61  ;;  %v13867_v63 = vcombine.low %v11824_v49, %v11824_v49  ;;  %v12857_v41 = vcombine.high %v15753_v56, %v15755_v21  ;;  %v15791_v57 = vld [vmem:[#allocation8 + $0x1ac8] sm:$0xff]  ;;  %v3423_v38 = vld [vmem:[#allocation8 + $0x210] sm:$0xff] }
 0x311   : > { %6745 = vmatpush2.bf16.msra.mxu1 %v13006_v15  ;;  %v13238_v42 = vcombine.low %v15757_v59, %v15759_v28  ;;  %v13239_v30 = vcombine.high %v15757_v59, %v15759_v28  ;;  %v11878_v19 = vrot.slane %v11757_v48, %v16352_v51  ;;  %v12848_v23 = vcombine.low %v15762_v27, %v15764_v37  ;;  %v3427_v49 = vld [vmem:[#allocation8 + $0x250] sm:$0xff] }
 0x312   : > { %6746 = vmatprep.subr.bf16.mxu1 %v12999_v33  ;;  %v12849_v22 = vcombine.high %v15762_v27, %v15764_v37  ;;  %v11848_v7 = vrot.slane %v11723_v46, %v16352_v51  ;;  %v11908_v35 = vrot.slane %v11791_v5, %v16352_v51  ;;  %v13230_v54 = vcombine.low %v15768_v47, %v15770_v24 }
 0x313   : > { %6790 = vmatpush2.bf16.msra.mxu0 %v13126_v11  ;;  %v15798_v17 = vrot.slane %v13863_v1, %v16352_v51  ;;  %v15801_v39 = vrot.slane %v13865_v52, %v16352_v51  ;;  %v11938_v25 = vrot.slane %v11825_v13, %v16352_v51  ;;  %v13231_v55 = vcombine.high %v15768_v47, %v15770_v24  ;;  %v3806_v13 = vld [vmem:[#allocation8 + $0x1a08] sm:$0xff] }
 0x314   : > { %6791 = vmatprep.subr.bf16.mxu0 %v13119_v12  ;;  %v12840_v32 = vcombine.low %v15780_v36, %v15782_v58  ;;  %v15809_v50 = vrot.slane %v13861_v0, %v16352_v51  ;;  %v11945_v15 = vrot.slane %v13867_v63, %v16352_v51  ;;  %v12841_v9 = vcombine.high %v15780_v36, %v15782_v58  ;;  %v3810_v1 = vld [vmem:[#allocation8 + $0x1a48] sm:$0xff] }
 0x315   : > { %6747 = vmatpush2.bf16.msra.mxu1 %v12998_v43  ;;  %v13222_v14 = vcombine.low %v15789_v62, %v15791_v57  ;;  %v11958_v2 = vunpack.c.l.b16 %v11878_v19  ;;  %v11959_v18 = vunpack.c.h.b16 %v11878_v19  ;;  %v13223_v60 = vcombine.high %v15789_v62, %v15791_v57  ;;  %v16357_v43 = vld [vmem:[#allocation40_spill] sm:$0xff] }
 0x316   : > { %6748 = vmatprep.subr.bf16.mxu1 %v12991_v10  ;;  %v11950_v34 = vunpack.c.l.b16 %v11848_v7  ;;  %v11966_v6 = vunpack.c.l.b16 %v11908_v35  ;;  %v11967_v44 = vunpack.c.h.b16 %v11908_v35  ;;  %v11960_v20 = vunpack.c.l.b16 %v15798_v17 }
 0x317   : > { %6792 = vmatpush2.bf16.msra.mxu0 %v13118_v31  ;;  %v11968_v4 = vunpack.c.l.b16 %v15801_v39  ;;  %v11974_v29 = vunpack.c.l.b16 %v11938_v25  ;;  %v11975_v61 = vunpack.c.h.b16 %v11938_v25  ;;  %v11951_v16 = vunpack.c.h.b16 %v11848_v7  ;;  %v3798_v25 = vld [vmem:[#allocation8 + $0x1988] sm:$0xff] }
 0x318   : > { %6847 = vmatprep.subr.bf16.mxu0 %v12857_v41  ;;  %v11952_v33 = vunpack.c.l.b16 %v15809_v50  ;;  %v11961_v11 = vunpack.c.h.b16 %v15798_v17  ;;  %v11976_v3 = vunpack.c.l.b16 %v11945_v15  ;;  %v12005_v12 = vrot.slane %v11958_v2, 7 }
 0x319   : > { %6749 = vmatpush2.bf16.msra.mxu1 %v12990_v26  ;;  %v12007_v56 = vrot.slane %v11966_v6, 6  ;;  %v12009_v21 = vrot.slane %v11974_v29, 5  ;;  %v12011_v48 = vrot.slane %v11959_v18, 7  ;;  %v11969_v31 = vunpack.c.h.b16 %v15801_v39  ;;  %v3407_v18 = vld [vmem:[#allocation8 + $0x110] sm:$0xff] }
 0x31a   : > { %6794 = vmatmul.mubr.bf16.vlgmr.msra.gmra.mxu0 %v16354_v53  ;;  %6804 = vmatprep.subr.bf16.mxu1 %v13239_v30  ;;  %v11977_v59 = vunpack.c.h.b16 %v11945_v15  ;;  %v12013_v28 = vrot.slane %v11967_v44, 6  ;;  %v12015_v46 = vrot.slane %v11975_v61, 5  ;;  %v12006_v5 = vsel %vm11979_vm1, %v12005_v12, %v11950_v34  ;;  %v3419_v30 = vld [vmem:[#allocation8 + $0x1d0] sm:$0xff]  ;;  %v3790_v44 = vld [vmem:[#allocation8 + $0x1908] sm:$0xff] }
 0x31b   : > { %6848 = vmatpush1.bf16.msra.mxu0 %v12856_v45  ;;  %6879 = vmatprep.mubr.bf16.mxu0 %v16355_v8  ;;  %v12012_v26 = vsel %vm11979_vm1, %v12011_v48, %v11951_v16  ;;  %v12017_v10 = vrot.slane %v11960_v20, 7  ;;  %v12019_v27 = vrot.slane %v11968_v4, 6  ;;  %v12833_v37 = vcombine.high %v3423_v38, %v3427_v49  ;;  %v3794_v20 = vld [vmem:[#allocation8 + $0x1948] sm:$0xff]  ;;  %v3403_v29 = vld [vmem:[#allocation8 + $0xd0] sm:$0xff] }
 0x31c   : > { %6751 = vmatmul.mubr.bf16.vlgmr.msra.gmra.mxu1 %v16356_v40  ;;  %6849 = vmatprep.subr.bf16.mxu0 %v12849_v22  ;;  %v11953_v45 = vunpack.c.h.b16 %v15809_v50  ;;  %v12008_v47 = vsel %vm11982_vm2, %v12007_v56, %v12006_v5  ;;  %v12014_v24 = vsel %vm11982_vm2, %v12013_v28, %v12012_v26  ;;  %v12021_v41 = vrot.slane %v11976_v3, 5  ;;  %v3786_v3 = vld [vmem:[#allocation8 + $0x18c8] sm:$0xff]  ;;  %v3391_v12 = vld [vmem:[#allocation8 + $0x10] sm:$0xff] }
 0x31d   : > { %6805 = vmatpush1.bf16.msra.mxu1 %v13238_v42  ;;  %6836 = vmatprep.mubr.bf16.mxu1 %v16357_v43  ;;  %v12010_v0 = vsel %vm11985_vm3, %v12009_v21, %v12008_v47  ;;  %v12016_v52 = vsel %vm11985_vm3, %v12015_v46, %v12014_v24  ;;  %v12018_v63 = vsel %vm11979_vm1, %v12017_v10, %v11952_v33  ;;  %v3415_v42 = vld [vmem:[#allocation8 + $0x190] sm:$0xff]  ;;  %v12025_v22 = vrot.slane %v11969_v31, 6  ;;  %v3774_v48 = vld [vmem:[#allocation8 + $0x1808] sm:$0xff] }
 0x31e   : > { %6806 = vmatprep.subr.bf16.mxu1 %v13231_v55  ;;  %v12020_v19 = vsel %vm11982_vm2, %v12019_v27, %v12018_v63  ;;  %v12027_v7 = vrot.slane %v11977_v59, 5  ;;  %v13215_v35 = vcombine.high %v3806_v13, %v3810_v1  ;;  %v12031_v17 = vpack.c.b16 %v12016_v52, %v12010_v0  ;;  %v3802_v55 = vld [vmem:[#allocation8 + $0x19c8] sm:$0xff]  ;;  %v3395_v56 = vld [vmem:[#allocation8 + $0x50] sm:$0xff] }
 0x31f   : > { %6850 = vmatpush1.bf16.msra.mxu0 %v12848_v23  ;;  %v12023_v23 = vrot.slane %v11961_v11, 7  ;;  %v12832_v39 = vcombine.low %v3423_v38, %v3427_v49  ;;  %v12022_v50 = vsel %vm11985_vm3, %v12021_v41, %v12020_v19  ;;  %v12825_v15 = vcombine.high %v3415_v42, %v3419_v30  ;;  %v3782_v11 = vld [vmem:[#allocation8 + $0x1888] sm:$0xff]  ;;  %v3511_v46 = vld [vmem:[#allocation8 + $0x790] sm:$0xff] }
 0x320   : > { %6851 = vmatprep.subr.bf16.mxu0 %v12841_v9  ;;  %v13214_v2 = vcombine.low %v3806_v13, %v3810_v1  ;;  %v13207_v58 = vcombine.high %v3798_v25, %v3802_v55  ;;  %v12054_v34 = vrot.slane %v12031_v17, %v16352_v51  ;;  %v12824_v6 = vcombine.low %v3415_v42, %v3419_v30  ;;  %v3778_v31 = vld [vmem:[#allocation8 + $0x1848] sm:$0xff]  ;;  %v3515_v5 = vld [vmem:[#allocation8 + $0x7d0] sm:$0xff] }
 0x321   : > { %6807 = vmatpush1.bf16.msra.mxu1 %v13230_v54  ;;  %v12024_v54 = vsel %vm11979_vm1, %v12023_v23, %v11953_v45  ;;  %v13206_v57 = vcombine.low %v3798_v25, %v3802_v55  ;;  %v13199_v61 = vcombine.high %v3790_v44, %v3794_v20  ;;  %v13198_v49 = vcombine.low %v3790_v44, %v3794_v20  ;;  %v3894_v27 = vld [vmem:[#allocation8 + $0x1f88] sm:$0xff]  ;;  %v3503_v45 = vld [vmem:[#allocation8 + $0x710] sm:$0xff] }
 0x322   : > { %6808 = vmatprep.subr.bf16.mxu1 %v13223_v60  ;;  %v12026_v9 = vsel %vm11982_vm2, %v12025_v22, %v12024_v54  ;;  %v3411_v60 = vld [vmem:[#allocation8 + $0x150] sm:$0xff]  ;;  %v12801_v59 = vcombine.high %v3391_v12, %v3395_v56  ;;  %v13190_v28 = vcombine.low %v3782_v11, %v3786_v3  ;;  %v13183_v26 = vcombine.high %v3774_v48, %v3778_v31  ;;  %v3886_v52 = vld [vmem:[#allocation8 + $0x1f08] sm:$0xff] }
 0x323   : > { %6852 = vmatpush1.bf16.msra.mxu0 %v12840_v32  ;;  %v12028_v36 = vsel %vm11985_vm3, %v12027_v7, %v12026_v9  ;;  %v12817_v4 = vcombine.high %v3407_v18, %v3411_v60  ;;  %v12816_v33 = vcombine.low %v3407_v18, %v3411_v60  ;;  %v12800_v10 = vcombine.low %v3391_v12, %v3395_v56  ;;  %v3507_v47 = vld [vmem:[#allocation8 + $0x750] sm:$0xff]  ;;  %v3890_v63 = vld [vmem:[#allocation8 + $0x1f48] sm:$0xff] }
 0x324   : > { %6853 = vmatprep.subr.bf16.mxu0 %v12833_v37  ;;  %v12032_v32 = vpack.c.b16 %v12028_v36, %v12022_v50  ;;  %v3898_v37 = vld [vmem:[#allocation8 + $0x1fc8] sm:$0xff]  ;;  %v12921_v13 = vcombine.high %v3511_v46, %v3515_v5  ;;  %v13182_v1 = vcombine.low %v3774_v48, %v3778_v31  ;;  %v12920_v0 = vcombine.low %v3511_v46, %v3515_v5  ;;  %v3495_v30 = vld [vmem:[#allocation8 + $0x690] sm:$0xff] }
 0x325   : > { %6809 = vmatpush1.bf16.msra.mxu1 %v13222_v14  ;;  %v3399_v14 = vld [vmem:[#allocation8 + $0x90] sm:$0xff]  ;;  %v13303_v24 = vcombine.high %v3894_v27, %v3898_v37  ;;  %v12913_v41 = vcombine.high %v3503_v45, %v3507_v47  ;;  %v13302_v42 = vcombine.low %v3894_v27, %v3898_v37  ;;  %v13295_v23 = vcombine.high %v3886_v52, %v3890_v63  ;;  %v3878_v7 = vld [vmem:[#allocation8 + $0x1e88] sm:$0xff] }
 0x326   : > { %6810 = vmatprep.subr.bf16.mxu1 %v13215_v35  ;;  %v12061_v62 = vrot.slane %v12032_v32, %v16352_v51  ;;  %v12809_v38 = vcombine.high %v3399_v14, %v3403_v29  ;;  %v13191_v51 = vcombine.high %v3782_v11, %v3786_v3  ;;  %v12808_v21 = vcombine.low %v3399_v14, %v3403_v29  ;;  %v3499_v19 = vld [vmem:[#allocation8 + $0x6d0] sm:$0xff]  ;;  %v3882_v35 = vld [vmem:[#allocation8 + $0x1ec8] sm:$0xff] }
 0x327   : > { %6854 = vmatpush1.bf16.msra.mxu0 %v12832_v39  ;;  %v12912_v22 = vcombine.low %v3503_v45, %v3507_v47  ;;  %v12905_v17 = vcombine.high %v3495_v30, %v3499_v19  ;;  %v13294_v39 = vcombine.low %v3886_v52, %v3890_v63  ;;  %v3487_v25 = vld [vmem:[#allocation8 + $0x610] sm:$0xff]  ;;  %v13287_v50 = vcombine.high %v3878_v7, %v3882_v35  ;;  %v3874_v9 = vld [vmem:[#allocation8 + $0x1e48] sm:$0xff] }
 0x328   : > { %6855 = vmatprep.subr.bf16.mxu0 %v12825_v15  ;;  %v12062_v16 = vcombine.low %v12054_v34, %v12061_v62  ;;  %v3491_v55 = vld [vmem:[#allocation8 + $0x650] sm:$0xff]  ;;  %v12904_v54 = vcombine.low %v3495_v30, %v3499_v19  ;;  %v3870_v15 = vld [vmem:[#allocation8 + $0x1e08] sm:$0xff]  ;;  %v13286_v18 = vcombine.low %v3878_v7, %v3882_v35 }
 0x329   : > { %6811 = vmatpush1.bf16.msra.mxu1 %v13214_v2  ;;  %v12897_v2 = vcombine.high %v3487_v25, %v3491_v55  ;;  %v3479_v60 = vld [vmem:[#allocation8 + $0x590] sm:$0xff]  ;;  %v12896_v32 = vcombine.low %v3487_v25, %v3491_v55  ;;  %v3862_v34 = vld [vmem:[#allocation8 + $0x1d88] sm:$0xff]  ;;  %v13278_v20 = vcombine.low %v3870_v15, %v3874_v9 }
 0x32a   : > { %6812 = vmatprep.subr.bf16.mxu1 %v13207_v58  ;;  %12066 = vst [vmem:[%s15294_s15 + $0x8] sm:$0xff] %v12062_v16  ;;  %v3483_v36 = vld [vmem:[#allocation8 + $0x5d0] sm:$0xff]  ;;  %v13279_v58 = vcombine.high %v3870_v15, %v3874_v9  ;;  %v3854_v29 = vld [vmem:[#allocation8 + $0x1d08] sm:$0xff]  ;;  %v16360_v15 = vld [vmem:[#allocation41_spill] sm:$0xff] }
 0x32b   : > { %6856 = vmatpush1.bf16.msra.mxu0 %v12824_v6  ;;  %v3866_v6 = vld [vmem:[#allocation8 + $0x1dc8] sm:$0xff]  ;;  %v12889_v44 = vcombine.high %v3479_v60, %v3483_v36  ;;  %v3475_v62 = vld [vmem:[#allocation8 + $0x550] sm:$0xff]  ;;  %v12888_v14 = vcombine.low %v3479_v60, %v3483_v36 }
 0x32c   : > { %6857 = vmatprep.subr.bf16.mxu0 %v12817_v4  ;;  %v3471_v4 = vld [vmem:[#allocation8 + $0x510] sm:$0xff]  ;;  %v3846_v12 = vld [vmem:[#allocation8 + $0x1c88] sm:$0xff] }
 0x32d   : > { %6813 = vmatpush1.bf16.msra.mxu1 %v13206_v57  ;;  %v13271_v57 = vcombine.high %v3862_v34, %v3866_v6  ;;  %v12881_v16 = vcombine.high %v3471_v4, %v3475_v62  ;;  %v3463_v11 = vld [vmem:[#allocation8 + $0x490] sm:$0xff]  ;;  %v3850_v56 = vld [vmem:[#allocation8 + $0x1cc8] sm:$0xff] }
 0x32e   : > { %6814 = vmatprep.subr.bf16.mxu1 %v13199_v61  ;;  %v3858_v61 = vld [vmem:[#allocation8 + $0x1d48] sm:$0xff]  ;;  %v3467_v3 = vld [vmem:[#allocation8 + $0x4d0] sm:$0xff] }
 0x32f   : > { %6858 = vmatpush1.bf16.msra.mxu0 %v12816_v33  ;;  %v13270_v33 = vcombine.low %v3862_v34, %v3866_v6  ;;  %v3455_v48 = vld [vmem:[#allocation8 + $0x410] sm:$0xff]  ;;  %v3838_v46 = vld [vmem:[#allocation8 + $0x1c08] sm:$0xff] }
 0x330   : > { %6859 = vmatprep.subr.bf16.mxu0 %v12809_v38  ;;  %v13263_v38 = vcombine.high %v3854_v29, %v3858_v61  ;;  %v3459_v31 = vld [vmem:[#allocation8 + $0x450] sm:$0xff]  ;;  %v3842_v5 = vld [vmem:[#allocation8 + $0x1c48] sm:$0xff] }
 0x331   : > { %6815 = vmatpush1.bf16.msra.mxu1 %v13198_v49  ;;  %v12880_v49 = vcombine.low %v3471_v4, %v3475_v62  ;;  %v3703_v27 = vld [vmem:[#allocation8 + $0x1390] sm:$0xff] }
 0x332   : > { %6816 = vmatprep.subr.bf16.mxu1 %v13191_v51  ;;  %v12873_v51 = vcombine.high %v3463_v11, %v3467_v3  ;;  %v3707_v37 = vld [vmem:[#allocation8 + $0x13d0] sm:$0xff] }
 0x333   : > { %6860 = vmatpush1.bf16.msra.mxu0 %v12808_v21  ;;  %v13262_v21 = vcombine.low %v3854_v29, %v3858_v61  ;;  %v3575_v45 = vld [vmem:[#allocation8 + $0xb90] sm:$0xff] }
 0x334   : > { %6861 = vmatprep.subr.bf16.mxu0 %v12801_v59  ;;  %v13255_v59 = vcombine.high %v3846_v12, %v3850_v56  ;;  %v3579_v47 = vld [vmem:[#allocation8 + $0xbd0] sm:$0xff] }
 0x335   : > { %6817 = vmatpush1.bf16.msra.mxu1 %v13190_v28  ;;  %v12872_v28 = vcombine.low %v3463_v11, %v3467_v3  ;;  %v3695_v52 = vld [vmem:[#allocation8 + $0x1310] sm:$0xff] }
 0x336   : > { %6818 = vmatprep.subr.bf16.mxu1 %v13183_v26  ;;  %v12865_v26 = vcombine.high %v3455_v48, %v3459_v31  ;;  %v3699_v63 = vld [vmem:[#allocation8 + $0x1350] sm:$0xff] }
 0x337   : > { %6862 = vmatpush1.bf16.msra.mxu0 %v12800_v10  ;;  %v13254_v10 = vcombine.low %v3846_v12, %v3850_v56  ;;  %v3567_v30 = vld [vmem:[#allocation8 + $0xb10] sm:$0xff]  ;;  %v13104_v55 = vcombine.low %v3695_v52, %v3699_v63 }
 0x338   : > { %6863 = vmatprep.subr.bf16.mxu0 %v12921_v13  ;;  %v13247_v13 = vcombine.high %v3838_v46, %v3842_v5  ;;  %v3571_v19 = vld [vmem:[#allocation8 + $0xb50] sm:$0xff] }
 0x339   : > { %6819 = vmatpush1.bf16.msra.mxu1 %v13182_v1  ;;  %v12864_v1 = vcombine.low %v3455_v48, %v3459_v31  ;;  %v3687_v7 = vld [vmem:[#allocation8 + $0x1290] sm:$0xff] }
 0x33a   : > { %6820 = vmatprep.subr.bf16.mxu1 %v13303_v24  ;;  %v13113_v24 = vcombine.high %v3703_v27, %v3707_v37  ;;  %v3691_v35 = vld [vmem:[#allocation8 + $0x12d0] sm:$0xff] }
 0x33b   : > { %6864 = vmatpush2.bf16.msra.mxu0 %v12920_v0  ;;  %v13246_v0 = vcombine.low %v3838_v46, %v3842_v5  ;;  %v16359_v25 = vld [vmem:[#allocation36_spill] sm:$0xff]  ;;  %v13097_v9 = vcombine.high %v3687_v7, %v3691_v35 }
 0x33c   : > { %6865 = vmatprep.subr.bf16.mxu0 %v12913_v41  ;;  %v12985_v41 = vcombine.high %v3575_v45, %v3579_v47  ;;  %v3679_v60 = vld [vmem:[#allocation8 + $0x1210] sm:$0xff] }
 0x33d   : > { %6821 = vmatpush2.bf16.msra.mxu1 %v13302_v42  ;;  %v13112_v42 = vcombine.low %v3703_v27, %v3707_v37  ;;  %v3683_v36 = vld [vmem:[#allocation8 + $0x1250] sm:$0xff] }
 0x33e   : > { %6822 = vmatprep.subr.bf16.mxu1 %v13295_v23  ;;  %v13105_v23 = vcombine.high %v3695_v52, %v3699_v63  ;;  %v3551_v34 = vld [vmem:[#allocation8 + $0xa10] sm:$0xff] }
 0x33f   : > { %6866 = vmatpush2.bf16.msra.mxu0 %v12912_v22  ;;  %v12984_v22 = vcombine.low %v3575_v45, %v3579_v47  ;;  %v3555_v6 = vld [vmem:[#allocation8 + $0xa50] sm:$0xff] }
 0x340   : > { %6867 = vmatprep.subr.bf16.mxu0 %v12905_v17  ;;  %v16358_v17 = vld [vmem:[#allocation27_spill] sm:$0xff]  ;;  %v3671_v4 = vld [vmem:[#allocation8 + $0x1190] sm:$0xff] }
 0x341   : > { %6823 = vmatpush2.bf16.msra.mxu1 %v13294_v39  ;;  %v12977_v39 = vcombine.high %v3567_v30, %v3571_v19  ;;  %v3675_v62 = vld [vmem:[#allocation8 + $0x11d0] sm:$0xff] }
 0x342   : > { %6824 = vmatprep.subr.bf16.mxu1 %v13287_v50  ;;  %v3559_v50 = vld [vmem:[#allocation8 + $0xa90] sm:$0xff] }
 0x343   : > { %6868 = vmatpush2.bf16.msra.mxu0 %v12904_v54  ;;  %v3563_v54 = vld [vmem:[#allocation8 + $0xad0] sm:$0xff] }
 0x344   : > { %6869 = vmatprep.subr.bf16.mxu0 %v12897_v2  ;;  %v16361_v2 = vld [vmem:[#allocation33_spill] sm:$0xff]  ;;  %v3543_v29 = vld [vmem:[#allocation8 + $0x990] sm:$0xff] }
 0x345   : > { %6825 = vmatpush2.bf16.msra.mxu1 %v13286_v18  ;;  %v12976_v18 = vcombine.low %v3567_v30, %v3571_v19  ;;  %v3547_v61 = vld [vmem:[#allocation8 + $0x9d0] sm:$0xff] }
 0x346   : > { %6826 = vmatprep.subr.bf16.mxu1 %v13279_v58  ;;  %v12969_v58 = vcombine.high %v3559_v50, %v3563_v54  ;;  %v3663_v11 = vld [vmem:[#allocation8 + $0x1110] sm:$0xff] }
 0x347   : > { %6870 = vmatpush2.bf16.msra.mxu0 %v12896_v32  ;;  %v13096_v32 = vcombine.low %v3687_v7, %v3691_v35  ;;  %v3667_v3 = vld [vmem:[#allocation8 + $0x1150] sm:$0xff] }
 0x348   : > { %6871 = vmatprep.subr.bf16.mxu0 %v12889_v44  ;;  %v13089_v44 = vcombine.high %v3679_v60, %v3683_v36  ;;  %v3535_v12 = vld [vmem:[#allocation8 + $0x910] sm:$0xff] }
 0x349   : > { %6827 = vmatpush2.bf16.msra.mxu1 %v13278_v20  ;;  %v12968_v20 = vcombine.low %v3559_v50, %v3563_v54  ;;  %v3539_v56 = vld [vmem:[#allocation8 + $0x950] sm:$0xff] }
 0x34a   : > { %6828 = vmatprep.subr.bf16.mxu1 %v13271_v57  ;;  %v12961_v57 = vcombine.high %v3551_v34, %v3555_v6  ;;  %v3655_v48 = vld [vmem:[#allocation8 + $0x1090] sm:$0xff] }
 0x34b   : > { %6872 = vmatpush2.bf16.msra.mxu0 %v12888_v14  ;;  %v13088_v14 = vcombine.low %v3679_v60, %v3683_v36  ;;  %v3659_v31 = vld [vmem:[#allocation8 + $0x10d0] sm:$0xff] }
 0x34c   : > { %6873 = vmatprep.subr.bf16.mxu0 %v12881_v16  ;;  %v13081_v16 = vcombine.high %v3671_v4, %v3675_v62  ;;  %v3527_v46 = vld [vmem:[#allocation8 + $0x890] sm:$0xff] }
 0x34d   : > { %6829 = vmatpush2.bf16.msra.mxu1 %v13270_v33  ;;  %v12960_v33 = vcombine.low %v3551_v34, %v3555_v6  ;;  %v3531_v5 = vld [vmem:[#allocation8 + $0x8d0] sm:$0xff] }
 0x34e   : > { %6830 = vmatprep.subr.bf16.mxu1 %v13263_v38  ;;  %v12953_v38 = vcombine.high %v3543_v29, %v3547_v61  ;;  %v3647_v27 = vld [vmem:[#allocation8 + $0x1010] sm:$0xff] }
 0x34f   : > { %6874 = vmatpush2.bf16.msra.mxu0 %v12880_v49  ;;  %v13080_v49 = vcombine.low %v3671_v4, %v3675_v62  ;;  %v3651_v37 = vld [vmem:[#allocation8 + $0x1050] sm:$0xff] }
 0x350   : > { %6875 = vmatprep.subr.bf16.mxu0 %v12873_v51  ;;  %v13073_v51 = vcombine.high %v3663_v11, %v3667_v3  ;;  %v3519_v45 = vld [vmem:[#allocation8 + $0x810] sm:$0xff] }
 0x351   : > { %6831 = vmatpush2.bf16.msra.mxu1 %v13262_v21  ;;  %v12952_v21 = vcombine.low %v3543_v29, %v3547_v61  ;;  %v3523_v47 = vld [vmem:[#allocation8 + $0x850] sm:$0xff] }
 0x352   : > { %6832 = vmatprep.subr.bf16.mxu1 %v13255_v59  ;;  %v12945_v59 = vcombine.high %v3535_v12, %v3539_v56  ;;  %v3767_v52 = vld [vmem:[#allocation8 + $0x1790] sm:$0xff] }
 0x353   : > { %6876 = vmatpush2.bf16.msra.mxu0 %v12872_v28  ;;  %v13072_v28 = vcombine.low %v3663_v11, %v3667_v3  ;;  %v3771_v63 = vld [vmem:[#allocation8 + $0x17d0] sm:$0xff] }
 0x354   : > { %6877 = vmatprep.subr.bf16.mxu0 %v12865_v26  ;;  %v13065_v26 = vcombine.high %v3655_v48, %v3659_v31  ;;  %v3639_v30 = vld [vmem:[#allocation8 + $0xf90] sm:$0xff] }
 0x355   : > { %6833 = vmatpush2.bf16.msra.mxu1 %v13254_v10  ;;  %v12944_v10 = vcombine.low %v3535_v12, %v3539_v56  ;;  %v3643_v19 = vld [vmem:[#allocation8 + $0xfd0] sm:$0xff] }
 0x356   : > { %6834 = vmatprep.subr.bf16.mxu1 %v13247_v13  ;;  %v12937_v13 = vcombine.high %v3527_v46, %v3531_v5  ;;  %v3759_v7 = vld [vmem:[#allocation8 + $0x1710] sm:$0xff] }
 0x357   : > { %6878 = vmatpush2.bf16.msra.mxu0 %v12864_v1  ;;  %v13064_v1 = vcombine.low %v3655_v48, %v3659_v31  ;;  %v3763_v35 = vld [vmem:[#allocation8 + $0x1750] sm:$0xff] }
 0x358   : > { %6933 = vmatprep.subr.bf16.mxu0 %v13113_v24  ;;  %v13057_v24 = vcombine.high %v3647_v27, %v3651_v37  ;;  %v3631_v50 = vld [vmem:[#allocation8 + $0xf10] sm:$0xff] }
 0x359   : > { %6835 = vmatpush2.bf16.msra.mxu1 %v13246_v0  ;;  %v12936_v0 = vcombine.low %v3527_v46, %v3531_v5  ;;  %v3635_v54 = vld [vmem:[#allocation8 + $0xf50] sm:$0xff] }
 0x35a   : > { %6880 = vmatmul.mubr.bf16.vlgmr.msra.gmra.mxu0 %v16358_v17  ;;  %6890 = vmatprep.subr.bf16.mxu1 %v12985_v41  ;;  %v12929_v41 = vcombine.high %v3519_v45, %v3523_v47  ;;  %v3751_v60 = vld [vmem:[#allocation8 + $0x1690] sm:$0xff] }
 0x35b   : > { %6934 = vmatpush1.bf16.msra.mxu0 %v13112_v42  ;;  %6965 = vmatprep.mubr.bf16.mxu0 %v16359_v25  ;;  %v13056_v42 = vcombine.low %v3647_v27, %v3651_v37  ;;  %v3755_v36 = vld [vmem:[#allocation8 + $0x16d0] sm:$0xff] }
 0x35c   : > { %6837 = vmatmul.mubr.bf16.vlgmr.msra.gmra.mxu1 %v16360_v15  ;;  %6935 = vmatprep.subr.bf16.mxu0 %v13105_v23  ;;  %v13177_v23 = vcombine.high %v3767_v52, %v3771_v63  ;;  %v3623_v34 = vld [vmem:[#allocation8 + $0xe90] sm:$0xff] }
 0x35d   : > { %6891 = vmatpush1.bf16.msra.mxu1 %v12984_v22  ;;  %6922 = vmatprep.mubr.bf16.mxu1 %v16361_v2  ;;  %v12928_v22 = vcombine.low %v3519_v45, %v3523_v47  ;;  %v3627_v6 = vld [vmem:[#allocation8 + $0xed0] sm:$0xff] }
 0x35e   : > { %6892 = vmatprep.subr.bf16.mxu1 %v12977_v39  ;;  %v13049_v39 = vcombine.high %v3639_v30, %v3643_v19  ;;  %v3743_v4 = vld [vmem:[#allocation8 + $0x1610] sm:$0xff] }
 0x35f   : > { %6936 = vmatpush1.bf16.msra.mxu0 %v13104_v55  ;;  %v13176_v55 = vcombine.low %v3767_v52, %v3771_v63  ;;  %v3747_v62 = vld [vmem:[#allocation8 + $0x1650] sm:$0xff] }
 0x360   : > { %6937 = vmatprep.subr.bf16.mxu0 %v13097_v9  ;;  %v13169_v9 = vcombine.high %v3759_v7, %v3763_v35  ;;  %v3615_v29 = vld [vmem:[#allocation8 + $0xe10] sm:$0xff] }
 0x361   : > { %6893 = vmatpush1.bf16.msra.mxu1 %v12976_v18  ;;  %v13048_v18 = vcombine.low %v3639_v30, %v3643_v19  ;;  %v3619_v61 = vld [vmem:[#allocation8 + $0xe50] sm:$0xff]  ;;  %v6580_v19 = vpop.f32.mrf.mxu1 }
 0x362   : > { %6894 = vmatprep.subr.bf16.mxu1 %v12969_v58  ;;  %v13041_v58 = vcombine.high %v3631_v50, %v3635_v54  ;;  %v3735_v11 = vld [vmem:[#allocation8 + $0x1590] sm:$0xff]  ;;  %v13024_v48 = vcombine.low %v3615_v29, %v3619_v61 }
 0x363   : > { %6938 = vmatpush1.bf16.msra.mxu0 %v13096_v32  ;;  %v13168_v32 = vcombine.low %v3759_v7, %v3763_v35  ;;  %v3739_v3 = vld [vmem:[#allocation8 + $0x15d0] sm:$0xff] }
 0x364   : > { %6939 = vmatprep.subr.bf16.mxu0 %v13089_v44  ;;  %v13161_v44 = vcombine.high %v3751_v60, %v3755_v36  ;;  %v3607_v12 = vld [vmem:[#allocation8 + $0xd90] sm:$0xff]  ;;  %v13144_v46 = vcombine.low %v3735_v11, %v3739_v3 }
 0x365   : > { %6895 = vmatpush1.bf16.msra.mxu1 %v12968_v20  ;;  %v13040_v20 = vcombine.low %v3631_v50, %v3635_v54  ;;  %v3611_v56 = vld [vmem:[#allocation8 + $0xdd0] sm:$0xff] }
 0x366   : > { %6896 = vmatprep.subr.bf16.mxu1 %v12961_v57  ;;  %v13033_v57 = vcombine.high %v3623_v34, %v3627_v6  ;;  %v3727_v31 = vld [vmem:[#allocation8 + $0x1510] sm:$0xff]  ;;  %v13016_v37 = vcombine.low %v3607_v12, %v3611_v56 }
 0x367   : > { %6940 = vmatpush1.bf16.msra.mxu0 %v13088_v14  ;;  %v13160_v14 = vcombine.low %v3751_v60, %v3755_v36  ;;  %v3599_v5 = vld [vmem:[#allocation8 + $0xd10] sm:$0xff]  ;;  %v16362_v60 = vld [vmem:[#allocation25_spill] sm:$0xff] }
 0x368   : > { %6941 = vmatprep.subr.bf16.mxu0 %v13081_v16  ;;  %v13153_v16 = vcombine.high %v3743_v4, %v3747_v62  ;;  %v3715_v30 = vld [vmem:[#allocation8 + $0x1450] sm:$0xff] }
 0x369   : > { %6897 = vmatpush1.bf16.msra.mxu1 %v12960_v33  ;;  %v13032_v33 = vcombine.low %v3623_v34, %v3627_v6  ;;  %v3583_v35 = vld [vmem:[#allocation8 + $0xc10] sm:$0xff]  ;;  %v16363_v6 = vld [vmem:[#allocation26_spill] sm:$0xff] }
 0x36a   : > { %6898 = vmatprep.subr.bf16.mxu1 %v12953_v38  ;;  %v13025_v38 = vcombine.high %v3615_v29, %v3619_v61  ;;  %v3440_v29 = vld [vmem:[#allocation8 + $0x318] sm:$0xff] }
 0x36b   : > { %6942 = vmatpush1.bf16.msra.mxu0 %v13080_v49  ;;  %v13152_v49 = vcombine.low %v3743_v4, %v3747_v62  ;;  %v3831_v4 = vld [vmem:[#allocation8 + $0x1b90] sm:$0xff]  ;;  %v3444_v61 = vld [vmem:[#allocation8 + $0x358] sm:$0xff] }
 0x36c   : > { %6943 = vmatprep.subr.bf16.mxu0 %v13073_v51  ;;  %v15853_v51 = vpop.f32.mrf.mxu0  ;;  %v3835_v62 = vld [vmem:[#allocation8 + $0x1bd0] sm:$0xff] }
 0x36d   : > { %6899 = vmatpush1.bf16.msra.mxu1 %v12952_v21  ;;  %v13145_v21 = vcombine.high %v3735_v11, %v3739_v3  ;;  %v13241_v3 = vcombine.high %v3831_v4, %v3835_v62 }
 0x36e   : > { %6900 = vmatprep.subr.bf16.mxu1 %v12945_v59  ;;  %v3731_v59 = vld [vmem:[#allocation8 + $0x1550] sm:$0xff] }
 0x36f   : > { %6944 = vmatpush1.bf16.msra.mxu0 %v13072_v28  ;;  %v13017_v28 = vcombine.high %v3607_v12, %v3611_v56  ;;  %v13137_v27 = vcombine.high %v3727_v31, %v3731_v59  ;;  %v13136_v47 = vcombine.low %v3727_v31, %v3731_v59  ;;  %v3823_v12 = vld [vmem:[#allocation8 + $0x1b10] sm:$0xff]  ;;  %v3432_v31 = vld [vmem:[#allocation8 + $0x298] sm:$0xff] }
 0x370   : > { %6945 = vmatprep.subr.bf16.mxu0 %v13065_v26  ;;  %v3603_v26 = vld [vmem:[#allocation8 + $0xd50] sm:$0xff]  ;;  %v3436_v59 = vld [vmem:[#allocation8 + $0x2d8] sm:$0xff] }
 0x371   : > { %6901 = vmatpush1.bf16.msra.mxu1 %v12944_v10  ;;  %v6539_v10 = vpop.f32.mrf.mxu0  ;;  %v13009_v45 = vcombine.high %v3599_v5, %v3603_v26  ;;  %v3827_v56 = vld [vmem:[#allocation8 + $0x1b50] sm:$0xff] }
 0x372   : > { %6902 = vmatprep.subr.bf16.mxu1 %v12937_v13  ;;  %v3719_v13 = vld [vmem:[#allocation8 + $0x1490] sm:$0xff] }
 0x373   : > { %6946 = vmatpush1.bf16.msra.mxu0 %v13064_v1  ;;  %v3723_v1 = vld [vmem:[#allocation8 + $0x14d0] sm:$0xff]  ;;  %v6541_v52 = vpop.f32.mrf.mxu0 }
 0x374   : > { %6947 = vmatprep.subr.bf16.mxu0 %v13057_v24  ;;  %v3591_v24 = vld [vmem:[#allocation8 + $0xc90] sm:$0xff]  ;;  %v13129_v63 = vcombine.high %v3719_v13, %v3723_v1  ;;  %v13128_v7 = vcombine.low %v3719_v13, %v3723_v1 }
 0x375   : > { %6903 = vmatpush1.bf16.msra.mxu1 %v12936_v0  ;;  %v3595_v0 = vld [vmem:[#allocation8 + $0xcd0] sm:$0xff] }
 0x376   : > { %6904 = vmatprep.subr.bf16.mxu1 %v12929_v41  ;;  %v13008_v41 = vcombine.low %v3599_v5, %v3603_v26  ;;  %v13000_v54 = vcombine.low %v3591_v24, %v3595_v0  ;;  %v3815_v13 = vld [vmem:[#allocation8 + $0x1a90] sm:$0xff] }
 0x377   : > { %6948 = vmatpush1.bf16.msra.mxu0 %v13056_v42  ;;  %v3711_v42 = vld [vmem:[#allocation8 + $0x1410] sm:$0xff] }
 0x378   : > { %6949 = vmatprep.subr.bf16.mxu0 %v13177_v23  ;;  %v13001_v23 = vcombine.high %v3591_v24, %v3595_v0  ;;  %v13121_v50 = vcombine.high %v3711_v42, %v3715_v30  ;;  %v3819_v1 = vld [vmem:[#allocation8 + $0x1ad0] sm:$0xff] }
 0x379   : > { %6905 = vmatpush1.bf16.msra.mxu1 %v12928_v22  ;;  %v15855_v22 = vld [vmem:[#allocation10] sm:$0xff] }
 0x37a   : > { %6906 = vmatprep.subr.bf16.mxu1 %v13049_v39  ;;  %v3587_v39 = vld [vmem:[#allocation8 + $0xc50] sm:$0xff]  ;;  %v3906_v36 = vrot.slane %v15855_v22, %v16362_v60 }
 0x37b   : > { %6950 = vmatpush2.bf16.msra.mxu0 %v13176_v55  ;;  %v6543_v55 = vpop.f32.mrf.mxu0  ;;  %v12993_v34 = vcombine.high %v3583_v35, %v3587_v39 }
 0x37c   : > { %6951 = vmatprep.subr.bf16.mxu0 %v13169_v9  ;;  %v3448_v9 = vld [vmem:[#allocation8 + $0x398] sm:$0xff] }
 0x37d   : > { %6907 = vmatpush2.bf16.msra.mxu1 %v13048_v18  ;;  %v3452_v18 = vld [vmem:[#allocation8 + $0x3d8] sm:$0xff] }
 0x37e   : > { %6908 = vmatprep.subr.bf16.mxu1 %v13041_v58  ;;  %v6582_v58 = vpop.f32.mrf.mxu1 }
 0x37f   : > { %6952 = vmatpush2.bf16.msra.mxu0 %v13168_v32  ;;  %v6623_v32 = vpop.f32.mrf.mxu0 }
 0x380   : > { %6953 = vmatprep.subr.bf16.mxu0 %v13161_v44  ;;  %v3910_v44 = vrot.slane %v15855_v22, %v16363_v6 }
 0x381   : > { %6909 = vmatpush2.bf16.msra.mxu1 %v13040_v20  ;;  %v13120_v20 = vcombine.low %v3711_v42, %v3715_v30  ;;  %v6625_v11 = vpop.f32.mrf.mxu0 }
 0x382   : > { %6910 = vmatprep.subr.bf16.mxu1 %v13033_v57  ;;  %v12859_v57 = vcombine.high %v3448_v9, %v3452_v18 }
 0x383   : > { %6954 = vmatpush2.bf16.msra.mxu0 %v13160_v14  ;;  %v12992_v14 = vcombine.low %v3583_v35, %v3587_v39  ;;  %v6627_v26 = vpop.f32.mrf.mxu0 }
 0x384   : > { %6955 = vmatprep.subr.bf16.mxu0 %v13153_v16  ;;  %v6538_v16 = vadd.f32 %v15853_v51, %v3906_v36  ;;  %v13233_v51 = vcombine.high %v3823_v12, %v3827_v56 }
 0x385   : > { %6911 = vmatpush2.bf16.msra.mxu1 %v13032_v33  ;;  %v6584_v33 = vpop.f32.mrf.mxu1  ;;  %v6629_v30 = vpop.f32.mrf.mxu0 }
 0x386   : > { %6912 = vmatprep.subr.bf16.mxu1 %v13025_v38  ;;  %v6540_v38 = vadd.f32 %v6539_v10, %v3910_v44  ;;  %v6544_v10 = vadd.f32 %v6543_v55, %v3910_v44  ;;  %v12842_v55 = vcombine.low %v3432_v31, %v3436_v59  ;;  %v3416_v44 = vld [vmem:[#allocation8 + $0x198] sm:$0xff] }
 0x387   : > { %6956 = vmatpush2.bf16.msra.mxu0 %v13152_v49  ;;  %v12858_v49 = vcombine.low %v3448_v9, %v3452_v18  ;;  %v6586_v5 = vpop.f32.mrf.mxu1 }
 0x388   : > { %6957 = vmatprep.subr.bf16.mxu0 %v13145_v21  ;;  %v12851_v21 = vcombine.high %v3440_v29, %v3444_v61 }
 0x389   : > { %6913 = vmatpush2.bf16.msra.mxu1 %v13024_v48  ;;  %v13240_v48 = vcombine.low %v3831_v4, %v3835_v62 }
 0x38a   : > { %6914 = vmatprep.subr.bf16.mxu1 %v13017_v28  ;;  %v6581_v28 = vadd.f32 %v6580_v19, %v6538_v16  ;;  %v3803_v16 = vld [vmem:[#allocation8 + $0x19d0] sm:$0xff] }
 0x38b   : > { %6958 = vmatpush2.bf16.msra.mxu0 %v13144_v46  ;;  %v6542_v46 = vadd.f32 %v6541_v52, %v3906_v36  ;;  %v13232_v52 = vcombine.low %v3823_v12, %v3827_v56 }
 0x38c   : > { %6959 = vmatprep.subr.bf16.mxu0 %v13137_v27  ;;  %v6583_v27 = vadd.f32 %v6582_v58, %v6540_v38  ;;  %v6624_v24 = vadd.f32 %v6623_v32, %v6581_v28  ;;  %v3408_v38 = vld [vmem:[#allocation8 + $0x118] sm:$0xff] }
 0x38d   : > { %6915 = vmatpush2.bf16.msra.mxu1 %v13016_v37  ;;  %v12850_v37 = vcombine.low %v3440_v29, %v3444_v61  ;;  %v6585_v42 = vadd.f32 %v6584_v33, %v6542_v46  ;;  %v3799_v61 = vld [vmem:[#allocation8 + $0x1990] sm:$0xff]  ;;  %v3400_v28 = vld [vmem:[#allocation8 + $0x98] sm:$0xff] }
 0x38e   : > { %6916 = vmatprep.subr.bf16.mxu1 %v13009_v45  ;;  %v6626_v0 = vadd.f32 %v6625_v11, %v6583_v27  ;;  %v13209_v12 = vcombine.high %v3799_v61, %v3803_v16  ;;  %v3404_v46 = vld [vmem:[#allocation8 + $0xd8] sm:$0xff]  ;;  %v3787_v27 = vld [vmem:[#allocation8 + $0x18d0] sm:$0xff] }
 0x38f   : > { %6960 = vmatpush2.bf16.msra.mxu0 %v13136_v47  ;;  %v6666_v45 = vpop.f32.mrf.mxu1  ;;  %v12843_v47 = vcombine.high %v3432_v31, %v3436_v59  ;;  %v6628_v36 = vadd.f32 %v6627_v26, %v6585_v42  ;;  %v13208_v59 = vcombine.low %v3799_v61, %v3803_v16  ;;  %v3516_v42 = vld [vmem:[#allocation8 + $0x7d8] sm:$0xff] }
 0x390   : > { %6961 = vmatprep.subr.bf16.mxu0 %v13129_v63  ;;  %v3424_v63 = vld [vmem:[#allocation8 + $0x218] sm:$0xff]  ;;  %v6667_v35 = vadd.f32 %v6666_v45, %v6624_v24  ;;  %v3775_v24 = vld [vmem:[#allocation8 + $0x1810] sm:$0xff] }
 0x391   : > { %6917 = vmatpush2.bf16.msra.mxu1 %v13008_v41  ;;  %v3428_v41 = vld [vmem:[#allocation8 + $0x258] sm:$0xff]  ;;  %v6668_v19 = vpop.f32.mrf.mxu1 }
 0x392   : > { %6918 = vmatprep.subr.bf16.mxu1 %v13001_v23  ;;  %v13225_v23 = vcombine.high %v3815_v13, %v3819_v1  ;;  %v6669_v39 = vadd.f32 %v6668_v19, %v6626_v0  ;;  %v12835_v18 = vcombine.high %v3424_v63, %v3428_v41  ;;  %v12834_v29 = vcombine.low %v3424_v63, %v3428_v41  ;;  %v3779_v0 = vld [vmem:[#allocation8 + $0x1850] sm:$0xff]  ;;  %v3512_v41 = vld [vmem:[#allocation8 + $0x798] sm:$0xff] }
 0x393   : > { %6962 = vmatpush2.bf16.msra.mxu0 %v13128_v7  ;;  %v6587_v7 = vadd.f32 %v6586_v5, %v6544_v10  ;;  %v6670_v9 = vpop.f32.mrf.mxu1  ;;  %v12811_v10 = vcombine.high %v3400_v28, %v3404_v46  ;;  %v3488_v61 = vld [vmem:[#allocation8 + $0x618] sm:$0xff] }
 0x394   : > { %6963 = vmatprep.subr.bf16.mxu0 %v13121_v50  ;;  %v3807_v50 = vld [vmem:[#allocation8 + $0x1a10] sm:$0xff]  ;;  %v13890_v32 = vpack.c.bf16 %v6669_v39, %v6667_v35  ;;  %v12923_v35 = vcombine.high %v3512_v41, %v3516_v42  ;;  %v13184_v39 = vcombine.low %v3775_v24, %v3779_v0  ;;  %v3492_v16 = vld [vmem:[#allocation8 + $0x658] sm:$0xff] }
 0x395   : > { %6919 = vmatpush2.bf16.msra.mxu1 %v13000_v54  ;;  %v3811_v54 = vld [vmem:[#allocation8 + $0x1a50] sm:$0xff]  ;;  %v6630_v58 = vadd.f32 %v6629_v30, %v6587_v7  ;;  %v6672_v4 = vpop.f32.mrf.mxu1  ;;  %v13185_v30 = vcombine.high %v3775_v24, %v3779_v0  ;;  %v3468_v24 = vld [vmem:[#allocation8 + $0x4d8] sm:$0xff] }
 0x396   : > { %6920 = vmatprep.subr.bf16.mxu1 %v12993_v34  ;;  %v13224_v34 = vcombine.low %v3815_v13, %v3819_v1  ;;  %v13217_v62 = vcombine.high %v3807_v50, %v3811_v54  ;;  %7239 = vst [vmem:[%s15867_s25] sm:$0xff] %v13890_v32  ;;  %v3392_v13 = vld [vmem:[#allocation8 + $0x18] sm:$0xff]  ;;  %v3899_v7 = vld [vmem:[#allocation8 + $0x1fd0] sm:$0xff] }
 0x397   : > { %6964 = vmatpush2.bf16.msra.mxu0 %v13120_v20  ;;  %v3420_v20 = vld [vmem:[#allocation8 + $0x1d8] sm:$0xff] }
 0x398   : > { %7019 = vmatprep.subr.bf16.mxu0 %v12859_v57  ;;  %v6671_v57 = vadd.f32 %v6670_v9, %v6628_v36  ;;  %v12827_v33 = vcombine.high %v3416_v44, %v3420_v20  ;;  %v12826_v56 = vcombine.low %v3416_v44, %v3420_v20  ;;  %v3396_v1 = vld [vmem:[#allocation8 + $0x58] sm:$0xff]  ;;  %v12922_v9 = vcombine.low %v3512_v41, %v3516_v42  ;;  %v3891_v36 = vld [vmem:[#allocation8 + $0x1f50] sm:$0xff] }
 0x399   : > { %6921 = vmatpush2.bf16.msra.mxu1 %v12992_v14  ;;  %v6673_v14 = vadd.f32 %v6672_v4, %v6630_v58  ;;  %v12802_v19 = vcombine.low %v3392_v13, %v3396_v1  ;;  %v3500_v44 = vld [vmem:[#allocation8 + $0x6d8] sm:$0xff]  ;;  %v3851_v41 = vld [vmem:[#allocation8 + $0x1cd0] sm:$0xff] }
 0x39a   : > { %6966 = vmatmul.mubr.bf16.vlgmr.msra.gmra.mxu0 %v16354_v53  ;;  %6976 = vmatprep.subr.bf16.mxu1 %v13241_v3  ;;  %v13216_v3 = vcombine.low %v3807_v50, %v3811_v54  ;;  %v3508_v50 = vld [vmem:[#allocation8 + $0x758] sm:$0xff] }
 0x39b   : > { %7020 = vmatpush1.bf16.msra.mxu0 %v12858_v49  ;;  %7051 = vmatprep.mubr.bf16.mxu0 %v16355_v8  ;;  %v13894_v11 = vpack.c.bf16 %v6673_v14, %v6671_v57  ;;  %v3412_v49 = vld [vmem:[#allocation8 + $0x158] sm:$0xff]  ;;  %v3883_v57 = vld [vmem:[#allocation8 + $0x1ed0] sm:$0xff] }
 0x39c   : > { %6923 = vmatmul.mubr.bf16.vlgmr.msra.gmra.mxu1 %v16356_v40  ;;  %7021 = vmatprep.subr.bf16.mxu0 %v12851_v21  ;;  %v3791_v21 = vld [vmem:[#allocation8 + $0x1910] sm:$0xff]  ;;  %v12819_v31 = vcombine.high %v3408_v38, %v3412_v49  ;;  %v12818_v26 = vcombine.low %v3408_v38, %v3412_v49  ;;  %v12899_v49 = vcombine.high %v3488_v61, %v3492_v16 }
 0x39d   : > { %6977 = vmatpush1.bf16.msra.mxu1 %v13240_v48  ;;  %7008 = vmatprep.mubr.bf16.mxu1 %v16357_v43  ;;  %7243 = vst [vmem:[%s15867_s25 + $0x20] sm:$0xff] %v13894_v11  ;;  %v3795_v48 = vld [vmem:[#allocation8 + $0x1950] sm:$0xff] }
 0x39e   : > { %6978 = vmatprep.subr.bf16.mxu1 %v13233_v51  ;;  %v13201_v5 = vcombine.high %v3791_v21, %v3795_v48  ;;  %v3783_v51 = vld [vmem:[#allocation8 + $0x1890] sm:$0xff] }
 0x39f   : > { %7022 = vmatpush1.bf16.msra.mxu0 %v12850_v37  ;;  %v13200_v37 = vcombine.low %v3791_v21, %v3795_v48  ;;  %v13193_v45 = vcombine.high %v3783_v51, %v3787_v27  ;;  %v13192_v63 = vcombine.low %v3783_v51, %v3787_v27  ;;  %v3875_v38 = vld [vmem:[#allocation8 + $0x1e50] sm:$0xff]  ;;  %v3484_v21 = vld [vmem:[#allocation8 + $0x5d8] sm:$0xff] }
 0x3a0   : > { %7023 = vmatprep.subr.bf16.mxu0 %v12843_v47  ;;  %v12810_v47 = vcombine.low %v3400_v28, %v3404_v46  ;;  %v3867_v28 = vld [vmem:[#allocation8 + $0x1dd0] sm:$0xff]  ;;  %v3476_v51 = vld [vmem:[#allocation8 + $0x558] sm:$0xff] }
 0x3a1   : > { %6979 = vmatpush1.bf16.msra.mxu1 %v13232_v52  ;;  %v12803_v52 = vcombine.high %v3392_v13, %v3396_v1  ;;  %v3859_v13 = vld [vmem:[#allocation8 + $0x1d50] sm:$0xff] }
 0x3a2   : > { %6980 = vmatprep.subr.bf16.mxu1 %v13225_v23  ;;  %v3895_v23 = vld [vmem:[#allocation8 + $0x1f90] sm:$0xff] }
 0x3a3   : > { %7024 = vmatpush1.bf16.msra.mxu0 %v12842_v55  ;;  %v3504_v55 = vld [vmem:[#allocation8 + $0x718] sm:$0xff]  ;;  %v13305_v54 = vcombine.high %v3895_v23, %v3899_v7  ;;  %v13304_v32 = vcombine.low %v3895_v23, %v3899_v7 }
 0x3a4   : > { %7025 = vmatprep.subr.bf16.mxu0 %v12835_v18  ;;  %v3887_v18 = vld [vmem:[#allocation8 + $0x1f10] sm:$0xff]  ;;  %v12915_v58 = vcombine.high %v3504_v55, %v3508_v50  ;;  %v12914_v4 = vcombine.low %v3504_v55, %v3508_v50  ;;  %v3460_v23 = vld [vmem:[#allocation8 + $0x458] sm:$0xff] }
 0x3a5   : > { %6981 = vmatpush1.bf16.msra.mxu1 %v13224_v34  ;;  %v3496_v34 = vld [vmem:[#allocation8 + $0x698] sm:$0xff]  ;;  %v13297_v20 = vcombine.high %v3887_v18, %v3891_v36  ;;  %v3843_v55 = vld [vmem:[#allocation8 + $0x1c50] sm:$0xff] }
 0x3a6   : > { %6982 = vmatprep.subr.bf16.mxu1 %v13217_v62  ;;  %v3879_v62 = vld [vmem:[#allocation8 + $0x1e90] sm:$0xff]  ;;  %v12907_v14 = vcombine.high %v3496_v34, %v3500_v44  ;;  %v12906_v11 = vcombine.low %v3496_v34, %v3500_v44  ;;  %v3580_v34 = vld [vmem:[#allocation8 + $0xbd8] sm:$0xff] }
 0x3a7   : > { %7026 = vmatpush1.bf16.msra.mxu0 %v12834_v29  ;;  %v13296_v29 = vcombine.low %v3887_v18, %v3891_v36  ;;  %v3708_v18 = vld [vmem:[#allocation8 + $0x13d8] sm:$0xff] }
 0x3a8   : > { %7027 = vmatprep.subr.bf16.mxu0 %v12827_v33  ;;  %v13289_v33 = vcombine.high %v3879_v62, %v3883_v57 }
 0x3a9   : > { %6983 = vmatpush1.bf16.msra.mxu1 %v13216_v3  ;;  %v3871_v3 = vld [vmem:[#allocation8 + $0x1e10] sm:$0xff] }
 0x3aa   : > { %6984 = vmatprep.subr.bf16.mxu1 %v13209_v12  ;;  %v13288_v12 = vcombine.low %v3879_v62, %v3883_v57  ;;  %v13281_v48 = vcombine.high %v3871_v3, %v3875_v38  ;;  %v3700_v62 = vld [vmem:[#allocation8 + $0x1358] sm:$0xff] }
 0x3ab   : > { %7028 = vmatpush1.bf16.msra.mxu0 %v12826_v56  ;;  %v3480_v56 = vld [vmem:[#allocation8 + $0x598] sm:$0xff] }
 0x3ac   : > { %7029 = vmatprep.subr.bf16.mxu0 %v12819_v31  ;;  %v12898_v31 = vcombine.low %v3488_v61, %v3492_v16  ;;  %v12891_v46 = vcombine.high %v3480_v56, %v3484_v21  ;;  %v3572_v61 = vld [vmem:[#allocation8 + $0xb58] sm:$0xff] }
 0x3ad   : > { %6985 = vmatpush1.bf16.msra.mxu1 %v13208_v59  ;;  %v3863_v59 = vld [vmem:[#allocation8 + $0x1d90] sm:$0xff] }
 0x3ae   : > { %6986 = vmatprep.subr.bf16.mxu1 %v13201_v5  ;;  %v13280_v5 = vcombine.low %v3871_v3, %v3875_v38  ;;  %v13273_v27 = vcombine.high %v3863_v59, %v3867_v28  ;;  %v3692_v3 = vld [vmem:[#allocation8 + $0x12d8] sm:$0xff] }
 0x3af   : > { %7030 = vmatpush1.bf16.msra.mxu0 %v12818_v26  ;;  %v3472_v26 = vld [vmem:[#allocation8 + $0x518] sm:$0xff] }
 0x3b0   : > { %7031 = vmatprep.subr.bf16.mxu0 %v12811_v10  ;;  %v12890_v10 = vcombine.low %v3480_v56, %v3484_v21  ;;  %v12883_v1 = vcombine.high %v3472_v26, %v3476_v51  ;;  %v3564_v56 = vld [vmem:[#allocation8 + $0xad8] sm:$0xff] }
 0x3b1   : > { %6987 = vmatpush1.bf16.msra.mxu1 %v13200_v37  ;;  %v3855_v37 = vld [vmem:[#allocation8 + $0x1d10] sm:$0xff] }
 0x3b2   : > { %6988 = vmatprep.subr.bf16.mxu1 %v13193_v45  ;;  %v13272_v45 = vcombine.low %v3863_v59, %v3867_v28  ;;  %v13265_v0 = vcombine.high %v3855_v37, %v3859_v13  ;;  %v3684_v59 = vld [vmem:[#allocation8 + $0x1258] sm:$0xff] }
 0x3b3   : > { %7032 = vmatpush1.bf16.msra.mxu0 %v12810_v47  ;;  %v3464_v47 = vld [vmem:[#allocation8 + $0x498] sm:$0xff] }
 0x3b4   : > { %7033 = vmatprep.subr.bf16.mxu0 %v12803_v52  ;;  %v12882_v52 = vcombine.low %v3472_v26, %v3476_v51  ;;  %v12875_v42 = vcombine.high %v3464_v47, %v3468_v24  ;;  %v3556_v26 = vld [vmem:[#allocation8 + $0xa58] sm:$0xff] }
 0x3b5   : > { %6989 = vmatpush1.bf16.msra.mxu1 %v13192_v63  ;;  %v3847_v63 = vld [vmem:[#allocation8 + $0x1c90] sm:$0xff] }
 0x3b6   : > { %6990 = vmatprep.subr.bf16.mxu1 %v13185_v30  ;;  %v13264_v30 = vcombine.low %v3855_v37, %v3859_v13  ;;  %v13257_v7 = vcombine.high %v3847_v63, %v3851_v41  ;;  %v3676_v37 = vld [vmem:[#allocation8 + $0x11d8] sm:$0xff] }
 0x3b7   : > { %7034 = vmatpush1.bf16.msra.mxu0 %v12802_v19  ;;  %v3456_v19 = vld [vmem:[#allocation8 + $0x418] sm:$0xff] }
 0x3b8   : > { %7035 = vmatprep.subr.bf16.mxu0 %v12923_v35  ;;  %v12874_v35 = vcombine.low %v3464_v47, %v3468_v24  ;;  %v12867_v50 = vcombine.high %v3456_v19, %v3460_v23  ;;  %v3548_v47 = vld [vmem:[#allocation8 + $0x9d8] sm:$0xff] }
 0x3b9   : > { %6991 = vmatpush1.bf16.msra.mxu1 %v13184_v39  ;;  %v3839_v39 = vld [vmem:[#allocation8 + $0x1c10] sm:$0xff] }
 0x3ba   : > { %6992 = vmatprep.subr.bf16.mxu1 %v13305_v54  ;;  %v13256_v54 = vcombine.low %v3847_v63, %v3851_v41  ;;  %v13249_v36 = vcombine.high %v3839_v39, %v3843_v55  ;;  %v3668_v63 = vld [vmem:[#allocation8 + $0x1158] sm:$0xff] }
 0x3bb   : > { %7036 = vmatpush2.bf16.msra.mxu0 %v12922_v9  ;;  %v3704_v9 = vld [vmem:[#allocation8 + $0x1398] sm:$0xff] }
 0x3bc   : > { %7037 = vmatprep.subr.bf16.mxu0 %v12915_v58  ;;  %v12866_v58 = vcombine.low %v3456_v19, %v3460_v23  ;;  %v13115_v44 = vcombine.high %v3704_v9, %v3708_v18  ;;  %v3540_v19 = vld [vmem:[#allocation8 + $0x958] sm:$0xff] }
 0x3bd   : > { %6993 = vmatpush2.bf16.msra.mxu1 %v13304_v32  ;;  %v3576_v32 = vld [vmem:[#allocation8 + $0xb98] sm:$0xff] }
 0x3be   : > { %6994 = vmatprep.subr.bf16.mxu1 %v13297_v20  ;;  %v13248_v20 = vcombine.low %v3839_v39, %v3843_v55  ;;  %v12987_v57 = vcombine.high %v3576_v32, %v3580_v34  ;;  %v3660_v39 = vld [vmem:[#allocation8 + $0x10d8] sm:$0xff] }
 0x3bf   : > { %7038 = vmatpush2.bf16.msra.mxu0 %v12914_v4  ;;  %v3696_v4 = vld [vmem:[#allocation8 + $0x1318] sm:$0xff] }
 0x3c0   : > { %7039 = vmatprep.subr.bf16.mxu0 %v12907_v14  ;;  %v13114_v14 = vcombine.low %v3704_v9, %v3708_v18  ;;  %v13107_v16 = vcombine.high %v3696_v4, %v3700_v62  ;;  %v3532_v9 = vld [vmem:[#allocation8 + $0x8d8] sm:$0xff] }
 0x3c1   : > { %6995 = vmatpush2.bf16.msra.mxu1 %v13296_v29  ;;  %v3568_v29 = vld [vmem:[#allocation8 + $0xb18] sm:$0xff] }
 0x3c2   : > { %6996 = vmatprep.subr.bf16.mxu1 %v13289_v33  ;;  %v12986_v33 = vcombine.low %v3576_v32, %v3580_v34  ;;  %v12979_v38 = vcombine.high %v3568_v29, %v3572_v61  ;;  %v3652_v32 = vld [vmem:[#allocation8 + $0x1058] sm:$0xff] }
 0x3c3   : > { %7040 = vmatpush2.bf16.msra.mxu0 %v12906_v11  ;;  %v3688_v11 = vld [vmem:[#allocation8 + $0x1298] sm:$0xff] }
 0x3c4   : > { %7041 = vmatprep.subr.bf16.mxu0 %v12899_v49  ;;  %v13106_v49 = vcombine.low %v3696_v4, %v3700_v62  ;;  %v13099_v21 = vcombine.high %v3688_v11, %v3692_v3  ;;  %v3524_v4 = vld [vmem:[#allocation8 + $0x858] sm:$0xff] }
 0x3c5   : > { %6997 = vmatpush2.bf16.msra.mxu1 %v13288_v12  ;;  %v3560_v12 = vld [vmem:[#allocation8 + $0xa98] sm:$0xff] }
 0x3c6   : > { %6998 = vmatprep.subr.bf16.mxu1 %v13281_v48  ;;  %v12978_v48 = vcombine.low %v3568_v29, %v3572_v61  ;;  %v12971_v28 = vcombine.high %v3560_v12, %v3564_v56  ;;  %v3772_v29 = vld [vmem:[#allocation8 + $0x17d8] sm:$0xff] }
 0x3c7   : > { %7042 = vmatpush2.bf16.msra.mxu0 %v12898_v31  ;;  %v3680_v31 = vld [vmem:[#allocation8 + $0x1218] sm:$0xff] }
 0x3c8   : > { %7043 = vmatprep.subr.bf16.mxu0 %v12891_v46  ;;  %v13098_v46 = vcombine.low %v3688_v11, %v3692_v3  ;;  %v13091_v51 = vcombine.high %v3680_v31, %v3684_v59  ;;  %v3644_v11 = vld [vmem:[#allocation8 + $0xfd8] sm:$0xff] }
 0x3c9   : > { %6999 = vmatpush2.bf16.msra.mxu1 %v13280_v5  ;;  %v3552_v5 = vld [vmem:[#allocation8 + $0xa18] sm:$0xff] }
 0x3ca   : > { %7000 = vmatprep.subr.bf16.mxu1 %v13273_v27  ;;  %v12970_v27 = vcombine.low %v3560_v12, %v3564_v56  ;;  %v12963_v13 = vcombine.high %v3552_v5, %v3556_v26  ;;  %v3764_v12 = vld [vmem:[#allocation8 + $0x1758] sm:$0xff] }
 0x3cb   : > { %7044 = vmatpush2.bf16.msra.mxu0 %v12890_v10  ;;  %v3672_v10 = vld [vmem:[#allocation8 + $0x1198] sm:$0xff] }
 0x3cc   : > { %7045 = vmatprep.subr.bf16.mxu0 %v12883_v1  ;;  %v13090_v1 = vcombine.low %v3680_v31, %v3684_v59  ;;  %v13083_v24 = vcombine.high %v3672_v10, %v3676_v37  ;;  %v3636_v31 = vld [vmem:[#allocation8 + $0xf58] sm:$0xff] }
 0x3cd   : > { %7001 = vmatpush2.bf16.msra.mxu1 %v13272_v45  ;;  %v3544_v45 = vld [vmem:[#allocation8 + $0x998] sm:$0xff] }
 0x3ce   : > { %7002 = vmatprep.subr.bf16.mxu1 %v13265_v0  ;;  %v12962_v0 = vcombine.low %v3552_v5, %v3556_v26  ;;  %v12955_v41 = vcombine.high %v3544_v45, %v3548_v47  ;;  %v3756_v5 = vld [vmem:[#allocation8 + $0x16d8] sm:$0xff] }
 0x3cf   : > { %7046 = vmatpush2.bf16.msra.mxu0 %v12882_v52  ;;  %v3664_v52 = vld [vmem:[#allocation8 + $0x1118] sm:$0xff] }
 0x3d0   : > { %7047 = vmatprep.subr.bf16.mxu0 %v12875_v42  ;;  %v13082_v42 = vcombine.low %v3672_v10, %v3676_v37  ;;  %v13075_v23 = vcombine.high %v3664_v52, %v3668_v63  ;;  %v3628_v10 = vld [vmem:[#allocation8 + $0xed8] sm:$0xff] }
 0x3d1   : > { %7003 = vmatpush2.bf16.msra.mxu1 %v13264_v30  ;;  %v3536_v30 = vld [vmem:[#allocation8 + $0x918] sm:$0xff] }
 0x3d2   : > { %7004 = vmatprep.subr.bf16.mxu1 %v13257_v7  ;;  %v12954_v7 = vcombine.low %v3544_v45, %v3548_v47  ;;  %v12947_v55 = vcombine.high %v3536_v30, %v3540_v19  ;;  %v3748_v45 = vld [vmem:[#allocation8 + $0x1658] sm:$0xff] }
 0x3d3   : > { %7048 = vmatpush2.bf16.msra.mxu0 %v12874_v35  ;;  %v3656_v35 = vld [vmem:[#allocation8 + $0x1098] sm:$0xff] }
 0x3d4   : > { %7049 = vmatprep.subr.bf16.mxu0 %v12867_v50  ;;  %v13074_v50 = vcombine.low %v3664_v52, %v3668_v63  ;;  %v13067_v18 = vcombine.high %v3656_v35, %v3660_v39  ;;  %v3620_v52 = vld [vmem:[#allocation8 + $0xe58] sm:$0xff] }
 0x3d5   : > { %7005 = vmatpush2.bf16.msra.mxu1 %v13256_v54  ;;  %v3528_v54 = vld [vmem:[#allocation8 + $0x898] sm:$0xff] }
 0x3d6   : > { %7006 = vmatprep.subr.bf16.mxu1 %v13249_v36  ;;  %v12946_v36 = vcombine.low %v3536_v30, %v3540_v19  ;;  %v12939_v34 = vcombine.high %v3528_v54, %v3532_v9  ;;  %v3740_v30 = vld [vmem:[#allocation8 + $0x15d8] sm:$0xff] }
 0x3d7   : > { %7050 = vmatpush2.bf16.msra.mxu0 %v12866_v58  ;;  %v3648_v58 = vld [vmem:[#allocation8 + $0x1018] sm:$0xff] }
 0x3d8   : > { %7105 = vmatprep.subr.bf16.mxu0 %v13115_v44  ;;  %v13066_v44 = vcombine.low %v3656_v35, %v3660_v39  ;;  %v13059_v62 = vcombine.high %v3648_v58, %v3652_v32  ;;  %v3612_v35 = vld [vmem:[#allocation8 + $0xdd8] sm:$0xff] }
 0x3d9   : > { %7007 = vmatpush2.bf16.msra.mxu1 %v13248_v20  ;;  %v3520_v20 = vld [vmem:[#allocation8 + $0x818] sm:$0xff] }
 0x3da   : > { %7052 = vmatmul.mubr.bf16.vlgmr.msra.gmra.mxu0 %v16358_v17  ;;  %7062 = vmatprep.subr.bf16.mxu1 %v12987_v57  ;;  %v12938_v57 = vcombine.low %v3528_v54, %v3532_v9  ;;  %v12931_v61 = vcombine.high %v3520_v20, %v3524_v4  ;;  %v3732_v54 = vld [vmem:[#allocation8 + $0x1558] sm:$0xff]  ;;  %v6709_v9 = vpop.f32.mrf.mxu0 }
 0x3db   : > { %7106 = vmatpush1.bf16.msra.mxu0 %v13114_v14  ;;  %7137 = vmatprep.mubr.bf16.mxu0 %v16359_v25  ;;  %v3768_v14 = vld [vmem:[#allocation8 + $0x1798] sm:$0xff] }
 0x3dc   : > { %7009 = vmatmul.mubr.bf16.vlgmr.msra.gmra.mxu1 %v16360_v15  ;;  %7107 = vmatprep.subr.bf16.mxu0 %v13107_v16  ;;  %v13058_v16 = vcombine.low %v3648_v58, %v3652_v32  ;;  %v13179_v3 = vcombine.high %v3768_v14, %v3772_v29  ;;  %v3600_v58 = vld [vmem:[#allocation8 + $0xd18] sm:$0xff] }
 0x3dd   : > { %7063 = vmatpush1.bf16.msra.mxu1 %v12986_v33  ;;  %7094 = vmatprep.mubr.bf16.mxu1 %v16361_v2  ;;  %v3640_v33 = vld [vmem:[#allocation8 + $0xf98] sm:$0xff] }
 0x3de   : > { %7064 = vmatprep.subr.bf16.mxu1 %v12979_v38  ;;  %v12930_v38 = vcombine.low %v3520_v20, %v3524_v4  ;;  %v13051_v56 = vcombine.high %v3640_v33, %v3644_v11  ;;  %v3604_v32 = vld [vmem:[#allocation8 + $0xd58] sm:$0xff] }
 0x3df   : > { %7108 = vmatpush1.bf16.msra.mxu0 %v13106_v49  ;;  %v3760_v49 = vld [vmem:[#allocation8 + $0x1718] sm:$0xff] }
 0x3e0   : > { %7109 = vmatprep.subr.bf16.mxu0 %v13099_v21  ;;  %v13178_v21 = vcombine.low %v3768_v14, %v3772_v29  ;;  %v13171_v59 = vcombine.high %v3760_v49, %v3764_v12  ;;  %v3720_v20 = vld [vmem:[#allocation8 + $0x1498] sm:$0xff] }
 0x3e1   : > { %7065 = vmatpush1.bf16.msra.mxu1 %v12978_v48  ;;  %v3632_v48 = vld [vmem:[#allocation8 + $0xf18] sm:$0xff] }
 0x3e2   : > { %7066 = vmatprep.subr.bf16.mxu1 %v12971_v28  ;;  %v13050_v28 = vcombine.low %v3640_v33, %v3644_v11  ;;  %v13043_v26 = vcombine.high %v3632_v48, %v3636_v31  ;;  %v3724_v4 = vld [vmem:[#allocation8 + $0x14d8] sm:$0xff]  ;;  %v13010_v33 = vcombine.low %v3600_v58, %v3604_v32 }
 0x3e3   : > { %7110 = vmatpush1.bf16.msra.mxu0 %v13098_v46  ;;  %v3752_v46 = vld [vmem:[#allocation8 + $0x1698] sm:$0xff] }
 0x3e4   : > { %7111 = vmatprep.subr.bf16.mxu0 %v13091_v51  ;;  %v13170_v51 = vcombine.low %v3760_v49, %v3764_v12  ;;  %v13163_v37 = vcombine.high %v3752_v46, %v3756_v5  ;;  %v3592_v29 = vld [vmem:[#allocation8 + $0xc98] sm:$0xff]  ;;  %v6752_v49 = vpop.f32.mrf.mxu1 }
 0x3e5   : > { %7067 = vmatpush1.bf16.msra.mxu1 %v12970_v27  ;;  %v3624_v27 = vld [vmem:[#allocation8 + $0xe98] sm:$0xff] }
 0x3e6   : > { %7068 = vmatprep.subr.bf16.mxu1 %v12963_v13  ;;  %v13042_v13 = vcombine.low %v3632_v48, %v3636_v31  ;;  %v13035_v47 = vcombine.high %v3624_v27, %v3628_v10  ;;  %v3712_v11 = vld [vmem:[#allocation8 + $0x1418] sm:$0xff] }
 0x3e7   : > { %7112 = vmatpush1.bf16.msra.mxu0 %v13090_v1  ;;  %v3744_v1 = vld [vmem:[#allocation8 + $0x1618] sm:$0xff] }
 0x3e8   : > { %7113 = vmatprep.subr.bf16.mxu0 %v13083_v24  ;;  %v13162_v24 = vcombine.low %v3752_v46, %v3756_v5  ;;  %v13155_v63 = vcombine.high %v3744_v1, %v3748_v45  ;;  %v3588_v48 = vld [vmem:[#allocation8 + $0xc58] sm:$0xff]  ;;  %v7307_v46 = vld [vmem:[#allocation8 + $0x3e0] sm:$0xff]  ;;  %v16364_v5 = vld [vmem:[#allocation28_spill] sm:$0xff] }
 0x3e9   : > { %7069 = vmatpush1.bf16.msra.mxu1 %v12962_v0  ;;  %v3616_v0 = vld [vmem:[#allocation8 + $0xe18] sm:$0xff] }
 0x3ea   : > { %7070 = vmatprep.subr.bf16.mxu1 %v12955_v41  ;;  %v13034_v41 = vcombine.low %v3624_v27, %v3628_v10  ;;  %v13027_v19 = vcombine.high %v3616_v0, %v3620_v52  ;;  %v6754_v27 = vpop.f32.mrf.mxu1 }
 0x3eb   : > { %7114 = vmatpush1.bf16.msra.mxu0 %v13082_v42  ;;  %v3736_v42 = vld [vmem:[#allocation8 + $0x1598] sm:$0xff] }
 0x3ec   : > { %7115 = vmatprep.subr.bf16.mxu0 %v13075_v23  ;;  %v13154_v23 = vcombine.low %v3744_v1, %v3748_v45  ;;  %v13147_v39 = vcombine.high %v3736_v42, %v3740_v30  ;;  %v3832_v45 = vld [vmem:[#allocation8 + $0x1b98] sm:$0xff] }
 0x3ed   : > { %7071 = vmatpush1.bf16.msra.mxu1 %v12954_v7  ;;  %v3608_v7 = vld [vmem:[#allocation8 + $0xd98] sm:$0xff] }
 0x3ee   : > { %7072 = vmatprep.subr.bf16.mxu1 %v12947_v55  ;;  %v13026_v55 = vcombine.low %v3616_v0, %v3620_v52 }
 0x3ef   : > { %7116 = vmatpush1.bf16.msra.mxu0 %v13074_v50  ;;  %v3728_v50 = vld [vmem:[#allocation8 + $0x1518] sm:$0xff] }
 0x3f0   : > { %7117 = vmatprep.subr.bf16.mxu0 %v13067_v18  ;;  %v13019_v18 = vcombine.high %v3608_v7, %v3612_v35  ;;  %v13138_v14 = vcombine.low %v3728_v50, %v3732_v54 }
 0x3f1   : > { %7073 = vmatpush1.bf16.msra.mxu1 %v12946_v36  ;;  %v13146_v36 = vcombine.low %v3736_v42, %v3740_v30  ;;  %v6756_v30 = vpop.f32.mrf.mxu1 }
 0x3f2   : > { %7074 = vmatprep.subr.bf16.mxu1 %v12939_v34  ;;  %v13139_v34 = vcombine.high %v3728_v50, %v3732_v54 }
 0x3f3   : > { %7118 = vmatpush1.bf16.msra.mxu0 %v13066_v44  ;;  %v13018_v44 = vcombine.low %v3608_v7, %v3612_v35  ;;  %v3824_v35 = vld [vmem:[#allocation8 + $0x1b18] sm:$0xff] }
 0x3f4   : > { %7119 = vmatprep.subr.bf16.mxu0 %v13059_v62  ;;  %v6711_v62 = vpop.f32.mrf.mxu0 }
 0x3f5   : > { %7075 = vmatpush1.bf16.msra.mxu1 %v12938_v57  ;;  %v13011_v57 = vcombine.high %v3600_v58, %v3604_v32  ;;  %v7291_v58 = vld [vmem:[#allocation8 + $0x2e0] sm:$0xff]  ;;  %v6758_v32 = vpop.f32.mrf.mxu1 }
 0x3f6   : > { %7076 = vmatprep.subr.bf16.mxu1 %v12931_v61  ;;  %v3596_v61 = vld [vmem:[#allocation8 + $0xcd8] sm:$0xff] }
 0x3f7   : > { %7120 = vmatpush1.bf16.msra.mxu0 %v13058_v16  ;;  %v13131_v16 = vcombine.high %v3720_v20, %v3724_v4  ;;  %v13003_v12 = vcombine.high %v3592_v29, %v3596_v61 }
 0x3f8   : > { %7121 = vmatprep.subr.bf16.mxu0 %v13179_v3  ;;  %v3716_v3 = vld [vmem:[#allocation8 + $0x1458] sm:$0xff] }
 0x3f9   : > { %7077 = vmatpush1.bf16.msra.mxu1 %v12930_v38  ;;  %v6713_v38 = vpop.f32.mrf.mxu0  ;;  %v13123_v31 = vcombine.high %v3712_v11, %v3716_v3  ;;  %v13122_v1 = vcombine.low %v3712_v11, %v3716_v3 }
 0x3fa   : > { %7078 = vmatprep.subr.bf16.mxu1 %v13051_v56  ;;  %v13130_v56 = vcombine.low %v3720_v20, %v3724_v4  ;;  %v3816_v4 = vld [vmem:[#allocation8 + $0x1a98] sm:$0xff] }
 0x3fb   : > { %7122 = vmatpush2.bf16.msra.mxu0 %v13178_v21  ;;  %v3584_v21 = vld [vmem:[#allocation8 + $0xc18] sm:$0xff] }
 0x3fc   : > { %7123 = vmatprep.subr.bf16.mxu0 %v13171_v59  ;;  %v13002_v59 = vcombine.low %v3592_v29, %v3596_v61  ;;  %v12995_v10 = vcombine.high %v3584_v21, %v3588_v48  ;;  %v12994_v52 = vcombine.low %v3584_v21, %v3588_v48 }
 0x3fd   : > { %7079 = vmatpush2.bf16.msra.mxu1 %v13050_v28  ;;  %v7303_v28 = vld [vmem:[#allocation8 + $0x3a0] sm:$0xff] }
 0x3fe   : > { %7080 = vmatprep.subr.bf16.mxu1 %v13043_v26  ;;  %v3914_v26 = vrot.slane %v15855_v22, %v16364_v5  ;;  %v13373_v0 = vcombine.high %v7303_v28, %v7307_v46  ;;  %v13372_v7 = vcombine.low %v7303_v28, %v7307_v46  ;;  %v3812_v28 = vld [vmem:[#allocation8 + $0x1a58] sm:$0xff] }
 0x3ff   : > { %7124 = vmatpush2.bf16.msra.mxu0 %v13170_v51  ;;  %v6715_v51 = vpop.f32.mrf.mxu0 }
 0x400   : > { %7125 = vmatprep.subr.bf16.mxu0 %v13163_v37  ;;  %v16365_v37 = vld [vmem:[#allocation29_spill] sm:$0xff]  ;;  %v6710_v42 = vadd.f32 %v6709_v9, %v3914_v26 }
 0x401   : > { %7081 = vmatpush2.bf16.msra.mxu1 %v13042_v13  ;;  %v3918_v13 = vrot.slane %v15855_v22, %v16365_v37  ;;  %v3828_v22 = vld [vmem:[#allocation8 + $0x1b58] sm:$0xff] }
 0x402   : > { %7082 = vmatprep.subr.bf16.mxu1 %v13035_v47  ;;  %v3836_v47 = vld [vmem:[#allocation8 + $0x1bd8] sm:$0xff]  ;;  %v13235_v9 = vcombine.high %v3824_v35, %v3828_v22  ;;  %v13234_v61 = vcombine.low %v3824_v35, %v3828_v22  ;;  %v7263_v35 = vld [vmem:[#allocation8 + $0x120] sm:$0xff] }
 0x403   : > { %7126 = vmatpush2.bf16.msra.mxu0 %v13162_v24  ;;  %v6795_v24 = vpop.f32.mrf.mxu0  ;;  %v7267_v22 = vld [vmem:[#allocation8 + $0x160] sm:$0xff] }
 0x404   : > { %7127 = vmatprep.subr.bf16.mxu0 %v13155_v63  ;;  %v7295_v63 = vld [vmem:[#allocation8 + $0x320] sm:$0xff] }
 0x405   : > { %7083 = vmatpush2.bf16.msra.mxu1 %v13034_v41  ;;  %v7299_v41 = vld [vmem:[#allocation8 + $0x360] sm:$0xff] }
 0x406   : > { %7084 = vmatprep.subr.bf16.mxu1 %v13027_v19  ;;  %v13243_v19 = vcombine.high %v3832_v45, %v3836_v47  ;;  %v13365_v50 = vcombine.high %v7295_v63, %v7299_v41  ;;  %v13364_v20 = vcombine.low %v7295_v63, %v7299_v41 }
 0x407   : > { %7128 = vmatpush2.bf16.msra.mxu0 %v13154_v23  ;;  %v6712_v23 = vadd.f32 %v6711_v62, %v3918_v13  ;;  %v3820_v62 = vld [vmem:[#allocation8 + $0x1ad8] sm:$0xff] }
 0x408   : > { %7129 = vmatprep.subr.bf16.mxu0 %v13147_v39  ;;  %v6753_v39 = vadd.f32 %v6752_v49, %v6710_v42  ;;  %v7283_v49 = vld [vmem:[#allocation8 + $0x260] sm:$0xff]  ;;  %v3800_v42 = vld [vmem:[#allocation8 + $0x1998] sm:$0xff] }
 0x409   : > { %7085 = vmatpush2.bf16.msra.mxu1 %v13026_v55  ;;  %v6797_v55 = vpop.f32.mrf.mxu0  ;;  %v6755_v54 = vadd.f32 %v6754_v27, %v6712_v23 }
 0x40a   : > { %7086 = vmatprep.subr.bf16.mxu1 %v13019_v18  ;;  %v13242_v18 = vcombine.low %v3832_v45, %v3836_v47  ;;  %v7271_v45 = vld [vmem:[#allocation8 + $0x1a0] sm:$0xff] }
 0x40b   : > { %7130 = vmatpush2.bf16.msra.mxu0 %v13146_v36  ;;  %v7287_v36 = vld [vmem:[#allocation8 + $0x2a0] sm:$0xff]  ;;  %v6798_v3 = vadd.f32 %v6797_v55, %v6755_v54  ;;  %v3796_v54 = vld [vmem:[#allocation8 + $0x1958] sm:$0xff] }
 0x40c   : > { %7131 = vmatprep.subr.bf16.mxu0 %v13139_v34  ;;  %v6714_v34 = vadd.f32 %v6713_v38, %v3914_v26  ;;  %v7279_v38 = vld [vmem:[#allocation8 + $0x220] sm:$0xff] }
 0x40d   : > { %7087 = vmatpush2.bf16.msra.mxu1 %v13018_v44  ;;  %v6716_v44 = vadd.f32 %v6715_v51, %v3918_v13  ;;  %v13349_v51 = vcombine.high %v7279_v38, %v7283_v49  ;;  %v7275_v47 = vld [vmem:[#allocation8 + $0x1e0] sm:$0xff]  ;;  %v13348_v41 = vcombine.low %v7279_v38, %v7283_v49 }
 0x40e   : > { %7088 = vmatprep.subr.bf16.mxu1 %v13011_v57  ;;  %v6799_v57 = vpop.f32.mrf.mxu0  ;;  %v13340_v55 = vcombine.low %v7271_v45, %v7275_v47  ;;  %v7367_v38 = vld [vmem:[#allocation8 + $0x7a0] sm:$0xff] }
 0x40f   : > { %7132 = vmatpush2.bf16.msra.mxu0 %v13138_v14  ;;  %v6796_v14 = vadd.f32 %v6795_v24, %v6753_v39  ;;  %v6759_v11 = vadd.f32 %v6758_v32, %v6716_v44  ;;  %v7259_v32 = vld [vmem:[#allocation8 + $0xe0] sm:$0xff]  ;;  %v3784_v44 = vld [vmem:[#allocation8 + $0x1898] sm:$0xff] }
 0x410   : > { %7133 = vmatprep.subr.bf16.mxu0 %v13131_v16  ;;  %v13357_v16 = vcombine.high %v7287_v36, %v7291_v58  ;;  %v6801_v46 = vpop.f32.mrf.mxu0  ;;  %v7371_v49 = vld [vmem:[#allocation8 + $0x7e0] sm:$0xff] }
 0x411   : > { %7089 = vmatpush2.bf16.msra.mxu1 %v13010_v33  ;;  %v6757_v33 = vadd.f32 %v6756_v30, %v6714_v34  ;;  %v6802_v13 = vadd.f32 %v6801_v46, %v6759_v11  ;;  %v3804_v30 = vld [vmem:[#allocation8 + $0x19d8] sm:$0xff]  ;;  %v13332_v34 = vcombine.low %v7263_v35, %v7267_v22  ;;  %v7363_v46 = vld [vmem:[#allocation8 + $0x760] sm:$0xff] }
 0x412   : > { %7090 = vmatprep.subr.bf16.mxu1 %v13003_v12  ;;  %v13211_v39 = vcombine.high %v3800_v42, %v3804_v30 }
 0x413   : > { %7134 = vmatpush2.bf16.msra.mxu0 %v13130_v56  ;;  %v13227_v56 = vcombine.high %v3816_v4, %v3820_v62 }
 0x414   : > { %7135 = vmatprep.subr.bf16.mxu0 %v13123_v31  ;;  %v13356_v31 = vcombine.low %v7287_v36, %v7291_v58  ;;  %v13210_v36 = vcombine.low %v3800_v42, %v3804_v30  ;;  %v7255_v58 = vld [vmem:[#allocation8 + $0xa0] sm:$0xff] }
 0x415   : > { %7091 = vmatpush2.bf16.msra.mxu1 %v13002_v59  ;;  %v3808_v59 = vld [vmem:[#allocation8 + $0x1a18] sm:$0xff]  ;;  %v7343_v30 = vld [vmem:[#allocation8 + $0x620] sm:$0xff] }
 0x416   : > { %7092 = vmatprep.subr.bf16.mxu1 %v12995_v10  ;;  %v6800_v10 = vadd.f32 %v6799_v57, %v6757_v33  ;;  %v7247_v57 = vld [vmem:[#allocation8 + $0x20] sm:$0xff]  ;;  %v3780_v33 = vld [vmem:[#allocation8 + $0x1858] sm:$0xff] }
 0x417   : > { %7136 = vmatpush2.bf16.msra.mxu0 %v13122_v1  ;;  %v13226_v1 = vcombine.low %v3816_v4, %v3820_v62  ;;  %v13325_v4 = vcombine.high %v7255_v58, %v7259_v32 }
 0x418   : > { %10361 = vmatprep.subr.bf16.mxu0 %v13373_v0  ;;  %v13219_v0 = vcombine.high %v3808_v59, %v3812_v28 }
 0x419   : > { %7093 = vmatpush2.bf16.msra.mxu1 %v12994_v52 }
 0x41a   : > { %7138 = vmatmul.mubr.bf16.vlgmr.msra.gmra.mxu0 %v16354_v53  ;;  %7148 = vmatprep.subr.bf16.mxu1 %v13243_v19  ;;  %v13341_v19 = vcombine.high %v7271_v45, %v7275_v47  ;;  %v7351_v45 = vld [vmem:[#allocation8 + $0x6a0] sm:$0xff] }
 0x41b   : > { %10362 = vmatpush1.bf16.msra.mxu0 %v13372_v7  ;;  %10393 = vmatprep.mubr.bf16.mxu0 %v16355_v8  ;;  %v13218_v7 = vcombine.low %v3808_v59, %v3812_v28  ;;  %v7359_v28 = vld [vmem:[#allocation8 + $0x720] sm:$0xff] }
 0x41c   : > { %v6838_v29 = vpop.f32.mrf.mxu1  ;;  %7095 = vmatmul.mubr.bf16.vlgmr.msra.gmra.mxu1 %v16356_v40  ;;  %10363 = vmatprep.subr.bf16.mxu0 %v13365_v50  ;;  %v3792_v50 = vld [vmem:[#allocation8 + $0x1918] sm:$0xff]  ;;  %v7355_v47 = vld [vmem:[#allocation8 + $0x6e0] sm:$0xff] }
 0x41d   : > { %7149 = vmatpush1.bf16.msra.mxu1 %v13242_v18  ;;  %7180 = vmatprep.mubr.bf16.mxu1 %v16357_v43  ;;  %v6839_v21 = vadd.f32 %v6838_v29, %v6796_v14  ;;  %v13333_v18 = vcombine.high %v7263_v35, %v7267_v22  ;;  %v13202_v62 = vcombine.low %v3792_v50, %v3796_v54  ;;  %v7251_v14 = vld [vmem:[#allocation8 + $0x60] sm:$0xff]  ;;  %v3872_v35 = vld [vmem:[#allocation8 + $0x1e18] sm:$0xff] }
 0x41e   : > { %v6840_v12 = vpop.f32.mrf.mxu1  ;;  %7150 = vmatprep.subr.bf16.mxu1 %v13235_v9  ;;  %v13203_v9 = vcombine.high %v3792_v50, %v3796_v54  ;;  %v13317_v11 = vcombine.high %v7247_v57, %v7251_v14  ;;  %v3876_v22 = vld [vmem:[#allocation8 + $0x1e58] sm:$0xff]  ;;  %v7335_v50 = vld [vmem:[#allocation8 + $0x5a0] sm:$0xff] }
 0x41f   : > { %v6841_v48 = vadd.f32 %v6840_v12, %v6798_v3  ;;  %10364 = vmatpush1.bf16.msra.mxu0 %v13364_v20  ;;  %v3788_v20 = vld [vmem:[#allocation8 + $0x18d8] sm:$0xff]  ;;  %v7339_v54 = vld [vmem:[#allocation8 + $0x5e0] sm:$0xff] }
 0x420   : > { %v6842_v26 = vpop.f32.mrf.mxu1  ;;  %10365 = vmatprep.subr.bf16.mxu0 %v13357_v16  ;;  %v13195_v29 = vcombine.high %v3784_v44, %v3788_v20  ;;  %v3776_v16 = vld [vmem:[#allocation8 + $0x1818] sm:$0xff]  ;;  %v13194_v3 = vcombine.low %v3784_v44, %v3788_v20  ;;  %v7327_v44 = vld [vmem:[#allocation8 + $0x520] sm:$0xff] }
 0x421   : > { %v13891_v27 = vpack.c.bf16 %v6841_v48, %v6839_v21  ;;  %7151 = vmatpush1.bf16.msra.mxu1 %v13234_v61  ;;  %v6843_v52 = vadd.f32 %v6842_v26, %v6800_v10  ;;  %v13324_v61 = vcombine.low %v7255_v58, %v7259_v32  ;;  %v13187_v12 = vcombine.high %v3776_v16, %v3780_v33  ;;  %v3896_v21 = vld [vmem:[#allocation8 + $0x1f98] sm:$0xff]  ;;  %v7331_v20 = vld [vmem:[#allocation8 + $0x560] sm:$0xff] }
 0x422   : > { %v6844_v24 = vpop.f32.mrf.mxu1  ;;  %7152 = vmatprep.subr.bf16.mxu1 %v13227_v56  ;;  %v13316_v56 = vcombine.low %v7247_v57, %v7251_v14  ;;  %v3900_v48 = vld [vmem:[#allocation8 + $0x1fd8] sm:$0xff]  ;;  %v13186_v59 = vcombine.low %v3776_v16, %v3780_v33  ;;  %v7319_v16 = vld [vmem:[#allocation8 + $0x4a0] sm:$0xff] }
 0x423   : > { %7240 = vst [vmem:[%s15867_s25 + $0x8] sm:$0xff] %v13891_v27  ;;  %v6845_v63 = vadd.f32 %v6844_v24, %v6802_v13  ;;  %10366 = vmatpush1.bf16.msra.mxu0 %v13356_v31  ;;  %v13437_v31 = vcombine.high %v7367_v38, %v7371_v49  ;;  %v13307_v26 = vcombine.high %v3896_v21, %v3900_v48  ;;  %v3888_v27 = vld [vmem:[#allocation8 + $0x1f18] sm:$0xff]  ;;  %v7323_v33 = vld [vmem:[#allocation8 + $0x4e0] sm:$0xff] }
 0x424   : > { %10367 = vmatprep.subr.bf16.mxu0 %v13349_v51  ;;  %v13436_v51 = vcombine.low %v7367_v38, %v7371_v49  ;;  %v3892_v10 = vld [vmem:[#allocation8 + $0x1f58] sm:$0xff]  ;;  %v13429_v13 = vcombine.high %v7359_v28, %v7363_v46 }
 0x425   : > { %v13895_v23 = vpack.c.bf16 %v6845_v63, %v6843_v52  ;;  %7153 = vmatpush1.bf16.msra.mxu1 %v13226_v1  ;;  %v13306_v1 = vcombine.low %v3896_v21, %v3900_v48  ;;  %v13299_v24 = vcombine.high %v3888_v27, %v3892_v10  ;;  %v3880_v52 = vld [vmem:[#allocation8 + $0x1e98] sm:$0xff]  ;;  %v13298_v42 = vcombine.low %v3888_v27, %v3892_v10  ;;  %v7311_v21 = vld [vmem:[#allocation8 + $0x420] sm:$0xff] }
 0x426   : > { %7154 = vmatprep.subr.bf16.mxu1 %v13219_v0  ;;  %v13428_v0 = vcombine.low %v7359_v28, %v7363_v46  ;;  %v3884_v63 = vld [vmem:[#allocation8 + $0x1ed8] sm:$0xff]  ;;  %v7315_v48 = vld [vmem:[#allocation8 + $0x460] sm:$0xff] }
 0x427   : > { %7244 = vst [vmem:[%s15867_s25 + $0x28] sm:$0xff] %v13895_v23  ;;  %10368 = vmatpush1.bf16.msra.mxu0 %v13348_v41  ;;  %v13421_v41 = vcombine.high %v7351_v45, %v7355_v47  ;;  %v13291_v23 = vcombine.high %v3880_v52, %v3884_v63  ;;  %v3864_v58 = vld [vmem:[#allocation8 + $0x1d98] sm:$0xff]  ;;  %v7559_v27 = vld [vmem:[#allocation8 + $0x13a0] sm:$0xff] }
 0x428   : > { %10369 = vmatprep.subr.bf16.mxu0 %v13341_v19  ;;  %v7347_v19 = vld [vmem:[#allocation8 + $0x660] sm:$0xff]  ;;  %v3868_v32 = vld [vmem:[#allocation8 + $0x1dd8] sm:$0xff] }
 0x429   : > { %7155 = vmatpush1.bf16.msra.mxu1 %v13218_v7  ;;  %v13420_v7 = vcombine.low %v7351_v45, %v7355_v47  ;;  %v3856_v57 = vld [vmem:[#allocation8 + $0x1d18] sm:$0xff]  ;;  %v7563_v10 = vld [vmem:[#allocation8 + $0x13e0] sm:$0xff] }
 0x42a   : > { %7156 = vmatprep.subr.bf16.mxu1 %v13211_v39  ;;  %v13413_v39 = vcombine.high %v7343_v30, %v7347_v19  ;;  %v3860_v14 = vld [vmem:[#allocation8 + $0x1d58] sm:$0xff]  ;;  %v7431_v45 = vld [vmem:[#allocation8 + $0xba0] sm:$0xff] }
 0x42b   : > { %10370 = vmatpush1.bf16.msra.mxu0 %v13340_v55  ;;  %v13290_v55 = vcombine.low %v3880_v52, %v3884_v63  ;;  %v3848_v38 = vld [vmem:[#allocation8 + $0x1c98] sm:$0xff]  ;;  %v7435_v47 = vld [vmem:[#allocation8 + $0xbe0] sm:$0xff] }
 0x42c   : > { %10371 = vmatprep.subr.bf16.mxu0 %v13333_v18  ;;  %v13283_v18 = vcombine.high %v3872_v35, %v3876_v22  ;;  %v3852_v49 = vld [vmem:[#allocation8 + $0x1cd8] sm:$0xff]  ;;  %v7551_v52 = vld [vmem:[#allocation8 + $0x1320] sm:$0xff] }
 0x42d   : > { %7157 = vmatpush1.bf16.msra.mxu1 %v13210_v36  ;;  %v13412_v36 = vcombine.low %v7343_v30, %v7347_v19  ;;  %v3840_v28 = vld [vmem:[#allocation8 + $0x1c18] sm:$0xff]  ;;  %v7555_v63 = vld [vmem:[#allocation8 + $0x1360] sm:$0xff] }
 0x42e   : > { %7158 = vmatprep.subr.bf16.mxu1 %v13203_v9  ;;  %v13405_v9 = vcombine.high %v7335_v50, %v7339_v54  ;;  %v3844_v46 = vld [vmem:[#allocation8 + $0x1c58] sm:$0xff]  ;;  %v7423_v30 = vld [vmem:[#allocation8 + $0xb20] sm:$0xff] }
 0x42f   : > { %10372 = vmatpush1.bf16.msra.mxu0 %v13332_v34  ;;  %v13282_v34 = vcombine.low %v3872_v35, %v3876_v22  ;;  %v7427_v19 = vld [vmem:[#allocation8 + $0xb60] sm:$0xff] }
 0x430   : > { %10373 = vmatprep.subr.bf16.mxu0 %v13325_v4  ;;  %v13275_v4 = vcombine.high %v3864_v58, %v3868_v32  ;;  %v7543_v35 = vld [vmem:[#allocation8 + $0x12a0] sm:$0xff] }
 0x431   : > { %7159 = vmatpush1.bf16.msra.mxu1 %v13202_v62  ;;  %v13404_v62 = vcombine.low %v7335_v50, %v7339_v54  ;;  %v7547_v22 = vld [vmem:[#allocation8 + $0x12e0] sm:$0xff] }
 0x432   : > { %7160 = vmatprep.subr.bf16.mxu1 %v13195_v29  ;;  %v13397_v29 = vcombine.high %v7327_v44, %v7331_v20  ;;  %v7415_v50 = vld [vmem:[#allocation8 + $0xaa0] sm:$0xff] }
 0x433   : > { %10374 = vmatpush1.bf16.msra.mxu0 %v13324_v61  ;;  %v13274_v61 = vcombine.low %v3864_v58, %v3868_v32  ;;  %v7419_v54 = vld [vmem:[#allocation8 + $0xae0] sm:$0xff] }
 0x434   : > { %10375 = vmatprep.subr.bf16.mxu0 %v13317_v11  ;;  %v13267_v11 = vcombine.high %v3856_v57, %v3860_v14  ;;  %v7535_v58 = vld [vmem:[#allocation8 + $0x1220] sm:$0xff] }
 0x435   : > { %7161 = vmatpush1.bf16.msra.mxu1 %v13194_v3  ;;  %v13396_v3 = vcombine.low %v7327_v44, %v7331_v20  ;;  %v7539_v32 = vld [vmem:[#allocation8 + $0x1260] sm:$0xff] }
 0x436   : > { %7162 = vmatprep.subr.bf16.mxu1 %v13187_v12  ;;  %v13389_v12 = vcombine.high %v7319_v16, %v7323_v33  ;;  %v7407_v44 = vld [vmem:[#allocation8 + $0xa20] sm:$0xff] }
 0x437   : > { %10376 = vmatpush1.bf16.msra.mxu0 %v13316_v56  ;;  %v13266_v56 = vcombine.low %v3856_v57, %v3860_v14  ;;  %v7411_v20 = vld [vmem:[#allocation8 + $0xa60] sm:$0xff] }
 0x438   : > { %10377 = vmatprep.subr.bf16.mxu0 %v13437_v31  ;;  %v13259_v31 = vcombine.high %v3848_v38, %v3852_v49  ;;  %v7527_v57 = vld [vmem:[#allocation8 + $0x11a0] sm:$0xff] }
 0x439   : > { %7163 = vmatpush1.bf16.msra.mxu1 %v13186_v59  ;;  %v13388_v59 = vcombine.low %v7319_v16, %v7323_v33  ;;  %v7531_v14 = vld [vmem:[#allocation8 + $0x11e0] sm:$0xff] }
 0x43a   : > { %7164 = vmatprep.subr.bf16.mxu1 %v13307_v26  ;;  %v13381_v26 = vcombine.high %v7311_v21, %v7315_v48  ;;  %v7399_v16 = vld [vmem:[#allocation8 + $0x9a0] sm:$0xff] }
 0x43b   : > { %10378 = vmatpush2.bf16.msra.mxu0 %v13436_v51  ;;  %v13258_v51 = vcombine.low %v3848_v38, %v3852_v49  ;;  %v7403_v33 = vld [vmem:[#allocation8 + $0x9e0] sm:$0xff] }
 0x43c   : > { %10379 = vmatprep.subr.bf16.mxu0 %v13429_v13  ;;  %v13251_v13 = vcombine.high %v3840_v28, %v3844_v46  ;;  %v7519_v38 = vld [vmem:[#allocation8 + $0x1120] sm:$0xff] }
 0x43d   : > { %7165 = vmatpush2.bf16.msra.mxu1 %v13306_v1  ;;  %v13380_v1 = vcombine.low %v7311_v21, %v7315_v48  ;;  %v7523_v49 = vld [vmem:[#allocation8 + $0x1160] sm:$0xff] }
 0x43e   : > { %7166 = vmatprep.subr.bf16.mxu1 %v13299_v24  ;;  %v13629_v24 = vcombine.high %v7559_v27, %v7563_v10  ;;  %v7391_v21 = vld [vmem:[#allocation8 + $0x920] sm:$0xff] }
 0x43f   : > { %10380 = vmatpush2.bf16.msra.mxu0 %v13428_v0  ;;  %v13250_v0 = vcombine.low %v3840_v28, %v3844_v46  ;;  %v7395_v48 = vld [vmem:[#allocation8 + $0x960] sm:$0xff] }
 0x440   : > { %10381 = vmatprep.subr.bf16.mxu0 %v13421_v41  ;;  %v13501_v41 = vcombine.high %v7431_v45, %v7435_v47  ;;  %v7511_v28 = vld [vmem:[#allocation8 + $0x10a0] sm:$0xff] }
 0x441   : > { %7167 = vmatpush2.bf16.msra.mxu1 %v13298_v42  ;;  %v13628_v42 = vcombine.low %v7559_v27, %v7563_v10  ;;  %v7515_v46 = vld [vmem:[#allocation8 + $0x10e0] sm:$0xff] }
 0x442   : > { %7168 = vmatprep.subr.bf16.mxu1 %v13291_v23  ;;  %v13621_v23 = vcombine.high %v7551_v52, %v7555_v63  ;;  %v7383_v27 = vld [vmem:[#allocation8 + $0x8a0] sm:$0xff] }
 0x443   : > { %10382 = vmatpush2.bf16.msra.mxu0 %v13420_v7  ;;  %v13500_v7 = vcombine.low %v7431_v45, %v7435_v47  ;;  %v7387_v10 = vld [vmem:[#allocation8 + $0x8e0] sm:$0xff] }
 0x444   : > { %10383 = vmatprep.subr.bf16.mxu0 %v13413_v39  ;;  %v13493_v39 = vcombine.high %v7423_v30, %v7427_v19  ;;  %v7503_v45 = vld [vmem:[#allocation8 + $0x1020] sm:$0xff] }
 0x445   : > { %7169 = vmatpush2.bf16.msra.mxu1 %v13290_v55  ;;  %v13620_v55 = vcombine.low %v7551_v52, %v7555_v63  ;;  %v7507_v47 = vld [vmem:[#allocation8 + $0x1060] sm:$0xff] }
 0x446   : > { %7170 = vmatprep.subr.bf16.mxu1 %v13283_v18  ;;  %v13613_v18 = vcombine.high %v7543_v35, %v7547_v22  ;;  %v7375_v52 = vld [vmem:[#allocation8 + $0x820] sm:$0xff] }
 0x447   : > { %10384 = vmatpush2.bf16.msra.mxu0 %v13412_v36  ;;  %v13492_v36 = vcombine.low %v7423_v30, %v7427_v19  ;;  %v7379_v63 = vld [vmem:[#allocation8 + $0x860] sm:$0xff] }
 0x448   : > { %10385 = vmatprep.subr.bf16.mxu0 %v13405_v9  ;;  %v13485_v9 = vcombine.high %v7415_v50, %v7419_v54  ;;  %v7623_v30 = vld [vmem:[#allocation8 + $0x17a0] sm:$0xff] }
 0x449   : > { %7171 = vmatpush2.bf16.msra.mxu1 %v13282_v34  ;;  %v13612_v34 = vcombine.low %v7543_v35, %v7547_v22  ;;  %v7627_v19 = vld [vmem:[#allocation8 + $0x17e0] sm:$0xff] }
 0x44a   : > { %7172 = vmatprep.subr.bf16.mxu1 %v13275_v4  ;;  %v13605_v4 = vcombine.high %v7535_v58, %v7539_v32  ;;  %v7495_v35 = vld [vmem:[#allocation8 + $0xfa0] sm:$0xff] }
 0x44b   : > { %10386 = vmatpush2.bf16.msra.mxu0 %v13404_v62  ;;  %v13484_v62 = vcombine.low %v7415_v50, %v7419_v54  ;;  %v7499_v22 = vld [vmem:[#allocation8 + $0xfe0] sm:$0xff] }
 0x44c   : > { %10387 = vmatprep.subr.bf16.mxu0 %v13397_v29  ;;  %v13477_v29 = vcombine.high %v7407_v44, %v7411_v20  ;;  %v7615_v50 = vld [vmem:[#allocation8 + $0x1720] sm:$0xff] }
 0x44d   : > { %7173 = vmatpush2.bf16.msra.mxu1 %v13274_v61  ;;  %v13604_v61 = vcombine.low %v7535_v58, %v7539_v32  ;;  %v7619_v54 = vld [vmem:[#allocation8 + $0x1760] sm:$0xff] }
 0x44e   : > { %7174 = vmatprep.subr.bf16.mxu1 %v13267_v11  ;;  %v13597_v11 = vcombine.high %v7527_v57, %v7531_v14  ;;  %v7487_v58 = vld [vmem:[#allocation8 + $0xf20] sm:$0xff] }
 0x44f   : > { %10388 = vmatpush2.bf16.msra.mxu0 %v13396_v3  ;;  %v13476_v3 = vcombine.low %v7407_v44, %v7411_v20  ;;  %v7491_v32 = vld [vmem:[#allocation8 + $0xf60] sm:$0xff] }
 0x450   : > { %10389 = vmatprep.subr.bf16.mxu0 %v13389_v12  ;;  %v13469_v12 = vcombine.high %v7399_v16, %v7403_v33  ;;  %v7607_v44 = vld [vmem:[#allocation8 + $0x16a0] sm:$0xff] }
 0x451   : > { %7175 = vmatpush2.bf16.msra.mxu1 %v13266_v56  ;;  %v13596_v56 = vcombine.low %v7527_v57, %v7531_v14  ;;  %v7611_v20 = vld [vmem:[#allocation8 + $0x16e0] sm:$0xff] }
 0x452   : > { %7176 = vmatprep.subr.bf16.mxu1 %v13259_v31  ;;  %v13589_v31 = vcombine.high %v7519_v38, %v7523_v49  ;;  %v7479_v57 = vld [vmem:[#allocation8 + $0xea0] sm:$0xff] }
 0x453   : > { %10390 = vmatpush2.bf16.msra.mxu0 %v13388_v59  ;;  %v13468_v59 = vcombine.low %v7399_v16, %v7403_v33  ;;  %v7483_v14 = vld [vmem:[#allocation8 + $0xee0] sm:$0xff] }
 0x454   : > { %10391 = vmatprep.subr.bf16.mxu0 %v13381_v26  ;;  %v13461_v26 = vcombine.high %v7391_v21, %v7395_v48  ;;  %v7599_v16 = vld [vmem:[#allocation8 + $0x1620] sm:$0xff] }
 0x455   : > { %7177 = vmatpush2.bf16.msra.mxu1 %v13258_v51  ;;  %v13588_v51 = vcombine.low %v7519_v38, %v7523_v49  ;;  %v7603_v33 = vld [vmem:[#allocation8 + $0x1660] sm:$0xff] }
 0x456   : > { %7178 = vmatprep.subr.bf16.mxu1 %v13251_v13  ;;  %v13581_v13 = vcombine.high %v7511_v28, %v7515_v46  ;;  %v7471_v38 = vld [vmem:[#allocation8 + $0xe20] sm:$0xff] }
 0x457   : > { %10392 = vmatpush2.bf16.msra.mxu0 %v13380_v1  ;;  %v13460_v1 = vcombine.low %v7391_v21, %v7395_v48  ;;  %v7475_v49 = vld [vmem:[#allocation8 + $0xe60] sm:$0xff] }
 0x458   : > { %10447 = vmatprep.subr.bf16.mxu0 %v13629_v24  ;;  %v13453_v24 = vcombine.high %v7383_v27, %v7387_v10  ;;  %v7591_v21 = vld [vmem:[#allocation8 + $0x15a0] sm:$0xff] }
 0x459   : > { %7179 = vmatpush2.bf16.msra.mxu1 %v13250_v0  ;;  %v13580_v0 = vcombine.low %v7511_v28, %v7515_v46  ;;  %v7595_v48 = vld [vmem:[#allocation8 + $0x15e0] sm:$0xff] }
 0x45a   : > { %10394 = vmatmul.mubr.bf16.vlgmr.msra.gmra.mxu0 %v16358_v17  ;;  %10404 = vmatprep.subr.bf16.mxu1 %v13501_v41  ;;  %v13573_v41 = vcombine.high %v7503_v45, %v7507_v47  ;;  %v7463_v28 = vld [vmem:[#allocation8 + $0xda0] sm:$0xff] }
 0x45b   : > { %10448 = vmatpush1.bf16.msra.mxu0 %v13628_v42  ;;  %10479 = vmatprep.mubr.bf16.mxu0 %v16359_v25  ;;  %v13452_v42 = vcombine.low %v7383_v27, %v7387_v10  ;;  %v7467_v46 = vld [vmem:[#allocation8 + $0xde0] sm:$0xff] }
 0x45c   : > { %7181 = vmatmul.mubr.bf16.vlgmr.msra.gmra.mxu1 %v16360_v15  ;;  %10449 = vmatprep.subr.bf16.mxu0 %v13621_v23  ;;  %v13445_v23 = vcombine.high %v7375_v52, %v7379_v63  ;;  %v7583_v27 = vld [vmem:[#allocation8 + $0x1520] sm:$0xff] }
 0x45d   : > { %10405 = vmatpush1.bf16.msra.mxu1 %v13500_v7  ;;  %10436 = vmatprep.mubr.bf16.mxu1 %v16361_v2  ;;  %v13572_v7 = vcombine.low %v7503_v45, %v7507_v47  ;;  %v7587_v10 = vld [vmem:[#allocation8 + $0x1560] sm:$0xff]  ;;  %v13660_v45 = vcombine.low %v7591_v21, %v7595_v48 }
 0x45e   : > { %10406 = vmatprep.subr.bf16.mxu1 %v13493_v39  ;;  %v13693_v39 = vcombine.high %v7623_v30, %v7627_v19  ;;  %v7455_v47 = vld [vmem:[#allocation8 + $0xd20] sm:$0xff] }
 0x45f   : > { %10450 = vmatpush1.bf16.msra.mxu0 %v13620_v55  ;;  %v13444_v55 = vcombine.low %v7375_v52, %v7379_v63  ;;  %v13532_v52 = vcombine.low %v7463_v28, %v7467_v46  ;;  %v7575_v63 = vld [vmem:[#allocation8 + $0x14a0] sm:$0xff] }
 0x460   : > { %10451 = vmatprep.subr.bf16.mxu0 %v13613_v18  ;;  %v13565_v18 = vcombine.high %v7495_v35, %v7499_v22 }
 0x461   : > { %10407 = vmatpush1.bf16.msra.mxu1 %v13492_v36  ;;  %v13692_v36 = vcombine.low %v7623_v30, %v7627_v19  ;;  %v13652_v19 = vcombine.low %v7583_v27, %v7587_v10 }
 0x462   : > { %10408 = vmatprep.subr.bf16.mxu1 %v13485_v9  ;;  %v13685_v9 = vcombine.high %v7615_v50, %v7619_v54 }
 0x463   : > { %10452 = vmatpush1.bf16.msra.mxu0 %v13612_v34  ;;  %v13564_v34 = vcombine.low %v7495_v35, %v7499_v22 }
 0x464   : > { %10453 = vmatprep.subr.bf16.mxu0 %v13605_v4  ;;  %v13557_v4 = vcombine.high %v7487_v58, %v7491_v32 }
 0x465   : > { %10409 = vmatpush1.bf16.msra.mxu1 %v13484_v62  ;;  %v13684_v62 = vcombine.low %v7615_v50, %v7619_v54  ;;  %v6924_v54 = vpop.f32.mrf.mxu1 }
 0x466   : > { %10410 = vmatprep.subr.bf16.mxu1 %v13477_v29  ;;  %v13677_v29 = vcombine.high %v7607_v44, %v7611_v20 }
 0x467   : > { %10454 = vmatpush1.bf16.msra.mxu0 %v13604_v61  ;;  %v13556_v61 = vcombine.low %v7487_v58, %v7491_v32  ;;  %v7439_v58 = vld [vmem:[#allocation8 + $0xc20] sm:$0xff] }
 0x468   : > { %10455 = vmatprep.subr.bf16.mxu0 %v13597_v11  ;;  %v13549_v11 = vcombine.high %v7479_v57, %v7483_v14  ;;  %v7443_v32 = vld [vmem:[#allocation8 + $0xc60] sm:$0xff] }
 0x469   : > { %10411 = vmatpush1.bf16.msra.mxu1 %v13476_v3  ;;  %v13676_v3 = vcombine.low %v7607_v44, %v7611_v20  ;;  %v7304_v44 = vld [vmem:[#allocation8 + $0x3a8] sm:$0xff] }
 0x46a   : > { %10412 = vmatprep.subr.bf16.mxu1 %v13469_v12  ;;  %v13669_v12 = vcombine.high %v7599_v16, %v7603_v33  ;;  %v7308_v20 = vld [vmem:[#allocation8 + $0x3e8] sm:$0xff] }
 0x46b   : > { %10456 = vmatpush1.bf16.msra.mxu0 %v13596_v56  ;;  %v13548_v56 = vcombine.low %v7479_v57, %v7483_v14 }
 0x46c   : > { %10457 = vmatprep.subr.bf16.mxu0 %v13589_v31  ;;  %v13541_v31 = vcombine.high %v7471_v38, %v7475_v49 }
 0x46d   : > { %10413 = vmatpush1.bf16.msra.mxu1 %v13468_v59  ;;  %v13668_v59 = vcombine.low %v7599_v16, %v7603_v33  ;;  %v16367_v16 = vld [vmem:[#allocation35_spill] sm:$0xff] }
 0x46e   : > { %10414 = vmatprep.subr.bf16.mxu1 %v13461_v26  ;;  %v13661_v26 = vcombine.high %v7591_v21, %v7595_v48  ;;  %v7296_v21 = vld [vmem:[#allocation8 + $0x328] sm:$0xff] }
 0x46f   : > { %10458 = vmatpush1.bf16.msra.mxu0 %v13588_v51  ;;  %v13540_v51 = vcombine.low %v7471_v38, %v7475_v49  ;;  %v7691_v38 = vld [vmem:[#allocation8 + $0x1be0] sm:$0xff]  ;;  %v7300_v48 = vld [vmem:[#allocation8 + $0x368] sm:$0xff] }
 0x470   : > { %10459 = vmatprep.subr.bf16.mxu0 %v13581_v13  ;;  %v6881_v13 = vpop.f32.mrf.mxu0 }
 0x471   : > { %10415 = vmatpush1.bf16.msra.mxu1 %v13460_v1  ;;  %v13533_v1 = vcombine.high %v7463_v28, %v7467_v46 }
 0x472   : > { %10416 = vmatprep.subr.bf16.mxu1 %v13453_v24  ;;  %v7459_v24 = vld [vmem:[#allocation8 + $0xd60] sm:$0xff] }
 0x473   : > { %10460 = vmatpush1.bf16.msra.mxu0 %v13580_v0  ;;  %v13653_v0 = vcombine.high %v7583_v27, %v7587_v10  ;;  %v13525_v30 = vcombine.high %v7455_v47, %v7459_v24  ;;  %v13524_v22 = vcombine.low %v7455_v47, %v7459_v24  ;;  %v7683_v27 = vld [vmem:[#allocation8 + $0x1b60] sm:$0xff] }
 0x474   : > { %10461 = vmatprep.subr.bf16.mxu0 %v13573_v41  ;;  %v7579_v41 = vld [vmem:[#allocation8 + $0x14e0] sm:$0xff] }
 0x475   : > { %10417 = vmatpush1.bf16.msra.mxu1 %v13452_v42  ;;  %v6883_v42 = vpop.f32.mrf.mxu0  ;;  %v13645_v35 = vcombine.high %v7575_v63, %v7579_v41 }
 0x476   : > { %10418 = vmatprep.subr.bf16.mxu1 %v13445_v23  ;;  %v7447_v23 = vld [vmem:[#allocation8 + $0xca0] sm:$0xff] }
 0x477   : > { %10462 = vmatpush1.bf16.msra.mxu0 %v13572_v7  ;;  %v7451_v7 = vld [vmem:[#allocation8 + $0xce0] sm:$0xff]  ;;  %v6885_v50 = vpop.f32.mrf.mxu0 }
 0x478   : > { %10463 = vmatprep.subr.bf16.mxu0 %v13693_v39  ;;  %v7567_v39 = vld [vmem:[#allocation8 + $0x1420] sm:$0xff] }
 0x479   : > { %10419 = vmatpush1.bf16.msra.mxu1 %v13444_v55  ;;  %v7571_v55 = vld [vmem:[#allocation8 + $0x1460] sm:$0xff]  ;;  %v6887_v14 = vpop.f32.mrf.mxu0 }
 0x47a   : > { %10420 = vmatprep.subr.bf16.mxu1 %v13565_v18  ;;  %v13517_v18 = vcombine.high %v7447_v23, %v7451_v7 }
 0x47b   : > { %10464 = vmatpush2.bf16.msra.mxu0 %v13692_v36  ;;  %v13644_v36 = vcombine.low %v7575_v63, %v7579_v41  ;;  %v6967_v49 = vpop.f32.mrf.mxu0 }
 0x47c   : > { %10465 = vmatprep.subr.bf16.mxu0 %v13685_v9  ;;  %v13637_v9 = vcombine.high %v7567_v39, %v7571_v55 }
 0x47d   : > { %10421 = vmatpush2.bf16.msra.mxu1 %v13564_v34  ;;  %v13516_v34 = vcombine.low %v7447_v23, %v7451_v7  ;;  %v7675_v23 = vld [vmem:[#allocation8 + $0x1ae0] sm:$0xff] }
 0x47e   : > { %10422 = vmatprep.subr.bf16.mxu1 %v13557_v4  ;;  %v15889_v4 = vld [vmem:[#allocation10] sm:$0xff] }
 0x47f   : > { %10466 = vmatpush2.bf16.msra.mxu0 %v13684_v62  ;;  %v16366_v62 = vld [vmem:[#allocation34_spill] sm:$0xff]  ;;  %v3926_v33 = vrot.slane %v15889_v4, %v16367_v16 }
 0x480   : > { %10467 = vmatprep.subr.bf16.mxu0 %v13677_v29  ;;  %v3922_v57 = vrot.slane %v15889_v4, %v16366_v62  ;;  %v6926_v29 = vpop.f32.mrf.mxu1 }
 0x481   : > { %10423 = vmatpush2.bf16.msra.mxu1 %v13556_v61  ;;  %v13509_v61 = vcombine.high %v7439_v58, %v7443_v32  ;;  %v6884_v46 = vadd.f32 %v6883_v42, %v3926_v33  ;;  %v6888_v42 = vadd.f32 %v6887_v14, %v3926_v33  ;;  %v7667_v14 = vld [vmem:[#allocation8 + $0x1a60] sm:$0xff] }
 0x482   : > { %10424 = vmatprep.subr.bf16.mxu1 %v13549_v11  ;;  %v13636_v11 = vcombine.low %v7567_v39, %v7571_v55  ;;  %v6886_v41 = vadd.f32 %v6885_v50, %v3922_v57 }
 0x483   : > { %10468 = vmatpush2.bf16.msra.mxu0 %v13676_v3  ;;  %v7687_v3 = vld [vmem:[#allocation8 + $0x1ba0] sm:$0xff]  ;;  %v6927_v47 = vadd.f32 %v6926_v29, %v6884_v46 }
 0x484   : > { %10469 = vmatprep.subr.bf16.mxu0 %v13669_v12  ;;  %v13375_v12 = vcombine.high %v7304_v44, %v7308_v20  ;;  %v13757_v28 = vcombine.high %v7687_v3, %v7691_v38  ;;  %v13756_v24 = vcombine.low %v7687_v3, %v7691_v38  ;;  %v7655_v46 = vld [vmem:[#allocation8 + $0x19a0] sm:$0xff] }
 0x485   : > { %10425 = vmatpush2.bf16.msra.mxu1 %v13548_v56  ;;  %v13508_v56 = vcombine.low %v7439_v58, %v7443_v32  ;;  %v7284_v58 = vld [vmem:[#allocation8 + $0x268] sm:$0xff] }
 0x486   : > { %10426 = vmatprep.subr.bf16.mxu1 %v13541_v31  ;;  %v6882_v31 = vadd.f32 %v6881_v13, %v3922_v57  ;;  %v7663_v57 = vld [vmem:[#allocation8 + $0x1a20] sm:$0xff] }
 0x487   : > { %10470 = vmatpush2.bf16.msra.mxu0 %v13668_v59  ;;  %v6928_v59 = vpop.f32.mrf.mxu1 }
 0x488   : > { %10471 = vmatprep.subr.bf16.mxu0 %v13661_v26  ;;  %v13374_v26 = vcombine.low %v7304_v44, %v7308_v20  ;;  %v6925_v10 = vadd.f32 %v6924_v54, %v6882_v31  ;;  %v6929_v54 = vadd.f32 %v6928_v59, %v6886_v41  ;;  %v7256_v41 = vld [vmem:[#allocation8 + $0xa8] sm:$0xff] }
 0x489   : > { %10427 = vmatpush2.bf16.msra.mxu1 %v13540_v51  ;;  %v7679_v51 = vld [vmem:[#allocation8 + $0x1b20] sm:$0xff]  ;;  %v6930_v63 = vpop.f32.mrf.mxu1 }
 0x48a   : > { %10428 = vmatprep.subr.bf16.mxu1 %v13533_v1  ;;  %v6969_v1 = vpop.f32.mrf.mxu0  ;;  %v13749_v13 = vcombine.high %v7679_v51, %v7683_v27  ;;  %v13748_v39 = vcombine.low %v7679_v51, %v7683_v27 }
 0x48b   : > { %10472 = vmatpush2.bf16.msra.mxu0 %v13660_v45  ;;  %v13367_v45 = vcombine.high %v7296_v21, %v7300_v48  ;;  %v6970_v50 = vadd.f32 %v6969_v1, %v6927_v47  ;;  %v7264_v1 = vld [vmem:[#allocation8 + $0x128] sm:$0xff] }
 0x48c   : > { %10473 = vmatprep.subr.bf16.mxu0 %v13653_v0  ;;  %v7288_v0 = vld [vmem:[#allocation8 + $0x2a8] sm:$0xff]  ;;  %v6971_v7 = vpop.f32.mrf.mxu0 }
 0x48d   : > { %10429 = vmatpush2.bf16.msra.mxu1 %v13532_v52  ;;  %v7292_v52 = vld [vmem:[#allocation8 + $0x2e8] sm:$0xff]  ;;  %v6972_v3 = vadd.f32 %v6971_v7, %v6929_v54  ;;  %v7643_v7 = vld [vmem:[#allocation8 + $0x18e0] sm:$0xff] }
 0x48e   : > { %10430 = vmatprep.subr.bf16.mxu1 %v13525_v30  ;;  %v13366_v30 = vcombine.low %v7296_v21, %v7300_v48  ;;  %v13359_v55 = vcombine.high %v7288_v0, %v7292_v52  ;;  %v13358_v20 = vcombine.low %v7288_v0, %v7292_v52  ;;  %v6973_v29 = vpop.f32.mrf.mxu0  ;;  %v13733_v48 = vcombine.high %v7663_v57, %v7667_v14  ;;  %v7647_v0 = vld [vmem:[#allocation8 + $0x1920] sm:$0xff] }
 0x48f   : > { %10474 = vmatpush2.bf16.msra.mxu0 %v13652_v19  ;;  %v7671_v19 = vld [vmem:[#allocation8 + $0x1aa0] sm:$0xff] }
 0x490   : > { %10475 = vmatprep.subr.bf16.mxu0 %v13645_v35  ;;  %v6968_v35 = vadd.f32 %v6967_v49, %v6925_v10  ;;  %v13740_v49 = vcombine.low %v7671_v19, %v7675_v23  ;;  %v13732_v10 = vcombine.low %v7663_v57, %v7667_v14  ;;  %v7651_v52 = vld [vmem:[#allocation8 + $0x1960] sm:$0xff] }
 0x491   : > { %10431 = vmatpush2.bf16.msra.mxu1 %v13524_v22  ;;  %v7751_v57 = vld [vmem:[#allocation8 + $0x1fa0] sm:$0xff] }
 0x492   : > { %10432 = vmatprep.subr.bf16.mxu1 %v13517_v18  ;;  %v6931_v18 = vadd.f32 %v6930_v63, %v6888_v42  ;;  %v7260_v42 = vld [vmem:[#allocation8 + $0xe8] sm:$0xff]  ;;  %v7755_v14 = vld [vmem:[#allocation8 + $0x1fe0] sm:$0xff] }
 0x493   : > { %10476 = vmatpush2.bf16.msra.mxu0 %v13644_v36  ;;  %v7280_v36 = vld [vmem:[#allocation8 + $0x228] sm:$0xff] }
 0x494   : > { %10477 = vmatprep.subr.bf16.mxu0 %v13637_v9  ;;  %v13741_v9 = vcombine.high %v7671_v19, %v7675_v23  ;;  %v13351_v33 = vcombine.high %v7280_v36, %v7284_v58  ;;  %v6974_v38 = vadd.f32 %v6973_v29, %v6931_v18  ;;  %v7639_v23 = vld [vmem:[#allocation8 + $0x18a0] sm:$0xff]  ;;  %v13326_v18 = vcombine.low %v7256_v41, %v7260_v42 }
 0x495   : > { %10433 = vmatpush2.bf16.msra.mxu1 %v13516_v34  ;;  %v13709_v54 = vcombine.high %v7639_v23, %v7643_v7 }
 0x496   : > { %10434 = vmatprep.subr.bf16.mxu1 %v13509_v61 }
 0x497   : > { %10478 = vmatpush2.bf16.msra.mxu0 %v13636_v11 }
 0x498   : > { %10533 = vmatprep.subr.bf16.mxu0 %v13375_v12  ;;  %v7272_v12 = vld [vmem:[#allocation8 + $0x1a8] sm:$0xff] }
 0x499   : > { %10435 = vmatpush2.bf16.msra.mxu1 %v13508_v56  ;;  %v7276_v56 = vld [vmem:[#allocation8 + $0x1e8] sm:$0xff] }
 0x49a   : > { %10480 = vmatmul.mubr.bf16.vlgmr.msra.gmra.mxu0 %v16354_v53  ;;  %10490 = vmatprep.subr.bf16.mxu1 %v13757_v28  ;;  %v13350_v28 = vcombine.low %v7280_v36, %v7284_v58  ;;  %v13343_v51 = vcombine.high %v7272_v12, %v7276_v56  ;;  %v7635_v36 = vld [vmem:[#allocation8 + $0x1860] sm:$0xff] }
 0x49b   : > { %10534 = vmatpush1.bf16.msra.mxu0 %v13374_v26  ;;  %10565 = vmatprep.mubr.bf16.mxu0 %v16355_v8  ;;  %v7659_v26 = vld [vmem:[#allocation8 + $0x19e0] sm:$0xff] }
 0x49c   : > { %v7010_v22 = vpop.f32.mrf.mxu1  ;;  %10437 = vmatmul.mubr.bf16.vlgmr.msra.gmra.mxu1 %v16356_v40  ;;  %10535 = vmatprep.subr.bf16.mxu0 %v13367_v45  ;;  %v7268_v45 = vld [vmem:[#allocation8 + $0x168] sm:$0xff]  ;;  %v13725_v47 = vcombine.high %v7655_v46, %v7659_v26 }
 0x49d   : > { %10491 = vmatpush1.bf16.msra.mxu1 %v13756_v24  ;;  %10522 = vmatprep.mubr.bf16.mxu1 %v16357_v43  ;;  %v7011_v34 = vadd.f32 %v7010_v22, %v6968_v35  ;;  %v13342_v24 = vcombine.low %v7272_v12, %v7276_v56  ;;  %v13335_v63 = vcombine.high %v7264_v1, %v7268_v45  ;;  %v7747_v12 = vld [vmem:[#allocation8 + $0x1f60] sm:$0xff] }
 0x49e   : > { %v7012_v32 = vpop.f32.mrf.mxu1  ;;  %10492 = vmatprep.subr.bf16.mxu1 %v13749_v13  ;;  %v13724_v13 = vcombine.low %v7655_v46, %v7659_v26  ;;  %v13334_v19 = vcombine.low %v7264_v1, %v7268_v45  ;;  %v13327_v35 = vcombine.high %v7256_v41, %v7260_v42  ;;  %v13716_v22 = vcombine.low %v7647_v0, %v7651_v52  ;;  %v7735_v46 = vld [vmem:[#allocation8 + $0x1ea0] sm:$0xff]  ;;  %v7348_v1 = vld [vmem:[#allocation8 + $0x668] sm:$0xff] }
 0x49f   : > { %v7013_v44 = vadd.f32 %v7012_v32, %v6970_v50  ;;  %10536 = vmatpush1.bf16.msra.mxu0 %v13366_v30  ;;  %v13717_v30 = vcombine.high %v7647_v0, %v7651_v52  ;;  %v7631_v50 = vld [vmem:[#allocation8 + $0x1820] sm:$0xff]  ;;  %v13708_v32 = vcombine.low %v7639_v23, %v7643_v7  ;;  %v7340_v41 = vld [vmem:[#allocation8 + $0x5e8] sm:$0xff] }
 0x4a0   : > { %v7014_v61 = vpop.f32.mrf.mxu1  ;;  %10537 = vmatprep.subr.bf16.mxu0 %v13359_v55  ;;  %v7252_v55 = vld [vmem:[#allocation8 + $0x68] sm:$0xff]  ;;  %v7739_v26 = vld [vmem:[#allocation8 + $0x1ee0] sm:$0xff] }
 0x4a1   : > { %v13892_v11 = vpack.c.bf16 %v7013_v44, %v7011_v34  ;;  %10493 = vmatpush1.bf16.msra.mxu1 %v13748_v39  ;;  %v7015_v31 = vadd.f32 %v7014_v61, %v6972_v3  ;;  %v7248_v39 = vld [vmem:[#allocation8 + $0x28] sm:$0xff]  ;;  %v13701_v44 = vcombine.high %v7631_v50, %v7635_v36  ;;  %v13700_v61 = vcombine.low %v7631_v50, %v7635_v36  ;;  %v7731_v0 = vld [vmem:[#allocation8 + $0x1e60] sm:$0xff] }
 0x4a2   : > { %v7016_v21 = vpop.f32.mrf.mxu1  ;;  %10494 = vmatprep.subr.bf16.mxu1 %v13741_v9  ;;  %v13319_v58 = vcombine.high %v7248_v39, %v7252_v55  ;;  %v7368_v9 = vld [vmem:[#allocation8 + $0x7a8] sm:$0xff]  ;;  %v13821_v3 = vcombine.high %v7751_v57, %v7755_v14  ;;  %v13805_v45 = vcombine.high %v7735_v46, %v7739_v26  ;;  %v7723_v23 = vld [vmem:[#allocation8 + $0x1de0] sm:$0xff] }
 0x4a3   : > { %7241 = vst [vmem:[%s15867_s25 + $0x10] sm:$0xff] %v13892_v11  ;;  %v7017_v59 = vadd.f32 %v7016_v21, %v6974_v38  ;;  %10538 = vmatpush1.bf16.msra.mxu0 %v13358_v20  ;;  %v7372_v34 = vld [vmem:[#allocation8 + $0x7e8] sm:$0xff]  ;;  %v13318_v20 = vcombine.low %v7248_v39, %v7252_v55  ;;  %v13820_v21 = vcombine.low %v7751_v57, %v7755_v14  ;;  %v7715_v50 = vld [vmem:[#allocation8 + $0x1d60] sm:$0xff] }
 0x4a4   : > { %10539 = vmatprep.subr.bf16.mxu0 %v13351_v33  ;;  %v13439_v29 = vcombine.high %v7368_v9, %v7372_v34  ;;  %v7360_v33 = vld [vmem:[#allocation8 + $0x728] sm:$0xff]  ;;  %v13438_v38 = vcombine.low %v7368_v9, %v7372_v34  ;;  %v7707_v57 = vld [vmem:[#allocation8 + $0x1ce0] sm:$0xff] }
 0x4a5   : > { %v13896_v27 = vpack.c.bf16 %v7017_v59, %v7015_v31  ;;  %10495 = vmatpush1.bf16.msra.mxu1 %v13740_v49  ;;  %v7364_v11 = vld [vmem:[#allocation8 + $0x768] sm:$0xff]  ;;  %v7743_v49 = vld [vmem:[#allocation8 + $0x1f20] sm:$0xff] }
 0x4a6   : > { %10496 = vmatprep.subr.bf16.mxu1 %v13733_v48  ;;  %v13431_v56 = vcombine.high %v7360_v33, %v7364_v11  ;;  %v7352_v48 = vld [vmem:[#allocation8 + $0x6a8] sm:$0xff]  ;;  %v13813_v59 = vcombine.high %v7743_v49, %v7747_v12 }
 0x4a7   : > { %7245 = vst [vmem:[%s15867_s25 + $0x30] sm:$0xff] %v13896_v27  ;;  %10540 = vmatpush1.bf16.msra.mxu0 %v13350_v28  ;;  %v7356_v31 = vld [vmem:[#allocation8 + $0x6e8] sm:$0xff]  ;;  %v13430_v28 = vcombine.low %v7360_v33, %v7364_v11  ;;  %v13812_v27 = vcombine.low %v7743_v49, %v7747_v12  ;;  %v7699_v49 = vld [vmem:[#allocation8 + $0x1c60] sm:$0xff] }
 0x4a8   : > { %10541 = vmatprep.subr.bf16.mxu0 %v13343_v51  ;;  %v13423_v51 = vcombine.high %v7352_v48, %v7356_v31  ;;  %v7332_v39 = vld [vmem:[#allocation8 + $0x568] sm:$0xff] }
 0x4a9   : > { %10497 = vmatpush1.bf16.msra.mxu1 %v13732_v10  ;;  %v7344_v10 = vld [vmem:[#allocation8 + $0x628] sm:$0xff] }
 0x4aa   : > { %10498 = vmatprep.subr.bf16.mxu1 %v13725_v47  ;;  %v13422_v47 = vcombine.low %v7352_v48, %v7356_v31  ;;  %v13415_v52 = vcombine.high %v7344_v10, %v7348_v1  ;;  %v7324_v9 = vld [vmem:[#allocation8 + $0x4e8] sm:$0xff] }
 0x4ab   : > { %10542 = vmatpush1.bf16.msra.mxu0 %v13342_v24  ;;  %v7727_v24 = vld [vmem:[#allocation8 + $0x1e20] sm:$0xff]  ;;  %v7316_v33 = vld [vmem:[#allocation8 + $0x468] sm:$0xff] }
 0x4ac   : > { %10543 = vmatprep.subr.bf16.mxu0 %v13335_v63  ;;  %v13804_v63 = vcombine.low %v7735_v46, %v7739_v26  ;;  %v13797_v42 = vcombine.high %v7727_v24, %v7731_v0  ;;  %v7564_v48 = vld [vmem:[#allocation8 + $0x13e8] sm:$0xff] }
 0x4ad   : > { %10499 = vmatpush1.bf16.msra.mxu1 %v13724_v13  ;;  %v7336_v13 = vld [vmem:[#allocation8 + $0x5a8] sm:$0xff] }
 0x4ae   : > { %10500 = vmatprep.subr.bf16.mxu1 %v13717_v30  ;;  %v13414_v30 = vcombine.low %v7344_v10, %v7348_v1  ;;  %v13407_v7 = vcombine.high %v7336_v13, %v7340_v41  ;;  %v7436_v46 = vld [vmem:[#allocation8 + $0xbe8] sm:$0xff] }
 0x4af   : > { %10544 = vmatpush1.bf16.msra.mxu0 %v13334_v19  ;;  %v7719_v19 = vld [vmem:[#allocation8 + $0x1da0] sm:$0xff]  ;;  %v7556_v10 = vld [vmem:[#allocation8 + $0x1368] sm:$0xff] }
 0x4b0   : > { %10545 = vmatprep.subr.bf16.mxu0 %v13327_v35  ;;  %v13796_v35 = vcombine.low %v7727_v24, %v7731_v0  ;;  %v13789_v55 = vcombine.high %v7719_v19, %v7723_v23  ;;  %v7428_v24 = vld [vmem:[#allocation8 + $0xb68] sm:$0xff] }
 0x4b1   : > { %10501 = vmatpush1.bf16.msra.mxu1 %v13716_v22  ;;  %v7328_v22 = vld [vmem:[#allocation8 + $0x528] sm:$0xff] }
 0x4b2   : > { %10502 = vmatprep.subr.bf16.mxu1 %v13709_v54  ;;  %v13406_v54 = vcombine.low %v7336_v13, %v7340_v41  ;;  %v13399_v36 = vcombine.high %v7328_v22, %v7332_v39  ;;  %v7548_v13 = vld [vmem:[#allocation8 + $0x12e8] sm:$0xff] }
 0x4b3   : > { %10546 = vmatpush1.bf16.msra.mxu0 %v13326_v18  ;;  %v7711_v18 = vld [vmem:[#allocation8 + $0x1d20] sm:$0xff] }
 0x4b4   : > { %10547 = vmatprep.subr.bf16.mxu0 %v13319_v58  ;;  %v13788_v58 = vcombine.low %v7719_v19, %v7723_v23  ;;  %v13781_v34 = vcombine.high %v7711_v18, %v7715_v50  ;;  %v7420_v19 = vld [vmem:[#allocation8 + $0xae8] sm:$0xff] }
 0x4b5   : > { %10503 = vmatpush1.bf16.msra.mxu1 %v13708_v32  ;;  %v7320_v32 = vld [vmem:[#allocation8 + $0x4a8] sm:$0xff] }
 0x4b6   : > { %10504 = vmatprep.subr.bf16.mxu1 %v13701_v44  ;;  %v13398_v44 = vcombine.low %v7328_v22, %v7332_v39  ;;  %v13391_v14 = vcombine.high %v7320_v32, %v7324_v9  ;;  %v7540_v22 = vld [vmem:[#allocation8 + $0x1268] sm:$0xff] }
 0x4b7   : > { %10548 = vmatpush1.bf16.msra.mxu0 %v13318_v20  ;;  %v7703_v20 = vld [vmem:[#allocation8 + $0x1ca0] sm:$0xff] }
 0x4b8   : > { %10549 = vmatprep.subr.bf16.mxu0 %v13439_v29  ;;  %v13780_v29 = vcombine.low %v7711_v18, %v7715_v50  ;;  %v13773_v11 = vcombine.high %v7703_v20, %v7707_v57  ;;  %v7412_v18 = vld [vmem:[#allocation8 + $0xa68] sm:$0xff] }
 0x4b9   : > { %10505 = vmatpush1.bf16.msra.mxu1 %v13700_v61  ;;  %v7312_v61 = vld [vmem:[#allocation8 + $0x428] sm:$0xff] }
 0x4ba   : > { %10506 = vmatprep.subr.bf16.mxu1 %v13821_v3  ;;  %v13390_v3 = vcombine.low %v7320_v32, %v7324_v9  ;;  %v13383_v12 = vcombine.high %v7312_v61, %v7316_v33  ;;  %v7532_v32 = vld [vmem:[#allocation8 + $0x11e8] sm:$0xff] }
 0x4bb   : > { %10550 = vmatpush2.bf16.msra.mxu0 %v13438_v38  ;;  %v7695_v38 = vld [vmem:[#allocation8 + $0x1c20] sm:$0xff] }
 0x4bc   : > { %10551 = vmatprep.subr.bf16.mxu0 %v13431_v56  ;;  %v13772_v56 = vcombine.low %v7703_v20, %v7707_v57  ;;  %v13765_v31 = vcombine.high %v7695_v38, %v7699_v49  ;;  %v7404_v20 = vld [vmem:[#allocation8 + $0x9e8] sm:$0xff] }
 0x4bd   : > { %10507 = vmatpush2.bf16.msra.mxu1 %v13820_v21  ;;  %v7560_v21 = vld [vmem:[#allocation8 + $0x13a8] sm:$0xff] }
 0x4be   : > { %10508 = vmatprep.subr.bf16.mxu1 %v13813_v59  ;;  %v13382_v59 = vcombine.low %v7312_v61, %v7316_v33  ;;  %v13631_v26 = vcombine.high %v7560_v21, %v7564_v48  ;;  %v7524_v61 = vld [vmem:[#allocation8 + $0x1168] sm:$0xff] }
 0x4bf   : > { %10552 = vmatpush2.bf16.msra.mxu0 %v13430_v28  ;;  %v7432_v28 = vld [vmem:[#allocation8 + $0xba8] sm:$0xff] }
 0x4c0   : > { %10553 = vmatprep.subr.bf16.mxu0 %v13423_v51  ;;  %v13764_v51 = vcombine.low %v7695_v38, %v7699_v49  ;;  %v13503_v1 = vcombine.high %v7432_v28, %v7436_v46  ;;  %v7396_v38 = vld [vmem:[#allocation8 + $0x968] sm:$0xff] }
 0x4c1   : > { %10509 = vmatpush2.bf16.msra.mxu1 %v13812_v27  ;;  %v7552_v27 = vld [vmem:[#allocation8 + $0x1328] sm:$0xff] }
 0x4c2   : > { %10510 = vmatprep.subr.bf16.mxu1 %v13805_v45  ;;  %v13630_v45 = vcombine.low %v7560_v21, %v7564_v48  ;;  %v13623_v0 = vcombine.high %v7552_v27, %v7556_v10  ;;  %v7516_v21 = vld [vmem:[#allocation8 + $0x10e8] sm:$0xff] }
 0x4c3   : > { %10554 = vmatpush2.bf16.msra.mxu0 %v13422_v47  ;;  %v7424_v47 = vld [vmem:[#allocation8 + $0xb28] sm:$0xff] }
 0x4c4   : > { %10555 = vmatprep.subr.bf16.mxu0 %v13415_v52  ;;  %v13502_v52 = vcombine.low %v7432_v28, %v7436_v46  ;;  %v13495_v41 = vcombine.high %v7424_v47, %v7428_v24  ;;  %v7388_v28 = vld [vmem:[#allocation8 + $0x8e8] sm:$0xff] }
 0x4c5   : > { %10511 = vmatpush2.bf16.msra.mxu1 %v13804_v63  ;;  %v7544_v63 = vld [vmem:[#allocation8 + $0x12a8] sm:$0xff] }
 0x4c6   : > { %10512 = vmatprep.subr.bf16.mxu1 %v13797_v42  ;;  %v13622_v42 = vcombine.low %v7552_v27, %v7556_v10  ;;  %v13615_v23 = vcombine.high %v7544_v63, %v7548_v13  ;;  %v7508_v27 = vld [vmem:[#allocation8 + $0x1068] sm:$0xff] }
 0x4c7   : > { %10556 = vmatpush2.bf16.msra.mxu0 %v13414_v30  ;;  %v7416_v30 = vld [vmem:[#allocation8 + $0xaa8] sm:$0xff] }
 0x4c8   : > { %10557 = vmatprep.subr.bf16.mxu0 %v13407_v7  ;;  %v13494_v7 = vcombine.low %v7424_v47, %v7428_v24  ;;  %v13487_v39 = vcombine.high %v7416_v30, %v7420_v19  ;;  %v7380_v47 = vld [vmem:[#allocation8 + $0x868] sm:$0xff] }
 0x4c9   : > { %10513 = vmatpush2.bf16.msra.mxu1 %v13796_v35  ;;  %v7536_v35 = vld [vmem:[#allocation8 + $0x1228] sm:$0xff] }
 0x4ca   : > { %10514 = vmatprep.subr.bf16.mxu1 %v13789_v55  ;;  %v13614_v55 = vcombine.low %v7544_v63, %v7548_v13  ;;  %v13607_v50 = vcombine.high %v7536_v35, %v7540_v22  ;;  %v7628_v63 = vld [vmem:[#allocation8 + $0x17e8] sm:$0xff] }
 0x4cb   : > { %10558 = vmatpush2.bf16.msra.mxu0 %v13406_v54  ;;  %v7408_v54 = vld [vmem:[#allocation8 + $0xa28] sm:$0xff] }
 0x4cc   : > { %10559 = vmatprep.subr.bf16.mxu0 %v13399_v36  ;;  %v13486_v36 = vcombine.low %v7416_v30, %v7420_v19  ;;  %v13479_v9 = vcombine.high %v7408_v54, %v7412_v18  ;;  %v7500_v30 = vld [vmem:[#allocation8 + $0xfe8] sm:$0xff] }
 0x4cd   : > { %10515 = vmatpush2.bf16.msra.mxu1 %v13788_v58  ;;  %v7528_v58 = vld [vmem:[#allocation8 + $0x11a8] sm:$0xff] }
 0x4ce   : > { %10516 = vmatprep.subr.bf16.mxu1 %v13781_v34  ;;  %v13606_v34 = vcombine.low %v7536_v35, %v7540_v22  ;;  %v13599_v57 = vcombine.high %v7528_v58, %v7532_v32  ;;  %v7620_v35 = vld [vmem:[#allocation8 + $0x1768] sm:$0xff] }
 0x4cf   : > { %10560 = vmatpush2.bf16.msra.mxu0 %v13398_v44  ;;  %v7400_v44 = vld [vmem:[#allocation8 + $0x9a8] sm:$0xff] }
 0x4d0   : > { %10561 = vmatprep.subr.bf16.mxu0 %v13391_v14  ;;  %v13478_v14 = vcombine.low %v7408_v54, %v7412_v18  ;;  %v13471_v33 = vcombine.high %v7400_v44, %v7404_v20  ;;  %v7492_v54 = vld [vmem:[#allocation8 + $0xf68] sm:$0xff] }
 0x4d1   : > { %10517 = vmatpush2.bf16.msra.mxu1 %v13780_v29  ;;  %v7520_v29 = vld [vmem:[#allocation8 + $0x1128] sm:$0xff] }
 0x4d2   : > { %10518 = vmatprep.subr.bf16.mxu1 %v13773_v11  ;;  %v13598_v11 = vcombine.low %v7528_v58, %v7532_v32  ;;  %v13591_v49 = vcombine.high %v7520_v29, %v7524_v61  ;;  %v7612_v58 = vld [vmem:[#allocation8 + $0x16e8] sm:$0xff] }
 0x4d3   : > { %10562 = vmatpush2.bf16.msra.mxu0 %v13390_v3  ;;  %v7392_v3 = vld [vmem:[#allocation8 + $0x928] sm:$0xff] }
 0x4d4   : > { %10563 = vmatprep.subr.bf16.mxu0 %v13383_v12  ;;  %v13470_v12 = vcombine.low %v7400_v44, %v7404_v20  ;;  %v13463_v48 = vcombine.high %v7392_v3, %v7396_v38  ;;  %v7484_v44 = vld [vmem:[#allocation8 + $0xee8] sm:$0xff] }
 0x4d5   : > { %10519 = vmatpush2.bf16.msra.mxu1 %v13772_v56  ;;  %v7512_v56 = vld [vmem:[#allocation8 + $0x10a8] sm:$0xff] }
 0x4d6   : > { %10520 = vmatprep.subr.bf16.mxu1 %v13765_v31  ;;  %v13590_v31 = vcombine.low %v7520_v29, %v7524_v61  ;;  %v13583_v46 = vcombine.high %v7512_v56, %v7516_v21  ;;  %v7604_v29 = vld [vmem:[#allocation8 + $0x1668] sm:$0xff] }
 0x4d7   : > { %10564 = vmatpush2.bf16.msra.mxu0 %v13382_v59  ;;  %v7384_v59 = vld [vmem:[#allocation8 + $0x8a8] sm:$0xff] }
 0x4d8   : > { %10619 = vmatprep.subr.bf16.mxu0 %v13631_v26  ;;  %v13462_v26 = vcombine.low %v7392_v3, %v7396_v38  ;;  %v13455_v10 = vcombine.high %v7384_v59, %v7388_v28  ;;  %v7476_v3 = vld [vmem:[#allocation8 + $0xe68] sm:$0xff] }
 0x4d9   : > { %10521 = vmatpush2.bf16.msra.mxu1 %v13764_v51  ;;  %v7504_v51 = vld [vmem:[#allocation8 + $0x1028] sm:$0xff] }
 0x4da   : > { %10566 = vmatmul.mubr.bf16.vlgmr.msra.gmra.mxu0 %v16358_v17  ;;  %10576 = vmatprep.subr.bf16.mxu1 %v13503_v1  ;;  %v13582_v1 = vcombine.low %v7512_v56, %v7516_v21  ;;  %v13575_v24 = vcombine.high %v7504_v51, %v7508_v27  ;;  %v7596_v56 = vld [vmem:[#allocation8 + $0x15e8] sm:$0xff] }
 0x4db   : > { %10620 = vmatpush1.bf16.msra.mxu0 %v13630_v45  ;;  %10651 = vmatprep.mubr.bf16.mxu0 %v16359_v25  ;;  %v7376_v45 = vld [vmem:[#allocation8 + $0x828] sm:$0xff] }
 0x4dc   : > { %10523 = vmatmul.mubr.bf16.vlgmr.msra.gmra.mxu1 %v16360_v15  ;;  %10621 = vmatprep.subr.bf16.mxu0 %v13623_v0  ;;  %v13454_v0 = vcombine.low %v7384_v59, %v7388_v28  ;;  %v13447_v13 = vcombine.high %v7376_v45, %v7380_v47  ;;  %v7468_v59 = vld [vmem:[#allocation8 + $0xde8] sm:$0xff] }
 0x4dd   : > { %10577 = vmatpush1.bf16.msra.mxu1 %v13502_v52  ;;  %10608 = vmatprep.mubr.bf16.mxu1 %v16361_v2  ;;  %v7624_v52 = vld [vmem:[#allocation8 + $0x17a8] sm:$0xff] }
 0x4de   : > { %10578 = vmatprep.subr.bf16.mxu1 %v13495_v41  ;;  %v13574_v41 = vcombine.low %v7504_v51, %v7508_v27  ;;  %v13695_v19 = vcombine.high %v7624_v52, %v7628_v63  ;;  %v7588_v51 = vld [vmem:[#allocation8 + $0x1568] sm:$0xff]  ;;  %v7053_v27 = vpop.f32.mrf.mxu0 }
 0x4df   : > { %10622 = vmatpush1.bf16.msra.mxu0 %v13622_v42  ;;  %v7496_v42 = vld [vmem:[#allocation8 + $0xfa8] sm:$0xff] }
 0x4e0   : > { %10623 = vmatprep.subr.bf16.mxu0 %v13615_v23  ;;  %v13446_v23 = vcombine.low %v7376_v45, %v7380_v47  ;;  %v13567_v22 = vcombine.high %v7496_v42, %v7500_v30  ;;  %v7456_v45 = vld [vmem:[#allocation8 + $0xd28] sm:$0xff] }
 0x4e1   : > { %10579 = vmatpush1.bf16.msra.mxu1 %v13494_v7  ;;  %v7616_v7 = vld [vmem:[#allocation8 + $0x1728] sm:$0xff] }
 0x4e2   : > { %10580 = vmatprep.subr.bf16.mxu1 %v13487_v39  ;;  %v13694_v39 = vcombine.low %v7624_v52, %v7628_v63  ;;  %v13687_v18 = vcombine.high %v7616_v7, %v7620_v35  ;;  %v7460_v47 = vld [vmem:[#allocation8 + $0xd68] sm:$0xff] }
 0x4e3   : > { %10624 = vmatpush1.bf16.msra.mxu0 %v13614_v55  ;;  %v7488_v55 = vld [vmem:[#allocation8 + $0xf28] sm:$0xff] }
 0x4e4   : > { %10625 = vmatprep.subr.bf16.mxu0 %v13607_v50  ;;  %v13566_v50 = vcombine.low %v7496_v42, %v7500_v30  ;;  %v13559_v32 = vcombine.high %v7488_v55, %v7492_v54  ;;  %v7576_v52 = vld [vmem:[#allocation8 + $0x14a8] sm:$0xff] }
 0x4e5   : > { %10581 = vmatpush1.bf16.msra.mxu1 %v13486_v36  ;;  %v7608_v36 = vld [vmem:[#allocation8 + $0x16a8] sm:$0xff] }
 0x4e6   : > { %10582 = vmatprep.subr.bf16.mxu1 %v13479_v9  ;;  %v13686_v9 = vcombine.low %v7616_v7, %v7620_v35  ;;  %v13679_v20 = vcombine.high %v7608_v36, %v7612_v58  ;;  %v7580_v63 = vld [vmem:[#allocation8 + $0x14e8] sm:$0xff]  ;;  %v13526_v7 = vcombine.low %v7456_v45, %v7460_v47 }
 0x4e7   : > { %10626 = vmatpush1.bf16.msra.mxu0 %v13606_v34  ;;  %v7480_v34 = vld [vmem:[#allocation8 + $0xea8] sm:$0xff] }
 0x4e8   : > { %10627 = vmatprep.subr.bf16.mxu0 %v13599_v57  ;;  %v13558_v57 = vcombine.low %v7488_v55, %v7492_v54  ;;  %v13551_v61 = vcombine.high %v7480_v34, %v7484_v44  ;;  %v7448_v30 = vld [vmem:[#allocation8 + $0xca8] sm:$0xff]  ;;  %v7096_v55 = vpop.f32.mrf.mxu1 }
 0x4e9   : > { %10583 = vmatpush1.bf16.msra.mxu1 %v13478_v14  ;;  %v7600_v14 = vld [vmem:[#allocation8 + $0x1628] sm:$0xff] }
 0x4ea   : > { %10584 = vmatprep.subr.bf16.mxu1 %v13471_v33  ;;  %v13678_v33 = vcombine.low %v7608_v36, %v7612_v58  ;;  %v13671_v38 = vcombine.high %v7600_v14, %v7604_v29  ;;  %v7568_v35 = vld [vmem:[#allocation8 + $0x1428] sm:$0xff] }
 0x4eb   : > { %10628 = vmatpush1.bf16.msra.mxu0 %v13598_v11  ;;  %v7472_v11 = vld [vmem:[#allocation8 + $0xe28] sm:$0xff] }
 0x4ec   : > { %10629 = vmatprep.subr.bf16.mxu0 %v13591_v49  ;;  %v13550_v49 = vcombine.low %v7480_v34, %v7484_v44  ;;  %v13543_v21 = vcombine.high %v7472_v11, %v7476_v3  ;;  %v7444_v36 = vld [vmem:[#allocation8 + $0xc68] sm:$0xff]  ;;  %v7309_v34 = vld [vmem:[#allocation8 + $0x3f0] sm:$0xff]  ;;  %v16368_v44 = vld [vmem:[#allocation38_spill] sm:$0xff] }
 0x4ed   : > { %10585 = vmatpush1.bf16.msra.mxu1 %v13470_v12  ;;  %v7592_v12 = vld [vmem:[#allocation8 + $0x15a8] sm:$0xff] }
 0x4ee   : > { %10586 = vmatprep.subr.bf16.mxu1 %v13463_v48  ;;  %v13670_v48 = vcombine.low %v7600_v14, %v7604_v29  ;;  %v13663_v28 = vcombine.high %v7592_v12, %v7596_v56  ;;  %v7098_v14 = vpop.f32.mrf.mxu1 }
 0x4ef   : > { %10630 = vmatpush1.bf16.msra.mxu0 %v13590_v31  ;;  %v7464_v31 = vld [vmem:[#allocation8 + $0xda8] sm:$0xff] }
 0x4f0   : > { %10631 = vmatprep.subr.bf16.mxu0 %v13583_v46  ;;  %v13542_v46 = vcombine.low %v7472_v11, %v7476_v3  ;;  %v7688_v3 = vld [vmem:[#allocation8 + $0x1ba8] sm:$0xff] }
 0x4f1   : > { %10587 = vmatpush1.bf16.msra.mxu1 %v13462_v26  ;;  %v7584_v26 = vld [vmem:[#allocation8 + $0x1528] sm:$0xff] }
 0x4f2   : > { %10588 = vmatprep.subr.bf16.mxu1 %v13455_v10  ;;  %v13535_v10 = vcombine.high %v7464_v31, %v7468_v59  ;;  %v13654_v42 = vcombine.low %v7584_v26, %v7588_v51 }
 0x4f3   : > { %10632 = vmatpush1.bf16.msra.mxu0 %v13582_v1  ;;  %v13662_v1 = vcombine.low %v7592_v12, %v7596_v56 }
 0x4f4   : > { %10633 = vmatprep.subr.bf16.mxu0 %v13575_v24  ;;  %v13655_v24 = vcombine.high %v7584_v26, %v7588_v51  ;;  %v7680_v51 = vld [vmem:[#allocation8 + $0x1b28] sm:$0xff] }
 0x4f5   : > { %10589 = vmatpush1.bf16.msra.mxu1 %v13454_v0  ;;  %v13534_v0 = vcombine.low %v7464_v31, %v7468_v59  ;;  %v7100_v59 = vpop.f32.mrf.mxu1 }
 0x4f6   : > { %10590 = vmatprep.subr.bf16.mxu1 %v13447_v13  ;;  %v7055_v13 = vpop.f32.mrf.mxu0 }
 0x4f7   : > { %10634 = vmatpush1.bf16.msra.mxu0 %v13574_v41  ;;  %v13527_v41 = vcombine.high %v7456_v45, %v7460_v47 }
 0x4f8   : > { %10635 = vmatprep.subr.bf16.mxu0 %v13695_v19  ;;  %v7452_v19 = vld [vmem:[#allocation8 + $0xce8] sm:$0xff] }
 0x4f9   : > { %10591 = vmatpush1.bf16.msra.mxu1 %v13446_v23  ;;  %v13647_v23 = vcombine.high %v7576_v52, %v7580_v63  ;;  %v13519_v54 = vcombine.high %v7448_v30, %v7452_v19 }
 0x4fa   : > { %10592 = vmatprep.subr.bf16.mxu1 %v13567_v22  ;;  %v7572_v22 = vld [vmem:[#allocation8 + $0x1468] sm:$0xff] }
 0x4fb   : > { %10636 = vmatpush2.bf16.msra.mxu0 %v13694_v39  ;;  %v7057_v39 = vpop.f32.mrf.mxu0  ;;  %v13639_v58 = vcombine.high %v7568_v35, %v7572_v22  ;;  %v13638_v11 = vcombine.low %v7568_v35, %v7572_v22 }
 0x4fc   : > { %10637 = vmatprep.subr.bf16.mxu0 %v13687_v18  ;;  %v13646_v18 = vcombine.low %v7576_v52, %v7580_v63  ;;  %v7293_v52 = vld [vmem:[#allocation8 + $0x2f0] sm:$0xff]  ;;  %v7102_v63 = vpop.f32.mrf.mxu1 }
 0x4fd   : > { %10593 = vmatpush2.bf16.msra.mxu1 %v13566_v50  ;;  %v7440_v50 = vld [vmem:[#allocation8 + $0xc28] sm:$0xff] }
 0x4fe   : > { %10594 = vmatprep.subr.bf16.mxu1 %v13559_v32  ;;  %v13518_v32 = vcombine.low %v7448_v30, %v7452_v19  ;;  %v13511_v29 = vcombine.high %v7440_v50, %v7444_v36  ;;  %v13510_v56 = vcombine.low %v7440_v50, %v7444_v36  ;;  %v7672_v30 = vld [vmem:[#allocation8 + $0x1aa8] sm:$0xff]  ;;  %v7281_v50 = vld [vmem:[#allocation8 + $0x230] sm:$0xff] }
 0x4ff   : > { %10638 = vmatpush2.bf16.msra.mxu0 %v13686_v9  ;;  %v7305_v9 = vld [vmem:[#allocation8 + $0x3b0] sm:$0xff]  ;;  %v7676_v19 = vld [vmem:[#allocation8 + $0x1ae8] sm:$0xff] }
 0x500   : > { %10639 = vmatprep.subr.bf16.mxu0 %v13679_v20  ;;  %v3930_v20 = vrot.slane %v15889_v4, %v16368_v44  ;;  %v13377_v12 = vcombine.high %v7305_v9, %v7309_v34  ;;  %v13376_v26 = vcombine.low %v7305_v9, %v7309_v34  ;;  %v7285_v36 = vld [vmem:[#allocation8 + $0x270] sm:$0xff] }
 0x501   : > { %10595 = vmatpush2.bf16.msra.mxu1 %v13558_v57  ;;  %v7059_v57 = vpop.f32.mrf.mxu0 }
 0x502   : > { %10596 = vmatprep.subr.bf16.mxu1 %v13551_v61  ;;  %v16369_v61 = vld [vmem:[#allocation39_spill] sm:$0xff]  ;;  %v7054_v31 = vadd.f32 %v7053_v27, %v3930_v20 }
 0x503   : > { %10640 = vmatpush2.bf16.msra.mxu0 %v13678_v33  ;;  %v3934_v33 = vrot.slane %v15889_v4, %v16369_v61  ;;  %v7684_v4 = vld [vmem:[#allocation8 + $0x1b68] sm:$0xff] }
 0x504   : > { %10641 = vmatprep.subr.bf16.mxu0 %v13671_v38  ;;  %v7692_v38 = vld [vmem:[#allocation8 + $0x1be8] sm:$0xff]  ;;  %v13751_v27 = vcombine.high %v7680_v51, %v7684_v4  ;;  %v13750_v22 = vcombine.low %v7680_v51, %v7684_v4 }
 0x505   : > { %10597 = vmatpush2.bf16.msra.mxu1 %v13550_v49  ;;  %v7139_v49 = vpop.f32.mrf.mxu0  ;;  %v7660_v51 = vld [vmem:[#allocation8 + $0x19e8] sm:$0xff] }
 0x506   : > { %10598 = vmatprep.subr.bf16.mxu1 %v13543_v21  ;;  %v7297_v21 = vld [vmem:[#allocation8 + $0x330] sm:$0xff] }
 0x507   : > { %10642 = vmatpush2.bf16.msra.mxu0 %v13670_v48  ;;  %v7301_v48 = vld [vmem:[#allocation8 + $0x370] sm:$0xff] }
 0x508   : > { %10643 = vmatprep.subr.bf16.mxu0 %v13663_v28  ;;  %v13759_v28 = vcombine.high %v7688_v3, %v7692_v38  ;;  %v13369_v45 = vcombine.high %v7297_v21, %v7301_v48 }
 0x509   : > { %10599 = vmatpush2.bf16.msra.mxu1 %v13542_v46  ;;  %v7056_v46 = vadd.f32 %v7055_v13, %v3934_v33  ;;  %v7060_v13 = vadd.f32 %v7059_v57, %v3934_v33  ;;  %v7664_v57 = vld [vmem:[#allocation8 + $0x1a28] sm:$0xff] }
 0x50a   : > { %10600 = vmatprep.subr.bf16.mxu1 %v13535_v10  ;;  %v7097_v10 = vadd.f32 %v7096_v55, %v7054_v31 }
 0x50b   : > { %10644 = vmatpush2.bf16.msra.mxu0 %v13662_v1  ;;  %v7141_v1 = vpop.f32.mrf.mxu0  ;;  %v7099_v47 = vadd.f32 %v7098_v14, %v7056_v46  ;;  %v7668_v14 = vld [vmem:[#allocation8 + $0x1a68] sm:$0xff]  ;;  %v13352_v46 = vcombine.low %v7281_v50, %v7285_v36 }
 0x50c   : > { %10645 = vmatprep.subr.bf16.mxu0 %v13655_v24  ;;  %v13758_v24 = vcombine.low %v7688_v3, %v7692_v38  ;;  %v13735_v31 = vcombine.high %v7664_v57, %v7668_v14 }
 0x50d   : > { %10601 = vmatpush2.bf16.msra.mxu1 %v13534_v0  ;;  %v7289_v0 = vld [vmem:[#allocation8 + $0x2b0] sm:$0xff] }
 0x50e   : > { %10602 = vmatprep.subr.bf16.mxu1 %v13527_v41  ;;  %v7058_v41 = vadd.f32 %v7057_v39, %v3930_v20  ;;  %v13361_v55 = vcombine.high %v7289_v0, %v7293_v52  ;;  %v7142_v39 = vadd.f32 %v7141_v1, %v7099_v47  ;;  %v13360_v20 = vcombine.low %v7289_v0, %v7293_v52  ;;  %v7269_v47 = vld [vmem:[#allocation8 + $0x170] sm:$0xff]  ;;  %v7648_v52 = vld [vmem:[#allocation8 + $0x1928] sm:$0xff] }
 0x50f   : > { %10646 = vmatpush2.bf16.msra.mxu0 %v13654_v42  ;;  %v13368_v42 = vcombine.low %v7297_v21, %v7301_v48  ;;  %v7277_v21 = vld [vmem:[#allocation8 + $0x1f0] sm:$0xff]  ;;  %v13734_v1 = vcombine.low %v7664_v57, %v7668_v14  ;;  %v7752_v14 = vld [vmem:[#allocation8 + $0x1fa8] sm:$0xff] }
 0x510   : > { %10647 = vmatprep.subr.bf16.mxu0 %v13647_v23  ;;  %v7143_v23 = vpop.f32.mrf.mxu0 }
 0x511   : > { %10603 = vmatpush2.bf16.msra.mxu1 %v13526_v7  ;;  %v7140_v7 = vadd.f32 %v7139_v49, %v7097_v10 }
 0x512   : > { %10604 = vmatprep.subr.bf16.mxu1 %v13519_v54  ;;  %v7101_v54 = vadd.f32 %v7100_v59, %v7058_v41 }
 0x513   : > { %10648 = vmatpush2.bf16.msra.mxu0 %v13646_v18  ;;  %v7103_v18 = vadd.f32 %v7102_v63, %v7060_v13  ;;  %v7652_v63 = vld [vmem:[#allocation8 + $0x1968] sm:$0xff]  ;;  %v7257_v13 = vld [vmem:[#allocation8 + $0xb0] sm:$0xff] }
 0x514   : > { %10649 = vmatprep.subr.bf16.mxu0 %v13639_v58  ;;  %v7144_v38 = vadd.f32 %v7143_v23, %v7101_v54  ;;  %v7640_v23 = vld [vmem:[#allocation8 + $0x18a8] sm:$0xff]  ;;  %v7253_v54 = vld [vmem:[#allocation8 + $0x70] sm:$0xff] }
 0x515   : > { %10605 = vmatpush2.bf16.msra.mxu1 %v13518_v32  ;;  %v13743_v32 = vcombine.high %v7672_v30, %v7676_v19 }
 0x516   : > { %10606 = vmatprep.subr.bf16.mxu1 %v13511_v29  ;;  %v7145_v29 = vpop.f32.mrf.mxu0 }
 0x517   : > { %10650 = vmatpush2.bf16.msra.mxu0 %v13638_v11  ;;  %v13353_v11 = vcombine.high %v7281_v50, %v7285_v36  ;;  %v7146_v49 = vadd.f32 %v7145_v29, %v7103_v18  ;;  %v7632_v50 = vld [vmem:[#allocation8 + $0x1828] sm:$0xff] }
 0x518   : > { %10705 = vmatprep.subr.bf16.mxu0 %v13377_v12  ;;  %v13742_v12 = vcombine.low %v7672_v30, %v7676_v19  ;;  %v13719_v30 = vcombine.high %v7648_v52, %v7652_v63  ;;  %v7636_v36 = vld [vmem:[#allocation8 + $0x1868] sm:$0xff] }
 0x519   : > { %10607 = vmatpush2.bf16.msra.mxu1 %v13510_v56  ;;  %v7273_v56 = vld [vmem:[#allocation8 + $0x1b0] sm:$0xff]  ;;  %v7756_v29 = vld [vmem:[#allocation8 + $0x1fe8] sm:$0xff] }
 0x51a   : > { %10652 = vmatmul.mubr.bf16.vlgmr.msra.gmra.mxu0 %v16354_v53  ;;  %10662 = vmatprep.subr.bf16.mxu1 %v13759_v28  ;;  %v13345_v4 = vcombine.high %v7273_v56, %v7277_v21  ;;  %v13344_v0 = vcombine.low %v7273_v56, %v7277_v21  ;;  %v7744_v56 = vld [vmem:[#allocation8 + $0x1f28] sm:$0xff] }
 0x51b   : > { %10706 = vmatpush1.bf16.msra.mxu0 %v13376_v26  ;;  %10737 = vmatprep.mubr.bf16.mxu0 %v16355_v8  ;;  %v7656_v26 = vld [vmem:[#allocation8 + $0x19a8] sm:$0xff] }
 0x51c   : > { %v7182_v35 = vpop.f32.mrf.mxu1  ;;  %10609 = vmatmul.mubr.bf16.vlgmr.msra.gmra.mxu1 %v16356_v40  ;;  %10707 = vmatprep.subr.bf16.mxu0 %v13369_v45  ;;  %v7265_v45 = vld [vmem:[#allocation8 + $0x130] sm:$0xff]  ;;  %v13726_v41 = vcombine.low %v7656_v26, %v7660_v51  ;;  %v7748_v21 = vld [vmem:[#allocation8 + $0x1f68] sm:$0xff] }
 0x51d   : > { %10663 = vmatpush1.bf16.msra.mxu1 %v13758_v24  ;;  %10694 = vmatprep.mubr.bf16.mxu1 %v16357_v43  ;;  %v7183_v9 = vadd.f32 %v7182_v35, %v7140_v7  ;;  %v13727_v24 = vcombine.high %v7656_v26, %v7660_v51  ;;  %v13336_v19 = vcombine.low %v7265_v45, %v7269_v47  ;;  %v7644_v7 = vld [vmem:[#allocation8 + $0x18e8] sm:$0xff] }
 0x51e   : > { %v7184_v58 = vpop.f32.mrf.mxu1  ;;  %10664 = vmatprep.subr.bf16.mxu1 %v13751_v27  ;;  %v13337_v27 = vcombine.high %v7265_v45, %v7269_v47  ;;  %v13711_v18 = vcombine.high %v7640_v23, %v7644_v7  ;;  %v7736_v51 = vld [vmem:[#allocation8 + $0x1ea8] sm:$0xff]  ;;  %v7345_v45 = vld [vmem:[#allocation8 + $0x630] sm:$0xff] }
 0x51f   : > { %v7185_v34 = vadd.f32 %v7184_v58, %v7142_v39  ;;  %10708 = vmatpush1.bf16.msra.mxu0 %v13368_v42  ;;  %v7261_v42 = vld [vmem:[#allocation8 + $0xf0] sm:$0xff] }
 0x520   : > { %v7186_v33 = vpop.f32.mrf.mxu1  ;;  %10709 = vmatprep.subr.bf16.mxu0 %v13361_v55  ;;  %v13329_v35 = vcombine.high %v7257_v13, %v7261_v42  ;;  %v7249_v55 = vld [vmem:[#allocation8 + $0x30] sm:$0xff]  ;;  %v13328_v39 = vcombine.low %v7257_v13, %v7261_v42 }
 0x521   : > { %v13893_v3 = vpack.c.bf16 %v7185_v34, %v7183_v9  ;;  %10665 = vmatpush1.bf16.msra.mxu1 %v13750_v22  ;;  %v7187_v59 = vadd.f32 %v7186_v33, %v7144_v38  ;;  %v13718_v22 = vcombine.low %v7648_v52, %v7652_v63  ;;  %v13321_v58 = vcombine.high %v7249_v55, %v7253_v54  ;;  %v7369_v9 = vld [vmem:[#allocation8 + $0x7b0] sm:$0xff]  ;;  %v7728_v52 = vld [vmem:[#allocation8 + $0x1e28] sm:$0xff] }
 0x522   : > { %v7188_v48 = vpop.f32.mrf.mxu1  ;;  %10666 = vmatprep.subr.bf16.mxu1 %v13743_v32  ;;  %v13710_v32 = vcombine.low %v7640_v23, %v7644_v7  ;;  %v7373_v34 = vld [vmem:[#allocation8 + $0x7f0] sm:$0xff]  ;;  %v13320_v57 = vcombine.low %v7249_v55, %v7253_v54  ;;  %v7732_v63 = vld [vmem:[#allocation8 + $0x1e68] sm:$0xff] }
 0x523   : > { %7242 = vst [vmem:[%s15867_s25 + $0x18] sm:$0xff] %v13893_v3  ;;  %v7189_v28 = vadd.f32 %v7188_v48, %v7146_v49  ;;  %10710 = vmatpush1.bf16.msra.mxu0 %v13360_v20  ;;  %v13703_v20 = vcombine.high %v7632_v50, %v7636_v36  ;;  %v13441_v33 = vcombine.high %v7369_v9, %v7373_v34  ;;  %v7361_v3 = vld [vmem:[#allocation8 + $0x730] sm:$0xff]  ;;  %v7720_v23 = vld [vmem:[#allocation8 + $0x1da8] sm:$0xff] }
 0x524   : > { %10711 = vmatprep.subr.bf16.mxu0 %v13353_v11  ;;  %v13702_v11 = vcombine.low %v7632_v50, %v7636_v36  ;;  %v7365_v38 = vld [vmem:[#allocation8 + $0x770] sm:$0xff]  ;;  %v13823_v49 = vcombine.high %v7752_v14, %v7756_v29  ;;  %v7724_v7 = vld [vmem:[#allocation8 + $0x1de8] sm:$0xff] }
 0x525   : > { %v13897_v10 = vpack.c.bf16 %v7189_v28, %v7187_v59  ;;  %10667 = vmatpush1.bf16.msra.mxu1 %v13742_v12  ;;  %v13440_v12 = vcombine.low %v7369_v9, %v7373_v34  ;;  %v13433_v48 = vcombine.high %v7361_v3, %v7365_v38  ;;  %v7353_v59 = vld [vmem:[#allocation8 + $0x6b0] sm:$0xff]  ;;  %v13432_v26 = vcombine.low %v7361_v3, %v7365_v38  ;;  %v7712_v50 = vld [vmem:[#allocation8 + $0x1d28] sm:$0xff] }
 0x526   : > { %10668 = vmatprep.subr.bf16.mxu1 %v13735_v31  ;;  %v13822_v31 = vcombine.low %v7752_v14, %v7756_v29  ;;  %v7357_v28 = vld [vmem:[#allocation8 + $0x6f0] sm:$0xff]  ;;  %v7716_v36 = vld [vmem:[#allocation8 + $0x1d68] sm:$0xff] }
 0x527   : > { %7246 = vst [vmem:[%s15867_s25 + $0x38] sm:$0xff] %v13897_v10  ;;  %10712 = vmatpush1.bf16.msra.mxu0 %v13352_v46  ;;  %v13815_v46 = vcombine.high %v7744_v56, %v7748_v21  ;;  %v13425_v10 = vcombine.high %v7353_v59, %v7357_v28  ;;  %v7349_v47 = vld [vmem:[#allocation8 + $0x670] sm:$0xff]  ;;  %v7704_v14 = vld [vmem:[#allocation8 + $0x1ca8] sm:$0xff] }
 0x528   : > { %10713 = vmatprep.subr.bf16.mxu0 %v13345_v4  ;;  %v7740_v4 = vld [vmem:[#allocation8 + $0x1ee8] sm:$0xff]  ;;  %v7337_v13 = vld [vmem:[#allocation8 + $0x5b0] sm:$0xff] }
 0x529   : > { %10669 = vmatpush1.bf16.msra.mxu1 %v13734_v1  ;;  %v13814_v1 = vcombine.low %v7744_v56, %v7748_v21  ;;  %v7341_v42 = vld [vmem:[#allocation8 + $0x5f0] sm:$0xff]  ;;  %v7708_v29 = vld [vmem:[#allocation8 + $0x1ce8] sm:$0xff] }
 0x52a   : > { %10670 = vmatprep.subr.bf16.mxu1 %v13727_v24  ;;  %v13807_v24 = vcombine.high %v7736_v51, %v7740_v4  ;;  %v7329_v55 = vld [vmem:[#allocation8 + $0x530] sm:$0xff]  ;;  %v7696_v56 = vld [vmem:[#allocation8 + $0x1c28] sm:$0xff] }
 0x52b   : > { %10714 = vmatpush1.bf16.msra.mxu0 %v13344_v0  ;;  %v13424_v0 = vcombine.low %v7353_v59, %v7357_v28  ;;  %v7333_v54 = vld [vmem:[#allocation8 + $0x570] sm:$0xff]  ;;  %v7700_v21 = vld [vmem:[#allocation8 + $0x1c68] sm:$0xff] }
 0x52c   : > { %10715 = vmatprep.subr.bf16.mxu0 %v13337_v27  ;;  %v13417_v27 = vcombine.high %v7345_v45, %v7349_v47  ;;  %v7321_v9 = vld [vmem:[#allocation8 + $0x4b0] sm:$0xff] }
 0x52d   : > { %10671 = vmatpush1.bf16.msra.mxu1 %v13726_v41  ;;  %v13806_v41 = vcombine.low %v7736_v51, %v7740_v4  ;;  %v7325_v34 = vld [vmem:[#allocation8 + $0x4f0] sm:$0xff] }
 0x52e   : > { %10672 = vmatprep.subr.bf16.mxu1 %v13719_v30  ;;  %v13799_v30 = vcombine.high %v7728_v52, %v7732_v63  ;;  %v7313_v3 = vld [vmem:[#allocation8 + $0x430] sm:$0xff] }
 0x52f   : > { %10716 = vmatpush1.bf16.msra.mxu0 %v13336_v19  ;;  %v13416_v19 = vcombine.low %v7345_v45, %v7349_v47  ;;  %v7317_v38 = vld [vmem:[#allocation8 + $0x470] sm:$0xff] }
 0x530   : > { %10717 = vmatprep.subr.bf16.mxu0 %v13329_v35  ;;  %v13409_v35 = vcombine.high %v7337_v13, %v7341_v42  ;;  %v7561_v59 = vld [vmem:[#allocation8 + $0x13b0] sm:$0xff] }
 0x531   : > { %10673 = vmatpush1.bf16.msra.mxu1 %v13718_v22  ;;  %v13798_v22 = vcombine.low %v7728_v52, %v7732_v63  ;;  %v7565_v28 = vld [vmem:[#allocation8 + $0x13f0] sm:$0xff] }
 0x532   : > { %10674 = vmatprep.subr.bf16.mxu1 %v13711_v18  ;;  %v13791_v18 = vcombine.high %v7720_v23, %v7724_v7  ;;  %v7433_v51 = vld [vmem:[#allocation8 + $0xbb0] sm:$0xff] }
 0x533   : > { %10718 = vmatpush1.bf16.msra.mxu0 %v13328_v39  ;;  %v13408_v39 = vcombine.low %v7337_v13, %v7341_v42  ;;  %v7437_v4 = vld [vmem:[#allocation8 + $0xbf0] sm:$0xff] }
 0x534   : > { %10719 = vmatprep.subr.bf16.mxu0 %v13321_v58  ;;  %v13401_v58 = vcombine.high %v7329_v55, %v7333_v54  ;;  %v7553_v45 = vld [vmem:[#allocation8 + $0x1330] sm:$0xff] }
 0x535   : > { %10675 = vmatpush1.bf16.msra.mxu1 %v13710_v32  ;;  %v13790_v32 = vcombine.low %v7720_v23, %v7724_v7  ;;  %v7557_v47 = vld [vmem:[#allocation8 + $0x1370] sm:$0xff] }
 0x536   : > { %10676 = vmatprep.subr.bf16.mxu1 %v13703_v20  ;;  %v13783_v20 = vcombine.high %v7712_v50, %v7716_v36  ;;  %v7425_v52 = vld [vmem:[#allocation8 + $0xb30] sm:$0xff] }
 0x537   : > { %10720 = vmatpush1.bf16.msra.mxu0 %v13320_v57  ;;  %v13400_v57 = vcombine.low %v7329_v55, %v7333_v54  ;;  %v7429_v63 = vld [vmem:[#allocation8 + $0xb70] sm:$0xff] }
 0x538   : > { %10721 = vmatprep.subr.bf16.mxu0 %v13441_v33  ;;  %v13393_v33 = vcombine.high %v7321_v9, %v7325_v34  ;;  %v7545_v13 = vld [vmem:[#allocation8 + $0x12b0] sm:$0xff] }
 0x539   : > { %10677 = vmatpush1.bf16.msra.mxu1 %v13702_v11  ;;  %v13782_v11 = vcombine.low %v7712_v50, %v7716_v36  ;;  %v7549_v42 = vld [vmem:[#allocation8 + $0x12f0] sm:$0xff] }
 0x53a   : > { %10678 = vmatprep.subr.bf16.mxu1 %v13823_v49  ;;  %v13775_v49 = vcombine.high %v7704_v14, %v7708_v29  ;;  %v7417_v23 = vld [vmem:[#allocation8 + $0xab0] sm:$0xff] }
 0x53b   : > { %10722 = vmatpush2.bf16.msra.mxu0 %v13440_v12  ;;  %v13392_v12 = vcombine.low %v7321_v9, %v7325_v34  ;;  %v7421_v7 = vld [vmem:[#allocation8 + $0xaf0] sm:$0xff] }
 0x53c   : > { %10723 = vmatprep.subr.bf16.mxu0 %v13433_v48  ;;  %v13385_v48 = vcombine.high %v7313_v3, %v7317_v38  ;;  %v7537_v55 = vld [vmem:[#allocation8 + $0x1230] sm:$0xff] }
 0x53d   : > { %10679 = vmatpush2.bf16.msra.mxu1 %v13822_v31  ;;  %v13774_v31 = vcombine.low %v7704_v14, %v7708_v29  ;;  %v7541_v54 = vld [vmem:[#allocation8 + $0x1270] sm:$0xff] }
 0x53e   : > { %10680 = vmatprep.subr.bf16.mxu1 %v13815_v46  ;;  %v13767_v46 = vcombine.high %v7696_v56, %v7700_v21  ;;  %v7409_v50 = vld [vmem:[#allocation8 + $0xa30] sm:$0xff] }
 0x53f   : > { %10724 = vmatpush2.bf16.msra.mxu0 %v13432_v26  ;;  %v13384_v26 = vcombine.low %v7313_v3, %v7317_v38  ;;  %v7413_v36 = vld [vmem:[#allocation8 + $0xa70] sm:$0xff] }
 0x540   : > { %10725 = vmatprep.subr.bf16.mxu0 %v13425_v10  ;;  %v13633_v10 = vcombine.high %v7561_v59, %v7565_v28  ;;  %v7529_v9 = vld [vmem:[#allocation8 + $0x11b0] sm:$0xff] }
 0x541   : > { %10681 = vmatpush2.bf16.msra.mxu1 %v13814_v1  ;;  %v13766_v1 = vcombine.low %v7696_v56, %v7700_v21  ;;  %v7533_v34 = vld [vmem:[#allocation8 + $0x11f0] sm:$0xff] }
 0x542   : > { %10682 = vmatprep.subr.bf16.mxu1 %v13807_v24  ;;  %v13505_v24 = vcombine.high %v7433_v51, %v7437_v4  ;;  %v7401_v14 = vld [vmem:[#allocation8 + $0x9b0] sm:$0xff] }
 0x543   : > { %10726 = vmatpush2.bf16.msra.mxu0 %v13424_v0  ;;  %v13632_v0 = vcombine.low %v7561_v59, %v7565_v28  ;;  %v7405_v29 = vld [vmem:[#allocation8 + $0x9f0] sm:$0xff] }
 0x544   : > { %10727 = vmatprep.subr.bf16.mxu0 %v13417_v27  ;;  %v13625_v27 = vcombine.high %v7553_v45, %v7557_v47  ;;  %v7521_v3 = vld [vmem:[#allocation8 + $0x1130] sm:$0xff] }
 0x545   : > { %10683 = vmatpush2.bf16.msra.mxu1 %v13806_v41  ;;  %v13504_v41 = vcombine.low %v7433_v51, %v7437_v4  ;;  %v7525_v38 = vld [vmem:[#allocation8 + $0x1170] sm:$0xff] }
 0x546   : > { %10684 = vmatprep.subr.bf16.mxu1 %v13799_v30  ;;  %v13497_v30 = vcombine.high %v7425_v52, %v7429_v63  ;;  %v7393_v56 = vld [vmem:[#allocation8 + $0x930] sm:$0xff] }
 0x547   : > { %10728 = vmatpush2.bf16.msra.mxu0 %v13416_v19  ;;  %v13624_v19 = vcombine.low %v7553_v45, %v7557_v47  ;;  %v7397_v21 = vld [vmem:[#allocation8 + $0x970] sm:$0xff] }
 0x548   : > { %10729 = vmatprep.subr.bf16.mxu0 %v13409_v35  ;;  %v13617_v35 = vcombine.high %v7545_v13, %v7549_v42  ;;  %v7513_v59 = vld [vmem:[#allocation8 + $0x10b0] sm:$0xff] }
 0x549   : > { %10685 = vmatpush2.bf16.msra.mxu1 %v13798_v22  ;;  %v13496_v22 = vcombine.low %v7425_v52, %v7429_v63  ;;  %v7517_v28 = vld [vmem:[#allocation8 + $0x10f0] sm:$0xff] }
 0x54a   : > { %10686 = vmatprep.subr.bf16.mxu1 %v13791_v18  ;;  %v13489_v18 = vcombine.high %v7417_v23, %v7421_v7  ;;  %v7385_v51 = vld [vmem:[#allocation8 + $0x8b0] sm:$0xff] }
 0x54b   : > { %10730 = vmatpush2.bf16.msra.mxu0 %v13408_v39  ;;  %v13616_v39 = vcombine.low %v7545_v13, %v7549_v42  ;;  %v7389_v4 = vld [vmem:[#allocation8 + $0x8f0] sm:$0xff] }
 0x54c   : > { %10731 = vmatprep.subr.bf16.mxu0 %v13401_v58  ;;  %v13609_v58 = vcombine.high %v7537_v55, %v7541_v54  ;;  %v7505_v45 = vld [vmem:[#allocation8 + $0x1030] sm:$0xff] }
 0x54d   : > { %10687 = vmatpush2.bf16.msra.mxu1 %v13790_v32  ;;  %v13488_v32 = vcombine.low %v7417_v23, %v7421_v7  ;;  %v7509_v47 = vld [vmem:[#allocation8 + $0x1070] sm:$0xff] }
 0x54e   : > { %10688 = vmatprep.subr.bf16.mxu1 %v13783_v20  ;;  %v13481_v20 = vcombine.high %v7409_v50, %v7413_v36  ;;  %v7377_v52 = vld [vmem:[#allocation8 + $0x830] sm:$0xff] }
 0x54f   : > { %10732 = vmatpush2.bf16.msra.mxu0 %v13400_v57  ;;  %v13608_v57 = vcombine.low %v7537_v55, %v7541_v54  ;;  %v7381_v63 = vld [vmem:[#allocation8 + $0x870] sm:$0xff] }
 0x550   : > { %10733 = vmatprep.subr.bf16.mxu0 %v13393_v33  ;;  %v13601_v33 = vcombine.high %v7529_v9, %v7533_v34  ;;  %v7625_v13 = vld [vmem:[#allocation8 + $0x17b0] sm:$0xff] }
 0x551   : > { %10689 = vmatpush2.bf16.msra.mxu1 %v13782_v11  ;;  %v13480_v11 = vcombine.low %v7409_v50, %v7413_v36  ;;  %v7629_v42 = vld [vmem:[#allocation8 + $0x17f0] sm:$0xff] }
 0x552   : > { %10690 = vmatprep.subr.bf16.mxu1 %v13775_v49  ;;  %v13473_v49 = vcombine.high %v7401_v14, %v7405_v29  ;;  %v7497_v23 = vld [vmem:[#allocation8 + $0xfb0] sm:$0xff] }
 0x553   : > { %10734 = vmatpush2.bf16.msra.mxu0 %v13392_v12  ;;  %v13600_v12 = vcombine.low %v7529_v9, %v7533_v34  ;;  %v7501_v7 = vld [vmem:[#allocation8 + $0xff0] sm:$0xff] }
 0x554   : > { %10735 = vmatprep.subr.bf16.mxu0 %v13385_v48  ;;  %v13593_v48 = vcombine.high %v7521_v3, %v7525_v38  ;;  %v7617_v55 = vld [vmem:[#allocation8 + $0x1730] sm:$0xff] }
 0x555   : > { %10691 = vmatpush2.bf16.msra.mxu1 %v13774_v31  ;;  %v13472_v31 = vcombine.low %v7401_v14, %v7405_v29  ;;  %v7621_v54 = vld [vmem:[#allocation8 + $0x1770] sm:$0xff] }
 0x556   : > { %10692 = vmatprep.subr.bf16.mxu1 %v13767_v46  ;;  %v13465_v46 = vcombine.high %v7393_v56, %v7397_v21  ;;  %v7489_v50 = vld [vmem:[#allocation8 + $0xf30] sm:$0xff] }
 0x557   : > { %10736 = vmatpush2.bf16.msra.mxu0 %v13384_v26  ;;  %v13592_v26 = vcombine.low %v7521_v3, %v7525_v38  ;;  %v7493_v36 = vld [vmem:[#allocation8 + $0xf70] sm:$0xff] }
 0x558   : > { %10791 = vmatprep.subr.bf16.mxu0 %v13633_v10  ;;  %v13585_v10 = vcombine.high %v7513_v59, %v7517_v28  ;;  %v7609_v9 = vld [vmem:[#allocation8 + $0x16b0] sm:$0xff] }
 0x559   : > { %10693 = vmatpush2.bf16.msra.mxu1 %v13766_v1  ;;  %v13464_v1 = vcombine.low %v7393_v56, %v7397_v21  ;;  %v7613_v34 = vld [vmem:[#allocation8 + $0x16f0] sm:$0xff] }
 0x55a   : > { %10738 = vmatmul.mubr.bf16.vlgmr.msra.gmra.mxu0 %v16358_v17  ;;  %10748 = vmatprep.subr.bf16.mxu1 %v13505_v24  ;;  %v13457_v24 = vcombine.high %v7385_v51, %v7389_v4  ;;  %v7481_v14 = vld [vmem:[#allocation8 + $0xeb0] sm:$0xff] }
 0x55b   : > { %10792 = vmatpush1.bf16.msra.mxu0 %v13632_v0  ;;  %10823 = vmatprep.mubr.bf16.mxu0 %v16359_v25  ;;  %v13584_v0 = vcombine.low %v7513_v59, %v7517_v28  ;;  %v7485_v29 = vld [vmem:[#allocation8 + $0xef0] sm:$0xff] }
 0x55c   : > { %10695 = vmatmul.mubr.bf16.vlgmr.msra.gmra.mxu1 %v16360_v15  ;;  %10793 = vmatprep.subr.bf16.mxu0 %v13625_v27  ;;  %v13577_v27 = vcombine.high %v7505_v45, %v7509_v47  ;;  %v7601_v3 = vld [vmem:[#allocation8 + $0x1630] sm:$0xff] }
 0x55d   : > { %10749 = vmatpush1.bf16.msra.mxu1 %v13504_v41  ;;  %10780 = vmatprep.mubr.bf16.mxu1 %v16361_v2  ;;  %v13456_v41 = vcombine.low %v7385_v51, %v7389_v4  ;;  %v7605_v38 = vld [vmem:[#allocation8 + $0x1670] sm:$0xff] }
 0x55e   : > { %10750 = vmatprep.subr.bf16.mxu1 %v13497_v30  ;;  %v13449_v30 = vcombine.high %v7377_v52, %v7381_v63  ;;  %v7473_v56 = vld [vmem:[#allocation8 + $0xe30] sm:$0xff] }
 0x55f   : > { %10794 = vmatpush1.bf16.msra.mxu0 %v13624_v19  ;;  %v13576_v19 = vcombine.low %v7505_v45, %v7509_v47  ;;  %v7477_v21 = vld [vmem:[#allocation8 + $0xe70] sm:$0xff] }
 0x560   : > { %10795 = vmatprep.subr.bf16.mxu0 %v13617_v35  ;;  %v13697_v35 = vcombine.high %v7625_v13, %v7629_v42  ;;  %v7593_v59 = vld [vmem:[#allocation8 + $0x15b0] sm:$0xff] }
 0x561   : > { %10751 = vmatpush1.bf16.msra.mxu1 %v13496_v22  ;;  %v13448_v22 = vcombine.low %v7377_v52, %v7381_v63  ;;  %v7597_v28 = vld [vmem:[#allocation8 + $0x15f0] sm:$0xff] }
 0x562   : > { %10752 = vmatprep.subr.bf16.mxu1 %v13489_v18  ;;  %v13569_v18 = vcombine.high %v7497_v23, %v7501_v7  ;;  %v7465_v51 = vld [vmem:[#allocation8 + $0xdb0] sm:$0xff]  ;;  %v13664_v52 = vcombine.low %v7593_v59, %v7597_v28 }
 0x563   : > { %10796 = vmatpush1.bf16.msra.mxu0 %v13616_v39  ;;  %v13696_v39 = vcombine.low %v7625_v13, %v7629_v42  ;;  %v7469_v4 = vld [vmem:[#allocation8 + $0xdf0] sm:$0xff] }
 0x564   : > { %10797 = vmatprep.subr.bf16.mxu0 %v13609_v58  ;;  %v13689_v58 = vcombine.high %v7617_v55, %v7621_v54  ;;  %v7585_v45 = vld [vmem:[#allocation8 + $0x1530] sm:$0xff]  ;;  %v13536_v13 = vcombine.low %v7465_v51, %v7469_v4 }
 0x565   : > { %10753 = vmatpush1.bf16.msra.mxu1 %v13488_v32  ;;  %v13568_v32 = vcombine.low %v7497_v23, %v7501_v7  ;;  %v7589_v47 = vld [vmem:[#allocation8 + $0x1570] sm:$0xff] }
 0x566   : > { %10754 = vmatprep.subr.bf16.mxu1 %v13481_v20  ;;  %v13561_v20 = vcombine.high %v7489_v50, %v7493_v36  ;;  %v7457_v63 = vld [vmem:[#allocation8 + $0xd30] sm:$0xff]  ;;  %v13656_v7 = vcombine.low %v7585_v45, %v7589_v47 }
 0x567   : > { %10798 = vmatpush1.bf16.msra.mxu0 %v13608_v57  ;;  %v13688_v57 = vcombine.low %v7617_v55, %v7621_v54  ;;  %v7577_v42 = vld [vmem:[#allocation8 + $0x14b0] sm:$0xff] }
 0x568   : > { %10799 = vmatprep.subr.bf16.mxu0 %v13601_v33  ;;  %v13681_v33 = vcombine.high %v7609_v9, %v7613_v34 }
 0x569   : > { %10755 = vmatpush1.bf16.msra.mxu1 %v13480_v11  ;;  %v13560_v11 = vcombine.low %v7489_v50, %v7493_v36  ;;  %v10438_v36 = vpop.f32.mrf.mxu1 }
 0x56a   : > { %10756 = vmatprep.subr.bf16.mxu1 %v13473_v49  ;;  %v13553_v49 = vcombine.high %v7481_v14, %v7485_v29 }
 0x56b   : > { %10800 = vmatpush1.bf16.msra.mxu0 %v13600_v12  ;;  %v13680_v12 = vcombine.low %v7609_v9, %v7613_v34  ;;  %v7441_v34 = vld [vmem:[#allocation8 + $0xc30] sm:$0xff] }
 0x56c   : > { %10801 = vmatprep.subr.bf16.mxu0 %v13593_v48  ;;  %v13673_v48 = vcombine.high %v7601_v3, %v7605_v38 }
 0x56d   : > { %10757 = vmatpush1.bf16.msra.mxu1 %v13472_v31  ;;  %v13552_v31 = vcombine.low %v7481_v14, %v7485_v29  ;;  %v7306_v29 = vld [vmem:[#allocation8 + $0x3b8] sm:$0xff] }
 0x56e   : > { %10758 = vmatprep.subr.bf16.mxu1 %v13465_v46  ;;  %v13545_v46 = vcombine.high %v7473_v56, %v7477_v21 }
 0x56f   : > { %10802 = vmatpush1.bf16.msra.mxu0 %v13592_v26  ;;  %v13672_v26 = vcombine.low %v7601_v3, %v7605_v38  ;;  %v10440_v38 = vpop.f32.mrf.mxu1 }
 0x570   : > { %10803 = vmatprep.subr.bf16.mxu0 %v13585_v10  ;;  %v13665_v10 = vcombine.high %v7593_v59, %v7597_v28 }
 0x571   : > { %10759 = vmatpush1.bf16.msra.mxu1 %v13464_v1  ;;  %v13544_v1 = vcombine.low %v7473_v56, %v7477_v21  ;;  %v7689_v21 = vld [vmem:[#allocation8 + $0x1bb0] sm:$0xff] }
 0x572   : > { %10760 = vmatprep.subr.bf16.mxu1 %v13457_v24  ;;  %v10395_v24 = vpop.f32.mrf.mxu0 }
 0x573   : > { %10804 = vmatpush1.bf16.msra.mxu0 %v13584_v0  ;;  %v13537_v0 = vcombine.high %v7465_v51, %v7469_v4 }
 0x574   : > { %10805 = vmatprep.subr.bf16.mxu0 %v13577_v27  ;;  %v7461_v27 = vld [vmem:[#allocation8 + $0xd70] sm:$0xff] }
 0x575   : > { %10761 = vmatpush1.bf16.msra.mxu1 %v13456_v41  ;;  %v13657_v41 = vcombine.high %v7585_v45, %v7589_v47  ;;  %v13529_v23 = vcombine.high %v7457_v63, %v7461_v27  ;;  %v13528_v54 = vcombine.low %v7457_v63, %v7461_v27  ;;  %v7681_v45 = vld [vmem:[#allocation8 + $0x1b30] sm:$0xff] }
 0x576   : > { %10762 = vmatprep.subr.bf16.mxu1 %v13449_v30  ;;  %v7581_v30 = vld [vmem:[#allocation8 + $0x14f0] sm:$0xff] }
 0x577   : > { %10806 = vmatpush1.bf16.msra.mxu0 %v13576_v19  ;;  %v10397_v19 = vpop.f32.mrf.mxu0  ;;  %v13649_v55 = vcombine.high %v7577_v42, %v7581_v30  ;;  %v13648_v9 = vcombine.low %v7577_v42, %v7581_v30 }
 0x578   : > { %10807 = vmatprep.subr.bf16.mxu0 %v13697_v35  ;;  %v7449_v35 = vld [vmem:[#allocation8 + $0xcb0] sm:$0xff] }
 0x579   : > { %10763 = vmatpush1.bf16.msra.mxu1 %v13448_v22  ;;  %v7453_v22 = vld [vmem:[#allocation8 + $0xcf0] sm:$0xff]  ;;  %v10399_v50 = vpop.f32.mrf.mxu0 }
 0x57a   : > { %10764 = vmatprep.subr.bf16.mxu1 %v13569_v18  ;;  %v7569_v18 = vld [vmem:[#allocation8 + $0x1430] sm:$0xff]  ;;  %v13520_v14 = vcombine.low %v7449_v35, %v7453_v22 }
 0x57b   : > { %10808 = vmatpush2.bf16.msra.mxu0 %v13696_v39  ;;  %v7573_v39 = vld [vmem:[#allocation8 + $0x1470] sm:$0xff]  ;;  %v10401_v3 = vpop.f32.mrf.mxu0 }
 0x57c   : > { %10809 = vmatprep.subr.bf16.mxu0 %v13689_v58  ;;  %v13521_v58 = vcombine.high %v7449_v35, %v7453_v22  ;;  %v13640_v56 = vcombine.low %v7569_v18, %v7573_v39  ;;  %v7677_v35 = vld [vmem:[#allocation8 + $0x1af0] sm:$0xff] }
 0x57d   : > { %10765 = vmatpush2.bf16.msra.mxu1 %v13568_v32  ;;  %v15919_v32 = vld [vmem:[#allocation10 + $0x8] sm:$0xff] }
 0x57e   : > { %10766 = vmatprep.subr.bf16.mxu1 %v13561_v20  ;;  %v7445_v20 = vld [vmem:[#allocation8 + $0xc70] sm:$0xff] }
 0x57f   : > { %10810 = vmatpush2.bf16.msra.mxu0 %v13688_v57  ;;  %v13641_v57 = vcombine.high %v7569_v18, %v7573_v39  ;;  %v13512_v28 = vcombine.low %v7441_v34, %v7445_v20 }
 0x580   : > { %10811 = vmatprep.subr.bf16.mxu0 %v13681_v33  ;;  %v7310_v33 = vld [vmem:[#allocation8 + $0x3f8] sm:$0xff] }
 0x581   : > { %10767 = vmatpush2.bf16.msra.mxu1 %v13560_v11  ;;  %v7764_v11 = vrot.slane %v15919_v32, %v16362_v60  ;;  %v13379_v59 = vcombine.high %v7306_v29, %v7310_v33  ;;  %v10442_v60 = vpop.f32.mrf.mxu1 }
 0x582   : > { %10768 = vmatprep.subr.bf16.mxu1 %v13553_v49  ;;  %v13513_v49 = vcombine.high %v7441_v34, %v7445_v20  ;;  %v7286_v34 = vld [vmem:[#allocation8 + $0x278] sm:$0xff] }
 0x583   : > { %10812 = vmatpush2.bf16.msra.mxu0 %v13680_v12  ;;  %v7768_v12 = vrot.slane %v15919_v32, %v16363_v6  ;;  %v10396_v51 = vadd.f32 %v10395_v24, %v7764_v11  ;;  %v7685_v6 = vld [vmem:[#allocation8 + $0x1b70] sm:$0xff]  ;;  %v10444_v42 = vpop.f32.mrf.mxu1  ;;  %v10400_v30 = vadd.f32 %v10399_v50, %v7764_v11 }
 0x584   : > { %10813 = vmatprep.subr.bf16.mxu0 %v13673_v48  ;;  %v7693_v48 = vld [vmem:[#allocation8 + $0x1bf0] sm:$0xff]  ;;  %v13753_v24 = vcombine.high %v7681_v45, %v7685_v6  ;;  %v13752_v18 = vcombine.low %v7681_v45, %v7685_v6 }
 0x585   : > { %10769 = vmatpush2.bf16.msra.mxu1 %v13552_v31  ;;  %v10481_v31 = vpop.f32.mrf.mxu0  ;;  %v13761_v4 = vcombine.high %v7689_v21, %v7693_v48  ;;  %v10439_v47 = vadd.f32 %v10438_v36, %v10396_v51  ;;  %v13760_v27 = vcombine.low %v7689_v21, %v7693_v48  ;;  %v10443_v36 = vadd.f32 %v10442_v60, %v10400_v30  ;;  %v7669_v11 = vld [vmem:[#allocation8 + $0x1a70] sm:$0xff]  ;;  %v7262_v30 = vld [vmem:[#allocation8 + $0xf8] sm:$0xff] }
 0x586   : > { %10770 = vmatprep.subr.bf16.mxu1 %v13545_v46  ;;  %v7298_v46 = vld [vmem:[#allocation8 + $0x338] sm:$0xff] }
 0x587   : > { %10814 = vmatpush2.bf16.msra.mxu0 %v13672_v26  ;;  %v7302_v26 = vld [vmem:[#allocation8 + $0x378] sm:$0xff] }
 0x588   : > { %10815 = vmatprep.subr.bf16.mxu0 %v13665_v10  ;;  %v10398_v10 = vadd.f32 %v10397_v19, %v7768_v12  ;;  %v10402_v19 = vadd.f32 %v10401_v3, %v7768_v12 }
 0x589   : > { %10771 = vmatpush2.bf16.msra.mxu1 %v13544_v1  ;;  %v13378_v1 = vcombine.low %v7306_v29, %v7310_v33  ;;  %v7665_v33 = vld [vmem:[#allocation8 + $0x1a30] sm:$0xff] }
 0x58a   : > { %10772 = vmatprep.subr.bf16.mxu1 %v13537_v0  ;;  %v10483_v0 = vpop.f32.mrf.mxu0  ;;  %v10441_v63 = vadd.f32 %v10440_v38, %v10398_v10  ;;  %v7661_v10 = vld [vmem:[#allocation8 + $0x19f0] sm:$0xff]  ;;  %v13736_v6 = vcombine.low %v7665_v33, %v7669_v11 }
 0x58b   : > { %10816 = vmatpush2.bf16.msra.mxu0 %v13664_v52  ;;  %v13371_v52 = vcombine.high %v7298_v46, %v7302_v26 }
 0x58c   : > { %10817 = vmatprep.subr.bf16.mxu0 %v13657_v41  ;;  %v7290_v41 = vld [vmem:[#allocation8 + $0x2b8] sm:$0xff]  ;;  %v10485_v22 = vpop.f32.mrf.mxu0  ;;  %v10484_v50 = vadd.f32 %v10483_v0, %v10441_v63 }
 0x58d   : > { %10773 = vmatpush2.bf16.msra.mxu1 %v13536_v13  ;;  %v7294_v13 = vld [vmem:[#allocation8 + $0x2f8] sm:$0xff] }
 0x58e   : > { %10774 = vmatprep.subr.bf16.mxu1 %v13529_v23  ;;  %v13370_v23 = vcombine.low %v7298_v46, %v7302_v26  ;;  %v13363_v39 = vcombine.high %v7290_v41, %v7294_v13  ;;  %v13362_v29 = vcombine.low %v7290_v41, %v7294_v13  ;;  %v10487_v3 = vpop.f32.mrf.mxu0  ;;  %v13737_v46 = vcombine.high %v7665_v33, %v7669_v11  ;;  %v7270_v0 = vld [vmem:[#allocation8 + $0x178] sm:$0xff]  ;;  %v7653_v41 = vld [vmem:[#allocation8 + $0x1970] sm:$0xff] }
 0x58f   : > { %10818 = vmatpush2.bf16.msra.mxu0 %v13656_v7  ;;  %v7673_v7 = vld [vmem:[#allocation8 + $0x1ab0] sm:$0xff] }
 0x590   : > { %10819 = vmatprep.subr.bf16.mxu0 %v13649_v55  ;;  %v10482_v55 = vadd.f32 %v10481_v31, %v10439_v47  ;;  %v13745_v20 = vcombine.high %v7673_v7, %v7677_v35  ;;  %v13744_v48 = vcombine.low %v7673_v7, %v7677_v35  ;;  %v7274_v31 = vld [vmem:[#allocation8 + $0x1b8] sm:$0xff]  ;;  %v7641_v7 = vld [vmem:[#allocation8 + $0x18b0] sm:$0xff] }
 0x591   : > { %10775 = vmatpush2.bf16.msra.mxu1 %v13528_v54  ;;  %v7266_v47 = vld [vmem:[#allocation8 + $0x138] sm:$0xff]  ;;  %v7645_v35 = vld [vmem:[#allocation8 + $0x18f0] sm:$0xff] }
 0x592   : > { %10776 = vmatprep.subr.bf16.mxu1 %v13521_v58  ;;  %v10445_v58 = vadd.f32 %v10444_v42, %v10402_v19  ;;  %v13339_v13 = vcombine.high %v7266_v47, %v7270_v0  ;;  %v7757_v33 = vld [vmem:[#allocation8 + $0x1ff0] sm:$0xff] }
 0x593   : > { %10820 = vmatpush2.bf16.msra.mxu0 %v13648_v9  ;;  %v7282_v9 = vld [vmem:[#allocation8 + $0x238] sm:$0xff] }
 0x594   : > { %10821 = vmatprep.subr.bf16.mxu0 %v13641_v57  ;;  %v10488_v21 = vadd.f32 %v10487_v3, %v10445_v58  ;;  %v13354_v60 = vcombine.low %v7282_v9, %v7286_v34  ;;  %v7633_v58 = vld [vmem:[#allocation8 + $0x1830] sm:$0xff] }
 0x595   : > { %10777 = vmatpush2.bf16.msra.mxu1 %v13520_v14 }
 0x596   : > { %10778 = vmatprep.subr.bf16.mxu1 %v13513_v49  ;;  %v13355_v49 = vcombine.high %v7282_v9, %v7286_v34  ;;  %v13712_v34 = vcombine.low %v7641_v7, %v7645_v35 }
 0x597   : > { %10822 = vmatpush2.bf16.msra.mxu0 %v13640_v56  ;;  %v10486_v56 = vadd.f32 %v10485_v22, %v10443_v36 }
 0x598   : > { %10877 = vmatprep.subr.bf16.mxu0 %v13379_v59  ;;  %v7278_v59 = vld [vmem:[#allocation8 + $0x1f8] sm:$0xff] }
 0x599   : > { %10779 = vmatpush2.bf16.msra.mxu1 %v13512_v28  ;;  %v13346_v63 = vcombine.low %v7274_v31, %v7278_v59 }
 0x59a   : > { %10824 = vmatmul.mubr.bf16.vlgmr.msra.gmra.mxu0 %v16354_v53  ;;  %10834 = vmatprep.subr.bf16.mxu1 %v13761_v4  ;;  %v7657_v4 = vld [vmem:[#allocation8 + $0x19b0] sm:$0xff] }
 0x59b   : > { %10878 = vmatpush1.bf16.msra.mxu0 %v13378_v1  ;;  %10909 = vmatprep.mubr.bf16.mxu0 %v16355_v8  ;;  %v13347_v1 = vcombine.high %v7274_v31, %v7278_v59  ;;  %v13728_v42 = vcombine.low %v7657_v4, %v7661_v10 }
 0x59c   : > { %v10524_v54 = vpop.f32.mrf.mxu1  ;;  %10781 = vmatmul.mubr.bf16.vlgmr.msra.gmra.mxu1 %v16356_v40  ;;  %10879 = vmatprep.subr.bf16.mxu0 %v13371_v52  ;;  %v13729_v52 = vcombine.high %v7657_v4, %v7661_v10  ;;  %v7741_v4 = vld [vmem:[#allocation8 + $0x1ef0] sm:$0xff] }
 0x59d   : > { %10835 = vmatpush1.bf16.msra.mxu1 %v13760_v27  ;;  %10866 = vmatprep.mubr.bf16.mxu1 %v16357_v43  ;;  %v10525_v57 = vadd.f32 %v10524_v54, %v10482_v55  ;;  %v7649_v27 = vld [vmem:[#allocation8 + $0x1930] sm:$0xff]  ;;  %v7250_v54 = vld [vmem:[#allocation8 + $0x38] sm:$0xff] }
 0x59e   : > { %v10526_v8 = vpop.f32.mrf.mxu1  ;;  %10836 = vmatprep.subr.bf16.mxu1 %v13753_v24  ;;  %v7258_v24 = vld [vmem:[#allocation8 + $0xb8] sm:$0xff]  ;;  %v13721_v19 = vcombine.high %v7649_v27, %v7653_v41  ;;  %v13720_v55 = vcombine.low %v7649_v27, %v7653_v41 }
 0x59f   : > { %v10527_v14 = vadd.f32 %v10526_v8, %v10484_v50  ;;  %10880 = vmatpush1.bf16.msra.mxu0 %v13370_v23  ;;  %v13338_v23 = vcombine.low %v7266_v47, %v7270_v0  ;;  %v13331_v22 = vcombine.high %v7258_v24, %v7262_v30  ;;  %v13330_v36 = vcombine.low %v7258_v24, %v7262_v30  ;;  %v7637_v50 = vld [vmem:[#allocation8 + $0x1870] sm:$0xff]  ;;  %v7370_v8 = vld [vmem:[#allocation8 + $0x7b8] sm:$0xff] }
 0x5a0   : > { %v10528_v38 = vpop.f32.mrf.mxu1  ;;  %10881 = vmatprep.subr.bf16.mxu0 %v13363_v39  ;;  %v13713_v39 = vcombine.high %v7641_v7, %v7645_v35  ;;  %v13704_v3 = vcombine.low %v7633_v58, %v7637_v50 }
 0x5a1   : > { %v13898_v12 = vpack.c.bf16 %v10527_v14, %v10525_v57  ;;  %10837 = vmatpush1.bf16.msra.mxu1 %v13752_v18  ;;  %v10529_v26 = vadd.f32 %v10528_v38, %v10486_v56  ;;  %v7254_v18 = vld [vmem:[#allocation8 + $0x78] sm:$0xff]  ;;  %v13705_v57 = vcombine.high %v7633_v58, %v7637_v50 }
 0x5a2   : > { %v10530_v28 = vpop.f32.mrf.mxu1  ;;  %10838 = vmatprep.subr.bf16.mxu1 %v13745_v20  ;;  %v13323_v9 = vcombine.high %v7250_v54, %v7254_v18  ;;  %v7374_v20 = vld [vmem:[#allocation8 + $0x7f8] sm:$0xff]  ;;  %v13322_v14 = vcombine.low %v7250_v54, %v7254_v18 }
 0x5a3   : > { %11097 = vst [vmem:[%s15930_s26] sm:$0xff] %v13898_v12  ;;  %v10531_v51 = vadd.f32 %v10530_v28, %v10488_v21  ;;  %10882 = vmatpush1.bf16.msra.mxu0 %v13362_v29  ;;  %v7753_v29 = vld [vmem:[#allocation8 + $0x1fb0] sm:$0xff]  ;;  %v13443_v11 = vcombine.high %v7370_v8, %v7374_v20  ;;  %v7362_v38 = vld [vmem:[#allocation8 + $0x738] sm:$0xff]  ;;  %v13442_v56 = vcombine.low %v7370_v8, %v7374_v20 }
 0x5a4   : > { %10883 = vmatprep.subr.bf16.mxu0 %v13355_v49  ;;  %v7366_v49 = vld [vmem:[#allocation8 + $0x778] sm:$0xff]  ;;  %v13825_v12 = vcombine.high %v7753_v29, %v7757_v33  ;;  %v7745_v21 = vld [vmem:[#allocation8 + $0x1f30] sm:$0xff]  ;;  %v13824_v59 = vcombine.low %v7753_v29, %v7757_v33 }
 0x5a5   : > { %v13902_v45 = vpack.c.bf16 %v10531_v51, %v10529_v26  ;;  %10839 = vmatpush1.bf16.msra.mxu1 %v13744_v48  ;;  %v7749_v48 = vld [vmem:[#allocation8 + $0x1f70] sm:$0xff]  ;;  %v13435_v31 = vcombine.high %v7362_v38, %v7366_v49  ;;  %v7354_v28 = vld [vmem:[#allocation8 + $0x6b8] sm:$0xff]  ;;  %v13434_v51 = vcombine.low %v7362_v38, %v7366_v49 }
 0x5a6   : > { %10840 = vmatprep.subr.bf16.mxu1 %v13737_v46  ;;  %v7358_v46 = vld [vmem:[#allocation8 + $0x6f8] sm:$0xff]  ;;  %v13817_v26 = vcombine.high %v7745_v21, %v7749_v48 }
 0x5a7   : > { %11101 = vst [vmem:[%s15930_s26 + $0x20] sm:$0xff] %v13902_v45  ;;  %10884 = vmatpush1.bf16.msra.mxu0 %v13354_v60  ;;  %v7737_v60 = vld [vmem:[#allocation8 + $0x1eb0] sm:$0xff]  ;;  %v13427_v10 = vcombine.high %v7354_v28, %v7358_v46  ;;  %v7346_v45 = vld [vmem:[#allocation8 + $0x638] sm:$0xff]  ;;  %v13426_v0 = vcombine.low %v7354_v28, %v7358_v46 }
 0x5a8   : > { %10885 = vmatprep.subr.bf16.mxu0 %v13347_v1  ;;  %v13816_v1 = vcombine.low %v7745_v21, %v7749_v48  ;;  %v13809_v47 = vcombine.high %v7737_v60, %v7741_v4  ;;  %v13808_v41 = vcombine.low %v7737_v60, %v7741_v4 }
 0x5a9   : > { %10841 = vmatpush1.bf16.msra.mxu1 %v13736_v6  ;;  %v7350_v6 = vld [vmem:[#allocation8 + $0x678] sm:$0xff] }
 0x5aa   : > { %10842 = vmatprep.subr.bf16.mxu1 %v13729_v52  ;;  %v7729_v52 = vld [vmem:[#allocation8 + $0x1e30] sm:$0xff]  ;;  %v13419_v27 = vcombine.high %v7346_v45, %v7350_v6  ;;  %v13418_v30 = vcombine.low %v7346_v45, %v7350_v6 }
 0x5ab   : > { %10886 = vmatpush1.bf16.msra.mxu0 %v13346_v63  ;;  %v7733_v63 = vld [vmem:[#allocation8 + $0x1e70] sm:$0xff] }
 0x5ac   : > { %10887 = vmatprep.subr.bf16.mxu0 %v13339_v13  ;;  %v7338_v13 = vld [vmem:[#allocation8 + $0x5b8] sm:$0xff]  ;;  %v13801_v24 = vcombine.high %v7729_v52, %v7733_v63  ;;  %v13800_v35 = vcombine.low %v7729_v52, %v7733_v63 }
 0x5ad   : > { %10843 = vmatpush1.bf16.msra.mxu1 %v13728_v42  ;;  %v7342_v42 = vld [vmem:[#allocation8 + $0x5f8] sm:$0xff] }
 0x5ae   : > { %10844 = vmatprep.subr.bf16.mxu1 %v13721_v19  ;;  %v7721_v19 = vld [vmem:[#allocation8 + $0x1db0] sm:$0xff]  ;;  %v13411_v7 = vcombine.high %v7338_v13, %v7342_v42  ;;  %v13410_v18 = vcombine.low %v7338_v13, %v7342_v42 }
 0x5af   : > { %10888 = vmatpush1.bf16.msra.mxu0 %v13338_v23  ;;  %v7725_v23 = vld [vmem:[#allocation8 + $0x1df0] sm:$0xff] }
 0x5b0   : > { %10889 = vmatprep.subr.bf16.mxu0 %v13331_v22  ;;  %v7330_v22 = vld [vmem:[#allocation8 + $0x538] sm:$0xff]  ;;  %v13793_v54 = vcombine.high %v7721_v19, %v7725_v23  ;;  %v13792_v50 = vcombine.low %v7721_v19, %v7725_v23 }
 0x5b1   : > { %10845 = vmatpush1.bf16.msra.mxu1 %v13720_v55  ;;  %v7334_v55 = vld [vmem:[#allocation8 + $0x578] sm:$0xff] }
 0x5b2   : > { %10846 = vmatprep.subr.bf16.mxu1 %v13713_v39  ;;  %v7713_v39 = vld [vmem:[#allocation8 + $0x1d30] sm:$0xff]  ;;  %v13403_v58 = vcombine.high %v7330_v22, %v7334_v55  ;;  %v13402_v20 = vcombine.low %v7330_v22, %v7334_v55  ;;  %v7410_v55 = vld [vmem:[#allocation8 + $0xa38] sm:$0xff] }
 0x5b3   : > { %10890 = vmatpush1.bf16.msra.mxu0 %v13330_v36  ;;  %v7717_v36 = vld [vmem:[#allocation8 + $0x1d70] sm:$0xff] }
 0x5b4   : > { %10891 = vmatprep.subr.bf16.mxu0 %v13323_v9  ;;  %v7322_v9 = vld [vmem:[#allocation8 + $0x4b8] sm:$0xff]  ;;  %v13785_v8 = vcombine.high %v7713_v39, %v7717_v36  ;;  %v13784_v33 = vcombine.low %v7713_v39, %v7717_v36 }
 0x5b5   : > { %10847 = vmatpush1.bf16.msra.mxu1 %v13712_v34  ;;  %v7326_v34 = vld [vmem:[#allocation8 + $0x4f8] sm:$0xff] }
 0x5b6   : > { %10848 = vmatprep.subr.bf16.mxu1 %v13705_v57  ;;  %v7705_v57 = vld [vmem:[#allocation8 + $0x1cb0] sm:$0xff]  ;;  %v13395_v29 = vcombine.high %v7322_v9, %v7326_v34  ;;  %v13394_v49 = vcombine.low %v7322_v9, %v7326_v34  ;;  %v7530_v39 = vld [vmem:[#allocation8 + $0x11b8] sm:$0xff] }
 0x5b7   : > { %10892 = vmatpush1.bf16.msra.mxu0 %v13322_v14  ;;  %v7709_v14 = vld [vmem:[#allocation8 + $0x1cf0] sm:$0xff]  ;;  %v7534_v36 = vld [vmem:[#allocation8 + $0x11f8] sm:$0xff] }
 0x5b8   : > { %10893 = vmatprep.subr.bf16.mxu0 %v13443_v11  ;;  %v7314_v11 = vld [vmem:[#allocation8 + $0x438] sm:$0xff]  ;;  %v13777_v38 = vcombine.high %v7705_v57, %v7709_v14  ;;  %v13776_v48 = vcombine.low %v7705_v57, %v7709_v14  ;;  %v13603_v34 = vcombine.high %v7530_v39, %v7534_v36 }
 0x5b9   : > { %10849 = vmatpush1.bf16.msra.mxu1 %v13704_v3  ;;  %v7318_v3 = vld [vmem:[#allocation8 + $0x478] sm:$0xff] }
 0x5ba   : > { %10850 = vmatprep.subr.bf16.mxu1 %v13825_v12  ;;  %v7697_v12 = vld [vmem:[#allocation8 + $0x1c30] sm:$0xff]  ;;  %v13387_v21 = vcombine.high %v7314_v11, %v7318_v3  ;;  %v13386_v46 = vcombine.low %v7314_v11, %v7318_v3  ;;  %v7406_v9 = vld [vmem:[#allocation8 + $0x9f8] sm:$0xff] }
 0x5bb   : > { %10894 = vmatpush2.bf16.msra.mxu0 %v13442_v56  ;;  %v7701_v56 = vld [vmem:[#allocation8 + $0x1c70] sm:$0xff]  ;;  %v7526_v57 = vld [vmem:[#allocation8 + $0x1178] sm:$0xff] }
 0x5bc   : > { %10895 = vmatprep.subr.bf16.mxu0 %v13435_v31  ;;  %v7562_v31 = vld [vmem:[#allocation8 + $0x13b8] sm:$0xff]  ;;  %v13769_v28 = vcombine.high %v7697_v12, %v7701_v56  ;;  %v13768_v4 = vcombine.low %v7697_v12, %v7701_v56 }
 0x5bd   : > { %10851 = vmatpush2.bf16.msra.mxu1 %v13824_v59  ;;  %v7566_v59 = vld [vmem:[#allocation8 + $0x13f8] sm:$0xff] }
 0x5be   : > { %10852 = vmatprep.subr.bf16.mxu1 %v13817_v26  ;;  %v7434_v26 = vld [vmem:[#allocation8 + $0xbb8] sm:$0xff]  ;;  %v13635_v60 = vcombine.high %v7562_v31, %v7566_v59  ;;  %v13634_v6 = vcombine.low %v7562_v31, %v7566_v59 }
 0x5bf   : > { %10896 = vmatpush2.bf16.msra.mxu0 %v13434_v51  ;;  %v7438_v51 = vld [vmem:[#allocation8 + $0xbf8] sm:$0xff] }
 0x5c0   : > { %10897 = vmatprep.subr.bf16.mxu0 %v13427_v10  ;;  %v7554_v10 = vld [vmem:[#allocation8 + $0x1338] sm:$0xff]  ;;  %v13507_v45 = vcombine.high %v7434_v26, %v7438_v51  ;;  %v13506_v63 = vcombine.low %v7434_v26, %v7438_v51 }
 0x5c1   : > { %10853 = vmatpush2.bf16.msra.mxu1 %v13816_v1  ;;  %v7558_v1 = vld [vmem:[#allocation8 + $0x1378] sm:$0xff] }
 0x5c2   : > { %10854 = vmatprep.subr.bf16.mxu1 %v13809_v47  ;;  %v7426_v47 = vld [vmem:[#allocation8 + $0xb38] sm:$0xff]  ;;  %v13627_v52 = vcombine.high %v7554_v10, %v7558_v1  ;;  %v13626_v42 = vcombine.low %v7554_v10, %v7558_v1 }
 0x5c3   : > { %10898 = vmatpush2.bf16.msra.mxu0 %v13426_v0  ;;  %v7430_v0 = vld [vmem:[#allocation8 + $0xb78] sm:$0xff] }
 0x5c4   : > { %10899 = vmatprep.subr.bf16.mxu0 %v13419_v27  ;;  %v7546_v27 = vld [vmem:[#allocation8 + $0x12b8] sm:$0xff]  ;;  %v13499_v13 = vcombine.high %v7426_v47, %v7430_v0  ;;  %v13498_v23 = vcombine.low %v7426_v47, %v7430_v0 }
 0x5c5   : > { %10855 = vmatpush2.bf16.msra.mxu1 %v13808_v41  ;;  %v7550_v41 = vld [vmem:[#allocation8 + $0x12f8] sm:$0xff] }
 0x5c6   : > { %10856 = vmatprep.subr.bf16.mxu1 %v13801_v24  ;;  %v7418_v24 = vld [vmem:[#allocation8 + $0xab8] sm:$0xff]  ;;  %v13619_v19 = vcombine.high %v7546_v27, %v7550_v41  ;;  %v13618_v22 = vcombine.low %v7546_v27, %v7550_v41 }
 0x5c7   : > { %10900 = vmatpush2.bf16.msra.mxu0 %v13418_v30  ;;  %v7422_v30 = vld [vmem:[#allocation8 + $0xaf8] sm:$0xff] }
 0x5c8   : > { %10901 = vmatprep.subr.bf16.mxu0 %v13411_v7  ;;  %v7538_v7 = vld [vmem:[#allocation8 + $0x1238] sm:$0xff] }
 0x5c9   : > { %10857 = vmatpush2.bf16.msra.mxu1 %v13800_v35  ;;  %v7542_v35 = vld [vmem:[#allocation8 + $0x1278] sm:$0xff] }
 0x5ca   : > { %10858 = vmatprep.subr.bf16.mxu1 %v13793_v54  ;;  %v7414_v54 = vld [vmem:[#allocation8 + $0xa78] sm:$0xff] }
 0x5cb   : > { %10902 = vmatpush2.bf16.msra.mxu0 %v13410_v18  ;;  %v13490_v18 = vcombine.low %v7418_v24, %v7422_v30  ;;  %v7398_v11 = vld [vmem:[#allocation8 + $0x978] sm:$0xff] }
 0x5cc   : > { %10903 = vmatprep.subr.bf16.mxu0 %v13403_v58  ;;  %v13483_v58 = vcombine.high %v7410_v55, %v7414_v54  ;;  %v7518_v12 = vld [vmem:[#allocation8 + $0x10f8] sm:$0xff] }
 0x5cd   : > { %10859 = vmatpush2.bf16.msra.mxu1 %v13792_v50  ;;  %v13610_v50 = vcombine.low %v7538_v7, %v7542_v35  ;;  %v7390_v31 = vld [vmem:[#allocation8 + $0x8f8] sm:$0xff] }
 0x5ce   : > { %10860 = vmatprep.subr.bf16.mxu1 %v13785_v8  ;;  %v13482_v8 = vcombine.low %v7410_v55, %v7414_v54  ;;  %v7510_v26 = vld [vmem:[#allocation8 + $0x1078] sm:$0xff] }
 0x5cf   : > { %10904 = vmatpush2.bf16.msra.mxu0 %v13402_v20  ;;  %v7522_v20 = vld [vmem:[#allocation8 + $0x1138] sm:$0xff] }
 0x5d0   : > { %10905 = vmatprep.subr.bf16.mxu0 %v13395_v29  ;;  %v13602_v29 = vcombine.low %v7530_v39, %v7534_v36  ;;  %v13595_v3 = vcombine.high %v7522_v20, %v7526_v57  ;;  %v7382_v10 = vld [vmem:[#allocation8 + $0x878] sm:$0xff] }
 0x5d1   : > { %10861 = vmatpush2.bf16.msra.mxu1 %v13784_v33  ;;  %v7394_v33 = vld [vmem:[#allocation8 + $0x938] sm:$0xff] }
 0x5d2   : > { %10862 = vmatprep.subr.bf16.mxu1 %v13777_v38  ;;  %v13467_v56 = vcombine.high %v7394_v33, %v7398_v11  ;;  %v7630_v47 = vld [vmem:[#allocation8 + $0x17f8] sm:$0xff] }
 0x5d3   : > { %10906 = vmatpush2.bf16.msra.mxu0 %v13394_v49  ;;  %v7514_v49 = vld [vmem:[#allocation8 + $0x10b8] sm:$0xff] }
 0x5d4   : > { %10907 = vmatprep.subr.bf16.mxu0 %v13387_v21  ;;  %v13594_v21 = vcombine.low %v7522_v20, %v7526_v57  ;;  %v13587_v59 = vcombine.high %v7514_v49, %v7518_v12  ;;  %v7502_v27 = vld [vmem:[#allocation8 + $0xff8] sm:$0xff] }
 0x5d5   : > { %10863 = vmatpush2.bf16.msra.mxu1 %v13776_v48  ;;  %v7386_v48 = vld [vmem:[#allocation8 + $0x8b8] sm:$0xff] }
 0x5d6   : > { %10864 = vmatprep.subr.bf16.mxu1 %v13769_v28  ;;  %v13466_v28 = vcombine.low %v7394_v33, %v7398_v11  ;;  %v13459_v51 = vcombine.high %v7386_v48, %v7390_v31  ;;  %v7614_v55 = vld [vmem:[#allocation8 + $0x16f8] sm:$0xff] }
 0x5d7   : > { %10908 = vmatpush2.bf16.msra.mxu0 %v13386_v46  ;;  %v7506_v46 = vld [vmem:[#allocation8 + $0x1038] sm:$0xff] }
 0x5d8   : > { %10963 = vmatprep.subr.bf16.mxu0 %v13635_v60  ;;  %v13586_v60 = vcombine.low %v7514_v49, %v7518_v12  ;;  %v13579_v1 = vcombine.high %v7506_v46, %v7510_v26  ;;  %v7486_v39 = vld [vmem:[#allocation8 + $0xef8] sm:$0xff] }
 0x5d9   : > { %10865 = vmatpush2.bf16.msra.mxu1 %v13768_v4  ;;  %v7378_v4 = vld [vmem:[#allocation8 + $0x838] sm:$0xff] }
 0x5da   : > { %10910 = vmatmul.mubr.bf16.vlgmr.msra.gmra.mxu0 %v16358_v17  ;;  %10920 = vmatprep.subr.bf16.mxu1 %v13507_v45  ;;  %v13491_v17 = vcombine.high %v7418_v24, %v7422_v30  ;;  %v13458_v45 = vcombine.low %v7386_v48, %v7390_v31  ;;  %v13451_v0 = vcombine.high %v7378_v4, %v7382_v10  ;;  %v7622_v24 = vld [vmem:[#allocation8 + $0x1778] sm:$0xff]  ;;  %v10567_v31 = vpop.f32.mrf.mxu0 }
 0x5db   : > { %10964 = vmatpush1.bf16.msra.mxu0 %v13634_v6  ;;  %10995 = vmatprep.mubr.bf16.mxu0 %v16359_v25  ;;  %v13611_v25 = vcombine.high %v7538_v7, %v7542_v35  ;;  %v7626_v6 = vld [vmem:[#allocation8 + $0x17b8] sm:$0xff] }
 0x5dc   : > { %10867 = vmatmul.mubr.bf16.vlgmr.msra.gmra.mxu1 %v16360_v15  ;;  %10965 = vmatprep.subr.bf16.mxu0 %v13627_v52  ;;  %v13578_v52 = vcombine.low %v7506_v46, %v7510_v26  ;;  %v13699_v41 = vcombine.high %v7626_v6, %v7630_v47  ;;  %v7494_v7 = vld [vmem:[#allocation8 + $0xf78] sm:$0xff] }
 0x5dd   : > { %10921 = vmatpush1.bf16.msra.mxu1 %v13506_v63  ;;  %10952 = vmatprep.mubr.bf16.mxu1 %v16361_v2  ;;  %v7402_v2 = vld [vmem:[#allocation8 + $0x9b8] sm:$0xff] }
 0x5de   : > { %10922 = vmatprep.subr.bf16.mxu1 %v13499_v13  ;;  %v13475_v14 = vcombine.high %v7402_v2, %v7406_v9  ;;  %v13474_v38 = vcombine.low %v7402_v2, %v7406_v9  ;;  %v7498_v63 = vld [vmem:[#allocation8 + $0xfb8] sm:$0xff]  ;;  %v13450_v13 = vcombine.low %v7378_v4, %v7382_v10 }
 0x5df   : > { %10966 = vmatpush1.bf16.msra.mxu0 %v13626_v42  ;;  %v7618_v42 = vld [vmem:[#allocation8 + $0x1738] sm:$0xff]  ;;  %v13571_v30 = vcombine.high %v7498_v63, %v7502_v27 }
 0x5e0   : > { %10967 = vmatprep.subr.bf16.mxu0 %v13619_v19  ;;  %v13698_v19 = vcombine.low %v7626_v6, %v7630_v47  ;;  %v13691_v35 = vcombine.high %v7618_v42, %v7622_v24  ;;  %v7606_v2 = vld [vmem:[#allocation8 + $0x1678] sm:$0xff] }
 0x5e1   : > { %10923 = vmatpush1.bf16.msra.mxu1 %v13498_v23  ;;  %v7490_v23 = vld [vmem:[#allocation8 + $0xf38] sm:$0xff] }
 0x5e2   : > { %10924 = vmatprep.subr.bf16.mxu1 %v13491_v17  ;;  %v13570_v17 = vcombine.low %v7498_v63, %v7502_v27  ;;  %v13563_v54 = vcombine.high %v7490_v23, %v7494_v7  ;;  %v7478_v20 = vld [vmem:[#allocation8 + $0xe78] sm:$0xff] }
 0x5e3   : > { %10968 = vmatpush1.bf16.msra.mxu0 %v13618_v22  ;;  %v7610_v22 = vld [vmem:[#allocation8 + $0x16b8] sm:$0xff] }
 0x5e4   : > { %10969 = vmatprep.subr.bf16.mxu0 %v13611_v25  ;;  %v13690_v25 = vcombine.low %v7618_v42, %v7622_v24  ;;  %v13683_v36 = vcombine.high %v7610_v22, %v7614_v55  ;;  %v7598_v33 = vld [vmem:[#allocation8 + $0x15f8] sm:$0xff]  ;;  %v10610_v42 = vpop.f32.mrf.mxu1 }
 0x5e5   : > { %10925 = vmatpush1.bf16.msra.mxu1 %v13490_v18  ;;  %v7482_v18 = vld [vmem:[#allocation8 + $0xeb8] sm:$0xff] }
 0x5e6   : > { %10926 = vmatprep.subr.bf16.mxu1 %v13483_v58  ;;  %v13562_v58 = vcombine.low %v7490_v23, %v7494_v7  ;;  %v13555_v9 = vcombine.high %v7482_v18, %v7486_v39  ;;  %v7470_v49 = vld [vmem:[#allocation8 + $0xdf8] sm:$0xff] }
 0x5e7   : > { %10970 = vmatpush1.bf16.msra.mxu0 %v13610_v50  ;;  %v7602_v50 = vld [vmem:[#allocation8 + $0x1638] sm:$0xff] }
 0x5e8   : > { %10971 = vmatprep.subr.bf16.mxu0 %v13603_v34  ;;  %v13682_v34 = vcombine.low %v7610_v22, %v7614_v55  ;;  %v13675_v57 = vcombine.high %v7602_v50, %v7606_v2  ;;  %v7590_v48 = vld [vmem:[#allocation8 + $0x1578] sm:$0xff]  ;;  %v10612_v55 = vpop.f32.mrf.mxu1 }
 0x5e9   : > { %10927 = vmatpush1.bf16.msra.mxu1 %v13482_v8  ;;  %v7474_v8 = vld [vmem:[#allocation8 + $0xe38] sm:$0xff] }
 0x5ea   : > { %10928 = vmatprep.subr.bf16.mxu1 %v13475_v14  ;;  %v13554_v14 = vcombine.low %v7482_v18, %v7486_v39  ;;  %v13547_v11 = vcombine.high %v7474_v8, %v7478_v20  ;;  %v7458_v46 = vld [vmem:[#allocation8 + $0xd38] sm:$0xff] }
 0x5eb   : > { %10972 = vmatpush1.bf16.msra.mxu0 %v13602_v29  ;;  %v7594_v29 = vld [vmem:[#allocation8 + $0x15b8] sm:$0xff] }
 0x5ec   : > { %10973 = vmatprep.subr.bf16.mxu0 %v13595_v3  ;;  %v13674_v3 = vcombine.low %v7602_v50, %v7606_v2  ;;  %v13667_v12 = vcombine.high %v7594_v29, %v7598_v33  ;;  %v7462_v26 = vld [vmem:[#allocation8 + $0xd78] sm:$0xff] }
 0x5ed   : > { %10929 = vmatpush1.bf16.msra.mxu1 %v13474_v38  ;;  %v7466_v38 = vld [vmem:[#allocation8 + $0xdb8] sm:$0xff]  ;;  %v13530_v63 = vcombine.low %v7458_v46, %v7462_v26 }
 0x5ee   : > { %10930 = vmatprep.subr.bf16.mxu1 %v13467_v56  ;;  %v13546_v56 = vcombine.low %v7474_v8, %v7478_v20  ;;  %v7578_v4 = vld [vmem:[#allocation8 + $0x14b8] sm:$0xff] }
 0x5ef   : > { %10974 = vmatpush1.bf16.msra.mxu0 %v13594_v21  ;;  %v7586_v21 = vld [vmem:[#allocation8 + $0x1538] sm:$0xff] }
 0x5f0   : > { %10975 = vmatprep.subr.bf16.mxu0 %v13587_v59  ;;  %v13539_v59 = vcombine.high %v7466_v38, %v7470_v49  ;;  %v7582_v10 = vld [vmem:[#allocation8 + $0x14f8] sm:$0xff]  ;;  %v13658_v6 = vcombine.low %v7586_v21, %v7590_v48 }
 0x5f1   : > { %10931 = vmatpush1.bf16.msra.mxu1 %v13466_v28  ;;  %v13666_v28 = vcombine.low %v7594_v29, %v7598_v33  ;;  %v7450_v47 = vld [vmem:[#allocation8 + $0xcb8] sm:$0xff] }
 0x5f2   : > { %10932 = vmatprep.subr.bf16.mxu1 %v13459_v51  ;;  %v13659_v51 = vcombine.high %v7586_v21, %v7590_v48  ;;  %v7570_v27 = vld [vmem:[#allocation8 + $0x1438] sm:$0xff] }
 0x5f3   : > { %10976 = vmatpush1.bf16.msra.mxu0 %v13586_v60  ;;  %v13538_v60 = vcombine.low %v7466_v38, %v7470_v49  ;;  %v7446_v23 = vld [vmem:[#allocation8 + $0xc78] sm:$0xff] }
 0x5f4   : > { %10977 = vmatprep.subr.bf16.mxu0 %v13579_v1  ;;  %v10569_v1 = vpop.f32.mrf.mxu0  ;;  %v7690_v39 = vld [vmem:[#allocation8 + $0x1bb8] sm:$0xff] }
 0x5f5   : > { %10933 = vmatpush1.bf16.msra.mxu1 %v13458_v45  ;;  %v13531_v45 = vcombine.high %v7458_v46, %v7462_v26  ;;  %v7682_v8 = vld [vmem:[#allocation8 + $0x1b38] sm:$0xff] }
 0x5f6   : > { %10934 = vmatprep.subr.bf16.mxu1 %v13451_v0  ;;  %v7454_v0 = vld [vmem:[#allocation8 + $0xcf8] sm:$0xff] }
 0x5f7   : > { %10978 = vmatpush1.bf16.msra.mxu0 %v13578_v52  ;;  %v13651_v52 = vcombine.high %v7578_v4, %v7582_v10  ;;  %v13523_v24 = vcombine.high %v7450_v47, %v7454_v0  ;;  %v7686_v20 = vld [vmem:[#allocation8 + $0x1b78] sm:$0xff] }
 0x5f8   : > { %10979 = vmatprep.subr.bf16.mxu0 %v13699_v41  ;;  %v7574_v41 = vld [vmem:[#allocation8 + $0x1478] sm:$0xff]  ;;  %v13755_v33 = vcombine.high %v7682_v8, %v7686_v20  ;;  %v13754_v48 = vcombine.low %v7682_v8, %v7686_v20 }
 0x5f9   : > { %10935 = vmatpush1.bf16.msra.mxu1 %v13450_v13  ;;  %v10571_v13 = vpop.f32.mrf.mxu0  ;;  %v13643_v7 = vcombine.high %v7570_v27, %v7574_v41  ;;  %v13642_v18 = vcombine.low %v7570_v27, %v7574_v41  ;;  %v7674_v38 = vld [vmem:[#allocation8 + $0x1ab8] sm:$0xff] }
 0x5fa   : > { %10936 = vmatprep.subr.bf16.mxu1 %v13571_v30  ;;  %v13650_v30 = vcombine.low %v7578_v4, %v7582_v10  ;;  %v7678_v49 = vld [vmem:[#allocation8 + $0x1af8] sm:$0xff] }
 0x5fb   : > { %10980 = vmatpush2.bf16.msra.mxu0 %v13698_v19  ;;  %v7442_v19 = vld [vmem:[#allocation8 + $0xc38] sm:$0xff]  ;;  %v10573_v22 = vpop.f32.mrf.mxu0 }
 0x5fc   : > { %10981 = vmatprep.subr.bf16.mxu0 %v13691_v35  ;;  %v13522_v35 = vcombine.low %v7450_v47, %v7454_v0  ;;  %v13514_v50 = vcombine.low %v7442_v19, %v7446_v23  ;;  %v7670_v4 = vld [vmem:[#allocation8 + $0x1a78] sm:$0xff]  ;;  %v13746_v47 = vcombine.low %v7674_v38, %v7678_v49 }
 0x5fd   : > { %10937 = vmatpush2.bf16.msra.mxu1 %v13570_v17  ;;  %v7772_v17 = vrot.slane %v15919_v32, %v16364_v5  ;;  %v7658_v27 = vld [vmem:[#allocation8 + $0x19b8] sm:$0xff] }
 0x5fe   : > { %10938 = vmatprep.subr.bf16.mxu1 %v13563_v54  ;;  %v13515_v54 = vcombine.high %v7442_v19, %v7446_v23  ;;  %v7662_v41 = vld [vmem:[#allocation8 + $0x19f8] sm:$0xff] }
 0x5ff   : > { %10982 = vmatpush2.bf16.msra.mxu0 %v13690_v25  ;;  %v7776_v25 = vrot.slane %v15919_v32, %v16365_v37  ;;  %v10568_v2 = vadd.f32 %v10567_v31, %v7772_v17  ;;  %v7654_v19 = vld [vmem:[#allocation8 + $0x1978] sm:$0xff]  ;;  %v13730_v23 = vcombine.low %v7658_v27, %v7662_v41 }
 0x600   : > { %10983 = vmatprep.subr.bf16.mxu0 %v13683_v36  ;;  %v7694_v36 = vld [vmem:[#allocation8 + $0x1bf8] sm:$0xff] }
 0x601   : > { %10939 = vmatpush2.bf16.msra.mxu1 %v13562_v58  ;;  %v10653_v58 = vpop.f32.mrf.mxu0  ;;  %v10570_v5 = vadd.f32 %v10569_v1, %v7776_v25  ;;  %v13762_v37 = vcombine.low %v7690_v39, %v7694_v36  ;;  %v7738_v20 = vld [vmem:[#allocation8 + $0x1eb8] sm:$0xff] }
 0x602   : > { %10940 = vmatprep.subr.bf16.mxu1 %v13555_v9  ;;  %v10614_v9 = vpop.f32.mrf.mxu1 }
 0x603   : > { %10984 = vmatpush2.bf16.msra.mxu0 %v13682_v34  ;;  %v13763_v34 = vcombine.high %v7690_v39, %v7694_v36  ;;  %v10613_v29 = vadd.f32 %v10612_v55, %v10570_v5  ;;  %v7754_v36 = vld [vmem:[#allocation8 + $0x1fb8] sm:$0xff] }
 0x604   : > { %10985 = vmatprep.subr.bf16.mxu0 %v13675_v57  ;;  %v10611_v57 = vadd.f32 %v10610_v42, %v10568_v2  ;;  %v10616_v32 = vpop.f32.mrf.mxu1 }
 0x605   : > { %10941 = vmatpush2.bf16.msra.mxu1 %v13554_v14  ;;  %v10655_v14 = vpop.f32.mrf.mxu0 }
 0x606   : > { %10942 = vmatprep.subr.bf16.mxu1 %v13547_v11  ;;  %v10572_v11 = vadd.f32 %v10571_v13, %v7772_v17  ;;  %v7646_v17 = vld [vmem:[#allocation8 + $0x18f8] sm:$0xff] }
 0x607   : > { %10986 = vmatpush2.bf16.msra.mxu0 %v13674_v3  ;;  %v10574_v3 = vadd.f32 %v10573_v22, %v7776_v25  ;;  %v7638_v25 = vld [vmem:[#allocation8 + $0x1878] sm:$0xff] }
 0x608   : > { %10987 = vmatprep.subr.bf16.mxu0 %v13667_v12  ;;  %v10657_v12 = vpop.f32.mrf.mxu0  ;;  %v10615_v31 = vadd.f32 %v10614_v9, %v10572_v11  ;;  %v7746_v9 = vld [vmem:[#allocation8 + $0x1f38] sm:$0xff] }
 0x609   : > { %10943 = vmatpush2.bf16.msra.mxu1 %v13546_v56  ;;  %v10654_v56 = vadd.f32 %v10653_v58, %v10611_v57  ;;  %v7758_v58 = vld [vmem:[#allocation8 + $0x1ff8] sm:$0xff] }
 0x60a   : > { %10944 = vmatprep.subr.bf16.mxu1 %v13539_v59  ;;  %v10617_v59 = vadd.f32 %v10616_v32, %v10574_v3  ;;  %v10659_v10 = vpop.f32.mrf.mxu0  ;;  %v13827_v2 = vcombine.high %v7754_v36, %v7758_v58  ;;  %v13826_v5 = vcombine.low %v7754_v36, %v7758_v58  ;;  %v7742_v57 = vld [vmem:[#allocation8 + $0x1ef8] sm:$0xff] }
 0x60b   : > { %10988 = vmatpush2.bf16.msra.mxu0 %v13666_v28  ;;  %v10656_v28 = vadd.f32 %v10655_v14, %v10613_v29  ;;  %v13811_v29 = vcombine.high %v7738_v20, %v7742_v57  ;;  %v7734_v32 = vld [vmem:[#allocation8 + $0x1e78] sm:$0xff] }
 0x60c   : > { %10989 = vmatprep.subr.bf16.mxu0 %v13659_v51  ;;  %v7722_v3 = vld [vmem:[#allocation8 + $0x1db8] sm:$0xff] }
 0x60d   : > { %10945 = vmatpush2.bf16.msra.mxu1 %v13538_v60  ;;  %v7666_v60 = vld [vmem:[#allocation8 + $0x1a38] sm:$0xff] }
 0x60e   : > { %10946 = vmatprep.subr.bf16.mxu1 %v13531_v45  ;;  %v13738_v42 = vcombine.low %v7666_v60, %v7670_v4 }
 0x60f   : > { %10990 = vmatpush2.bf16.msra.mxu0 %v13658_v6  ;;  %v10658_v6 = vadd.f32 %v10657_v12, %v10615_v31 }
 0x610   : > { %10991 = vmatprep.subr.bf16.mxu0 %v13651_v52 }
 0x611   : > { %10947 = vmatpush2.bf16.msra.mxu1 %v13530_v63 }
 0x612   : > { %10948 = vmatprep.subr.bf16.mxu1 %v13523_v24  ;;  %v13731_v24 = vcombine.high %v7658_v27, %v7662_v41 }
 0x613   : > { %10992 = vmatpush2.bf16.msra.mxu0 %v13650_v30  ;;  %v7650_v30 = vld [vmem:[#allocation8 + $0x1938] sm:$0xff] }
 0x614   : > { %10993 = vmatprep.subr.bf16.mxu0 %v13643_v7  ;;  %v13723_v7 = vcombine.high %v7650_v30, %v7654_v19  ;;  %v13722_v22 = vcombine.low %v7650_v30, %v7654_v19 }
 0x615   : > { %10949 = vmatpush2.bf16.msra.mxu1 %v13522_v35  ;;  %v7642_v35 = vld [vmem:[#allocation8 + $0x18b8] sm:$0xff] }
 0x616   : > { %10950 = vmatprep.subr.bf16.mxu1 %v13515_v54  ;;  %v13715_v55 = vcombine.high %v7642_v35, %v7646_v17  ;;  %v7634_v54 = vld [vmem:[#allocation8 + $0x1838] sm:$0xff] }
 0x617   : > { %10994 = vmatpush2.bf16.msra.mxu0 %v13642_v18  ;;  %v13714_v18 = vcombine.low %v7642_v35, %v7646_v17  ;;  %v13707_v39 = vcombine.high %v7634_v54, %v7638_v25 }
 0x619   : > { %10951 = vmatpush2.bf16.msra.mxu1 %v13514_v50  ;;  %v13706_v50 = vcombine.low %v7634_v54, %v7638_v25 }
 0x61a   : > { %10996 = vmatmul.mubr.bf16.vlgmr.msra.gmra.mxu0 %v16354_v53  ;;  %11006 = vmatprep.subr.bf16.mxu1 %v13763_v34  ;;  %v13747_v53 = vcombine.high %v7674_v38, %v7678_v49  ;;  %v7750_v34 = vld [vmem:[#allocation8 + $0x1f78] sm:$0xff] }
 0x61b   : > { %v13819_v8 = vcombine.high %v7746_v9, %v7750_v34  ;;  %v13818_v14 = vcombine.low %v7746_v9, %v7750_v34  ;;  %v7726_v38 = vld [vmem:[#allocation8 + $0x1df8] sm:$0xff] }
 0x61c   : > { %v10696_v21 = vpop.f32.mrf.mxu1  ;;  %10953 = vmatmul.mubr.bf16.vlgmr.msra.gmra.mxu1 %v16356_v40  ;;  %v10660_v40 = vadd.f32 %v10659_v10, %v10617_v59  ;;  %v13795_v12 = vcombine.high %v7722_v3, %v7726_v38  ;;  %v7706_v59 = vld [vmem:[#allocation8 + $0x1cb8] sm:$0xff] }
 0x61d   : > { %11007 = vmatpush1.bf16.msra.mxu1 %v13762_v37  ;;  %11038 = vmatprep.mubr.bf16.mxu1 %v16357_v43  ;;  %v10697_v26 = vadd.f32 %v10696_v21, %v10654_v56  ;;  %v13739_v43 = vcombine.high %v7666_v60, %v7670_v4  ;;  %v7730_v37 = vld [vmem:[#allocation8 + $0x1e38] sm:$0xff] }
 0x61e   : > { %v10698_v46 = vpop.f32.mrf.mxu1  ;;  %11008 = vmatprep.subr.bf16.mxu1 %v13755_v33  ;;  %v13810_v33 = vcombine.low %v7738_v20, %v7742_v57  ;;  %v13803_v11 = vcombine.high %v7730_v37, %v7734_v32  ;;  %v13802_v49 = vcombine.low %v7730_v37, %v7734_v32  ;;  %v7714_v56 = vld [vmem:[#allocation8 + $0x1d38] sm:$0xff] }
 0x61f   : > { %v10699_v51 = vadd.f32 %v10698_v46, %v10656_v28  ;;  %v7718_v21 = vld [vmem:[#allocation8 + $0x1d78] sm:$0xff] }
 0x620   : > { %v10700_v1 = vpop.f32.mrf.mxu1  ;;  %v13787_v31 = vcombine.high %v7714_v56, %v7718_v21  ;;  %v7710_v28 = vld [vmem:[#allocation8 + $0x1cf8] sm:$0xff]  ;;  %v13786_v46 = vcombine.low %v7714_v56, %v7718_v21 }
 0x621   : > { %v13899_v45 = vpack.c.bf16 %v10699_v51, %v10697_v26  ;;  %11009 = vmatpush1.bf16.msra.mxu1 %v13754_v48  ;;  %v10701_v52 = vadd.f32 %v10700_v1, %v10658_v6  ;;  %v13794_v48 = vcombine.low %v7722_v3, %v7726_v38  ;;  %v7698_v26 = vld [vmem:[#allocation8 + $0x1c38] sm:$0xff]  ;;  %v13778_v60 = vcombine.low %v7706_v59, %v7710_v28  ;;  %v10739_v1 = vpop.f32.mrf.mxu0 }
 0x622   : > { %v10702_v0 = vpop.f32.mrf.mxu1  ;;  %11010 = vmatprep.subr.bf16.mxu1 %v13747_v53  ;;  %v13779_v53 = vcombine.high %v7706_v59, %v7710_v28  ;;  %v7702_v51 = vld [vmem:[#allocation8 + $0x1c78] sm:$0xff] }
 0x623   : > { %11098 = vst [vmem:[%s15930_s26 + $0x8] sm:$0xff] %v13899_v45  ;;  %v10703_v63 = vadd.f32 %v10702_v0, %v10660_v40  ;;  %v13771_v4 = vcombine.high %v7698_v26, %v7702_v51  ;;  %v13770_v10 = vcombine.low %v7698_v26, %v7702_v51  ;;  %v10741_v45 = vpop.f32.mrf.mxu0 }
 0x625   : > { %v13903_v13 = vpack.c.bf16 %v10703_v63, %v10701_v52  ;;  %11011 = vmatpush1.bf16.msra.mxu1 %v13746_v47  ;;  %v10743_v6 = vpop.f32.mrf.mxu0 }
 0x626   : > { %11012 = vmatprep.subr.bf16.mxu1 %v13739_v43  ;;  %v15948_v43 = vld [vmem:[#allocation10 + $0x8] sm:$0xff] }
 0x627   : > { %11102 = vst [vmem:[%s15930_s26 + $0x28] sm:$0xff] %v13903_v13  ;;  %v10745_v47 = vpop.f32.mrf.mxu0  ;;  %v7780_v52 = vrot.slane %v15948_v43, %v16366_v62  ;;  %v7784_v63 = vrot.slane %v15948_v43, %v16367_v16 }
 0x629   : > { %11013 = vmatpush1.bf16.msra.mxu1 %v13738_v42  ;;  %v10740_v13 = vadd.f32 %v10739_v1, %v7780_v52  ;;  %v10742_v42 = vadd.f32 %v10741_v45, %v7784_v63 }
 0x62a   : > { %11014 = vmatprep.subr.bf16.mxu1 %v13731_v24 }
 0x62d   : > { %11015 = vmatpush1.bf16.msra.mxu1 %v13730_v23  ;;  %v10744_v23 = vadd.f32 %v10743_v6, %v7780_v52 }
 0x62e   : > { %11016 = vmatprep.subr.bf16.mxu1 %v13723_v7  ;;  %v10746_v7 = vadd.f32 %v10745_v47, %v7784_v63 }
 0x631   : > { %11017 = vmatpush1.bf16.msra.mxu1 %v13722_v22 }
 0x632   : > { %11018 = vmatprep.subr.bf16.mxu1 %v13715_v55 }
 0x635   : > { %11019 = vmatpush1.bf16.msra.mxu1 %v13714_v18 }
 0x636   : > { %11020 = vmatprep.subr.bf16.mxu1 %v13707_v39 }
 0x639   : > { %11021 = vmatpush1.bf16.msra.mxu1 %v13706_v50 }
 0x63a   : > { %11022 = vmatprep.subr.bf16.mxu1 %v13827_v2 }
 0x63d   : > { %11023 = vmatpush2.bf16.msra.mxu1 %v13826_v5 }
 0x63e   : > { %11024 = vmatprep.subr.bf16.mxu1 %v13819_v8 }
 0x641   : > { %11025 = vmatpush2.bf16.msra.mxu1 %v13818_v14 }
 0x642   : > { %11026 = vmatprep.subr.bf16.mxu1 %v13811_v29 }
 0x645   : > { %11027 = vmatpush2.bf16.msra.mxu1 %v13810_v33 }
 0x646   : > { %11028 = vmatprep.subr.bf16.mxu1 %v13803_v11 }
 0x649   : > { %11029 = vmatpush2.bf16.msra.mxu1 %v13802_v49 }
 0x64a   : > { %11030 = vmatprep.subr.bf16.mxu1 %v13795_v12 }
 0x64d   : > { %11031 = vmatpush2.bf16.msra.mxu1 %v13794_v48 }
 0x64e   : > { %11032 = vmatprep.subr.bf16.mxu1 %v13787_v31 }
 0x651   : > { %11033 = vmatpush2.bf16.msra.mxu1 %v13786_v46 }
 0x652   : > { %11034 = vmatprep.subr.bf16.mxu1 %v13779_v53 }
 0x655   : > { %11035 = vmatpush2.bf16.msra.mxu1 %v13778_v60 }
 0x656   : > { %11036 = vmatprep.subr.bf16.mxu1 %v13771_v4 }
 0x659   : > { %11037 = vmatpush2.bf16.msra.mxu1 %v13770_v10 }
 0x65a   : > { %v10825_v27 = vpop.f32.mrf.mxu0 }
 0x65c   : > { %11039 = vmatmul.mubr.bf16.vlgmr.msra.gmra.mxu1 %v16360_v15  ;;  %v10782_v40 = vpop.f32.mrf.mxu1  ;;  %v10827_v24 = vpop.f32.mrf.mxu0 }
 0x65d   : > { %v10783_v15 = vadd.f32 %v10782_v40, %v10740_v13 }
 0x65e   : > { %v10784_v0 = vpop.f32.mrf.mxu1  ;;  %v10829_v35 = vpop.f32.mrf.mxu0 }
 0x65f   : > { %v10785_v30 = vadd.f32 %v10784_v0, %v10742_v42  ;;  %v10826_v62 = vadd.f32 %v10825_v27, %v10783_v15 }
 0x660   : > { %v10786_v41 = vpop.f32.mrf.mxu1  ;;  %v10831_v39 = vpop.f32.mrf.mxu0 }
 0x661   : > { %v10787_v22 = vadd.f32 %v10786_v41, %v10744_v23  ;;  %v10828_v54 = vadd.f32 %v10827_v24, %v10785_v30 }
 0x662   : > { %v10788_v19 = vpop.f32.mrf.mxu1 }
 0x663   : > { %v10789_v55 = vadd.f32 %v10788_v19, %v10746_v7  ;;  %v10830_v50 = vadd.f32 %v10829_v35, %v10787_v22 }
 0x665   : > { %v10832_v2 = vadd.f32 %v10831_v39, %v10789_v55 }
 0x69c   : > { %v10868_v17 = vpop.f32.mrf.mxu1 }
 0x69d   : > { %v10869_v25 = vadd.f32 %v10868_v17, %v10826_v62 }
 0x69e   : > { %v10870_v16 = vpop.f32.mrf.mxu1 }
 0x69f   : > { %v10871_v18 = vadd.f32 %v10870_v16, %v10828_v54 }
 0x6a0   : > { %v10872_v36 = vpop.f32.mrf.mxu1 }
 0x6a1   : > { %v13900_v58 = vpack.c.bf16 %v10871_v18, %v10869_v25  ;;  %v10873_v34 = vadd.f32 %v10872_v36, %v10830_v50 }
 0x6a2   : > { %v10874_v9 = vpop.f32.mrf.mxu1 }
 0x6a3   : > { %11099 = vst [vmem:[%s15930_s26 + $0x10] sm:$0xff] %v13900_v58  ;;  %v10875_v5 = vadd.f32 %v10874_v9, %v10832_v2 }
 0x6a5   : > { %v13904_v8 = vpack.c.bf16 %v10875_v5, %v10873_v34 }
 0x6a7   : > { %11103 = vst [vmem:[%s15930_s26 + $0x30] sm:$0xff] %v13904_v8 }
 0x6a8   : > { %14203 = shalt.err (!%p14200_p12)
}
 0x6a9   : > { %s14204_s11 = scalar_lea.hbm %s15967_s1, 1024  ;;  %s14208_s17 = scalar_lea.hbm %s16370_s6, 2048 }
 0x6aa   : > { %p14205_p6 = scmp.ne.s32.totalorder %s15967_s1, %s14204_s11  ;;  %p14209_p13 = scmp.lt.s32.totalorder %s15967_s1, %s16370_s6 }
 0x6ab   : > { %p14210_p11 = scmp.lt.s32.totalorder %s14208_s17, %s14204_s11 }
 0x6ac   : > { %p14206_p3 = pnand %p14205_p6, %p14538_p9 }
 0x6ad   : > { %p14211_p0 = por %p14210_p11, %p14209_p13 }
 0x6ae   : > { %p14207_p7 = pneg %p14206_p3 }
 0x6b0   : > { %p14212_p5 = pnand %p14211_p0, %p14207_p7 }
 0x6b2   : > { %14215 = shalt.err (!%p14212_p5)
}
 0x6b3   : > { %s16184_s21 = smov 512   ;;  %s14380_s2 = smov 32  }
 0x6b4   : > { %13932 = dma.vmem_to_hbm [thread:$0]  (%p14538_p9), %s15956_s16, 1024, %s15967_s1, %s15969_s4, %s16184_s21, %s16184_s21, %s14380_s2  }
 0x6b5   : > { %s16371_s5 = sld [smem:[#allocation49_spill]]  ;;  %s12099_s19 = sshll.u32 %s14662_s3, 4  ;;  %s16002_s19 = int_to_ptr.vmem [resolvable:$true] %s12099_s19 }
 0x6b6   : > { %s12068_s17 = scalar_lea.sflag [#allocation4], %s14563_s23  ;;  %s14216_s24 = scalar_lea.vmem %s16002_s19, 1024 }
 0x6b7   : > { %p14217_p10 = scmp.ne.s32.totalorder %s16002_s19, %s14216_s24  ;;  %s14381_s20 = smov [#allocation11]  }
 0x6b8   : > { %s14220_s0 = sshll.u32 %s14381_s20, 4  ;;  %s14221_s0 = int_to_ptr.vmem [resolvable:$false] %s14220_s0 }
 0x6b9   : > { %p14218_p1 = pnand %p14217_p10, %p14538_p9  ;;  %s14222_s16 = scalar_lea.vmem %s14221_s0, 2048 }
 0x6ba   : > { %p14223_p4 = scmp.lt.s32.totalorder %s16002_s19, %s14221_s0  ;;  %p14224_p8 = scmp.lt.s32.totalorder %s14222_s16, %s14216_s24 }
 0x6bb   : > { %s15999_s25 = scalar_lea.hbm %s16371_s5, %s15961_s22  ;;  %p14219_p2 = pneg %p14218_p1 }
 0x6bc   : > { %p14225_p12 = por %p14224_p8, %p14223_p4 }
 0x6be   : > { %p14226_p6 = pnand %p14225_p12, %p14219_p2 }
 0x6c0   : > { %14229 = shalt.err (!%p14226_p6)
}
 0x6c1   : > { %s14230_s3 = scalar_lea.hbm %s15999_s25, 1024  ;;  %s14234_s11 = scalar_lea.hbm %s16371_s5, 2048 }
 0x6c2   : > { %p14231_p3 = scmp.ne.s32.totalorder %s15999_s25, %s14230_s3  ;;  %p14235_p11 = scmp.lt.s32.totalorder %s15999_s25, %s16371_s5 }
 0x6c3   : > { %p14236_p0 = scmp.lt.s32.totalorder %s14234_s11, %s14230_s3 }
 0x6c4   : > { %p14232_p7 = pnand %p14231_p3, %p14538_p9 }
 0x6c5   : > { %p14237_p5 = por %p14236_p0, %p14235_p11 }
 0x6c6   : > { %p14233_p13 = pneg %p14232_p7 }
 0x6c8   : > { %p14238_p10 = pnand %p14237_p5, %p14233_p13 }
 0x6ca   : > { %14241 = shalt.err (!%p14238_p10)
}
 0x6cb   : > { %s16372_s0 = smov 512   ;;  %s13909_s24 = sshll.u32 %s14356_s30, 8 }
 0x6cc   : > { %13931 = dma.vmem_to_hbm [thread:$0]  (%p14538_p9), %s16002_s19, 1024, %s15999_s25, %s12068_s17, %s16372_s0, %s16372_s0, %s14380_s2  }
 0x6cd   : > { %s12156_s16 = sshll.u32 %s15294_s15, 4  ;;  %s12154_s3 = scalar_lea.hbm %s16118_s8, %s13909_s24  ;;  %s12157_s16 = int_to_ptr.vmem [resolvable:$true] %s12156_s16 }
 0x6ce   : > { %s12083_s13 = scalar_lea.sflag [#allocation16], %s14563_s23  ;;  %s14242_s11 = scalar_lea.vmem %s12157_s16, 256 }
 0x6cf   : > { %p14243_p1 = scmp.ne.s32.totalorder %s12157_s16, %s14242_s11  ;;  %s14382_s20 = smov [#allocation15]  }
 0x6d0   : > { %s14246_s5 = sshll.u32 %s14382_s20, 4  ;;  %s14247_s5 = int_to_ptr.vmem [resolvable:$false] %s14246_s5 }
 0x6d1   : > { %p14244_p2 = pnand %p14243_p1, %p14538_p9  ;;  %s14248_s6 = scalar_lea.vmem %s14247_s5, 512 }
 0x6d2   : > { %p14249_p8 = scmp.lt.s32.totalorder %s12157_s16, %s14247_s5  ;;  %p14250_p12 = scmp.lt.s32.totalorder %s14248_s6, %s14242_s11 }
 0x6d3   : > { %p14245_p4 = pneg %p14244_p2 }
 0x6d4   : > { %p14251_p6 = por %p14250_p12, %p14249_p8 }
 0x6d6   : > { %p14252_p3 = pnand %p14251_p6, %p14245_p4 }
 0x6d8   : > { %14255 = shalt.err (!%p14252_p3)
}
 0x6d9   : > { %s14256_s30 = scalar_lea.hbm %s12154_s3, 256  ;;  %s14260_s25 = scalar_lea.hbm %s16118_s8, 512 }
 0x6da   : > { %p14257_p7 = scmp.ne.s32.totalorder %s12154_s3, %s14256_s30  ;;  %p14261_p0 = scmp.lt.s32.totalorder %s12154_s3, %s16118_s8 }
 0x6db   : > { %p14262_p5 = scmp.lt.s32.totalorder %s14260_s25, %s14256_s30 }
 0x6dc   : > { %p14258_p13 = pnand %p14257_p7, %p14538_p9 }
 0x6dd   : > { %p14263_p10 = por %p14262_p5, %p14261_p0 }
 0x6de   : > { %p14259_p11 = pneg %p14258_p13 }
 0x6e0   : > { %p14264_p1 = pnand %p14263_p10, %p14259_p11 }
 0x6e2   : > { %14267 = shalt.err (!%p14264_p1)
}
 0x6e3   : > { %13934 = dma.vmem_to_hbm [thread:$0]  (%p14538_p9), %s12157_s16, 256, %s12154_s3, %s12083_s13   ;;  %v10911_v20 = vpop.f32.mrf.mxu0  ;;  %v10954_v29 = vpop.f32.mrf.mxu1  ;;  %v7788_v33 = vrot.slane %v15948_v43, %v16368_v44  ;;  %v7792_v11 = vrot.slane %v15948_v43, %v16369_v61 }
 0x6e4   : > { %s12137_s5 = sshll.u32 %s15930_s26, 4  ;;  %s16058_s16 = scalar_lea.hbm %s16117_s7, %s15961_s22  ;;  %s16052_s5 = int_to_ptr.vmem [resolvable:$true] %s12137_s5 }
 0x6e5   : > { %v10913_v57 = vpop.f32.mrf.mxu0  ;;  %v10956_v32 = vpop.f32.mrf.mxu1  ;;  %v10912_v49 = vadd.f32 %v10911_v20, %v7788_v33  ;;  %s14268_s21 = scalar_lea.vmem %s16052_s5, 1024  ;;  %s14383_s1 = smov [#allocation14]  }
 0x6e6   : > { %v10914_v12 = vadd.f32 %v10913_v57, %v7792_v11  ;;  %p14269_p2 = scmp.ne.s32.totalorder %s16052_s5, %s14268_s21  ;;  %s14272_s3 = sshll.u32 %s14383_s1, 4  ;;  %s14273_s3 = int_to_ptr.vmem [resolvable:$false] %s14272_s3 }
 0x6e7   : > { %v10915_v14 = vpop.f32.mrf.mxu0  ;;  %v10958_v38 = vpop.f32.mrf.mxu1  ;;  %v10955_v21 = vadd.f32 %v10954_v29, %v10912_v49  ;;  %s14274_s13 = scalar_lea.vmem %s14273_s3, 2048  ;;  %p14275_p12 = scmp.lt.s32.totalorder %s16052_s5, %s14273_s3 }
 0x6e8   : > { %v10957_v48 = vadd.f32 %v10956_v32, %v10914_v12  ;;  %v10916_v59 = vadd.f32 %v10915_v14, %v7788_v33  ;;  %p14270_p4 = pnand %p14269_p2, %p14538_p9  ;;  %p14276_p6 = scmp.lt.s32.totalorder %s14274_s13, %s14268_s21 }
 0x6e9   : > { %v10917_v37 = vpop.f32.mrf.mxu0  ;;  %v10960_v31 = vpop.f32.mrf.mxu1 }
 0x6ea   : > { %v10918_v28 = vadd.f32 %v10917_v37, %v7792_v11  ;;  %v10959_v26 = vadd.f32 %v10958_v38, %v10916_v59  ;;  %p14271_p8 = pneg %p14270_p4  ;;  %p14277_p3 = por %p14276_p6, %p14275_p12 }
 0x6eb   : > { %v10997_v3 = vpop.f32.mrf.mxu0 }
 0x6ec   : > { %v10961_v51 = vadd.f32 %v10960_v31, %v10918_v28  ;;  %v10998_v44 = vadd.f32 %v10997_v3, %v10955_v21  ;;  %p14278_p7 = pnand %p14277_p3, %p14271_p8 }
 0x6ed   : > { %v10999_v56 = vpop.f32.mrf.mxu0 }
 0x6ee   : > { %v11000_v60 = vadd.f32 %v10999_v56, %v10957_v48 }
 0x6ef   : > { %v11001_v46 = vpop.f32.mrf.mxu0 }
 0x6f0   : > { %v11002_v40 = vadd.f32 %v11001_v46, %v10959_v26 }
 0x6f1   : > { %v11003_v1 = vpop.f32.mrf.mxu0 }
 0x6f2   : > { %v11004_v47 = vadd.f32 %v11003_v1, %v10961_v51 }
 0x71c   : > { %v11040_v53 = vpop.f32.mrf.mxu1 }
 0x71d   : > { %v11041_v4 = vadd.f32 %v11040_v53, %v10998_v44 }
 0x71e   : > { %v11042_v61 = vpop.f32.mrf.mxu1 }
 0x71f   : > { %v11043_v10 = vadd.f32 %v11042_v61, %v11000_v60 }
 0x720   : > { %v11044_v45 = vpop.f32.mrf.mxu1 }
 0x721   : > { %v13901_v6 = vpack.c.bf16 %v11043_v10, %v11041_v4  ;;  %v11045_v43 = vadd.f32 %v11044_v45, %v11002_v40 }
 0x722   : > { %v11046_v0 = vpop.f32.mrf.mxu1 }
 0x723   : > { %11100 = vst [vmem:[%s15930_s26 + $0x18] sm:$0xff] %v13901_v6  ;;  %v11047_v52 = vadd.f32 %v11046_v0, %v11004_v47 }
 0x725   : > { %v13905_v63 = vpack.c.bf16 %v11047_v52, %v11045_v43 }
 0x727   : > { %11104 = vst [vmem:[%s15930_s26 + $0x38] sm:$0xff] %v13905_v63 }
 0x728   : > { %14281 = shalt.err (!%p14278_p7)
}
 0x729   : > { %s14282_s22 = scalar_lea.hbm %s16058_s16, 1024  ;;  %s14286_s20 = scalar_lea.hbm %s16117_s7, 2048 }
 0x72a   : > { %p14283_p13 = scmp.ne.s32.totalorder %s16058_s16, %s14282_s22  ;;  %p14287_p5 = scmp.lt.s32.totalorder %s16058_s16, %s16117_s7 }
 0x72b   : > { %p14288_p10 = scmp.lt.s32.totalorder %s14286_s20, %s14282_s22 }
 0x72c   : > { %p14284_p11 = pnand %p14283_p13, %p14538_p9 }
 0x72d   : > { %p14289_p1 = por %p14288_p10, %p14287_p5 }
 0x72e   : > { %p14285_p0 = pneg %p14284_p11 }
 0x730   : > { %p14290_p2 = pnand %p14289_p1, %p14285_p0 }
 0x732   : > { %14293 = shalt.err (!%p14290_p2)
}
 0x733   : > { %13933 = dma.vmem_to_hbm [thread:$0]  (%p14538_p9), %s16052_s5, 1024, %s16058_s16, %s15969_s4, %s16372_s0, %s16372_s0, %s14380_s2  }
 0x734 PF: > { %s12168_s15 = sand.u32 1, %s14344_s27   ;;  %p16373_p4 = scmp.ne.s32.totalorder %s16194_s14, 0 }
 0x735   : > { %p16374_p8 = scmp.ge.s32.totalorder %s14364_s10, 2  ;;  %s12169_s25 = scalar_lea.sflag [#allocation4], %s12168_s15 }
 0x737   : > { %p13957_p12 = pnand %p16374_p8, %p16373_p4 }
 0x739   : > { %p13958_p6 = pneg %p13957_p12 }
 0x73b   : > { %14331 = dma.done.wait (%p13958_p6), %s12169_s25, 1024  }
 0x73c   : > { %14333 = vsyncadd (%p13958_p6), %s12169_s25, 4294966272  ;;  %s16375_s18 = sadd.s32 4294967294, %s14364_s10  }
 0x73d   : > { %s12177_s19 = sand.u32 1, %s16375_s18  }
 0x73e   : > { %s12178_s17 = scalar_lea.sflag [#allocation13], %s12177_s19 }
 0x73f   : > { %14335 = dma.done.wait (%p13958_p6), %s12178_s17, 2048  }
 0x740   : > { %14337 = vsyncadd (%p13958_p6), %s12178_s17, 4294965248  ;;  %s12196_s6 = scalar_lea.sflag [#allocation16], %s12168_s15 }
 0x741   : > { %14339 = dma.done.wait (%p13958_p6), %s12196_s6, 256  }
 0x742   : > { %14341 = vsyncadd (%p13958_p6), %s12196_s6, 4294967040  ;;  %s33_s10 = sadd.s32 1, %s14364_s10   ;;  %s16376_s14 = sld [smem:[#allocation23_spill]] }
 0x743   : > { %p30_p9 = scmp.ge.s32.totalorder %s33_s10, 4   ;;  %s16377_s27 = smov %s14348_s28 }
 0x744   : > { %s16378_s28 = smov %s14352_s29  ;;  %s16379_s29 = smov %s14550_s12 }
 0x745   : > { %s16380_s30 = smov %s14360_s9  ;;  %32 = sbr.rel (!%p30_p9) target bundleno = 20 (0x14), region = 150 }
 0x748   : > { %s16381_s9 = smov %s16376_s14 }
 0x74a   :  { %12201 = vsyncpa [#allocation3], 1 }
 0x74b   :  { %12203 = vsyncpa [#allocation3 + $0x1], 1 }
 0x74c   :  { %12204 = vsyncpa [#allocation6], 1 }
 0x74d   :  { %12205 = vsyncpa [#allocation9], 1 }
 0x74e   :  { %12206 = vsyncpa [#allocation4], 1 }
 0x74f   :  { %12208 = vsyncpa [#allocation4 + $0x1], 1 }
 0x750   :  { %12209 = vsyncpa [#allocation13], 1 }
 0x751   :  { %12211 = vsyncpa [#allocation13 + $0x1], 1 }
 0x752   :  { %12212 = vsyncpa [#allocation16], 1 }
 0x753   :  { %12214 = vsyncpa [#allocation16 + $0x1], 1 }

</bundles_post_ra>
